<compile_context>
chip_gen: v5e
topology: v5e:2x2
jax: 0.10.0
libtpu: 0.0.40
codegen_flags: <defaults>
</compile_context>

<pallas_src>
import functools

import jax
import jax.numpy as jnp
import numpy as np
from jax.experimental import pallas as pl
from jax.experimental.pallas import tpu as pltpu


def _round_up(v, m):
    return (v + m - 1) // m * m


# ---------------------------------------------------------------------------
# Kernel 1: fused conv block
#   stacked im2col matmul (bf16 x bf16 -> f32 MXU) + bias + ReLU
#   + MaxPool2d(3, stride=1, padding=1) done in-register with pltpu.roll
# ---------------------------------------------------------------------------
def _roll_rows(y, shift):
    """result[i] = y[i - shift] (wrap-around rows are masked by the caller)."""
    return pltpu.roll(y, shift % y.shape[0], axis=0)


def _conv_block_kernel(x_ref, w_ref, b_ref, pen_ref, o_ref, *, out_w):
    # x_ref : (tile_m, K) bf16 stacked patches; rows are image-major, then
    #         (oh, ow) row-major, each image padded to `mp` rows.
    # w_ref : (K, C) bf16   b_ref: (1, C) f32
    # pen_ref: (tile_m, 4) f32 penalties [left, right, up, down]; 0 where that
    #          pool neighbour exists, 1e30 where it crosses an image border.
    # o_ref : (tile_m, C) bf16 pooled ReLU(conv) output.
    y = jnp.dot(x_ref[...], w_ref[...], preferred_element_type=jnp.float32)
    y = jnp.maximum(y + b_ref[...], 0.0)                      # bias + ReLU (f32)

    # Separable 3x3/s1/p1 max pool on the flattened row grid (W pass, H pass).
    # Values are non-negative post-ReLU, so subtracting 1e30 emulates -inf
    # padding at image borders; pool math stays f32, cast only at the store.
    pen = pen_ref[...]
    y = jnp.maximum(y, _roll_rows(y, 1) - pen[:, 0:1])        # ow - 1
    y = jnp.maximum(y, _roll_rows(y, -1) - pen[:, 1:2])       # ow + 1
    y = jnp.maximum(y, _roll_rows(y, out_w) - pen[:, 2:3])    # oh - 1
    y = jnp.maximum(y, _roll_rows(y, -out_w) - pen[:, 3:4])   # oh + 1
    o_ref[...] = y.astype(o_ref.dtype)                        # bf16 writeback


def _conv_block(patches, w_mat, bias, pen, *, out_w, num_tiles):
    m_total, k = patches.shape
    c = w_mat.shape[1]
    tile_m = m_total // num_tiles
    kernel = functools.partial(_conv_block_kernel, out_w=out_w)
    return pl.pallas_call(
        kernel,
        out_shape=jax.ShapeDtypeStruct((m_total, c), jnp.bfloat16),
        grid=(num_tiles,),
        in_specs=[
            pl.BlockSpec((tile_m, k), lambda i: (i, 0)),
            pl.BlockSpec((k, c), lambda i: (0, 0)),     # weights resident across steps
            pl.BlockSpec((1, c), lambda i: (0, 0)),
            pl.BlockSpec((tile_m, 4), lambda i: (0, 0)),
        ],
        out_specs=pl.BlockSpec((tile_m, c), lambda i: (i, 0)),
        compiler_params=pltpu.CompilerParams(dimension_semantics=("parallel",)),
    )(patches, w_mat, bias, pen)


def _pool_penalty(out_h, out_w, mp, tile_m):
    """(tile_m, 4) f32 penalties for [left, right, up, down] pool neighbours.

    Derived on idx % mp so the penalties are identical for every image in the
    stacked layout (image boundaries are treated exactly like grid borders).
    """
    idx = np.arange(tile_m)
    j = idx % mp
    col = j % out_w
    row = j // out_w
    invalid = np.stack(
        [col == 0, col == out_w - 1, row == 0, row >= out_h - 1], axis=1)
    return jnp.asarray(np.where(invalid, 1e30, 0.0), dtype=jnp.float32)


# ---------------------------------------------------------------------------
# Kernel 2: fused classifier  fc1 + ReLU + fc2 + ReLU + fc3  (weights resident)
# ---------------------------------------------------------------------------
def _classifier_kernel(x_ref, w1_ref, b1_ref, w2_ref, b2_ref, w3_ref, b3_ref, o_ref):
    h = jnp.dot(x_ref[...], w1_ref[...], preferred_element_type=jnp.float32)
    h = jnp.maximum(h + b1_ref[...], 0.0).astype(jnp.bfloat16)
    h = jnp.dot(h, w2_ref[...], preferred_element_type=jnp.float32)
    h = jnp.maximum(h + b2_ref[...], 0.0).astype(jnp.bfloat16)
    h = jnp.dot(h, w3_ref[...], preferred_element_type=jnp.float32)
    o_ref[...] = h + b3_ref[...]


def _classifier(x, w1, b1, w2, b2, w3, b3):
    m = x.shape[0]
    n_out = w3.shape[1]
    operands = (x, w1, b1, w2, b2, w3, b3)
    return pl.pallas_call(
        _classifier_kernel,
        out_shape=jax.ShapeDtypeStruct((m, n_out), jnp.float32),
        grid=(1,),
        in_specs=[pl.BlockSpec(op.shape, lambda i: (0, 0)) for op in operands],
        out_specs=pl.BlockSpec((m, n_out), lambda i: (0, 0)),
        compiler_params=pltpu.CompilerParams(dimension_semantics=("arbitrary",)),
    )(*operands)


# ---------------------------------------------------------------------------
# XLA-side glue: im2col patch extraction (tiny strided slices at this size)
# ---------------------------------------------------------------------------
def _im2col(x_nhwc, ksize, stride, padding, out_h, out_w):
    n = x_nhwc.shape[0]
    xp = jnp.pad(x_nhwc, ((0, 0), (padding, padding), (padding, padding), (0, 0)))
    cols = []
    for kh in range(ksize):
        for kw in range(ksize):
            cols.append(xp[:, kh:kh + stride * (out_h - 1) + 1:stride,
                            kw:kw + stride * (out_w - 1) + 1:stride, :])
    patches = jnp.concatenate(cols, axis=-1)            # (n, oh, ow, k*k*c)
    return patches.reshape(n, out_h * out_w, -1)


# ---------------------------------------------------------------------------
# One-time weight layout preparation (pre-transpose, lane-dense pad, bf16)
# ---------------------------------------------------------------------------
def prepare_params(params):
    # conv1: OIHW (96,3,5,5) -> (kh,kw,cin)-major (75,96) -> pad to (128,128) bf16
    co1, ci1, kh1, kw1 = params["conv1_w"].shape
    w = jnp.transpose(params["conv1_w"], (2, 3, 1, 0)).reshape(kh1 * kw1 * ci1, co1)
    k1p = _round_up(w.shape[0], 128)
    c1p = _round_up(co1, 128)
    conv1_w = jnp.pad(w, ((0, k1p - w.shape[0]), (0, c1p - co1))).astype(jnp.bfloat16)
    conv1_b = jnp.pad(params["conv1_b"], (0, c1p - co1)).reshape(1, c1p).astype(jnp.float32)

    # conv2: OIHW (256,96,5,5) -> (kh,kw,cin)-major (2400,256) bf16.
    # No Cin zero-pad: the 32 conv1 pad channels are sliced off before im2col.
    co2, ci2, kh2, kw2 = params["conv2_w"].shape
    w = jnp.transpose(params["conv2_w"], (2, 3, 1, 0)).reshape(kh2 * kw2 * ci2, co2)
    conv2_w = w.astype(jnp.bfloat16)
    conv2_b = params["conv2_b"].reshape(1, co2).astype(jnp.float32)

    # fc1: stored (K, N); fold the torch.flatten(NCHW) permutation into the
    # rows (CHW -> HWC order) so the NHWC conv2 output flattens directly.
    n1, kin = params["fc1_w"].shape                     # (384, 256*4*4)
    s = int(round((kin // co2) ** 0.5))                 # spatial side (4)
    w = params["fc1_w"].reshape(n1, co2, s, s)
    fc1_w = jnp.transpose(w, (2, 3, 1, 0)).reshape(kin, n1).astype(jnp.bfloat16)
    fc1_b = params["fc1_b"].reshape(1, n1).astype(jnp.float32)

    # fc2 / fc3: (K, N) layout, zero-padded to lane-dense widths (192->256, 10->128).
    n2 = params["fc2_w"].shape[0]
    n2p = _round_up(n2, 128)
    fc2_w = jnp.pad(params["fc2_w"].T, ((0, 0), (0, n2p - n2))).astype(jnp.bfloat16)
    fc2_b = jnp.pad(params["fc2_b"], (0, n2p - n2)).reshape(1, n2p).astype(jnp.float32)
    nc = params["fc3_w"].shape[0]
    ncp = _round_up(nc, 128)
    fc3_w = jnp.pad(params["fc3_w"].T,
                    ((0, n2p - n2), (0, ncp - nc))).astype(jnp.bfloat16)
    fc3_b = jnp.pad(params["fc3_b"], (0, ncp - nc)).reshape(1, ncp).astype(jnp.float32)

    return {"conv1_w": conv1_w, "conv1_b": conv1_b,
            "conv2_w": conv2_w, "conv2_b": conv2_b,
            "fc1_w": fc1_w, "fc1_b": fc1_b,
            "fc2_w": fc2_w, "fc2_b": fc2_b,
            "fc3_w": fc3_w, "fc3_b": fc3_b}


# ---------------------------------------------------------------------------
# miniAlexNet forward (matches PyTorch module semantics)
# ---------------------------------------------------------------------------
def mini_alexnet_forward(x_nchw, prep, num_classes=10):
    n, _, h, w = x_nchw.shape
    # bf16 NHWC input: halves im2col/pad glue bytes; matmuls are bf16 anyway.
    x = jnp.transpose(x_nchw, (0, 2, 3, 1)).astype(jnp.bfloat16)

    # >=2 parallel grid steps when the batch allows it (v7x has 2 TensorCores);
    # each tile holds whole images so the in-tile pooling never crosses a tile.
    num_tiles = 2 if n % 2 == 0 else 1

    # ---- conv block 1: Conv(3->96, k5,s3,p2) + ReLU + MaxPool(3,s1,p1) ----
    oh1 = (h + 4 - 5) // 3 + 1
    ow1 = (w + 4 - 5) // 3 + 1
    mp1 = _round_up(oh1 * ow1, 8)                    # per-image rows, 8-aligned
    k1p, c1p = prep["conv1_w"].shape
    p1 = _im2col(x, 5, 3, 2, oh1, ow1)               # (n, oh1*ow1, 75) bf16
    p1 = jnp.pad(p1, ((0, 0), (0, mp1 - oh1 * ow1), (0, k1p - p1.shape[-1])))
    p1 = p1.reshape(n * mp1, k1p)                    # stacked-batch M dimension
    pen1 = _pool_penalty(oh1, ow1, mp1, (n // num_tiles) * mp1)
    f1 = _conv_block(p1, prep["conv1_w"], prep["conv1_b"], pen1,
                     out_w=ow1, num_tiles=num_tiles)           # (n*mp1, 128) bf16
    c_in2 = prep["conv2_w"].shape[0] // 25           # real conv1 channels (96)
    f1 = f1.reshape(n, mp1, c1p)[:, :oh1 * ow1, :c_in2].reshape(n, oh1, ow1, c_in2)

    # ---- conv block 2: Conv(96->256, k5,s3,p2) + ReLU + MaxPool(3,s1,p1) ----
    oh2 = (oh1 + 4 - 5) // 3 + 1
    ow2 = (ow1 + 4 - 5) // 3 + 1
    mp2 = _round_up(oh2 * ow2, 8)
    p2 = _im2col(f1, 5, 3, 2, oh2, ow2)              # (n, oh2*ow2, 2400) bf16
    if mp2 > oh2 * ow2:
        p2 = jnp.pad(p2, ((0, 0), (0, mp2 - oh2 * ow2), (0, 0)))
    p2 = p2.reshape(n * mp2, -1)
    pen2 = _pool_penalty(oh2, ow2, mp2, (n // num_tiles) * mp2)
    f2 = _conv_block(p2, prep["conv2_w"], prep["conv2_b"], pen2,
                     out_w=ow2, num_tiles=num_tiles)           # (n*mp2, 256) bf16
    c2 = prep["conv2_w"].shape[1]
    f2 = f2.reshape(n, mp2, c2)[:, :oh2 * ow2, :]

    # torch.flatten(x, 1): the CHW->HWC permutation lives in fc1's weights, so
    # the NHWC row-major conv2 output flattens with a plain reshape.
    feat = f2.reshape(n, oh2 * ow2 * c2)             # (n, 4096) bf16

    # ---- classifier: fc1 + ReLU + fc2 + ReLU + fc3, one fused kernel ----
    m_pad = _round_up(n, 8)
    xc = jnp.pad(feat, ((0, m_pad - n), (0, 0)))     # stays bf16
    logits = _classifier(xc, prep["fc1_w"], prep["fc1_b"],
                         prep["fc2_w"], prep["fc2_b"],
                         prep["fc3_w"], prep["fc3_b"])         # (m_pad, 128) f32
    return logits[:n, :num_classes]


# ---------------------------------------------------------------------------
# Deterministic parameter init (PyTorch weight shape conventions)
# ---------------------------------------------------------------------------
def init_params(key, num_classes=10):
    ks = jax.random.split(key, 10)

    def w(k, shape, fan_in):
        return jax.random.normal(k, shape, jnp.float32) / jnp.sqrt(float(fan_in))

    def b(k, shape):
        return 0.1 * jax.random.normal(k, shape, jnp.float32)

    return {
        "conv1_w": w(ks[0], (96, 3, 5, 5), 3 * 5 * 5),
        "conv1_b": b(ks[1], (96,)),
        "conv2_w": w(ks[2], (256, 96, 5, 5), 96 * 5 * 5),
        "conv2_b": b(ks[3], (256,)),
        "fc1_w": w(ks[4], (384, 256 * 4 * 4), 256 * 4 * 4),
        "fc1_b": b(ks[5], (384,)),
        "fc2_w": w(ks[6], (192, 384), 384),
        "fc2_b": b(ks[7], (192,)),
        "fc3_w": w(ks[8], (num_classes, 192), 192),
        "fc3_b": b(ks[9], (num_classes,)),
    }


# ---------------------------------------------------------------------------
# Pure-JAX f32 reference (mirrors the PyTorch forward) for correctness checking
# ---------------------------------------------------------------------------
def reference_forward(x_nchw, params):
    hi = jax.lax.Precision.HIGHEST

    def conv(x, wt, bias, stride, pad):
        y = jax.lax.conv_general_dilated(
            x, wt, window_strides=(stride, stride),
            padding=[(pad, pad), (pad, pad)],
            dimension_numbers=("NCHW", "OIHW", "NCHW"), precision=hi)
        return y + bias[None, :, None, None]

    def maxpool(x):
        return jax.lax.reduce_window(
            x, -jnp.inf, jax.lax.max, (1, 1, 3, 3), (1, 1, 1, 1),
            [(0, 0), (0, 0), (1, 1), (1, 1)])

    x = jnp.maximum(conv(x_nchw, params["conv1_w"], params["conv1_b"], 3, 2), 0.0)
    x = maxpool(x)
    x = jnp.maximum(conv(x, params["conv2_w"], params["conv2_b"], 3, 2), 0.0)
    x = maxpool(x)
    x = x.reshape(x.shape[0], -1)
    x = jnp.maximum(jnp.dot(x, params["fc1_w"].T, precision=hi) + params["fc1_b"], 0.0)
    x = jnp.maximum(jnp.dot(x, params["fc2_w"].T, precision=hi) + params["fc2_b"], 0.0)
    return jnp.dot(x, params["fc3_w"].T, precision=hi) + params["fc3_b"]


if __name__ == "__main__":
    key = jax.random.PRNGKey(0)
    pkey, xkey = jax.random.split(key)
    params = init_params(pkey, num_classes=10)
    prep = prepare_params(params)          # one-time weight layout prep (not per step)
    # batch=2, PyTorch NCHW input; 32x32 spatial is required by the 256*4*4 flatten.
    x = jax.random.normal(xkey, (2, 3, 32, 32), jnp.float32)

    out = jax.block_until_ready(jax.jit(mini_alexnet_forward)(x, prep))
    assert out.shape == (2, 10)

    # bf16 matmul operands (f32 accumulation) vs f32 reference -> loose tolerance.
    ref = reference_forward(x, params)
    np.testing.assert_allclose(np.asarray(out), np.asarray(ref), rtol=2e-2, atol=2e-2)

    print("KERNEL_OK")
</pallas_src>

<mosaic_0001>
module attributes {stable_mosaic.version = 11 : i64} {
  func.func @_conv_block_kernel(%arg0: i32, %arg1: memref<128x128xbf16, #tpu.memory_space<vmem>>, %arg2: memref<128x128xbf16, #tpu.memory_space<vmem>>, %arg3: memref<1x128xf32, #tpu.memory_space<vmem>>, %arg4: memref<128x4xf32, #tpu.memory_space<vmem>>, %arg5: memref<128x128xbf16, #tpu.memory_space<vmem>>) attributes {dimension_semantics = [#tpu.dimension_semantics<parallel>], iteration_bounds = array<i64: 2>, scalar_prefetch = 0 : i64, scratch_operands = 0 : i64, tpu.core_type = #tpu.core_type<tc>, window_params = [{transform_indices = @transform_0, window_bounds = array<i64: 128, 128>}, {pipeline_mode = #tpu.pipeline_mode<synchronous>, transform_indices = @transform_1, window_bounds = array<i64: 128, 128>}, {pipeline_mode = #tpu.pipeline_mode<synchronous>, transform_indices = @transform_2, window_bounds = array<i64: 1, 128>}, {pipeline_mode = #tpu.pipeline_mode<synchronous>, transform_indices = @transform_3, window_bounds = array<i64: 128, 4>}, {transform_indices = @transform_4, window_bounds = array<i64: 128, 128>}]} {
    %c0 = arith.constant 0 : index
    %c0_0 = arith.constant 0 : index
    %0 = vector.load %arg1[%c0, %c0_0] : memref<128x128xbf16, #tpu.memory_space<vmem>>, vector<128x128xbf16>
    %c0_1 = arith.constant 0 : index
    %c0_2 = arith.constant 0 : index
    %1 = vector.load %arg2[%c0_1, %c0_2] : memref<128x128xbf16, #tpu.memory_space<vmem>>, vector<128x128xbf16>
    %cst = arith.constant dense<0.000000e+00> : vector<128x128xf32>
    %2 = tpu.matmul %0, %1, %cst {dimension_numbers = #tpu.dot_dimension_numbers<[1], [0], [0], [1], [0, 0, 1, 1], [], []>} : vector<128x128xbf16>, vector<128x128xbf16>, vector<128x128xf32> -> vector<128x128xf32>
    %c0_3 = arith.constant 0 : index
    %c0_4 = arith.constant 0 : index
    %3 = vector.load %arg3[%c0_3, %c0_4] : memref<1x128xf32, #tpu.memory_space<vmem>>, vector<1x128xf32>
    %4 = vector.broadcast %3 : vector<1x128xf32> to vector<128x128xf32>
    %5 = arith.addf %2, %4 : vector<128x128xf32>
    %cst_5 = arith.constant 0.000000e+00 : f32
    %6 = vector.broadcast %cst_5 : f32 to vector<128x128xf32>
    %7 = arith.maximumf %5, %6 : vector<128x128xf32>
    %c0_6 = arith.constant 0 : index
    %c0_7 = arith.constant 0 : index
    %8 = vector.load %arg4[%c0_6, %c0_7] : memref<128x4xf32, #tpu.memory_space<vmem>>, vector<128x4xf32>
    %c1_i32 = arith.constant 1 : i32
    %9 = tpu.dynamic_rotate %7 by %c1_i32 dim 0 : vector<128x128xf32>, i32 -> vector<128x128xf32>
    %10 = vector.extract_strided_slice %8 {offsets = [0, 0], sizes = [128, 1], strides = [1, 1]} : vector<128x4xf32> to vector<128x1xf32>
    %11 = vector.broadcast %10 : vector<128x1xf32> to vector<128x128xf32>
    %12 = arith.subf %9, %11 : vector<128x128xf32>
    %13 = arith.maximumf %7, %12 : vector<128x128xf32>
    %c127_i32 = arith.constant 127 : i32
    %14 = tpu.dynamic_rotate %13 by %c127_i32 dim 0 : vector<128x128xf32>, i32 -> vector<128x128xf32>
    %15 = vector.extract_strided_slice %8 {offsets = [0, 1], sizes = [128, 1], strides = [1, 1]} : vector<128x4xf32> to vector<128x1xf32>
    %16 = vector.broadcast %15 : vector<128x1xf32> to vector<128x128xf32>
    %17 = arith.subf %14, %16 : vector<128x128xf32>
    %18 = arith.maximumf %13, %17 : vector<128x128xf32>
    %c11_i32 = arith.constant 11 : i32
    %19 = tpu.dynamic_rotate %18 by %c11_i32 dim 0 : vector<128x128xf32>, i32 -> vector<128x128xf32>
    %20 = vector.extract_strided_slice %8 {offsets = [0, 2], sizes = [128, 1], strides = [1, 1]} : vector<128x4xf32> to vector<128x1xf32>
    %21 = vector.broadcast %20 : vector<128x1xf32> to vector<128x128xf32>
    %22 = arith.subf %19, %21 : vector<128x128xf32>
    %23 = arith.maximumf %18, %22 : vector<128x128xf32>
    %c117_i32 = arith.constant 117 : i32
    %24 = tpu.dynamic_rotate %23 by %c117_i32 dim 0 : vector<128x128xf32>, i32 -> vector<128x128xf32>
    %25 = vector.extract_strided_slice %8 {offsets = [0, 3], sizes = [128, 1], strides = [1, 1]} : vector<128x4xf32> to vector<128x1xf32>
    %26 = vector.broadcast %25 : vector<128x1xf32> to vector<128x128xf32>
    %27 = arith.subf %24, %26 : vector<128x128xf32>
    %28 = arith.maximumf %23, %27 : vector<128x128xf32>
    %29 = arith.truncf %28 : vector<128x128xf32> to vector<128x128xbf16>
    %c0_8 = arith.constant 0 : index
    %c0_9 = arith.constant 0 : index
    %30 = vector.load %arg5[%c0_8, %c0_9] : memref<128x128xbf16, #tpu.memory_space<vmem>>, vector<128x128xbf16>
    tpu.vector_store %arg5[%c0_8, %c0_9], %29 {strides = array<i32>} : memref<128x128xbf16, #tpu.memory_space<vmem>>, vector<128x128xbf16>,
    return
  }
  func.func @transform_0(%arg0: i32) -> (i32, i32) {
    %c0_i32 = arith.constant 0 : i32
    %c0_i32_0 = arith.constant 0 : i32
    return %arg0, %c0_i32 : i32, i32
  }
  func.func @transform_1(%arg0: i32) -> (i32, i32) {
    %c0_i32 = arith.constant 0 : i32
    %c0_i32_0 = arith.constant 0 : i32
    %c0_i32_1 = arith.constant 0 : i32
    return %c0_i32, %c0_i32_0 : i32, i32
  }
  func.func @transform_2(%arg0: i32) -> (i32, i32) {
    %c0_i32 = arith.constant 0 : i32
    %c0_i32_0 = arith.constant 0 : i32
    %c0_i32_1 = arith.constant 0 : i32
    return %c0_i32, %c0_i32_0 : i32, i32
  }
  func.func @transform_3(%arg0: i32) -> (i32, i32) {
    %c0_i32 = arith.constant 0 : i32
    %c0_i32_0 = arith.constant 0 : i32
    %c0_i32_1 = arith.constant 0 : i32
    return %c0_i32, %c0_i32_0 : i32, i32
  }
  func.func @transform_4(%arg0: i32) -> (i32, i32) {
    %c0_i32 = arith.constant 0 : i32
    %c0_i32_0 = arith.constant 0 : i32
    return %arg0, %c0_i32 : i32, i32
  }
}

module attributes {stable_mosaic.version = 11 : i64} {
  func.func @_conv_block_kernel(%arg0: i32, %arg1: memref<16x2400xbf16, #tpu.memory_space<vmem>>, %arg2: memref<2400x256xbf16, #tpu.memory_space<vmem>>, %arg3: memref<1x256xf32, #tpu.memory_space<vmem>>, %arg4: memref<16x4xf32, #tpu.memory_space<vmem>>, %arg5: memref<16x256xbf16, #tpu.memory_space<vmem>>) attributes {dimension_semantics = [#tpu.dimension_semantics<parallel>], iteration_bounds = array<i64: 2>, scalar_prefetch = 0 : i64, scratch_operands = 0 : i64, tpu.core_type = #tpu.core_type<tc>, window_params = [{transform_indices = @transform_0, window_bounds = array<i64: 16, 2400>}, {pipeline_mode = #tpu.pipeline_mode<synchronous>, transform_indices = @transform_1, window_bounds = array<i64: 2400, 256>}, {pipeline_mode = #tpu.pipeline_mode<synchronous>, transform_indices = @transform_2, window_bounds = array<i64: 1, 256>}, {pipeline_mode = #tpu.pipeline_mode<synchronous>, transform_indices = @transform_3, window_bounds = array<i64: 16, 4>}, {transform_indices = @transform_4, window_bounds = array<i64: 16, 256>}]} {
    %c0 = arith.constant 0 : index
    %c0_0 = arith.constant 0 : index
    %0 = vector.load %arg1[%c0, %c0_0] : memref<16x2400xbf16, #tpu.memory_space<vmem>>, vector<16x2400xbf16>
    %c0_1 = arith.constant 0 : index
    %c0_2 = arith.constant 0 : index
    %1 = vector.load %arg2[%c0_1, %c0_2] : memref<2400x256xbf16, #tpu.memory_space<vmem>>, vector<2400x256xbf16>
    %cst = arith.constant dense<0.000000e+00> : vector<16x256xf32>
    %2 = tpu.matmul %0, %1, %cst {dimension_numbers = #tpu.dot_dimension_numbers<[1], [0], [0], [1], [0, 0, 1, 1], [], []>} : vector<16x2400xbf16>, vector<2400x256xbf16>, vector<16x256xf32> -> vector<16x256xf32>
    %c0_3 = arith.constant 0 : index
    %c0_4 = arith.constant 0 : index
    %3 = vector.load %arg3[%c0_3, %c0_4] : memref<1x256xf32, #tpu.memory_space<vmem>>, vector<1x256xf32>
    %4 = vector.broadcast %3 : vector<1x256xf32> to vector<16x256xf32>
    %5 = arith.addf %2, %4 : vector<16x256xf32>
    %cst_5 = arith.constant 0.000000e+00 : f32
    %6 = vector.broadcast %cst_5 : f32 to vector<16x256xf32>
    %7 = arith.maximumf %5, %6 : vector<16x256xf32>
    %c0_6 = arith.constant 0 : index
    %c0_7 = arith.constant 0 : index
    %8 = vector.load %arg4[%c0_6, %c0_7] : memref<16x4xf32, #tpu.memory_space<vmem>>, vector<16x4xf32>
    %c1_i32 = arith.constant 1 : i32
    %9 = tpu.dynamic_rotate %7 by %c1_i32 dim 0 : vector<16x256xf32>, i32 -> vector<16x256xf32>
    %10 = vector.extract_strided_slice %8 {offsets = [0, 0], sizes = [16, 1], strides = [1, 1]} : vector<16x4xf32> to vector<16x1xf32>
    %11 = vector.broadcast %10 : vector<16x1xf32> to vector<16x256xf32>
    %12 = arith.subf %9, %11 : vector<16x256xf32>
    %13 = arith.maximumf %7, %12 : vector<16x256xf32>
    %c15_i32 = arith.constant 15 : i32
    %14 = tpu.dynamic_rotate %13 by %c15_i32 dim 0 : vector<16x256xf32>, i32 -> vector<16x256xf32>
    %15 = vector.extract_strided_slice %8 {offsets = [0, 1], sizes = [16, 1], strides = [1, 1]} : vector<16x4xf32> to vector<16x1xf32>
    %16 = vector.broadcast %15 : vector<16x1xf32> to vector<16x256xf32>
    %17 = arith.subf %14, %16 : vector<16x256xf32>
    %18 = arith.maximumf %13, %17 : vector<16x256xf32>
    %c4_i32 = arith.constant 4 : i32
    %19 = tpu.dynamic_rotate %18 by %c4_i32 dim 0 : vector<16x256xf32>, i32 -> vector<16x256xf32>
    %20 = vector.extract_strided_slice %8 {offsets = [0, 2], sizes = [16, 1], strides = [1, 1]} : vector<16x4xf32> to vector<16x1xf32>
    %21 = vector.broadcast %20 : vector<16x1xf32> to vector<16x256xf32>
    %22 = arith.subf %19, %21 : vector<16x256xf32>
    %23 = arith.maximumf %18, %22 : vector<16x256xf32>
    %c12_i32 = arith.constant 12 : i32
    %24 = tpu.dynamic_rotate %23 by %c12_i32 dim 0 : vector<16x256xf32>, i32 -> vector<16x256xf32>
    %25 = vector.extract_strided_slice %8 {offsets = [0, 3], sizes = [16, 1], strides = [1, 1]} : vector<16x4xf32> to vector<16x1xf32>
    %26 = vector.broadcast %25 : vector<16x1xf32> to vector<16x256xf32>
    %27 = arith.subf %24, %26 : vector<16x256xf32>
    %28 = arith.maximumf %23, %27 : vector<16x256xf32>
    %29 = arith.truncf %28 : vector<16x256xf32> to vector<16x256xbf16>
    %c0_8 = arith.constant 0 : index
    %c0_9 = arith.constant 0 : index
    %30 = vector.load %arg5[%c0_8, %c0_9] : memref<16x256xbf16, #tpu.memory_space<vmem>>, vector<16x256xbf16>
    tpu.vector_store %arg5[%c0_8, %c0_9], %29 {strides = array<i32>} : memref<16x256xbf16, #tpu.memory_space<vmem>>, vector<16x256xbf16>,
    return
  }
  func.func @transform_0(%arg0: i32) -> (i32, i32) {
    %c0_i32 = arith.constant 0 : i32
    %c0_i32_0 = arith.constant 0 : i32
    return %arg0, %c0_i32 : i32, i32
  }
  func.func @transform_1(%arg0: i32) -> (i32, i32) {
    %c0_i32 = arith.constant 0 : i32
    %c0_i32_0 = arith.constant 0 : i32
    %c0_i32_1 = arith.constant 0 : i32
    return %c0_i32, %c0_i32_0 : i32, i32
  }
  func.func @transform_2(%arg0: i32) -> (i32, i32) {
    %c0_i32 = arith.constant 0 : i32
    %c0_i32_0 = arith.constant 0 : i32
    %c0_i32_1 = arith.constant 0 : i32
    return %c0_i32, %c0_i32_0 : i32, i32
  }
  func.func @transform_3(%arg0: i32) -> (i32, i32) {
    %c0_i32 = arith.constant 0 : i32
    %c0_i32_0 = arith.constant 0 : i32
    %c0_i32_1 = arith.constant 0 : i32
    return %c0_i32, %c0_i32_0 : i32, i32
  }
  func.func @transform_4(%arg0: i32) -> (i32, i32) {
    %c0_i32 = arith.constant 0 : i32
    %c0_i32_0 = arith.constant 0 : i32
    return %arg0, %c0_i32 : i32, i32
  }
}

module attributes {stable_mosaic.version = 11 : i64} {
  func.func @_classifier_kernel(%arg0: i32, %arg1: memref<8x4096xbf16, #tpu.memory_space<vmem>>, %arg2: memref<4096x384xbf16, #tpu.memory_space<vmem>>, %arg3: memref<1x384xf32, #tpu.memory_space<vmem>>, %arg4: memref<384x256xbf16, #tpu.memory_space<vmem>>, %arg5: memref<1x256xf32, #tpu.memory_space<vmem>>, %arg6: memref<256x128xbf16, #tpu.memory_space<vmem>>, %arg7: memref<1x128xf32, #tpu.memory_space<vmem>>, %arg8: memref<8x128xf32, #tpu.memory_space<vmem>>) attributes {dimension_semantics = [#tpu.dimension_semantics<arbitrary>], iteration_bounds = array<i64: 1>, scalar_prefetch = 0 : i64, scratch_operands = 0 : i64, tpu.core_type = #tpu.core_type<tc>, window_params = [{pipeline_mode = #tpu.pipeline_mode<synchronous>, transform_indices = @transform_0, window_bounds = array<i64: 8, 4096>}, {pipeline_mode = #tpu.pipeline_mode<synchronous>, transform_indices = @transform_1, window_bounds = array<i64: 4096, 384>}, {pipeline_mode = #tpu.pipeline_mode<synchronous>, transform_indices = @transform_2, window_bounds = array<i64: 1, 384>}, {pipeline_mode = #tpu.pipeline_mode<synchronous>, transform_indices = @transform_3, window_bounds = array<i64: 384, 256>}, {pipeline_mode = #tpu.pipeline_mode<synchronous>, transform_indices = @transform_4, window_bounds = array<i64: 1, 256>}, {pipeline_mode = #tpu.pipeline_mode<synchronous>, transform_indices = @transform_5, window_bounds = array<i64: 256, 128>}, {pipeline_mode = #tpu.pipeline_mode<synchronous>, transform_indices = @transform_6, window_bounds = array<i64: 1, 128>}, {pipeline_mode = #tpu.pipeline_mode<synchronous>, transform_indices = @transform_7, window_bounds = array<i64: 8, 128>}]} {
    %c0 = arith.constant 0 : index
    %c0_0 = arith.constant 0 : index
    %0 = vector.load %arg1[%c0, %c0_0] : memref<8x4096xbf16, #tpu.memory_space<vmem>>, vector<8x4096xbf16>
    %c0_1 = arith.constant 0 : index
    %c0_2 = arith.constant 0 : index
    %1 = vector.load %arg2[%c0_1, %c0_2] : memref<4096x384xbf16, #tpu.memory_space<vmem>>, vector<4096x384xbf16>
    %cst = arith.constant dense<0.000000e+00> : vector<8x384xf32>
    %2 = tpu.matmul %0, %1, %cst {dimension_numbers = #tpu.dot_dimension_numbers<[1], [0], [0], [1], [0, 0, 1, 1], [], []>} : vector<8x4096xbf16>, vector<4096x384xbf16>, vector<8x384xf32> -> vector<8x384xf32>
    %c0_3 = arith.constant 0 : index
    %c0_4 = arith.constant 0 : index
    %3 = vector.load %arg3[%c0_3, %c0_4] : memref<1x384xf32, #tpu.memory_space<vmem>>, vector<1x384xf32>
    %4 = vector.broadcast %3 : vector<1x384xf32> to vector<8x384xf32>
    %5 = arith.addf %2, %4 : vector<8x384xf32>
    %cst_5 = arith.constant 0.000000e+00 : f32
    %6 = vector.broadcast %cst_5 : f32 to vector<8x384xf32>
    %7 = arith.maximumf %5, %6 : vector<8x384xf32>
    %8 = arith.truncf %7 : vector<8x384xf32> to vector<8x384xbf16>
    %c0_6 = arith.constant 0 : index
    %c0_7 = arith.constant 0 : index
    %9 = vector.load %arg4[%c0_6, %c0_7] : memref<384x256xbf16, #tpu.memory_space<vmem>>, vector<384x256xbf16>
    %cst_8 = arith.constant dense<0.000000e+00> : vector<8x256xf32>
    %10 = tpu.matmul %8, %9, %cst_8 {dimension_numbers = #tpu.dot_dimension_numbers<[1], [0], [0], [1], [0, 0, 1, 1], [], []>} : vector<8x384xbf16>, vector<384x256xbf16>, vector<8x256xf32> -> vector<8x256xf32>
    %c0_9 = arith.constant 0 : index
    %c0_10 = arith.constant 0 : index
    %11 = vector.load %arg5[%c0_9, %c0_10] : memref<1x256xf32, #tpu.memory_space<vmem>>, vector<1x256xf32>
    %12 = vector.broadcast %11 : vector<1x256xf32> to vector<8x256xf32>
    %13 = arith.addf %10, %12 : vector<8x256xf32>
    %cst_11 = arith.constant 0.000000e+00 : f32
    %14 = vector.broadcast %cst_11 : f32 to vector<8x256xf32>
    %15 = arith.maximumf %13, %14 : vector<8x256xf32>
    %16 = arith.truncf %15 : vector<8x256xf32> to vector<8x256xbf16>
    %c0_12 = arith.constant 0 : index
    %c0_13 = arith.constant 0 : index
    %17 = vector.load %arg6[%c0_12, %c0_13] : memref<256x128xbf16, #tpu.memory_space<vmem>>, vector<256x128xbf16>
    %cst_14 = arith.constant dense<0.000000e+00> : vector<8x128xf32>
    %18 = tpu.matmul %16, %17, %cst_14 {dimension_numbers = #tpu.dot_dimension_numbers<[1], [0], [0], [1], [0, 0, 1, 1], [], []>} : vector<8x256xbf16>, vector<256x128xbf16>, vector<8x128xf32> -> vector<8x128xf32>
    %c0_15 = arith.constant 0 : index
    %c0_16 = arith.constant 0 : index
    %19 = vector.load %arg7[%c0_15, %c0_16] : memref<1x128xf32, #tpu.memory_space<vmem>>, vector<1x128xf32>
    %20 = vector.broadcast %19 : vector<1x128xf32> to vector<8x128xf32>
    %21 = arith.addf %18, %20 : vector<8x128xf32>
    %c0_17 = arith.constant 0 : index
    %c0_18 = arith.constant 0 : index
    %22 = vector.load %arg8[%c0_17, %c0_18] : memref<8x128xf32, #tpu.memory_space<vmem>>, vector<8x128xf32>
    tpu.vector_store %arg8[%c0_17, %c0_18], %21 {strides = array<i32>} : memref<8x128xf32, #tpu.memory_space<vmem>>, vector<8x128xf32>,
    return
  }
  func.func @transform_0(%arg0: i32) -> (i32, i32) {
    %c0_i32 = arith.constant 0 : i32
    %c0_i32_0 = arith.constant 0 : i32
    %c0_i32_1 = arith.constant 0 : i32
    return %c0_i32, %c0_i32_0 : i32, i32
  }
  func.func @transform_1(%arg0: i32) -> (i32, i32) {
    %c0_i32 = arith.constant 0 : i32
    %c0_i32_0 = arith.constant 0 : i32
    %c0_i32_1 = arith.constant 0 : i32
    return %c0_i32, %c0_i32_0 : i32, i32
  }
  func.func @transform_2(%arg0: i32) -> (i32, i32) {
    %c0_i32 = arith.constant 0 : i32
    %c0_i32_0 = arith.constant 0 : i32
    %c0_i32_1 = arith.constant 0 : i32
    return %c0_i32, %c0_i32_0 : i32, i32
  }
  func.func @transform_3(%arg0: i32) -> (i32, i32) {
    %c0_i32 = arith.constant 0 : i32
    %c0_i32_0 = arith.constant 0 : i32
    %c0_i32_1 = arith.constant 0 : i32
    return %c0_i32, %c0_i32_0 : i32, i32
  }
  func.func @transform_4(%arg0: i32) -> (i32, i32) {
    %c0_i32 = arith.constant 0 : i32
    %c0_i32_0 = arith.constant 0 : i32
    %c0_i32_1 = arith.constant 0 : i32
    return %c0_i32, %c0_i32_0 : i32, i32
  }
  func.func @transform_5(%arg0: i32) -> (i32, i32) {
    %c0_i32 = arith.constant 0 : i32
    %c0_i32_0 = arith.constant 0 : i32
    %c0_i32_1 = arith.constant 0 : i32
    return %c0_i32, %c0_i32_0 : i32, i32
  }
  func.func @transform_6(%arg0: i32) -> (i32, i32) {
    %c0_i32 = arith.constant 0 : i32
    %c0_i32_0 = arith.constant 0 : i32
    %c0_i32_1 = arith.constant 0 : i32
    return %c0_i32, %c0_i32_0 : i32, i32
  }
  func.func @transform_7(%arg0: i32) -> (i32, i32) {
    %c0_i32 = arith.constant 0 : i32
    %c0_i32_0 = arith.constant 0 : i32
    %c0_i32_1 = arith.constant 0 : i32
    return %c0_i32, %c0_i32_0 : i32, i32
  }
}

</mosaic_0001>

<bundles_post_ra>
// kernel: mini_alexnet_forward.3
= control target key start
LH: loop header
LB: loop body
LE: loop exit
PB: predicated region body
PF: predicated region fallthrough
CT: control target
= control target key end

     0   :  { %s1260_s15 = smov 0   ;;  %s1961_s0 = inlined_call_operand.vmem [shape: bf16[256,128], index: 0, kind: input, shape index: {}]   ;;  %s1962_s1 = inlined_call_operand.vmem [shape: bf16[128,128], index: 1, kind: input, shape index: {}]   ;;  %s1963_s2 = inlined_call_operand.vmem [shape: f32[1,128], index: 2, kind: input, shape index: {}]   ;;  %s1964_s3 = inlined_call_operand.vmem [shape: f32[128,4], index: 3, kind: input, shape index: {}]   ;;  %s1965_s4 = inlined_call_operand.vmem [shape: bf16[256,128], index: 4, kind: output, shape index: {}]  }
   0x1 LB: > { %s1036_s16 = sadd.s32 4294967295, %s1229_s15   ;;  %p1040_p0 = scmp.ge.s32.totalorder %s1229_s15, 1  ;;  %s1229_s15 = sphi %s1260_s15, %s14_s15  }
   0x2   : > { %p163_p1 = scmp.lt.s32.totalorder %s1229_s15, 3 }
   0x4   : > { %p164_p2 = pnand %p1040_p0, %p163_p1 }
   0x6   : > { %167 = sbr.rel (%p164_p2) target bundleno = 309 (0x135), region = 36 }
   0xb   : > { %v1271_v0 = vld [vmem:[%s1964_s3 + $0x20] sm:$0xff]  ;;  %v1276_v1 = vld [vmem:[%s1964_s3 + $0x10] sm:$0xff]  ;;  %v1231_v3 = vmov 0   ;;  %v1126_v4 = vld [vmem:[%s1962_s1 + $0x38] sm:$0xff]  ;;  %s1041_s13 = sshll.u32 %s1036_s16, 4  ;;  %v1232_v29 = vmov 1   ;;  %v430_v61 = vlaneseq }
   0xc   : > { %v1281_v2 = vld [vmem:[%s1964_s3] sm:$0xff]  ;;  %1212 = vset.pattern.permute.xlu2 %v1231_v3  ;;  %1211 = vset.pattern.permute.xlu1 %v1231_v3  ;;  %v1125_v5 = vld [vmem:[%s1962_s1 + $0x30] sm:$0xff]  ;;  %v1295_v6 = vld [vmem:[%s1964_s3 + $0x28] sm:$0xff]  ;;  %p190_p3 = scmp.lt.s32.totalorder %s1041_s13, 31  ;;  %v1233_v34 = vmov 2   ;;  %v1234_v44 = vmov 3  }
   0xd   : > { %1210 = vset.pattern.permute.xlu0 %v1231_v3  ;;  %471 = vperm.xlu2 %1212, %v1271_v0   ;;  %v1300_v7 = vld [vmem:[%s1964_s3 + $0x18] sm:$0xff]  ;;  %v1305_v8 = vld [vmem:[%s1964_s3 + $0x8] sm:$0xff]  ;;  %v1123_v10 = vld [vmem:[%s1962_s1 + $0x20] sm:$0xff] }
   0xe   : > { %461 = vperm.xlu1 %1211, %v1276_v1   ;;  %451 = vperm.xlu0 %1210, %v1281_v2   ;;  %v1124_v9 = vld [vmem:[%s1962_s1 + $0x28] sm:$0xff]  ;;  %v1319_v11 = vld [vmem:[%s1964_s3 + $0x40] sm:$0xff]  ;;  %v1326_v12 = vld [vmem:[%s1964_s3 + $0x38] sm:$0xff]  ;;  %s1987_s13 = smov (!%p190_p3, %s1041_s13), 31 }
   0xf   : > { %333 = vmatpush.bf16.msra.mxu0 %v1126_v4  ;;  %1174 = vmatpush.bf16.msra.mxu1 %v1126_v4  ;;  %v1331_v13 = vld [vmem:[%s1964_s3 + $0x30] sm:$0xff]  ;;  %v1122_v14 = vld [vmem:[%s1962_s1 + $0x18] sm:$0xff]  ;;  %v1357_v18 = vld [vmem:[%s1964_s3 + $0x48] sm:$0xff]  ;;  %s1042_s5 = sshll.u32 %s1987_s13, 2 }
  0x10   : > { %1175 = vmatpush.bf16.msra.mxu2 %v1126_v4  ;;  %1176 = vmatpush.bf16.msra.mxu3 %v1126_v4  ;;  %v1121_v15 = vld [vmem:[%s1962_s1 + $0x10] sm:$0xff]  ;;  %v1347_v16 = vld [vmem:[%s1964_s3 + $0x58] sm:$0xff]  ;;  %v1120_v19 = vld [vmem:[%s1962_s1 + $0x8] sm:$0xff]  ;;  %s193_s10 = scalar_lea.vmem %s1961_s0, %s1042_s5  ;;  %s1928_s25 = scalar_lea.vmem %s1965_s4, %s1042_s5 }
  0x11   : > { %v1352_v17 = vld [vmem:[%s1964_s3 + $0x50] sm:$0xff]  ;;  %v1119_v20 = vld [vmem:[%s1962_s1] sm:$0xff]  ;;  %v1382_v22 = vld [vmem:[%s1964_s3 + $0x68] sm:$0xff] }
  0x12   : > { %v1377_v21 = vld [vmem:[%s1964_s3 + $0x70] sm:$0xff]  ;;  %v1387_v23 = vld [vmem:[%s1964_s3 + $0x60] sm:$0xff]  ;;  %v1395_v28 = vld [vmem:[%s1964_s3 + $0x78] sm:$0xff] }
  0x13   : > { %334 = vmatpush.bf16.msra.mxu0 %v1125_v5  ;;  %1177 = vmatpush.bf16.msra.mxu1 %v1125_v5  ;;  %v1111_v24 = vld [vmem:[%s193_s10] sm:$0xff]  ;;  %v1113_v25 = vld [vmem:[%s193_s10 + $0x10] sm:$0xff]  ;;  %v1112_v30 = vld [vmem:[%s193_s10 + $0x8] sm:$0xff] }
  0x14   : > { %1178 = vmatpush.bf16.msra.mxu2 %v1125_v5  ;;  %1179 = vmatpush.bf16.msra.mxu3 %v1125_v5  ;;  %v1115_v26 = vld [vmem:[%s193_s10 + $0x20] sm:$0xff]  ;;  %v1117_v27 = vld [vmem:[%s193_s10 + $0x30] sm:$0xff]  ;;  %v1114_v31 = vld [vmem:[%s193_s10 + $0x18] sm:$0xff] }
  0x15   : > { %476 = vperm.xlu2 %1212, %v1295_v6   ;;  %v1116_v32 = vld [vmem:[%s193_s10 + $0x28] sm:$0xff]  ;;  %v1118_v33 = vld [vmem:[%s193_s10 + $0x38] sm:$0xff]  ;;  %v1487_v59 = vld [vmem:[%s1963_s2] ss:$0 sm:$0xff] }
  0x16   : > { %466 = vperm.xlu1 %1211, %v1300_v7   ;;  %456 = vperm.xlu0 %1210, %v1305_v8  }
  0x17   : > { %335 = vmatpush.bf16.msra.mxu0 %v1124_v9  ;;  %1180 = vmatpush.bf16.msra.mxu1 %v1124_v9 }
  0x18   : > { %1181 = vmatpush.bf16.msra.mxu2 %v1124_v9  ;;  %1182 = vmatpush.bf16.msra.mxu3 %v1124_v9 }
  0x1b   : > { %336 = vmatpush.bf16.msra.mxu0 %v1123_v10  ;;  %1183 = vmatpush.bf16.msra.mxu1 %v1123_v10 }
  0x1c   : > { %1184 = vmatpush.bf16.msra.mxu2 %v1123_v10  ;;  %1185 = vmatpush.bf16.msra.mxu3 %v1123_v10 }
  0x1d   : > { %491 = vperm.xlu2 %1212, %v1319_v11  }
  0x1e   : > { %486 = vperm.xlu1 %1211, %v1326_v12   ;;  %481 = vperm.xlu0 %1210, %v1331_v13  }
  0x1f   : > { %337 = vmatpush.bf16.msra.mxu0 %v1122_v14  ;;  %1186 = vmatpush.bf16.msra.mxu1 %v1122_v14 }
  0x20   : > { %1187 = vmatpush.bf16.msra.mxu2 %v1122_v14  ;;  %1188 = vmatpush.bf16.msra.mxu3 %v1122_v14 }
  0x23   : > { %338 = vmatpush.bf16.msra.mxu0 %v1121_v15  ;;  %1189 = vmatpush.bf16.msra.mxu1 %v1121_v15 }
  0x24   : > { %1190 = vmatpush.bf16.msra.mxu2 %v1121_v15  ;;  %1191 = vmatpush.bf16.msra.mxu3 %v1121_v15 }
  0x25   : > { %506 = vperm.xlu2 %1212, %v1347_v16  }
  0x26   : > { %501 = vperm.xlu1 %1211, %v1352_v17   ;;  %496 = vperm.xlu0 %1210, %v1357_v18  }
  0x27   : > { %339 = vmatpush.bf16.msra.mxu0 %v1120_v19  ;;  %1192 = vmatpush.bf16.msra.mxu1 %v1120_v19 }
  0x28   : > { %1193 = vmatpush.bf16.msra.mxu2 %v1120_v19  ;;  %1194 = vmatpush.bf16.msra.mxu3 %v1120_v19 }
  0x2b   : > { %340 = vmatpush.bf16.msra.mxu0 %v1119_v20  ;;  %1195 = vmatpush.bf16.msra.mxu1 %v1119_v20 }
  0x2c   : > { %1196 = vmatpush.bf16.msra.mxu2 %v1119_v20  ;;  %1197 = vmatpush.bf16.msra.mxu3 %v1119_v20 }
  0x2d   : > { %521 = vperm.xlu2 %1212, %v1377_v21  }
  0x2e   : > { %516 = vperm.xlu1 %1211, %v1382_v22   ;;  %511 = vperm.xlu0 %1210, %v1387_v23  }
  0x2f   : > { %341 = vmatmul.bf16.vlgmr.msra.gmra.mxu0 %v1111_v24  ;;  %351 = vmatmul.bf16.vlgmr.msra.gmra.mxu1 %v1113_v25 }
  0x30   : > { %361 = vmatmul.bf16.vlgmr.msra.gmra.mxu2 %v1115_v26  ;;  %371 = vmatmul.bf16.vlgmr.msra.gmra.mxu3 %v1117_v27 }
  0x35   : > { %1214 = vset.pattern.permute.xlu2 %v1232_v29 }
  0x36   : > { %1213 = vset.pattern.permute.xlu1 %v1232_v29  ;;  %526 = vperm.xlu0 %1210, %v1395_v28  }
  0x37   : > { %599 = vperm.xlu2 %1214, %v1305_v8   ;;  %595 = vperm.xlu1 %1213, %v1281_v2  }
  0x3e   : > { %1215 = vset.pattern.permute.xlu0 %v1232_v29 }
  0x3f   : > { %346 = vmatmul.bf16.gmra.mxu0 %v1112_v30  ;;  %356 = vmatmul.bf16.gmra.mxu1 %v1114_v31 }
  0x40   : > { %366 = vmatmul.bf16.gmra.mxu2 %v1116_v32  ;;  %376 = vmatmul.bf16.gmra.mxu3 %v1118_v33 }
  0x41   : > { %611 = vperm.xlu2 %1214, %v1271_v0   ;;  %607 = vperm.xlu1 %1213, %v1300_v7  }
  0x42   : > { %603 = vperm.xlu0 %1215, %v1276_v1  }
  0x49   : > { %619 = vperm.xlu2 %1214, %v1331_v13   ;;  %615 = vperm.xlu1 %1213, %v1295_v6  }
  0x4a   : > { %623 = vperm.xlu0 %1215, %v1326_v12  }
  0x51   : > { %631 = vperm.xlu2 %1214, %v1357_v18   ;;  %627 = vperm.xlu1 %1213, %v1319_v11  }
  0x52   : > { %635 = vperm.xlu0 %1215, %v1352_v17  }
  0x59   : > { %643 = vperm.xlu2 %1214, %v1387_v23   ;;  %639 = vperm.xlu1 %1213, %v1347_v16  }
  0x5a   : > { %647 = vperm.xlu0 %1215, %v1382_v22  }
  0x61   : > { %655 = vperm.xlu2 %1214, %v1395_v28   ;;  %651 = vperm.xlu1 %1213, %v1377_v21  }
  0x62   : > { %1216 = vset.pattern.permute.xlu0 %v1233_v34 }
  0x63   : > { %724 = vperm.xlu0 %1216, %v1281_v2  }
  0x67   : > { %v1415_v35 = vpop.permute.xlu2 %471 }
  0x69   : > { %1218 = vset.pattern.permute.xlu2 %v1233_v34  ;;  %1217 = vset.pattern.permute.xlu1 %v1233_v34 }
  0x6a   : > { %732 = vperm.xlu2 %1218, %v1276_v1   ;;  %728 = vperm.xlu1 %1217, %v1305_v8  }
  0x6b   : > { %744 = vperm.xlu0 %1216, %v1295_v6  }
  0x6f   : > { %v1420_v36 = vpop.permute.xlu2 %476 }
  0x72   : > { %740 = vperm.xlu2 %1218, %v1271_v0   ;;  %736 = vperm.xlu1 %1217, %v1300_v7  }
  0x73   : > { %756 = vperm.xlu0 %1216, %v1319_v11  }
  0x77   : > { %v1425_v37 = vpop.permute.xlu2 %491 }
  0x7a   : > { %752 = vperm.xlu2 %1218, %v1326_v12   ;;  %748 = vperm.xlu1 %1217, %v1331_v13  }
  0x7b   : > { %768 = vperm.xlu0 %1216, %v1347_v16  }
  0x7f   : > { %v1430_v38 = vpop.permute.xlu2 %506 }
  0x80   : > { %v1432_v39 = vpop.permute.xlu1 %461  ;;  %v1434_v40 = vpop.permute.xlu0 %451 }
  0x82   : > { %764 = vperm.xlu2 %1218, %v1352_v17   ;;  %760 = vperm.xlu1 %1217, %v1357_v18  }
  0x83   : > { %780 = vperm.xlu0 %1216, %v1377_v21  }
  0x87   : > { %v1439_v41 = vpop.permute.xlu2 %521 }
  0x88   : > { %v1441_v42 = vpop.permute.xlu1 %466  ;;  %v1443_v43 = vpop.permute.xlu0 %456 }
  0x8a   : > { %776 = vperm.xlu2 %1218, %v1382_v22   ;;  %772 = vperm.xlu1 %1217, %v1387_v23  }
  0x8b   : > { %1220 = vset.pattern.permute.xlu0 %v1234_v44 }
  0x8c   : > { %857 = vperm.xlu0 %1220, %v1305_v8  }
  0x90   : > { %v1448_v45 = vpop.permute.xlu1 %486  ;;  %v1450_v46 = vpop.permute.xlu0 %481 }
  0x91   : > { %v1452_v47 = vpop.permute.xlu2 %599 }
  0x92   : > { %1219 = vset.pattern.permute.xlu2 %v1234_v44  ;;  %784 = vperm.xlu1 %1217, %v1395_v28  }
  0x93   : > { %853 = vperm.xlu2 %1219, %v1281_v2  }
  0x94   : > { %877 = vperm.xlu0 %1220, %v1331_v13  }
  0x98   : > { %v1457_v48 = vpop.permute.xlu1 %501  ;;  %v1459_v49 = vpop.permute.xlu0 %496 }
  0x9a   : > { %1221 = vset.pattern.permute.xlu1 %v1234_v44 }
  0x9b   : > { %v1461_v50 = vpop.permute.xlu2 %611  ;;  %865 = vperm.xlu2 %1219, %v1300_v7   ;;  %861 = vperm.xlu1 %1221, %v1276_v1   ;;  %v1505_v7 = vshrl.u32 %v430_v61, 7 }
  0x9c   : > { %889 = vperm.xlu0 %1220, %v1357_v18  }
  0x9d   : > { %vm432_vm0 = vcmp.lt.s32.totalorder %v1505_v7, 1  ;;  %vm577_vm1 = vcmp.lt.s32.totalorder %v1505_v7, 7  ;;  %vm706_vm2 = vcmp.lt.s32.totalorder %v1505_v7, 3  ;;  %vm835_vm3 = vcmp.lt.s32.totalorder %v1505_v7, 5 }
  0xa0   : > { %v1466_v51 = vpop.permute.xlu1 %516  ;;  %v1468_v52 = vpop.permute.xlu0 %511 }
  0xa3   : > { %v1470_v53 = vpop.permute.xlu2 %619  ;;  %873 = vperm.xlu2 %1219, %v1295_v6   ;;  %869 = vperm.xlu1 %1221, %v1271_v0  }
  0xa4   : > { %901 = vperm.xlu0 %1220, %v1387_v23  }
  0xa8   : > { %v1477_v55 = vpop.permute.xlu0 %526 }
  0xa9   : > { %v1475_v54 = vpop.permute.xlu1 %595 }
  0xab   : > { %v1479_v56 = vpop.permute.xlu2 %631  ;;  %885 = vperm.xlu2 %1219, %v1319_v11   ;;  %881 = vperm.xlu1 %1221, %v1326_v12  }
  0xac   : > { %913 = vperm.xlu0 %1220, %v1395_v28   ;;  %v342_v57 = vpop.f32.mrf.mxu0  ;;  %v352_v58 = vpop.f32.mrf.mxu1 }
  0xad   : > { %v1490_v60 = vadd.f32 %v1487_v59, %v342_v57  ;;  %v1493_v62 = vadd.f32 %v1487_v59, %v352_v58 }
  0xaf   : > { %v1966_v3 = vmax.f32 %v1490_v60, 0.0  ;;  %v1970_v9 = vmax.f32 %v1493_v62, 0.0 }
  0xb1   : > { %v1517_v14 = vrot.slane %v1966_v3, 7 }
  0xb3   : > { %v1495_v63 = vpop.permute.xlu2 %643  ;;  %897 = vperm.xlu2 %1219, %v1347_v16   ;;  %893 = vperm.xlu1 %1221, %v1352_v17   ;;  %v1499_v0 = vpop.permute.xlu1 %607  ;;  %v1522_v17 = vrot.slane %v1970_v9, 7 }
  0xb4   : > { %1971 = vst [vmem:[#allocation2_spill] sm:$0xff] %v1495_v63  ;;  %v1501_v1 = vpop.permute.xlu0 %603  ;;  %v362_v2 = vpop.f32.mrf.mxu2 }
  0xb5   : > { %v372_v4 = vpop.f32.mrf.mxu3  ;;  %v344_v5 = vpop.f32.mrf.mxu0  ;;  %v1509_v10 = vadd.f32 %v1487_v59, %v362_v2 }
  0xb6   : > { %v345_v6 = vadd.f32 %v1487_v59, %v344_v5  ;;  %v354_v8 = vpop.f32.mrf.mxu1  ;;  %v1513_v12 = vadd.f32 %v1487_v59, %v372_v4 }
  0xb7   : > { %v355_v11 = vadd.f32 %v1487_v59, %v354_v8  ;;  %v1968_v18 = vmax.f32 %v1509_v10, 0.0 }
  0xb8   : > { %v383_v13 = vmax.f32 %v345_v6, 0.0  ;;  %v1967_v24 = vmax.f32 %v1513_v12, 0.0 }
  0xb9   : > { %v387_v15 = vmax.f32 %v355_v11, 0.0  ;;  %v1542_v32 = vrot.slane %v1968_v18, 7 }
  0xba   : > { %v415_v16 = vrot.slane %v383_v13, 7  ;;  %v1550_v57 = vrot.slane %v1967_v24, 7 }
  0xbb   : > { %v419_v19 = vrot.slane %v387_v15, 7  ;;  %v1525_v20 = vpop.permute.xlu2 %655  ;;  %909 = vperm.xlu2 %1219, %v1377_v21   ;;  %905 = vperm.xlu1 %1221, %v1382_v22   ;;  %v1529_v23 = vpop.permute.xlu1 %615 }
  0xbc   : > { %v1532_v25 = vpop.permute.xlu0 %623  ;;  %v364_v26 = vpop.f32.mrf.mxu2  ;;  %v447_v27 = vsel %vm432_vm0, %v1517_v14, %v415_v16 }
  0xbd   : > { %v365_v28 = vadd.f32 %v1487_v59, %v364_v26  ;;  %v374_v29 = vpop.f32.mrf.mxu3  ;;  %v347_v30 = vpop.f32.mrf.mxu0  ;;  %v443_v33 = vsel %vm432_vm0, %v1522_v17, %v419_v19  ;;  %v530_v58 = vsub.f32 %v447_v27, %v1443_v43 }
  0xbe   : > { %v375_v31 = vadd.f32 %v1487_v59, %v374_v29  ;;  %v348_v21 = vadd.f32 %v1487_v59, %v347_v30  ;;  %v357_v22 = vpop.f32.mrf.mxu1  ;;  %v534_v6 = vsub.f32 %v443_v33, %v1420_v36 }
  0xbf   : > { %v391_v34 = vmax.f32 %v365_v28, 0.0  ;;  %v358_v44 = vadd.f32 %v1487_v59, %v357_v22  ;;  %v1559_v30 = vmax.f32 %v383_v13, %v530_v58 }
  0xc0   : > { %v395_v61 = vmax.f32 %v375_v31, 0.0  ;;  %v384_v2 = vmax.f32 %v348_v21, 0.0 }
  0xc1   : > { %v423_v4 = vrot.slane %v391_v34, 7  ;;  %v388_v5 = vmax.f32 %v358_v44, 0.0 }
  0xc2   : > { %v427_v8 = vrot.slane %v395_v61, 7  ;;  %v416_v11 = vrot.slane %v384_v2, 7 }
  0xc3   : > { %v439_v26 = vsel %vm432_vm0, %v1542_v32, %v423_v4  ;;  %v420_v28 = vrot.slane %v388_v5, 7  ;;  %v1557_v29 = vpop.permute.xlu1 %627 }
  0xc4   : > { %v538_v22 = vsub.f32 %v439_v26, %v1459_v49  ;;  %v435_v43 = vsel %vm432_vm0, %v1550_v57, %v427_v8  ;;  %v446_v36 = vsel %vm432_vm0, %v415_v16, %v416_v11  ;;  %v1567_v27 = vpop.permute.xlu0 %635  ;;  %v367_v31 = vpop.f32.mrf.mxu2  ;;  %v1576_v26 = vmax.f32 %v387_v15, %v534_v6 }
  0xc5   : > { %v542_v21 = vsub.f32 %v435_v43, %v1466_v51  ;;  %v531_v33 = vsub.f32 %v446_v36, %v1432_v39  ;;  %v442_v13 = vsel %vm432_vm0, %v419_v19, %v420_v28  ;;  %v368_v44 = vadd.f32 %v1487_v59, %v367_v31  ;;  %v377_v49 = vpop.f32.mrf.mxu3  ;;  %v1574_v58 = vpop.permute.xlu2 %732 }
  0xc6   : > { %1972 = vst [vmem:[#allocation3_spill] sm:$0xff] %v1574_v58  ;;  %v1578_v3 = vmax.f32 %v391_v34, %v538_v22  ;;  %v535_v16 = vsub.f32 %v442_v13, %v1450_v46  ;;  %v378_v24 = vadd.f32 %v1487_v59, %v377_v49  ;;  %v349_v18 = vpop.f32.mrf.mxu0  ;;  %v359_v51 = vpop.f32.mrf.mxu1  ;;  %v1969_v46 = vrot.slane %v1559_v30, 1 }
  0xc7   : > { %v1582_v43 = vmax.f32 %v395_v61, %v542_v21  ;;  %v1584_v39 = vmax.f32 %v384_v2, %v531_v33  ;;  %v392_v19 = vmax.f32 %v368_v44, 0.0  ;;  %v350_v36 = vadd.f32 %v1487_v59, %v349_v18 }
  0xc8   : > { %v1587_v31 = vmax.f32 %v388_v5, %v535_v16  ;;  %v396_v15 = vmax.f32 %v378_v24, 0.0  ;;  %v360_v34 = vadd.f32 %v1487_v59, %v359_v51 }
  0xc9   : > { %v563_v6 = vrot.slane %v1584_v39, 1  ;;  %v424_v22 = vrot.slane %v392_v19, 7  ;;  %v385_v13 = vmax.f32 %v350_v36, 0.0 }
  0xca   : > { %v1595_v21 = vrot.slane %v396_v15, 7  ;;  %v389_v18 = vmax.f32 %v360_v34, 0.0  ;;  %v567_v16 = vrot.slane %v1587_v31, 1 }
  0xcb   : > { %v438_v24 = vsel %vm432_vm0, %v423_v4, %v424_v22  ;;  %v417_v33 = vrot.slane %v385_v13, 7  ;;  %v1600_v44 = vpop.permute.xlu1 %639  ;;  %v1606_v49 = vsel %vm577_vm1, %v1969_v46, %v563_v6 }
  0xcc   : > { %v539_v51 = vsub.f32 %v438_v24, %v1457_v48  ;;  %v434_v36 = vsel %vm432_vm0, %v427_v8, %v1595_v21  ;;  %v421_v34 = vrot.slane %v389_v18, 7  ;;  %v648_v61 = vpop.permute.xlu0 %647  ;;  %v369_v4 = vpop.f32.mrf.mxu2 }
  0xcd   : > { %v543_v5 = vsub.f32 %v434_v36, %v1439_v41  ;;  %v444_v2 = vsel %vm432_vm0, %v417_v33, %v1522_v17  ;;  %v445_v46 = vsel %vm432_vm0, %v416_v11, %v417_v33  ;;  %v370_v9 = vadd.f32 %v1487_v59, %v369_v4  ;;  %v1620_v58 = vpop.permute.xlu2 %740  ;;  %v379_v36 = vpop.f32.mrf.mxu3 }
  0xce   : > { %v1622_v48 = vmax.f32 %v392_v19, %v539_v51  ;;  %v532_v8 = vsub.f32 %v445_v46, %v1441_v42  ;;  %v533_v24 = vsub.f32 %v444_v2, %v1415_v35  ;;  %v440_v41 = vsel %vm432_vm0, %v421_v34, %v1542_v32 }
  0xcf   : > { %v1629_v63 = vmax.f32 %v396_v15, %v543_v5  ;;  %v441_v17 = vsel %vm432_vm0, %v420_v28, %v421_v34  ;;  %v537_v11 = vsub.f32 %v440_v41, %v1425_v37  ;;  %v393_v33 = vmax.f32 %v370_v9, 0.0 }
  0xd0   : > { %v571_v19 = vrot.slane %v1622_v48, 1  ;;  %v548_v51 = vmax.f32 %v385_v13, %v532_v8  ;;  %v1973_v42 = vmax.f32 %v1493_v62, 0.0  ;;  %v536_v35 = vsub.f32 %v441_v17, %v1448_v45 }
  0xd1   : > { %v575_v2 = vrot.slane %v1629_v63, 1  ;;  %v1974_v32 = vmax.f32 %v1509_v10, 0.0  ;;  %v425_v5 = vrot.slane %v393_v33, 7  ;;  %v380_v28 = vadd.f32 %v1487_v59, %v379_v36 }
  0xd2   : > { %v549_v46 = vmax.f32 %v1973_v42, %v533_v24  ;;  %v1975_v37 = vrot.slane %v1578_v3, 1  ;;  %v564_v62 = vrot.slane %v548_v51, 1  ;;  %v552_v45 = vmax.f32 %v389_v18, %v536_v35 }
  0xd3   : > { %v1641_v15 = vmax.f32 %v1974_v32, %v537_v11  ;;  %v1976_v10 = vrot.slane %v1582_v43, 1  ;;  %v436_v59 = vsel %vm432_vm0, %v425_v5, %v1550_v57  ;;  %v437_v4 = vsel %vm432_vm0, %v424_v22, %v425_v5  ;;  %v652_v24 = vpop.permute.xlu1 %651 }
  0xd4   : > { %v1650_v9 = vsel %vm577_vm1, %v1975_v37, %v571_v19  ;;  %v565_v13 = vrot.slane %v549_v46, 1  ;;  %v397_v8 = vmax.f32 %v380_v28, 0.0  ;;  %v590_v18 = vsel %vm577_vm1, %v563_v6, %v564_v62 }
  0xd5   : > { %v579_v34 = vsel %vm577_vm1, %v1976_v10, %v575_v2  ;;  %v568_v36 = vrot.slane %v552_v45, 1  ;;  %v540_v42 = vsub.f32 %v437_v4, %v1430_v38  ;;  %v541_v35 = vsub.f32 %v436_v59, %v1468_v52  ;;  %v1669_v32 = vpop.permute.xlu2 %752  ;;  %v1671_v22 = vpop.permute.xlu0 %724 }
  0xd6   : > { %v589_v41 = vsel %vm577_vm1, %v564_v62, %v565_v13  ;;  %v671_v17 = vsub.f32 %v579_v34, %v648_v61  ;;  %v429_v57 = vrot.slane %v397_v8, 7  ;;  %v1977_v6 = vrot.slane %v1576_v26, 1 }
  0xd7   : > { %v661_v11 = vsub.f32 %v589_v41, %v1499_v0  ;;  %v586_v5 = vsel %vm577_vm1, %v567_v16, %v568_v36  ;;  %v660_v38 = vsub.f32 %v590_v18, %v1501_v1  ;;  %v556_v52 = vmax.f32 %v393_v33, %v540_v42 }
  0xd8   : > { %v1676_v28 = vmax.f32 %v1582_v43, %v671_v17  ;;  %v588_v0 = vsel %vm577_vm1, %v565_v13, %v1977_v6  ;;  %v1978_v37 = vmax.f32 %v1513_v12, 0.0  ;;  %v433_v10 = vsel %vm432_vm0, %v1595_v21, %v429_v57 }
  0xd9   : > { %v1683_v61 = vmax.f32 %v548_v51, %v661_v11  ;;  %v1979_v34 = vmov %v1977_v6  ;;  %v448_v1 = vsel %vm432_vm0, %v429_v57, %v1517_v14  ;;  %v544_v51 = vsub.f32 %v433_v10, %v1477_v55 }
  0xda   : > { %v1687_v62 = vmax.f32 %v1978_v37, %v541_v35  ;;  %v587_v59 = vsel %vm577_vm1, %v1979_v34, %v567_v16  ;;  %v662_v33 = vsub.f32 %v588_v0, %v1461_v50  ;;  %v572_v12 = vrot.slane %v556_v52, 1 }
  0xdb   : > { %v529_v4 = vsub.f32 %v448_v1, %v1434_v40  ;;  %v1704_v21 = vmax.f32 %v1584_v39, %v660_v38  ;;  %v703_v41 = vrot.slane %v1676_v28, 5  ;;  %v560_v18 = vmax.f32 %v397_v8, %v544_v51 }
  0xdc   : > { %v573_v13 = vrot.slane %v1687_v62, 1  ;;  %v693_v16 = vrot.slane %v1683_v61, 5  ;;  %v569_v17 = vrot.slane %v1641_v15, 1  ;;  %v1980_v55 = vmax.f32 %v1490_v60, 0.0  ;;  %v729_v57 = vpop.permute.xlu1 %728 }
  0xdd   : > { %v692_v40 = vrot.slane %v1704_v21, 5  ;;  %v663_v39 = vsub.f32 %v587_v59, %v1529_v23  ;;  %v576_v11 = vrot.slane %v560_v18, 1  ;;  %v1717_v42 = vmax.f32 %v549_v46, %v662_v33  ;;  %v1732_v46 = vpop.permute.xlu2 %764  ;;  %v745_v38 = vpop.permute.xlu0 %744 }
  0xde   : > { %v581_v50 = vsel %vm577_vm1, %v572_v12, %v573_v13  ;;  %v545_v14 = vmax.f32 %v1980_v55, %v529_v4  ;;  %v585_v8 = vsel %vm577_vm1, %v568_v36, %v569_v17  ;;  %v664_v35 = vsub.f32 %v586_v5, %v1470_v53 }
  0xdf   : > { %v719_v60 = vsel %vm706_vm2, %v692_v40, %v693_v16  ;;  %v665_v0 = vsub.f32 %v585_v8, %v1532_v25  ;;  %v1730_v23 = vmax.f32 %v1576_v26, %v663_v39  ;;  %v669_v36 = vsub.f32 %v581_v50, %v1600_v44 }
  0xe0   : > { %v561_v6 = vrot.slane %v545_v14, 1  ;;  %v791_v53 = vsub.f32 %v719_v60, %v1620_v58  ;;  %v578_v5 = vsel %vm577_vm1, %v575_v2, %v576_v11  ;;  %v1739_v37 = vmax.f32 %v1587_v31, %v664_v35 }
  0xe1   : > { %v672_v25 = vsub.f32 %v578_v5, %v652_v24  ;;  %v1743_v34 = vmax.f32 %v552_v45, %v665_v0  ;;  %v695_v26 = vrot.slane %v1730_v23, 5  ;;  %v1981_v2 = vrot.slane %v1559_v30, 1 }
  0xe2   : > { %v593_v10 = vsel %vm577_vm1, %v576_v11, %v561_v6  ;;  %v1748_v44 = vmax.f32 %v1717_v42, %v791_v53  ;;  %v696_v58 = vrot.slane %v1739_v37, 5  ;;  %v1982_v24 = vrot.slane %v1578_v3, 1 }
  0xe3   : > { %v673_v59 = vsub.f32 %v593_v10, %v1525_v20  ;;  %v592_v31 = vsel %vm577_vm1, %v561_v6, %v1981_v2  ;;  %v1756_v1 = vmax.f32 %v1629_v63, %v672_v25  ;;  %v582_v20 = vsel %vm577_vm1, %v571_v19, %v572_v12  ;;  %v1984_v10 = vld [vmem:[#allocation2_spill] sm:$0xff] }
  0xe4   : > { %v658_v45 = vsub.f32 %v592_v31, %v1475_v54  ;;  %v584_v51 = vsel %vm577_vm1, %v569_v17, %v1982_v24  ;;  %v1767_v33 = vmax.f32 %v556_v52, %v669_v36  ;;  %v716_v63 = vsel %vm706_vm2, %v695_v26, %v696_v58  ;;  %v737_v11 = vpop.permute.xlu1 %736 }
  0xe5   : > { %v1769_v4 = vmax.f32 %v560_v18, %v673_v59  ;;  %v666_v50 = vsub.f32 %v584_v51, %v1557_v29  ;;  %v704_v54 = vrot.slane %v1756_v1, 5  ;;  %v794_v55 = vsub.f32 %v716_v63, %v1669_v32 }
  0xe6   : > { %v674_v39 = vmax.f32 %v545_v14, %v658_v45  ;;  %v667_v19 = vsub.f32 %v1650_v9, %v1479_v56  ;;  %v668_v52 = vsub.f32 %v582_v20, %v1567_v27  ;;  %v659_v17 = vsub.f32 %v1606_v49, %v1452_v47  ;;  %v777_v56 = vpop.permute.xlu2 %776  ;;  %v757_v9 = vpop.permute.xlu0 %756 }
  0xe7   : > { %v705_v12 = vrot.slane %v1769_v4, 5  ;;  %v682_v18 = vmax.f32 %v1641_v15, %v666_v50  ;;  %v1784_v29 = vmax.f32 %v1743_v34, %v794_v55  ;;  %v694_v14 = vrot.slane %v1717_v42, 5 }
  0xe8   : > { %v1787_v8 = vmax.f32 %v1578_v3, %v667_v19  ;;  %v690_v32 = vrot.slane %v674_v39, 5  ;;  %v823_v35 = vrot.slane %v1748_v44, 3  ;;  %v675_v49 = vmax.f32 %v1559_v30, %v659_v17  ;;  %v1985_v17 = vld [vmem:[#allocation3_spill] sm:$0xff] }
  0xe9   : > { %v707_v27 = vsel %vm706_vm2, %v704_v54, %v705_v12  ;;  %v698_v47 = vrot.slane %v682_v18, 5  ;;  %v684_v3 = vmax.f32 %v1622_v48, %v668_v52  ;;  %v826_v60 = vrot.slane %v1784_v29, 3 }
  0xea   : > { %v787_v15 = vsub.f32 %v707_v27, %v1671_v22  ;;  %v699_v6 = vrot.slane %v1787_v8, 5  ;;  %v722_v42 = vsel %vm706_vm2, %v705_v12, %v690_v32  ;;  %v718_v36 = vsel %vm706_vm2, %v693_v16, %v694_v14 }
  0xeb   : > { %v788_v0 = vsub.f32 %v722_v42, %v729_v57  ;;  %v1983_v53 = vrot.slane %v1582_v43, 1  ;;  %v792_v5 = vsub.f32 %v718_v36, %v745_v38  ;;  %v691_v16 = vrot.slane %v675_v49, 5 }
  0xec   : > { %v1812_v48 = vmax.f32 %v674_v39, %v787_v15  ;;  %v713_v22 = vsel %vm706_vm2, %v698_v47, %v699_v6  ;;  %v697_v43 = vrot.slane %v1743_v34, 5  ;;  %v701_v31 = vrot.slane %v1767_v33, 5  ;;  %v749_v34 = vpop.permute.xlu1 %748 }
  0xed   : > { %v580_v30 = vsel %vm577_vm1, %v573_v13, %v1983_v53  ;;  %v797_v25 = vsub.f32 %v713_v22, %v1732_v46  ;;  %v1818_v59 = vmax.f32 %v675_v49, %v788_v0  ;;  %v1822_v2 = vmax.f32 %v1730_v23, %v792_v5 }
  0xee   : > { %v670_v57 = vsub.f32 %v580_v30, %v1984_v10  ;;  %v717_v38 = vsel %vm706_vm2, %v694_v14, %v695_v26  ;;  %v819_v45 = vrot.slane %v1812_v48, 3  ;;  %v720_v46 = vsel %vm706_vm2, %v691_v16, %v692_v40  ;;  %v769_v63 = vpop.permute.xlu0 %768  ;;  %v854_v50 = vpop.permute.xlu2 %853 }
  0xef   : > { %v1831_v20 = vmax.f32 %v684_v3, %v797_v25  ;;  %v721_v23 = vsel %vm706_vm2, %v690_v32, %v691_v16  ;;  %v790_v51 = vsub.f32 %v720_v46, %v737_v11  ;;  %v715_v26 = vsel %vm706_vm2, %v696_v58, %v697_v43 }
  0xf0   : > { %v1825_v13 = vmax.f32 %v1687_v62, %v670_v57  ;;  %v820_v62 = vrot.slane %v1818_v59, 3  ;;  %v824_v55 = vrot.slane %v1822_v2, 3  ;;  %v795_v39 = vsub.f32 %v715_v26, %v757_v9 }
  0xf1   : > { %v793_v19 = vsub.f32 %v717_v38, %v749_v34  ;;  %v700_v12 = vrot.slane %v684_v3, 5  ;;  %v806_v52 = vmax.f32 %v1683_v61, %v790_v51  ;;  %v789_v32 = vsub.f32 %v721_v23, %v1985_v17 }
  0xf2   : > { %v702_v24 = vrot.slane %v1825_v13, 5  ;;  %v1849_v14 = vmax.f32 %v682_v18, %v795_v39  ;;  %v714_v61 = vsel %vm706_vm2, %v697_v43, %v698_v47  ;;  %v846_v47 = vsel %vm835_vm3, %v823_v35, %v824_v55 }
  0xf3   : > { %v1852_v58 = vmax.f32 %v1739_v37, %v793_v19  ;;  %v712_v9 = vsel %vm706_vm2, %v699_v6, %v700_v12  ;;  %v822_v27 = vrot.slane %v806_v52, 3  ;;  %v1857_v15 = vmax.f32 %v1704_v21, %v789_v32 }
  0xf4   : > { %v710_v40 = vsel %vm706_vm2, %v701_v31, %v702_v24  ;;  %v798_v49 = vsub.f32 %v712_v9, %v769_v63  ;;  %v827_v18 = vrot.slane %v1849_v14, 3  ;;  %v709_v37 = vsel %vm706_vm2, %v702_v24, %v703_v41  ;;  %v761_v36 = vpop.permute.xlu1 %760 }
  0xf5   : > { %v800_v11 = vsub.f32 %v710_v40, %v777_v56  ;;  %v825_v56 = vrot.slane %v1852_v58, 3  ;;  %v821_v21 = vrot.slane %v1857_v15, 3  ;;  %v711_v42 = vsel %vm706_vm2, %v700_v12, %v701_v31 }
  0xf6   : > { %v1871_v6 = vmax.f32 %v1767_v33, %v798_v49  ;;  %v829_v0 = vrot.slane %v1831_v20, 3  ;;  %v708_v33 = vsel %vm706_vm2, %v703_v41, %v704_v54  ;;  %v843_v30 = vsel %vm835_vm3, %v826_v60, %v827_v18  ;;  %v781_v57 = vpop.permute.xlu0 %780  ;;  %v866_v25 = vpop.permute.xlu2 %865 }
  0xf7   : > { %v1862_v3 = vmax.f32 %v1676_v28, %v800_v11  ;;  %v844_v53 = vsel %vm835_vm3, %v825_v56, %v826_v60  ;;  %v849_v5 = vsel %vm835_vm3, %v820_v62, %v821_v21  ;;  %v796_v10 = vsub.f32 %v714_v61, %v761_v36 }
  0xf8   : > { %v830_v22 = vrot.slane %v1871_v6, 3  ;;  %v848_v16 = vsel %vm835_vm3, %v821_v21, %v822_v27  ;;  %v916_v43 = vsub.f32 %v849_v5, %v854_v50  ;;  %v801_v31 = vsub.f32 %v709_v37, %v781_v57 }
  0xf9   : > { %v919_v28 = vsub.f32 %v846_v47, %v866_v25  ;;  %v847_v41 = vsel %vm835_vm3, %v822_v27, %v823_v35  ;;  %v812_v54 = vmax.f32 %v1787_v8, %v796_v10  ;;  %v845_v38 = vsel %vm835_vm3, %v824_v55, %v825_v56 }
  0xfa   : > { %v840_v60 = vsel %vm835_vm3, %v829_v0, %v830_v22  ;;  %v1909_v46 = vsel %vm835_vm3, %v819_v45, %v820_v62  ;;  %v932_v23 = vmax.f32 %v1812_v48, %v916_v43  ;;  %v817_v34 = vmax.f32 %v1756_v1, %v801_v31 }
  0xfb   : > { %v935_v24 = vmax.f32 %v806_v52, %v919_v28  ;;  %v828_v35 = vrot.slane %v812_v54, 3  ;;  %v832_v8 = vrot.slane %v1862_v3, 3 }
  0xfc   : > { %v833_v51 = vrot.slane %v817_v34, 3  ;;  %v773_v50 = vpop.permute.xlu1 %772 }
  0xfd   : > { %v841_v26 = vsel %vm835_vm3, %v828_v35, %v829_v0  ;;  %v842_v63 = vsel %vm835_vm3, %v827_v18, %v828_v35  ;;  %v799_v55 = vsub.f32 %v711_v42, %v773_v50 }
  0xfe   : > { %v837_v62 = vsel %vm835_vm3, %v832_v8, %v833_v51  ;;  %v874_v39 = vpop.permute.xlu2 %873  ;;  %v858_v1 = vpop.permute.xlu0 %857 }
  0xff   : > { %v921_v19 = vsub.f32 %v844_v53, %v874_v39  ;;  %v815_v12 = vmax.f32 %v1825_v13, %v799_v55  ;;  %v917_v40 = vsub.f32 %v848_v16, %v858_v1 }
 0x101   : > { %v937_v52 = vmax.f32 %v1822_v2, %v921_v19  ;;  %v831_v17 = vrot.slane %v815_v12, 3  ;;  %v933_v32 = vmax.f32 %v1818_v59, %v917_v40 }
 0x103   : > { %v1130_v11 = vpack.c.bf16 %v933_v32, %v932_v23  ;;  %v838_v9 = vsel %vm835_vm3, %v831_v17, %v832_v8  ;;  %v839_v13 = vsel %vm835_vm3, %v830_v22, %v831_v17 }
 0x104   : > { %v785_v27 = vpop.permute.xlu1 %784 }
 0x105   : > { %1131 = vst [vmem:[%s1928_s25] sm:$0xff] %v1130_v11   ;;  %v802_v2 = vsub.f32 %v708_v33, %v785_v27 }
 0x106   : > { %v886_v49 = vpop.permute.xlu2 %885  ;;  %v878_v59 = vpop.permute.xlu0 %877 }
 0x107   : > { %v924_v61 = vsub.f32 %v841_v26, %v886_v49  ;;  %v818_v18 = vmax.f32 %v1769_v4, %v802_v2  ;;  %v922_v56 = vsub.f32 %v843_v30, %v878_v59 }
 0x109   : > { %v940_v37 = vmax.f32 %v1849_v14, %v924_v61  ;;  %v834_v21 = vrot.slane %v818_v18, 3  ;;  %v938_v47 = vmax.f32 %v1852_v58, %v922_v56 }
 0x10b   : > { %v851_v42 = vsel %vm835_vm3, %v834_v21, %v819_v45  ;;  %v836_v0 = vsel %vm835_vm3, %v833_v51, %v834_v21 }
 0x10d   : > { %v862_v53 = vpop.permute.xlu1 %861 }
 0x10e   : > { %v898_v36 = vpop.permute.xlu2 %897  ;;  %v918_v4 = vsub.f32 %v847_v41, %v862_v53  ;;  %v890_v30 = vpop.permute.xlu0 %889 }
 0x10f   : > { %v927_v33 = vsub.f32 %v838_v9, %v898_v36  ;;  %v925_v22 = vsub.f32 %v840_v60, %v890_v30 }
 0x110   : > { %v934_v5 = vmax.f32 %v1857_v15, %v918_v4 }
 0x111   : > { %v943_v14 = vmax.f32 %v1871_v6, %v927_v33  ;;  %v941_v58 = vmax.f32 %v812_v54, %v925_v22 }
 0x112   : > { %v1135_v10 = vpack.c.bf16 %v935_v24, %v934_v5 }
 0x113   : > { %v1150_v48 = vpack.c.bf16 %v941_v58, %v940_v37 }
 0x114   : > { %1167 = vst [vmem:[%s1928_s25 + $0x8] sm:$0xff] %v1135_v10  }
 0x115   : > { %1170 = vst [vmem:[%s1928_s25 + $0x20] sm:$0xff] %v1150_v48   ;;  %v870_v57 = vpop.permute.xlu1 %869 }
 0x116   : > { %v910_v45 = vpop.permute.xlu2 %909  ;;  %v920_v25 = vsub.f32 %v845_v38, %v870_v57  ;;  %v902_v16 = vpop.permute.xlu0 %901 }
 0x117   : > { %v930_v7 = vsub.f32 %v851_v42, %v910_v45  ;;  %v928_v43 = vsub.f32 %v837_v62, %v902_v16 }
 0x118   : > { %v936_v28 = vmax.f32 %v1748_v44, %v920_v25 }
 0x119   : > { %v946_v31 = vmax.f32 %v817_v34, %v930_v7  ;;  %v944_v6 = vmax.f32 %v815_v12, %v928_v43 }
 0x11a   : > { %v1140_v41 = vpack.c.bf16 %v937_v52, %v936_v28 }
 0x11c   : > { %1168 = vst [vmem:[%s1928_s25 + $0x10] sm:$0xff] %v1140_v41  }
 0x11d   : > { %v882_v15 = vpop.permute.xlu1 %881 }
 0x11e   : > { %v923_v54 = vsub.f32 %v842_v63, %v882_v15  ;;  %v914_v60 = vpop.permute.xlu0 %913 }
 0x11f   : > { %v931_v23 = vsub.f32 %v1909_v46, %v914_v60 }
 0x120   : > { %v939_v24 = vmax.f32 %v1784_v29, %v923_v54 }
 0x121   : > { %v947_v38 = vmax.f32 %v818_v18, %v931_v23 }
 0x122   : > { %v1145_v35 = vpack.c.bf16 %v939_v24, %v938_v47 }
 0x123   : > { %v1165_v8 = vpack.c.bf16 %v947_v38, %v946_v31 }
 0x124   : > { %1169 = vst [vmem:[%s1928_s25 + $0x18] sm:$0xff] %v1145_v35  }
 0x125   : > { %1173 = vst [vmem:[%s1928_s25 + $0x38] sm:$0xff] %v1165_v8   ;;  %v894_v34 = vpop.permute.xlu1 %893 }
 0x126   : > { %v926_v51 = vsub.f32 %v839_v13, %v894_v34 }
 0x128   : > { %v942_v44 = vmax.f32 %v1831_v20, %v926_v51 }
 0x12a   : > { %v1155_v26 = vpack.c.bf16 %v943_v14, %v942_v44 }
 0x12c   : > { %1171 = vst [vmem:[%s1928_s25 + $0x28] sm:$0xff] %v1155_v26  }
 0x12d   : > { %v906_v50 = vpop.permute.xlu1 %905 }
 0x12e   : > { %v929_v62 = vsub.f32 %v836_v0, %v906_v50 }
 0x130   : > { %v945_v63 = vmax.f32 %v1862_v3, %v929_v62 }
 0x132   : > { %v1160_v55 = vpack.c.bf16 %v945_v63, %v944_v6 }
 0x134   : > { %1172 = vst [vmem:[%s1928_s25 + $0x30] sm:$0xff] %v1160_v55  }
 0x135 PF: > { %s14_s15 = sadd.s32 1, %s1229_s15  }
 0x136   : > { %p11_p4 = scmp.ge.s32.totalorder %s14_s15, 4  }
 0x138   :  { %13 = sbr.rel (!%p11_p4) target bundleno = 1 (0x1), region = 66 }

// kernel: mini_alexnet_forward.4
= control target key start
LH: loop header
LB: loop body
LE: loop exit
PB: predicated region body
PF: predicated region fallthrough
CT: control target
= control target key end

     0   :  { %s4501_s15 = smov 0   ;;  %s6563_s0 = inlined_call_operand.vmem [shape: bf16[32,2400], index: 0, kind: input, shape index: {}]   ;;  %s6564_s1 = inlined_call_operand.vmem [shape: bf16[2400,256], index: 1, kind: input, shape index: {}]   ;;  %s6565_s2 = inlined_call_operand.vmem [shape: f32[1,256], index: 2, kind: input, shape index: {}]   ;;  %s6566_s3 = inlined_call_operand.vmem [shape: f32[16,4], index: 3, kind: input, shape index: {}]   ;;  %s6567_s4 = inlined_call_operand.vmem [shape: bf16[32,256], index: 4, kind: output, shape index: {}]  }
   0x1 LB: > { %s2835_s16 = sadd.s32 4294967295, %s4470_s15   ;;  %p2839_p0 = scmp.ge.s32.totalorder %s4470_s15, 1  ;;  %s4470_s15 = sphi %s4501_s15, %s14_s15  }
   0x2   : > { %p164_p1 = scmp.lt.s32.totalorder %s4470_s15, 3 }
   0x4   : > { %p165_p2 = pnand %p2839_p0, %p164_p1 }
   0x5   : > { %s2840_s7 = sshll.u32 (!%p165_p2), %s2835_s16, 1 }
   0x6   : > { %168 = sbr.rel (%p165_p2) target bundleno = 504 (0x1f8), region = 36  ;;  %p193_p3 = scmp.lt.s32.totalorder (!%p165_p2), %s2840_s7, 3 }
   0xb   : > { %v2979_v0 = vld [vmem:[%s6564_s1 + $0x70] sm:$0xf]  ;;  %v4160_v1 = vld [vmem:[%s6564_s1 + $0x74] sm:$0xf0]  ;;  %v2971_v11 = vld [vmem:[%s6564_s1 + $0x60] sm:$0xf] }
   0xc   : > { %v3107_v2 = vld [vmem:[%s6564_s1 + $0x170] sm:$0xf]  ;;  %v2980_v3 = vor.u32 %v4160_v1, %v2979_v0  ;;  %v4192_v4 = vld [vmem:[%s6564_s1 + $0x174] sm:$0xf0]  ;;  %v4158_v13 = vld [vmem:[%s6564_s1 + $0x64] sm:$0xf0] }
   0xd   : > { %v3171_v5 = vld [vmem:[%s6564_s1 + $0x1f0] sm:$0xf]  ;;  %v4208_v6 = vld [vmem:[%s6564_s1 + $0x1f4] sm:$0xf0]  ;;  %v3108_v7 = vor.u32 %v4192_v4, %v3107_v2  ;;  %v3099_v14 = vld [vmem:[%s6564_s1 + $0x160] sm:$0xf]  ;;  %v2972_v16 = vor.u32 %v4158_v13, %v2971_v11 }
   0xe   : > { %v3172_v8 = vor.u32 %v4208_v6, %v3171_v5  ;;  %v3043_v9 = vld [vmem:[%s6564_s1 + $0xf0] sm:$0xf]  ;;  %v4176_v10 = vld [vmem:[%s6564_s1 + $0xf4] sm:$0xf0]  ;;  %2132 = vmatpush.bf16.msra.mxu0 %v2980_v3  ;;  %v4190_v15 = vld [vmem:[%s6564_s1 + $0x164] sm:$0xf0] }
   0xf   : > { %v3044_v12 = vor.u32 %v4176_v10, %v3043_v9  ;;  %2160 = vmatpush.bf16.msra.mxu2 %v3108_v7  ;;  %v3100_v17 = vor.u32 %v4190_v15, %v3099_v14  ;;  %v3163_v18 = vld [vmem:[%s6564_s1 + $0x1e0] sm:$0xf]  ;;  %v4206_v19 = vld [vmem:[%s6564_s1 + $0x1e4] sm:$0xf0]  ;;  %v2963_v23 = vld [vmem:[%s6564_s1 + $0x50] sm:$0xf] }
  0x10   : > { %2174 = vmatpush.bf16.msra.mxu3 %v3172_v8  ;;  %v3035_v20 = vld [vmem:[%s6564_s1 + $0xe0] sm:$0xf]  ;;  %v3164_v21 = vor.u32 %v4206_v19, %v3163_v18  ;;  %v4174_v22 = vld [vmem:[%s6564_s1 + $0xe4] sm:$0xf0]  ;;  %v4156_v24 = vld [vmem:[%s6564_s1 + $0x54] sm:$0xf0] }
  0x11   : > { %2146 = vmatpush.bf16.msra.mxu1 %v3044_v12  ;;  %v3036_v25 = vor.u32 %v4174_v22, %v3035_v20  ;;  %v3091_v26 = vld [vmem:[%s6564_s1 + $0x150] sm:$0xf]  ;;  %v4188_v27 = vld [vmem:[%s6564_s1 + $0x154] sm:$0xf0]  ;;  %v2964_v29 = vor.u32 %v4156_v24, %v2963_v23  ;;  %v2955_v35 = vld [vmem:[%s6564_s1 + $0x40] sm:$0xf] }
  0x12   : > { %v3155_v28 = vld [vmem:[%s6564_s1 + $0x1d0] sm:$0xf]  ;;  %2133 = vmatpush.bf16.msra.mxu0 %v2972_v16  ;;  %v4204_v30 = vld [vmem:[%s6564_s1 + $0x1d4] sm:$0xf0]  ;;  %v3092_v33 = vor.u32 %v4188_v27, %v3091_v26  ;;  %v4154_v36 = vld [vmem:[%s6564_s1 + $0x44] sm:$0xf0] }
  0x13   : > { %v3027_v31 = vld [vmem:[%s6564_s1 + $0xd0] sm:$0xf]  ;;  %v4172_v32 = vld [vmem:[%s6564_s1 + $0xd4] sm:$0xf0]  ;;  %2161 = vmatpush.bf16.msra.mxu2 %v3100_v17  ;;  %v3156_v34 = vor.u32 %v4204_v30, %v3155_v28  ;;  %v3083_v37 = vld [vmem:[%s6564_s1 + $0x140] sm:$0xf]  ;;  %v2956_v44 = vor.u32 %v4154_v36, %v2955_v35 }
  0x14   : > { %2175 = vmatpush.bf16.msra.mxu3 %v3164_v21  ;;  %v3028_v38 = vor.u32 %v4172_v32, %v3027_v31  ;;  %v4186_v39 = vld [vmem:[%s6564_s1 + $0x144] sm:$0xf0]  ;;  %v3147_v40 = vld [vmem:[%s6564_s1 + $0x1c0] sm:$0xf]  ;;  %v2947_v47 = vld [vmem:[%s6564_s1 + $0x30] sm:$0xf] }
  0x15   : > { %2147 = vmatpush.bf16.msra.mxu1 %v3036_v25  ;;  %v4202_v41 = vld [vmem:[%s6564_s1 + $0x1c4] sm:$0xf0]  ;;  %v3019_v42 = vld [vmem:[%s6564_s1 + $0xc0] sm:$0xf]  ;;  %v3084_v45 = vor.u32 %v4186_v39, %v3083_v37  ;;  %v4152_v48 = vld [vmem:[%s6564_s1 + $0x34] sm:$0xf0] }
  0x16   : > { %v4170_v43 = vld [vmem:[%s6564_s1 + $0xc4] sm:$0xf0]  ;;  %2134 = vmatpush.bf16.msra.mxu0 %v2964_v29  ;;  %v3148_v46 = vor.u32 %v4202_v41, %v3147_v40  ;;  %v3075_v49 = vld [vmem:[%s6564_s1 + $0x130] sm:$0xf]  ;;  %v4184_v51 = vld [vmem:[%s6564_s1 + $0x134] sm:$0xf0]  ;;  %v2948_v56 = vor.u32 %v4152_v48, %v2947_v47 }
  0x17   : > { %2162 = vmatpush.bf16.msra.mxu2 %v3092_v33  ;;  %v3020_v50 = vor.u32 %v4170_v43, %v3019_v42  ;;  %v3139_v52 = vld [vmem:[%s6564_s1 + $0x1b0] sm:$0xf]  ;;  %v4200_v53 = vld [vmem:[%s6564_s1 + $0x1b4] sm:$0xf0]  ;;  %v3076_v57 = vor.u32 %v4184_v51, %v3075_v49  ;;  %v2939_v59 = vld [vmem:[%s6564_s1 + $0x20] sm:$0xf] }
  0x18   : > { %2176 = vmatpush.bf16.msra.mxu3 %v3156_v34  ;;  %v3011_v54 = vld [vmem:[%s6564_s1 + $0xb0] sm:$0xf]  ;;  %v4168_v55 = vld [vmem:[%s6564_s1 + $0xb4] sm:$0xf0]  ;;  %v3140_v58 = vor.u32 %v4200_v53, %v3139_v52  ;;  %v4150_v60 = vld [vmem:[%s6564_s1 + $0x24] sm:$0xf0] }
  0x19   : > { %2148 = vmatpush.bf16.msra.mxu1 %v3028_v38  ;;  %v3067_v61 = vld [vmem:[%s6564_s1 + $0x120] sm:$0xf]  ;;  %v3012_v62 = vor.u32 %v4168_v55, %v3011_v54  ;;  %v4182_v63 = vld [vmem:[%s6564_s1 + $0x124] sm:$0xf0]  ;;  %v2940_v4 = vor.u32 %v4150_v60, %v2939_v59  ;;  %v2931_v7 = vld [vmem:[%s6564_s1 + $0x10] sm:$0xf] }
  0x1a   : > { %2135 = vmatpush.bf16.msra.mxu0 %v2956_v44  ;;  %v3131_v0 = vld [vmem:[%s6564_s1 + $0x1a0] sm:$0xf]  ;;  %v4198_v1 = vld [vmem:[%s6564_s1 + $0x1a4] sm:$0xf0]  ;;  %v3068_v5 = vor.u32 %v4182_v63, %v3067_v61  ;;  %v4148_v8 = vld [vmem:[%s6564_s1 + $0x14] sm:$0xf0] }
  0x1b   : > { %2163 = vmatpush.bf16.msra.mxu2 %v3084_v45  ;;  %v3003_v2 = vld [vmem:[%s6564_s1 + $0xa0] sm:$0xf]  ;;  %v4166_v3 = vld [vmem:[%s6564_s1 + $0xa4] sm:$0xf0]  ;;  %v3132_v6 = vor.u32 %v4198_v1, %v3131_v0  ;;  %v3059_v9 = vld [vmem:[%s6564_s1 + $0x110] sm:$0xf]  ;;  %v2932_v16 = vor.u32 %v4148_v8, %v2931_v7 }
  0x1c   : > { %2177 = vmatpush.bf16.msra.mxu3 %v3148_v46  ;;  %v3004_v10 = vor.u32 %v4166_v3, %v3003_v2  ;;  %v4180_v11 = vld [vmem:[%s6564_s1 + $0x114] sm:$0xf0]  ;;  %v3123_v12 = vld [vmem:[%s6564_s1 + $0x190] sm:$0xf]  ;;  %v2923_v17 = vld [vmem:[%s6564_s1] sm:$0xf] }
  0x1d   : > { %2149 = vmatpush.bf16.msra.mxu1 %v3020_v50  ;;  %v4196_v13 = vld [vmem:[%s6564_s1 + $0x194] sm:$0xf0]  ;;  %v2995_v14 = vld [vmem:[%s6564_s1 + $0x90] sm:$0xf]  ;;  %v4146_v18 = vld [vmem:[%s6564_s1 + $0x4] sm:$0xf0]  ;;  %v3060_v19 = vor.u32 %v4180_v11, %v3059_v9 }
  0x1e   : > { %2136 = vmatpush.bf16.msra.mxu0 %v2948_v56  ;;  %v4164_v15 = vld [vmem:[%s6564_s1 + $0x94] sm:$0xf0]  ;;  %v3124_v20 = vor.u32 %v4196_v13, %v3123_v12  ;;  %v3051_v21 = vld [vmem:[%s6564_s1 + $0x100] sm:$0xf]  ;;  %v4178_v22 = vld [vmem:[%s6564_s1 + $0x104] sm:$0xf0]  ;;  %v2924_v31 = vor.u32 %v4146_v18, %v2923_v17 }
  0x1f   : > { %2164 = vmatpush.bf16.msra.mxu2 %v3076_v57  ;;  %v3115_v23 = vld [vmem:[%s6564_s1 + $0x180] sm:$0xf]  ;;  %v2996_v24 = vor.u32 %v4164_v15, %v2995_v14  ;;  %v4194_v25 = vld [vmem:[%s6564_s1 + $0x184] sm:$0xf0]  ;;  %v3235_v26 = vld [vmem:[%s6564_s1 + $0x270] sm:$0xf]  ;;  %v3052_v35 = vor.u32 %v4178_v22, %v3051_v21 }
  0x20   : > { %2178 = vmatpush.bf16.msra.mxu3 %v3140_v58  ;;  %v4224_v27 = vld [vmem:[%s6564_s1 + $0x274] sm:$0xf0]  ;;  %v3363_v28 = vld [vmem:[%s6564_s1 + $0x370] sm:$0xf]  ;;  %v2987_v33 = vld [vmem:[%s6564_s1 + $0x80] sm:$0xf]  ;;  %v3116_v36 = vor.u32 %v4194_v25, %v3115_v23 }
  0x21   : > { %2150 = vmatpush.bf16.msra.mxu1 %v3012_v62  ;;  %v4256_v29 = vld [vmem:[%s6564_s1 + $0x374] sm:$0xf0]  ;;  %v3427_v30 = vld [vmem:[%s6564_s1 + $0x3f0] sm:$0xf]  ;;  %v4162_v34 = vld [vmem:[%s6564_s1 + $0x84] sm:$0xf0]  ;;  %v3236_v39 = vor.u32 %v4224_v27, %v3235_v26 }
  0x22   : > { %2137 = vmatpush.bf16.msra.mxu0 %v2940_v4  ;;  %v4272_v32 = vld [vmem:[%s6564_s1 + $0x3f4] sm:$0xf0]  ;;  %v3299_v37 = vld [vmem:[%s6564_s1 + $0x2f0] sm:$0xf]  ;;  %v3364_v40 = vor.u32 %v4256_v29, %v3363_v28  ;;  %v3227_v41 = vld [vmem:[%s6564_s1 + $0x260] sm:$0xf]  ;;  %v2988_v43 = vor.u32 %v4162_v34, %v2987_v33 }
  0x23   : > { %2165 = vmatpush.bf16.msra.mxu2 %v3068_v5  ;;  %v4240_v38 = vld [vmem:[%s6564_s1 + $0x2f4] sm:$0xf0]  ;;  %v3428_v42 = vor.u32 %v4272_v32, %v3427_v30  ;;  %v4222_v44 = vld [vmem:[%s6564_s1 + $0x264] sm:$0xf0]  ;;  %v3355_v45 = vld [vmem:[%s6564_s1 + $0x360] sm:$0xf] }
  0x24   : > { %2179 = vmatpush.bf16.msra.mxu3 %v3132_v6  ;;  %v4254_v46 = vld [vmem:[%s6564_s1 + $0x364] sm:$0xf0]  ;;  %v3300_v47 = vor.u32 %v4240_v38, %v3299_v37  ;;  %v3419_v48 = vld [vmem:[%s6564_s1 + $0x3e0] sm:$0xf]  ;;  %v3228_v52 = vor.u32 %v4222_v44, %v3227_v41  ;;  %v3219_v54 = vld [vmem:[%s6564_s1 + $0x250] sm:$0xf] }
  0x25   : > { %2151 = vmatpush.bf16.msra.mxu1 %v3004_v10  ;;  %v4270_v49 = vld [vmem:[%s6564_s1 + $0x3e4] sm:$0xf0]  ;;  %v3291_v50 = vld [vmem:[%s6564_s1 + $0x2e0] sm:$0xf]  ;;  %v3356_v53 = vor.u32 %v4254_v46, %v3355_v45  ;;  %v4220_v56 = vld [vmem:[%s6564_s1 + $0x254] sm:$0xf0] }
  0x26   : > { %2138 = vmatpush.bf16.msra.mxu0 %v2932_v16  ;;  %v4238_v51 = vld [vmem:[%s6564_s1 + $0x2e4] sm:$0xf0]  ;;  %v3420_v55 = vor.u32 %v4270_v49, %v3419_v48  ;;  %v3347_v57 = vld [vmem:[%s6564_s1 + $0x350] sm:$0xf]  ;;  %v4252_v58 = vld [vmem:[%s6564_s1 + $0x354] sm:$0xf0]  ;;  %v3220_v0 = vor.u32 %v4220_v56, %v3219_v54 }
  0x27   : > { %2166 = vmatpush.bf16.msra.mxu2 %v3060_v19  ;;  %v3292_v59 = vor.u32 %v4238_v51, %v3291_v50  ;;  %v3411_v60 = vld [vmem:[%s6564_s1 + $0x3d0] sm:$0xf]  ;;  %v4268_v61 = vld [vmem:[%s6564_s1 + $0x3d4] sm:$0xf0]  ;;  %s6569_s7 = smov (!%p193_p3, %s2840_s7), 3  ;;  %v3348_v1 = vor.u32 %v4252_v58, %v3347_v57  ;;  %vm2128_vm0 = vcmask 785408  }
  0x28   : > { %2180 = vmatpush.bf16.msra.mxu3 %v3124_v20  ;;  %v3283_v62 = vld [vmem:[%s6564_s1 + $0x2d0] sm:$0xf]  ;;  %v4236_v63 = vld [vmem:[%s6564_s1 + $0x2d4] sm:$0xf0]  ;;  %v3211_v2 = vld [vmem:[%s6564_s1 + $0x240] sm:$0xf]  ;;  %v3412_v4 = vor.u32 %v4268_v61, %v3411_v60 }
  0x29   : > { %2152 = vmatpush.bf16.msra.mxu1 %v2996_v24  ;;  %v4218_v3 = vld [vmem:[%s6564_s1 + $0x244] sm:$0xf0]  ;;  %s4445_s29 = smul.u32 76, %s6569_s7  ;;  %v3339_v5 = vld [vmem:[%s6564_s1 + $0x340] sm:$0xf]  ;;  %v3284_v8 = vor.u32 %v4236_v63, %v3283_v62  ;;  %s4125_s25 = sshll.u32 %s6569_s7, 3 }
  0x2a   : > { %2139 = vmatpush.bf16.msra.mxu0 %v2924_v31  ;;  %v4250_v6 = vld [vmem:[%s6564_s1 + $0x344] sm:$0xf0]  ;;  %v3403_v7 = vld [vmem:[%s6564_s1 + $0x3c0] sm:$0xf]  ;;  %v3203_v15 = vld [vmem:[%s6564_s1 + $0x230] sm:$0xf]  ;;  %v3212_v18 = vor.u32 %v4218_v3, %v3211_v2  ;;  %s204_s28 = scalar_lea.vmem %s6567_s4, %s4125_s25 }
  0x2b   : > { %2167 = vmatpush.bf16.msra.mxu2 %v3052_v35  ;;  %v4266_v9 = vld [vmem:[%s6564_s1 + $0x3c4] sm:$0xf0]  ;;  %v3275_v10 = vld [vmem:[%s6564_s1 + $0x2c0] sm:$0xf]  ;;  %s4805_s20 = scalar_lea.vmem %s6563_s0, %s4445_s29  ;;  %v4216_v16 = vld [vmem:[%s6564_s1 + $0x234] sm:$0xf0]  ;;  %v3340_v19 = vor.u32 %v4250_v6, %v3339_v5 }
  0x2c   : > { %2181 = vmatpush.bf16.msra.mxu3 %v3116_v36  ;;  %v4234_v11 = vld [vmem:[%s6564_s1 + $0x2c4] sm:$0xf0]  ;;  %v2847_v12 = vld [vmem:[%s4805_s20] sm:$0xf]  ;;  %v4135_v13 = vld [vmem:[%s4805_s20 + $0x48] sm:$0xf0]  ;;  %v3404_v24 = vor.u32 %v4266_v9, %v3403_v7  ;;  %v3204_v36 = vor.u32 %v4216_v16, %v3203_v15 }
  0x2d   : > { %2153 = vmatpush.bf16.msra.mxu1 %v2988_v43  ;;  %v2855_v14 = vld [vmem:[%s4805_s20 + $0x8] sm:$0xf]  ;;  %v3331_v17 = vld [vmem:[%s6564_s1 + $0x330] sm:$0xf]  ;;  %v4819_v20 = vor.u32 %v4135_v13, %v2847_v12  ;;  %v4136_v21 = vld [vmem:[%s4805_s20 + $0x50] sm:$0xf0]  ;;  %v3276_v30 = vor.u32 %v4234_v11, %v3275_v10 }
  0x2e   : > { %2188 = vmatpush.bf16.msrb.mxu0 %v3236_v39  ;;  %v4126_v22 = vld [vmem:[%s4805_s20 + $0x4] sm:$0xf]  ;;  %v2849_v23 = vld [vmem:[%s4805_s20 + $0x4c] sm:$0xf0]  ;;  %v4824_v25 = vor.u32 %v4136_v21, %v2855_v14  ;;  %v4248_v26 = vld [vmem:[%s6564_s1 + $0x334] sm:$0xf0] }
  0x2f   : > { %2216 = vmatpush.bf16.msrb.mxu2 %v3364_v40  ;;  %v4829_v27 = vor.u32 %v4126_v22, %v2849_v23  ;;  %v4127_v28 = vld [vmem:[%s4805_s20 + $0xc] sm:$0xf]  ;;  %v2857_v29 = vld [vmem:[%s4805_s20 + $0x54] sm:$0xf0]  ;;  %2140 = vmatmul.bf16.vlgmr.msra.gmra.mxu0 %v4819_v20  ;;  %v3395_v31 = vld [vmem:[%s6564_s1 + $0x3b0] sm:$0xf]  ;;  %v3332_v37 = vor.u32 %v4248_v26, %v3331_v17 }
  0x30   : > { %2230 = vmatpush.bf16.msrb.mxu3 %v3428_v42  ;;  %v4264_v32 = vld [vmem:[%s6564_s1 + $0x3b4] sm:$0xf0]  ;;  %v4840_v33 = vor.u32 %v4127_v28, %v2857_v29  ;;  %2168 = vmatmul.bf16.vlgmr.msra.gmra.mxu2 %v4824_v25  ;;  %v3267_v34 = vld [vmem:[%s6564_s1 + $0x2b0] sm:$0xf]  ;;  %v3195_v38 = vld [vmem:[%s6564_s1 + $0x220] sm:$0xf] }
  0x31   : > { %2202 = vmatpush.bf16.msrb.mxu1 %v3300_v47  ;;  %v4232_v35 = vld [vmem:[%s6564_s1 + $0x2b4] sm:$0xf0]  ;;  %v3396_v39 = vor.u32 %v4264_v32, %v3395_v31  ;;  %v4214_v40 = vld [vmem:[%s6564_s1 + $0x224] sm:$0xf0]  ;;  %v3323_v41 = vld [vmem:[%s6564_s1 + $0x320] sm:$0xf] }
  0x32   : > { %2189 = vmatpush.bf16.msrb.mxu0 %v3228_v52  ;;  %2154 = vmatmul.bf16.vlgmr.msra.gmra.mxu1 %v4829_v27  ;;  %v4246_v42 = vld [vmem:[%s6564_s1 + $0x324] sm:$0xf0]  ;;  %v3268_v43 = vor.u32 %v4232_v35, %v3267_v34  ;;  %v3387_v44 = vld [vmem:[%s6564_s1 + $0x3a0] sm:$0xf]  ;;  %v3196_v48 = vor.u32 %v4214_v40, %v3195_v38  ;;  %v3187_v50 = vld [vmem:[%s6564_s1 + $0x210] sm:$0xf] }
  0x33   : > { %2217 = vmatpush.bf16.msrb.mxu2 %v3356_v53  ;;  %2182 = vmatmul.bf16.vlgmr.msra.gmra.mxu3 %v4840_v33  ;;  %v4262_v45 = vld [vmem:[%s6564_s1 + $0x3a4] sm:$0xf0]  ;;  %v3259_v46 = vld [vmem:[%s6564_s1 + $0x2a0] sm:$0xf]  ;;  %v3324_v49 = vor.u32 %v4246_v42, %v3323_v41  ;;  %v4212_v51 = vld [vmem:[%s6564_s1 + $0x214] sm:$0xf0] }
  0x34   : > { %2231 = vmatpush.bf16.msrb.mxu3 %v3420_v55  ;;  %v4230_v47 = vld [vmem:[%s6564_s1 + $0x2a4] sm:$0xf0]  ;;  %v3388_v52 = vor.u32 %v4262_v45, %v3387_v44  ;;  %v3315_v53 = vld [vmem:[%s6564_s1 + $0x310] sm:$0xf]  ;;  %v4244_v54 = vld [vmem:[%s6564_s1 + $0x314] sm:$0xf0] }
  0x35   : > { %2203 = vmatpush.bf16.msrb.mxu1 %v3292_v59  ;;  %v3379_v55 = vld [vmem:[%s6564_s1 + $0x390] sm:$0xf]  ;;  %v3260_v56 = vor.u32 %v4230_v47, %v3259_v46  ;;  %v4260_v57 = vld [vmem:[%s6564_s1 + $0x394] sm:$0xf0]  ;;  %v3179_v60 = vld [vmem:[%s6564_s1 + $0x200] sm:$0xf] }
  0x36   : > { %2190 = vmatpush.bf16.msrb.mxu0 %v3220_v0  ;;  %v3251_v58 = vld [vmem:[%s6564_s1 + $0x290] sm:$0xf]  ;;  %v4228_v59 = vld [vmem:[%s6564_s1 + $0x294] sm:$0xf0]  ;;  %v4210_v61 = vld [vmem:[%s6564_s1 + $0x204] sm:$0xf0]  ;;  %v3188_v0 = vor.u32 %v4212_v51, %v3187_v50  ;;  %v3380_v5 = vor.u32 %v4260_v57, %v3379_v55 }
  0x37   : > { %2218 = vmatpush.bf16.msrb.mxu2 %v3348_v1  ;;  %v3307_v62 = vld [vmem:[%s6564_s1 + $0x300] sm:$0xf]  ;;  %v4242_v63 = vld [vmem:[%s6564_s1 + $0x304] sm:$0xf0]  ;;  %v3316_v1 = vor.u32 %v4244_v54, %v3315_v53  ;;  %v4288_v6 = vld [vmem:[%s6564_s1 + $0x474] sm:$0xf0]  ;;  %v3252_v9 = vor.u32 %v4228_v59, %v3251_v58  ;;  %v3180_v16 = vor.u32 %v4210_v61, %v3179_v60 }
  0x38   : > { %2232 = vmatpush.bf16.msrb.mxu3 %v3412_v4  ;;  %v3371_v2 = vld [vmem:[%s6564_s1 + $0x380] sm:$0xf]  ;;  %v4258_v3 = vld [vmem:[%s6564_s1 + $0x384] sm:$0xf0]  ;;  %v3491_v4 = vld [vmem:[%s6564_s1 + $0x470] sm:$0xf]  ;;  %v3308_v17 = vor.u32 %v4242_v63, %v3307_v62 }
  0x39   : > { %2204 = vmatpush.bf16.msrb.mxu1 %v3284_v8  ;;  %v3619_v7 = vld [vmem:[%s6564_s1 + $0x570] sm:$0xf]  ;;  %v4320_v8 = vld [vmem:[%s6564_s1 + $0x574] sm:$0xf0]  ;;  %v3243_v12 = vld [vmem:[%s6564_s1 + $0x280] sm:$0xf]  ;;  %v3372_v22 = vor.u32 %v4258_v3, %v3371_v2  ;;  %v3492_v23 = vor.u32 %v4288_v6, %v3491_v4 }
  0x3a   : > { %2191 = vmatpush.bf16.msrb.mxu0 %v3212_v18  ;;  %v3683_v10 = vld [vmem:[%s6564_s1 + $0x5f0] sm:$0xf]  ;;  %v4336_v11 = vld [vmem:[%s6564_s1 + $0x5f4] sm:$0xf0]  ;;  %v4226_v13 = vld [vmem:[%s6564_s1 + $0x284] sm:$0xf0]  ;;  %v3620_v29 = vor.u32 %v4320_v8, %v3619_v7 }
  0x3b   : > { %2219 = vmatpush.bf16.msrb.mxu2 %v3340_v19  ;;  %v2863_v14 = vld [vmem:[%s4805_s20 + $0x10] sm:$0xf]  ;;  %v4137_v15 = vld [vmem:[%s4805_s20 + $0x58] sm:$0xf0]  ;;  %v2871_v18 = vld [vmem:[%s4805_s20 + $0x18] sm:$0xf]  ;;  %v3244_v35 = vor.u32 %v4226_v13, %v3243_v12 }
  0x3c   : > { %2233 = vmatpush.bf16.msrb.mxu3 %v3404_v24  ;;  %v4138_v19 = vld [vmem:[%s4805_s20 + $0x60] sm:$0xf0]  ;;  %v3555_v21 = vld [vmem:[%s6564_s1 + $0x4f0] sm:$0xf]  ;;  %v4304_v24 = vld [vmem:[%s6564_s1 + $0x4f4] sm:$0xf0] }
  0x3d   : > { %2205 = vmatpush.bf16.msrb.mxu1 %v3276_v30  ;;  %v4128_v26 = vld [vmem:[%s4805_s20 + $0x14] sm:$0xf]  ;;  %v4129_v28 = vld [vmem:[%s4805_s20 + $0x1c] sm:$0xf]  ;;  %v3684_v30 = vor.u32 %v4336_v11, %v3683_v10  ;;  %v2873_v31 = vld [vmem:[%s4805_s20 + $0x64] sm:$0xf0]  ;;  %v4969_v40 = vor.u32 %v4138_v19, %v2871_v18  ;;  %v3556_v41 = vor.u32 %v4304_v24, %v3555_v21 }
  0x3e   : > { %2192 = vmatpush.bf16.msrb.mxu0 %v3204_v36  ;;  %v3483_v32 = vld [vmem:[%s6564_s1 + $0x460] sm:$0xf]  ;;  %v4286_v34 = vld [vmem:[%s6564_s1 + $0x464] sm:$0xf0]  ;;  %v4960_v36 = vor.u32 %v4137_v15, %v2863_v14  ;;  %v4977_v44 = vor.u32 %v4129_v28, %v2873_v31  ;;  %v3475_v50 = vld [vmem:[%s6564_s1 + $0x450] sm:$0xf] }
  0x3f   : > { %2220 = vmatpush.bf16.msrb.mxu2 %v3332_v37  ;;  %v2865_v37 = vld [vmem:[%s4805_s20 + $0x5c] sm:$0xf0]  ;;  %v3484_v45 = vor.u32 %v4286_v34, %v3483_v32  ;;  %v4302_v47 = vld [vmem:[%s6564_s1 + $0x4e4] sm:$0xf0]  ;;  %v4284_v51 = vld [vmem:[%s6564_s1 + $0x454] sm:$0xf0] }
  0x40   : > { %2234 = vmatpush.bf16.msrb.mxu3 %v3396_v39  ;;  %v3611_v38 = vld [vmem:[%s6564_s1 + $0x560] sm:$0xf]  ;;  %v4318_v39 = vld [vmem:[%s6564_s1 + $0x564] sm:$0xf0]  ;;  %v3603_v53 = vld [vmem:[%s6564_s1 + $0x550] sm:$0xf]  ;;  %v3476_v58 = vor.u32 %v4284_v51, %v3475_v50 }
  0x41   : > { %2206 = vmatpush.bf16.msrb.mxu1 %v3268_v43  ;;  %v3675_v42 = vld [vmem:[%s6564_s1 + $0x5e0] sm:$0xf]  ;;  %v4334_v43 = vld [vmem:[%s6564_s1 + $0x5e4] sm:$0xf0]  ;;  %v4316_v54 = vld [vmem:[%s6564_s1 + $0x554] sm:$0xf0] }
  0x42   : > { %2193 = vmatpush.bf16.msrb.mxu0 %v3196_v48  ;;  %v3547_v46 = vld [vmem:[%s6564_s1 + $0x4e0] sm:$0xf]  ;;  %v4985_v48 = vor.u32 %v4128_v26, %v2865_v37  ;;  %v4332_v57 = vld [vmem:[%s6564_s1 + $0x5d4] sm:$0xf0]  ;;  %v3539_v59 = vld [vmem:[%s6564_s1 + $0x4d0] sm:$0xf]  ;;  %v3604_v61 = vor.u32 %v4316_v54, %v3603_v53 }
  0x43   : > { %2221 = vmatpush.bf16.msrb.mxu2 %v3324_v49  ;;  %v3612_v49 = vor.u32 %v4318_v39, %v3611_v38  ;;  %v3548_v55 = vor.u32 %v4302_v47, %v3547_v46  ;;  %v4300_v60 = vld [vmem:[%s6564_s1 + $0x4d4] sm:$0xf0]  ;;  %v3467_v62 = vld [vmem:[%s6564_s1 + $0x440] sm:$0xf]  ;;  %v4282_v63 = vld [vmem:[%s6564_s1 + $0x444] sm:$0xf0] }
  0x44   : > { %2235 = vmatpush.bf16.msrb.mxu3 %v3388_v52  ;;  %v3676_v52 = vor.u32 %v4334_v43, %v3675_v42  ;;  %v4314_v2 = vld [vmem:[%s6564_s1 + $0x544] sm:$0xf0]  ;;  %v3540_v3 = vor.u32 %v4300_v60, %v3539_v59  ;;  %v3659_v4 = vld [vmem:[%s6564_s1 + $0x5c0] sm:$0xf]  ;;  %v3468_v6 = vor.u32 %v4282_v63, %v3467_v62  ;;  %v3459_v10 = vld [vmem:[%s6564_s1 + $0x430] sm:$0xf] }
  0x45   : > { %2207 = vmatpush.bf16.msrb.mxu1 %v3260_v56  ;;  %v3667_v56 = vld [vmem:[%s6564_s1 + $0x5d0] sm:$0xf]  ;;  %v3531_v7 = vld [vmem:[%s6564_s1 + $0x4c0] sm:$0xf]  ;;  %v4298_v8 = vld [vmem:[%s6564_s1 + $0x4c4] sm:$0xf0] }
  0x46   : > { %2194 = vmatpush.bf16.msrb.mxu0 %v3188_v0  ;;  %v3668_v0 = vor.u32 %v4332_v57, %v3667_v56  ;;  %v4280_v11 = vld [vmem:[%s6564_s1 + $0x434] sm:$0xf0]  ;;  %v3587_v13 = vld [vmem:[%s6564_s1 + $0x530] sm:$0xf]  ;;  %v3532_v15 = vor.u32 %v4298_v8, %v3531_v7  ;;  %v4278_v24 = vld [vmem:[%s6564_s1 + $0x424] sm:$0xf0] }
  0x47   : > { %2222 = vmatpush.bf16.msrb.mxu2 %v3316_v1  ;;  %v3595_v1 = vld [vmem:[%s6564_s1 + $0x540] sm:$0xf]  ;;  %v4312_v14 = vld [vmem:[%s6564_s1 + $0x534] sm:$0xf0]  ;;  %v3460_v18 = vor.u32 %v4280_v11, %v3459_v10  ;;  %v3523_v19 = vld [vmem:[%s6564_s1 + $0x4b0] sm:$0xf] }
  0x48   : > { %2236 = vmatpush.bf16.msrb.mxu3 %v3380_v5  ;;  %v4330_v5 = vld [vmem:[%s6564_s1 + $0x5c4] sm:$0xf0]  ;;  %v4296_v21 = vld [vmem:[%s6564_s1 + $0x4b4] sm:$0xf0]  ;;  %v3579_v28 = vld [vmem:[%s6564_s1 + $0x520] sm:$0xf] }
  0x49   : > { %2208 = vmatpush.bf16.msrb.mxu1 %v3252_v9  ;;  %v3596_v9 = vor.u32 %v4314_v2, %v3595_v1  ;;  %v3660_v12 = vor.u32 %v4330_v5, %v3659_v4  ;;  %v3643_v31 = vld [vmem:[%s6564_s1 + $0x5a0] sm:$0xf]  ;;  %v4326_v32 = vld [vmem:[%s6564_s1 + $0x5a4] sm:$0xf0]  ;;  %v3443_v39 = vld [vmem:[%s6564_s1 + $0x410] sm:$0xf] }
  0x4a   : > { %2195 = vmatpush.bf16.msrb.mxu0 %v3180_v16  ;;  %v3651_v16 = vld [vmem:[%s6564_s1 + $0x5b0] sm:$0xf]  ;;  %v4294_v37 = vld [vmem:[%s6564_s1 + $0x4a4] sm:$0xf0]  ;;  %v3644_v43 = vor.u32 %v4326_v32, %v3643_v31  ;;  %v4324_v47 = vld [vmem:[%s6564_s1 + $0x594] sm:$0xf0] }
  0x4b   : > { %2223 = vmatpush.bf16.msrb.mxu2 %v3308_v17  ;;  %v4328_v17 = vld [vmem:[%s6564_s1 + $0x5b4] sm:$0xf0]  ;;  %v3571_v42 = vld [vmem:[%s6564_s1 + $0x510] sm:$0xf]  ;;  %v4274_v54 = vld [vmem:[%s6564_s1 + $0x404] sm:$0xf0] }
  0x4c   : > { %2237 = vmatpush.bf16.msrb.mxu3 %v3372_v22  ;;  %v3588_v22 = vor.u32 %v4312_v14, %v3587_v13  ;;  %v3652_v26 = vor.u32 %v4328_v17, %v3651_v16  ;;  %v3635_v46 = vld [vmem:[%s6564_s1 + $0x590] sm:$0xf]  ;;  %v4292_v51 = vld [vmem:[%s6564_s1 + $0x494] sm:$0xf0]  ;;  %v4306_v56 = vld [vmem:[%s6564_s1 + $0x504] sm:$0xf0] }
  0x4d   : > { %2209 = vmatpush.bf16.msrb.mxu1 %v3244_v35  ;;  %2196 = vmatmul.bf16.vlgmr.msrb.gmra.mxu0 %v4960_v36  ;;  %v3515_v35 = vld [vmem:[%s6564_s1 + $0x4a0] sm:$0xf]  ;;  %v3507_v50 = vld [vmem:[%s6564_s1 + $0x490] sm:$0xf]  ;;  %v4322_v59 = vld [vmem:[%s6564_s1 + $0x584] sm:$0xf0]  ;;  %v3636_v63 = vor.u32 %v4324_v47, %v3635_v46 }
  0x4e   : > { %2244 = vmatpush.bf16.msra.mxu0 %v3492_v23  ;;  %2224 = vmatmul.bf16.vlgmr.msrb.gmra.mxu2 %v4969_v40  ;;  %v3451_v23 = vld [vmem:[%s6564_s1 + $0x420] sm:$0xf]  ;;  %v3747_v60 = vld [vmem:[%s6564_s1 + $0x670] sm:$0xf]  ;;  %v4400_v2 = vld [vmem:[%s6564_s1 + $0x7f4] sm:$0xf0] }
  0x4f   : > { %2272 = vmatpush.bf16.msra.mxu2 %v3620_v29  ;;  %2238 = vmatmul.bf16.vlgmr.msrb.gmra.mxu3 %v4977_v44  ;;  %v4310_v29 = vld [vmem:[%s6564_s1 + $0x524] sm:$0xf0]  ;;  %v3452_v34 = vor.u32 %v4278_v24, %v3451_v23  ;;  %v3875_v62 = vld [vmem:[%s6564_s1 + $0x770] sm:$0xf]  ;;  %v3499_v4 = vld [vmem:[%s6564_s1 + $0x480] sm:$0xf] }
  0x50   : > { %2286 = vmatpush.bf16.msra.mxu3 %v3684_v30  ;;  %2210 = vmatmul.bf16.vlgmr.msrb.gmra.mxu1 %v4985_v48  ;;  %v3524_v30 = vor.u32 %v4296_v21, %v3523_v19  ;;  %v3580_v38 = vor.u32 %v4310_v29, %v3579_v28  ;;  %v3939_v1 = vld [vmem:[%s6564_s1 + $0x7f0] sm:$0xf]  ;;  %v4290_v5 = vld [vmem:[%s6564_s1 + $0x484] sm:$0xf0]  ;;  %v4139_v8 = vld [vmem:[%s4805_s20 + $0x68] sm:$0xf0] }
  0x51   : > { %2258 = vmatpush.bf16.msra.mxu1 %v3556_v41  ;;  %v4276_v41 = vld [vmem:[%s6564_s1 + $0x414] sm:$0xf0]  ;;  %v4140_v10 = vld [vmem:[%s4805_s20 + $0x70] sm:$0xf0]  ;;  %v3811_v13 = vld [vmem:[%s6564_s1 + $0x6f0] sm:$0xf]  ;;  %v3500_v23 = vor.u32 %v4290_v5, %v3499_v4 }
  0x52   : > { %2245 = vmatpush.bf16.msra.mxu0 %v3484_v45  ;;  %v4308_v45 = vld [vmem:[%s6564_s1 + $0x514] sm:$0xf0]  ;;  %v3444_v53 = vor.u32 %v4276_v41, %v3443_v39  ;;  %v4131_v19 = vld [vmem:[%s4805_s20 + $0x2c] sm:$0xf]  ;;  %v3739_v24 = vld [vmem:[%s6564_s1 + $0x660] sm:$0xf] }
  0x53   : > { %2273 = vmatpush.bf16.msra.mxu2 %v3612_v49  ;;  %v3516_v49 = vor.u32 %v4294_v37, %v3515_v35  ;;  %v3572_v57 = vor.u32 %v4308_v45, %v3571_v42  ;;  %v4368_v14 = vld [vmem:[%s6564_s1 + $0x6f4] sm:$0xf0]  ;;  %v3867_v28 = vld [vmem:[%s6564_s1 + $0x760] sm:$0xf]  ;;  %v4382_v31 = vld [vmem:[%s6564_s1 + $0x764] sm:$0xf0] }
  0x54   : > { %2287 = vmatpush.bf16.msra.mxu3 %v3676_v52  ;;  %v3435_v52 = vld [vmem:[%s6564_s1 + $0x400] sm:$0xf]  ;;  %v2889_v21 = vld [vmem:[%s4805_s20 + $0x74] sm:$0xf0]  ;;  %v3812_v35 = vor.u32 %v4368_v14, %v3811_v13  ;;  %v4366_v42 = vld [vmem:[%s6564_s1 + $0x6e4] sm:$0xf0] }
  0x55   : > { %2259 = vmatpush.bf16.msra.mxu1 %v3548_v55  ;;  %v3563_v55 = vld [vmem:[%s6564_s1 + $0x500] sm:$0xf]  ;;  %v3436_v7 = vor.u32 %v4274_v54, %v3435_v52  ;;  %v5189_v37 = vor.u32 %v4131_v19, %v2889_v21  ;;  %v3731_v46 = vld [vmem:[%s6564_s1 + $0x650] sm:$0xf]  ;;  %v4348_v47 = vld [vmem:[%s6564_s1 + $0x654] sm:$0xf0] }
  0x56   : > { %2246 = vmatpush.bf16.msra.mxu0 %v3476_v58  ;;  %v3627_v58 = vld [vmem:[%s6564_s1 + $0x580] sm:$0xf]  ;;  %v3564_v11 = vor.u32 %v4306_v56, %v3563_v55  ;;  %v4396_v52 = vld [vmem:[%s6564_s1 + $0x7d4] sm:$0xf0]  ;;  %v3732_v54 = vor.u32 %v4348_v47, %v3731_v46  ;;  %v3795_v55 = vld [vmem:[%s6564_s1 + $0x6d0] sm:$0xf] }
  0x57   : > { %2274 = vmatpush.bf16.msra.mxu2 %v3604_v61  ;;  %v4352_v61 = vld [vmem:[%s6564_s1 + $0x674] sm:$0xf0]  ;;  %v3628_v16 = vor.u32 %v4322_v59, %v3627_v58  ;;  %v3931_v32 = vld [vmem:[%s6564_s1 + $0x7e0] sm:$0xf]  ;;  %v4362_v4 = vld [vmem:[%s6564_s1 + $0x6c4] sm:$0xf0] }
  0x58   : > { %2288 = vmatpush.bf16.msra.mxu3 %v3668_v0  ;;  %v4384_v0 = vld [vmem:[%s6564_s1 + $0x774] sm:$0xf0]  ;;  %v3803_v41 = vld [vmem:[%s6564_s1 + $0x6e0] sm:$0xf]  ;;  %v4342_v21 = vld [vmem:[%s6564_s1 + $0x624] sm:$0xf0] }
  0x59   : > { %2260 = vmatpush.bf16.msra.mxu1 %v3540_v3  ;;  %v3508_v3 = vor.u32 %v4292_v51, %v3507_v50  ;;  %v3876_v17 = vor.u32 %v4384_v0, %v3875_v62  ;;  %v4380_v50 = vld [vmem:[%s6564_s1 + $0x754] sm:$0xf0]  ;;  %v3923_v51 = vld [vmem:[%s6564_s1 + $0x7d0] sm:$0xf]  ;;  %v3723_v59 = vld [vmem:[%s6564_s1 + $0x640] sm:$0xf] }
  0x5a   : > { %2247 = vmatpush.bf16.msra.mxu0 %v3468_v6  ;;  %v2879_v6 = vld [vmem:[%s4805_s20 + $0x20] sm:$0xf]  ;;  %v4364_v56 = vld [vmem:[%s6564_s1 + $0x6d4] sm:$0xf0]  ;;  %v3924_v58 = vor.u32 %v4396_v52, %v3923_v51  ;;  %v4378_v62 = vld [vmem:[%s6564_s1 + $0x744] sm:$0xf0] }
  0x5b   : > { %2275 = vmatpush.bf16.msra.mxu2 %v3596_v9  ;;  %v2887_v9 = vld [vmem:[%s4805_s20 + $0x28] sm:$0xf]  ;;  %v5176_v29 = vor.u32 %v4139_v8, %v2879_v6  ;;  %v4344_v8 = vld [vmem:[%s6564_s1 + $0x634] sm:$0xf0]  ;;  %v3707_v19 = vld [vmem:[%s6564_s1 + $0x620] sm:$0xf] }
  0x5c   : > { %2289 = vmatpush.bf16.msra.mxu3 %v3660_v12  ;;  %v3748_v12 = vor.u32 %v4352_v61, %v3747_v60  ;;  %v4346_v60 = vld [vmem:[%s6564_s1 + $0x644] sm:$0xf0]  ;;  %v3851_v61 = vld [vmem:[%s6564_s1 + $0x740] sm:$0xf]  ;;  %v3891_v46 = vld [vmem:[%s6564_s1 + $0x790] sm:$0xf] }
  0x5d   : > { %2261 = vmatpush.bf16.msra.mxu1 %v3532_v15  ;;  %v4130_v15 = vld [vmem:[%s4805_s20 + $0x24] sm:$0xf]  ;;  %v4394_v0 = vld [vmem:[%s6564_s1 + $0x7c4] sm:$0xf0]  ;;  %v3852_v5 = vor.u32 %v4378_v62, %v3851_v61  ;;  %v4388_v47 = vld [vmem:[%s6564_s1 + $0x794] sm:$0xf0] }
  0x5e   : > { %2248 = vmatpush.bf16.msra.mxu0 %v3460_v18  ;;  %v2881_v18 = vld [vmem:[%s4805_s20 + $0x6c] sm:$0xf0]  ;;  %v4356_v51 = vld [vmem:[%s6564_s1 + $0x694] sm:$0xf0]  ;;  %v3691_v52 = vld [vmem:[%s6564_s1 + $0x600] sm:$0xf] }
  0x5f   : > { %2276 = vmatpush.bf16.msra.mxu2 %v3588_v22  ;;  %v3940_v22 = vor.u32 %v4400_v2, %v3939_v1  ;;  %v3796_v1 = vor.u32 %v4364_v56, %v3795_v55  ;;  %v3724_v2 = vor.u32 %v4346_v60, %v3723_v59  ;;  %v3819_v55 = vld [vmem:[%s6564_s1 + $0x700] sm:$0xf]  ;;  %v4370_v56 = vld [vmem:[%s6564_s1 + $0x704] sm:$0xf0]  ;;  %v3892_v60 = vor.u32 %v4388_v47, %v3891_v46  ;;  %v4003_v61 = vld [vmem:[%s6564_s1 + $0x870] sm:$0xf] }
  0x60   : > { %2290 = vmatpush.bf16.msra.mxu3 %v3652_v26  ;;  %v4350_v26 = vld [vmem:[%s6564_s1 + $0x664] sm:$0xf0]  ;;  %v4416_v62 = vld [vmem:[%s6564_s1 + $0x874] sm:$0xf0]  ;;  %v4059_v46 = vld [vmem:[%s6564_s1 + $0x8e0] sm:$0xf] }
  0x61   : > { %2262 = vmatpush.bf16.msra.mxu1 %v3524_v30  ;;  %v5178_v30 = vor.u32 %v4140_v10, %v2887_v9  ;;  %v3740_v39 = vor.u32 %v4350_v26, %v3739_v24  ;;  %v3843_v9 = vld [vmem:[%s6564_s1 + $0x730] sm:$0xf]  ;;  %v4376_v10 = vld [vmem:[%s6564_s1 + $0x734] sm:$0xf0]  ;;  %v3899_v24 = vld [vmem:[%s6564_s1 + $0x7a0] sm:$0xf] }
  0x62   : > { %2249 = vmatpush.bf16.msra.mxu0 %v3452_v34  ;;  %v4398_v34 = vld [vmem:[%s6564_s1 + $0x7e4] sm:$0xf0] }
  0x63   : > { %2277 = vmatpush.bf16.msra.mxu2 %v3580_v38  ;;  %v5191_v38 = vor.u32 %v4130_v15, %v2881_v18  ;;  %v3932_v45 = vor.u32 %v4398_v34, %v3931_v32  ;;  %v3779_v15 = vld [vmem:[%s6564_s1 + $0x6b0] sm:$0xf]  ;;  %v4390_v26 = vld [vmem:[%s6564_s1 + $0x7a4] sm:$0xf0]  ;;  %v3771_v32 = vld [vmem:[%s6564_s1 + $0x6a0] sm:$0xf] }
  0x64   : > { %2291 = vmatpush.bf16.msra.mxu3 %v3644_v43  ;;  %v3868_v43 = vor.u32 %v4382_v31, %v3867_v28  ;;  %v3708_v31 = vor.u32 %v4342_v21, %v3707_v19  ;;  %v4358_v34 = vld [vmem:[%s6564_s1 + $0x6a4] sm:$0xf0]  ;;  %v4133_v19 = vld [vmem:[%s4805_s20 + $0x3c] sm:$0xf] }
  0x65   : > { %2263 = vmatpush.bf16.msra.mxu1 %v3516_v49  ;;  %v3859_v49 = vld [vmem:[%s6564_s1 + $0x750] sm:$0xf]  ;;  %v2905_v21 = vld [vmem:[%s4805_s20 + $0x84] sm:$0xf0] }
  0x66   : > { %2250 = vmatpush.bf16.msra.mxu0 %v3444_v53  ;;  %v3804_v53 = vor.u32 %v4366_v42, %v3803_v41  ;;  %v3900_v41 = vor.u32 %v4390_v26, %v3899_v24  ;;  %v4340_v42 = vld [vmem:[%s6564_s1 + $0x614] sm:$0xf0]  ;;  %v3995_v24 = vld [vmem:[%s6564_s1 + $0x860] sm:$0xf]  ;;  %v4414_v26 = vld [vmem:[%s6564_s1 + $0x864] sm:$0xf0] }
  0x67   : > { %2278 = vmatpush.bf16.msra.mxu2 %v3572_v57  ;;  %v3860_v57 = vor.u32 %v4380_v50, %v3859_v49  ;;  %v3763_v49 = vld [vmem:[%s6564_s1 + $0x690] sm:$0xf]  ;;  %v3772_v50 = vor.u32 %v4358_v34, %v3771_v32  ;;  %v4442_v34 = vld [vmem:[%s6564_s1 + $0x944] sm:$0xf0] }
  0x68   : > { %2292 = vmatpush.bf16.msra.mxu3 %v3636_v63  ;;  %v3915_v63 = vld [vmem:[%s6564_s1 + $0x7c0] sm:$0xf]  ;;  %v4430_v47 = vld [vmem:[%s6564_s1 + $0x8e4] sm:$0xf0] }
  0x69   : > { %2264 = vmatpush.bf16.msra.mxu1 %v3508_v3  ;;  %v3787_v3 = vld [vmem:[%s6564_s1 + $0x6c0] sm:$0xf]  ;;  %v3916_v6 = vor.u32 %v4394_v0, %v3915_v63  ;;  %v4115_v63 = vld [vmem:[%s6564_s1 + $0x950] sm:$0xf]  ;;  %v4444_v0 = vld [vmem:[%s6564_s1 + $0x954] sm:$0xf0] }
  0x6a   : > { %2251 = vmatpush.bf16.msra.mxu0 %v3436_v7  ;;  %v3715_v7 = vld [vmem:[%s6564_s1 + $0x630] sm:$0xf]  ;;  %v3788_v13 = vor.u32 %v4362_v4, %v3787_v3  ;;  %v3764_v3 = vor.u32 %v4356_v51, %v3763_v49  ;;  %v3755_v4 = vld [vmem:[%s6564_s1 + $0x680] sm:$0xf] }
  0x6b   : > { %2279 = vmatpush.bf16.msra.mxu2 %v3564_v11  ;;  %v3907_v11 = vld [vmem:[%s6564_s1 + $0x7b0] sm:$0xf]  ;;  %v3716_v14 = vor.u32 %v4344_v8, %v3715_v7  ;;  %v4141_v8 = vld [vmem:[%s4805_s20 + $0x78] sm:$0xf0] }
  0x6c   : > { %2293 = vmatpush.bf16.msra.mxu3 %v3628_v16  ;;  %v4360_v16 = vld [vmem:[%s6564_s1 + $0x6b4] sm:$0xf0]  ;;  %v3987_v51 = vld [vmem:[%s6564_s1 + $0x850] sm:$0xf] }
  0x6d   : > { %2265 = vmatpush.bf16.msra.mxu1 %v3500_v23  ;;  %2252 = vmatmul.bf16.vlgmr.msra.gmra.mxu0 %v5176_v29  ;;  %v4374_v23 = vld [vmem:[%s6564_s1 + $0x724] sm:$0xf0]  ;;  %v3780_v28 = vor.u32 %v4360_v16, %v3779_v15  ;;  %v4132_v15 = vld [vmem:[%s4805_s20 + $0x34] sm:$0xf]  ;;  %v4004_v16 = vor.u32 %v4416_v62, %v4003_v61 }
  0x6e   : > { %2300 = vmatpush.bf16.msrb.mxu0 %v3748_v12  ;;  %2280 = vmatmul.bf16.vlgmr.msra.gmra.mxu2 %v5178_v30  ;;  %v4392_v12 = vld [vmem:[%s6564_s1 + $0x7b4] sm:$0xf0] }
  0x6f   : > { %2328 = vmatpush.bf16.msrb.mxu2 %v3876_v17  ;;  %2294 = vmatmul.bf16.vlgmr.msra.gmra.mxu3 %v5189_v37  ;;  %v3844_v17 = vor.u32 %v4376_v10, %v3843_v9  ;;  %v3908_v18 = vor.u32 %v4392_v12, %v3907_v11  ;;  %v2903_v9 = vld [vmem:[%s4805_s20 + $0x38] sm:$0xf]  ;;  %v4142_v10 = vld [vmem:[%s4805_s20 + $0x80] sm:$0xf0]  ;;  %v3820_v11 = vor.u32 %v4370_v56, %v3819_v55  ;;  %v4155_v55 = vld [vmem:[%s6564_s1 + $0x54] sm:$0xf] }
  0x70   : > { %2342 = vmatpush.bf16.msrb.mxu3 %v3940_v22  ;;  %2266 = vmatmul.bf16.vlgmr.msra.gmra.mxu1 %v5191_v38  ;;  %v3835_v22 = vld [vmem:[%s6564_s1 + $0x720] sm:$0xf]  ;;  %v5390_v32 = vor.u32 %v4142_v10, %v2903_v9  ;;  %v2965_v56 = vld [vmem:[%s6564_s1 + $0x58] sm:$0xf0] }
  0x71   : > { %2314 = vmatpush.bf16.msrb.mxu1 %v3812_v35  ;;  %v3699_v35 = vld [vmem:[%s6564_s1 + $0x610] sm:$0xf]  ;;  %v2968_v62 = vor.u32 %v4155_v55, %v2965_v56  ;;  %v4147_v55 = vld [vmem:[%s6564_s1 + $0x14] sm:$0xf]  ;;  %v2919_v56 = vld [vmem:[%s4805_s20 + $0x48] sm:$0xf] }
  0x72   : > { %2301 = vmatpush.bf16.msrb.mxu0 %v3740_v39  ;;  %v3836_v39 = vor.u32 %v4374_v23, %v3835_v22 }
  0x73   : > { %2329 = vmatpush.bf16.msrb.mxu2 %v3868_v43  ;;  %v3827_v43 = vld [vmem:[%s6564_s1 + $0x710] sm:$0xf] }
  0x74   : > { %2343 = vmatpush.bf16.msrb.mxu3 %v3932_v45  ;;  %v4372_v45 = vld [vmem:[%s6564_s1 + $0x714] sm:$0xf0] }
  0x75   : > { %2315 = vmatpush.bf16.msrb.mxu1 %v3804_v53  ;;  %v4338_v53 = vld [vmem:[%s6564_s1 + $0x604] sm:$0xf0]  ;;  %v3828_v59 = vor.u32 %v4372_v45, %v3827_v43  ;;  %v3996_v45 = vor.u32 %v4414_v26, %v3995_v24  ;;  %v3963_v24 = vld [vmem:[%s6564_s1 + $0x820] sm:$0xf] }
  0x76   : > { %2302 = vmatpush.bf16.msrb.mxu0 %v3732_v54  ;;  %v3700_v54 = vor.u32 %v4340_v42, %v3699_v35  ;;  %v3692_v7 = vor.u32 %v4338_v53, %v3691_v52  ;;  %v4157_v35 = vld [vmem:[%s6564_s1 + $0x64] sm:$0xf]  ;;  %v5401_v42 = vor.u32 %v4133_v19, %v2905_v21  ;;  %v4412_v52 = vld [vmem:[%s6564_s1 + $0x854] sm:$0xf0]  ;;  %v4099_v53 = vld [vmem:[%s6564_s1 + $0x930] sm:$0xf] }
  0x77   : > { %2330 = vmatpush.bf16.msrb.mxu2 %v3860_v57  ;;  %v3883_v57 = vld [vmem:[%s6564_s1 + $0x780] sm:$0xf]  ;;  %v4035_v19 = vld [vmem:[%s6564_s1 + $0x8b0] sm:$0xf]  ;;  %v4424_v21 = vld [vmem:[%s6564_s1 + $0x8b4] sm:$0xf0] }
  0x78   : > { %2344 = vmatpush.bf16.msrb.mxu3 %v3924_v58  ;;  %v4386_v58 = vld [vmem:[%s6564_s1 + $0x784] sm:$0xf0] }
  0x79   : > { %2316 = vmatpush.bf16.msrb.mxu1 %v3796_v1  ;;  %v4159_v1 = vld [vmem:[%s6564_s1 + $0x74] sm:$0xf]  ;;  %v3884_v12 = vor.u32 %v4386_v58, %v3883_v57  ;;  %v4060_v57 = vor.u32 %v4430_v47, %v4059_v46  ;;  %v3988_v58 = vor.u32 %v4412_v52, %v3987_v51  ;;  %v4406_v26 = vld [vmem:[%s6564_s1 + $0x824] sm:$0xf0]  ;;  %v3045_v46 = vld [vmem:[%s6564_s1 + $0xf8] sm:$0xf0] }
  0x7a   : > { %2303 = vmatpush.bf16.msrb.mxu0 %v3724_v2  ;;  %v2981_v2 = vld [vmem:[%s6564_s1 + $0x78] sm:$0xf0]  ;;  %v4027_v47 = vld [vmem:[%s6564_s1 + $0x8a0] sm:$0xf]  ;;  %v3955_v51 = vld [vmem:[%s6564_s1 + $0x810] sm:$0xf] }
  0x7b   : > { %2331 = vmatpush.bf16.msrb.mxu2 %v3852_v5  ;;  %v4354_v5 = vld [vmem:[%s6564_s1 + $0x684] sm:$0xf0]  ;;  %v2984_v22 = vor.u32 %v4159_v1, %v2981_v2  ;;  %v4091_v1 = vld [vmem:[%s6564_s1 + $0x920] sm:$0xf]  ;;  %v4404_v52 = vld [vmem:[%s6564_s1 + $0x814] sm:$0xf0] }
  0x7c   : > { %2345 = vmatpush.bf16.msrb.mxu3 %v3916_v6  ;;  %v2895_v6 = vld [vmem:[%s4805_s20 + $0x30] sm:$0xf]  ;;  %v3756_v23 = vor.u32 %v4354_v5, %v3755_v4  ;;  %v4438_v2 = vld [vmem:[%s6564_s1 + $0x924] sm:$0xf0]  ;;  %v2957_v4 = vld [vmem:[%s6564_s1 + $0x48] sm:$0xf0] }
  0x7d   : > { %2317 = vmatpush.bf16.msrb.mxu1 %v3788_v13  ;;  %v4067_v13 = vld [vmem:[%s6564_s1 + $0x8f0] sm:$0xf]  ;;  %v4092_v9 = vor.u32 %v4438_v2, %v4091_v1  ;;  %v3947_v1 = vld [vmem:[%s6564_s1 + $0x800] sm:$0xf]  ;;  %v3956_v2 = vor.u32 %v4404_v52, %v3955_v51  ;;  %v4169_v51 = vld [vmem:[%s6564_s1 + $0xc4] sm:$0xf] }
  0x7e   : > { %2304 = vmatpush.bf16.msrb.mxu0 %v3716_v14  ;;  %v4432_v14 = vld [vmem:[%s6564_s1 + $0x8f4] sm:$0xf0]  ;;  %v3021_v52 = vld [vmem:[%s6564_s1 + $0xc8] sm:$0xf0] }
  0x7f   : > { %2332 = vmatpush.bf16.msrb.mxu2 %v3844_v17  ;;  %v4116_v17 = vor.u32 %v4444_v0, %v4115_v63  ;;  %v3979_v63 = vld [vmem:[%s6564_s1 + $0x840] sm:$0xf]  ;;  %v4410_v0 = vld [vmem:[%s6564_s1 + $0x844] sm:$0xf0] }
  0x80   : > { %2346 = vmatpush.bf16.msrb.mxu3 %v3908_v18  ;;  %v2897_v18 = vld [vmem:[%s4805_s20 + $0x7c] sm:$0xf0] }
  0x81   : > { %2318 = vmatpush.bf16.msrb.mxu1 %v3780_v28  ;;  %v4107_v28 = vld [vmem:[%s6564_s1 + $0x940] sm:$0xf]  ;;  %v5403_v43 = vor.u32 %v4132_v15, %v2897_v18  ;;  %v4151_v15 = vld [vmem:[%s6564_s1 + $0x34] sm:$0xf] }
  0x82   : > { %2305 = vmatpush.bf16.msrb.mxu0 %v3708_v31  ;;  %v5388_v31 = vor.u32 %v4141_v8, %v2895_v6  ;;  %v4108_v49 = vor.u32 %v4442_v34, %v4107_v28  ;;  %v3980_v6 = vor.u32 %v4410_v0, %v3979_v63  ;;  %v4426_v8 = vld [vmem:[%s6564_s1 + $0x8c4] sm:$0xf0]  ;;  %v4075_v28 = vld [vmem:[%s6564_s1 + $0x900] sm:$0xf]  ;;  %v4019_v63 = vld [vmem:[%s6564_s1 + $0x890] sm:$0xf] }
  0x83   : > { %2333 = vmatpush.bf16.msrb.mxu2 %v3836_v39  ;;  %v2973_v39 = vld [vmem:[%s6564_s1 + $0x68] sm:$0xf0]  ;;  %v4434_v34 = vld [vmem:[%s6564_s1 + $0x904] sm:$0xf0]  ;;  %v4420_v0 = vld [vmem:[%s6564_s1 + $0x894] sm:$0xf0] }
  0x84   : > { %2347 = vmatpush.bf16.msrb.mxu3 %v3900_v41  ;;  %v4068_v41 = vor.u32 %v4432_v14, %v4067_v13  ;;  %v4083_v13 = vld [vmem:[%s6564_s1 + $0x910] sm:$0xf]  ;;  %v4436_v14 = vld [vmem:[%s6564_s1 + $0x914] sm:$0xf0] }
  0x85   : > { %2319 = vmatpush.bf16.msrb.mxu1 %v3772_v50  ;;  %v2976_v50 = vor.u32 %v4157_v35, %v2973_v39  ;;  %v4149_v35 = vld [vmem:[%s6564_s1 + $0x24] sm:$0xf]  ;;  %v2941_v39 = vld [vmem:[%s6564_s1 + $0x28] sm:$0xf0] }
  0x86   : > { %2306 = vmatpush.bf16.msrb.mxu0 %v3700_v54  ;;  %v4440_v54 = vld [vmem:[%s6564_s1 + $0x934] sm:$0xf0] }
  0x87   : > { %2334 = vmatpush.bf16.msrb.mxu2 %v3828_v59  ;;  %v4051_v59 = vld [vmem:[%s6564_s1 + $0x8d0] sm:$0xf]  ;;  %v4100_v61 = vor.u32 %v4440_v54, %v4099_v53  ;;  %v4076_v53 = vor.u32 %v4434_v34, %v4075_v28  ;;  %v2944_v54 = vor.u32 %v4149_v35, %v2941_v39  ;;  %v4207_v28 = vld [vmem:[%s6564_s1 + $0x1f4] sm:$0xf]  ;;  %v3173_v34 = vld [vmem:[%s6564_s1 + $0x1f8] sm:$0xf0] }
  0x88   : > { %2348 = vmatpush.bf16.msrb.mxu3 %v3892_v60  ;;  %v4428_v60 = vld [vmem:[%s6564_s1 + $0x8d4] sm:$0xf0] }
  0x89   : > { %2320 = vmatpush.bf16.msrb.mxu1 %v3764_v3  ;;  %v4153_v3 = vld [vmem:[%s6564_s1 + $0x44] sm:$0xf]  ;;  %v4052_v5 = vor.u32 %v4428_v60, %v4051_v59  ;;  %v2933_v59 = vld [vmem:[%s6564_s1 + $0x18] sm:$0xf0] }
  0x8a   : > { %2307 = vmatpush.bf16.msrb.mxu0 %v3692_v7  ;;  %v4043_v7 = vld [vmem:[%s6564_s1 + $0x8c0] sm:$0xf]  ;;  %v2960_v10 = vor.u32 %v4153_v3, %v2957_v4  ;;  %v4173_v60 = vld [vmem:[%s6564_s1 + $0xe4] sm:$0xf]  ;;  %v4402_v3 = vld [vmem:[%s6564_s1 + $0x804] sm:$0xf0] }
  0x8b   : > { %2335 = vmatpush.bf16.msrb.mxu2 %v3820_v11  ;;  %v3971_v11 = vld [vmem:[%s6564_s1 + $0x830] sm:$0xf]  ;;  %v4145_v4 = vld [vmem:[%s6564_s1 + $0x4] sm:$0xf] }
  0x8c   : > { %2349 = vmatpush.bf16.msrb.mxu3 %v3884_v12  ;;  %v4408_v12 = vld [vmem:[%s6564_s1 + $0x834] sm:$0xf0] }
  0x8d   : > { %2321 = vmatpush.bf16.msrb.mxu1 %v3756_v23  ;;  %2308 = vmatmul.bf16.vlgmr.msrb.gmra.mxu0 %v5388_v31  ;;  %v3972_v18 = vor.u32 %v4408_v12, %v3971_v11  ;;  %v3029_v11 = vld [vmem:[%s6564_s1 + $0xd8] sm:$0xf0]  ;;  %v4191_v12 = vld [vmem:[%s6564_s1 + $0x174] sm:$0xf] }
  0x8e   : > { %2356 = vmatpush.bf16.msra.mxu0 %v4004_v16  ;;  %2336 = vmatmul.bf16.vlgmr.msrb.gmra.mxu2 %v5390_v32  ;;  %v2949_v16 = vld [vmem:[%s6564_s1 + $0x38] sm:$0xf0] }
  0x8f   : > { %2386 = vmatpush.bf16.msra.mxu2 %v4116_v17  ;;  %2350 = vmatmul.bf16.vlgmr.msrb.gmra.mxu3 %v5401_v42  ;;  %v4044_v17 = vor.u32 %v4426_v8, %v4043_v7  ;;  %v2952_v23 = vor.u32 %v4151_v15, %v2949_v16  ;;  %v2936_v7 = vor.u32 %v4147_v55, %v2933_v59  ;;  %v2925_v8 = vld [vmem:[%s6564_s1 + $0x8] sm:$0xf0]  ;;  %v4223_v16 = vld [vmem:[%s6564_s1 + $0x274] sm:$0xf] }
  0x90   : > { %2398 = vmatpush.bf16.msra.mxu3 %v2984_v22  ;;  %2322 = vmatmul.bf16.vlgmr.msrb.gmra.mxu1 %v5403_v43  ;;  %v4084_v22 = vor.u32 %v4436_v14, %v4083_v13  ;;  %v3109_v13 = vld [vmem:[%s6564_s1 + $0x178] sm:$0xf0]  ;;  %v4472_v14 = vmov 0   ;;  %v4020_v15 = vor.u32 %v4420_v0, %v4019_v63  ;;  %v3229_v55 = vld [vmem:[%s6564_s1 + $0x268] sm:$0xf0] }
  0x91   : > { %2370 = vmatpush.bf16.msra.mxu1 %v4068_v41  ;;  %v4036_v41 = vor.u32 %v4424_v21, %v4035_v19  ;;  %4458 = vset.pattern.permute.xlu0 %v4472_v14  ;;  %v3948_v19 = vor.u32 %v4402_v3, %v3947_v1  ;;  %v4418_v21 = vld [vmem:[%s6564_s1 + $0x884] sm:$0xf0]  ;;  %v4167_v0 = vld [vmem:[%s6564_s1 + $0xb4] sm:$0xf]  ;;  %v3013_v1 = vld [vmem:[%s6564_s1 + $0xb8] sm:$0xf0] }
  0x92   : > { %2357 = vmatpush.bf16.msra.mxu0 %v3996_v45  ;;  %v4175_v45 = vld [vmem:[%s6564_s1 + $0xf4] sm:$0xf] }
  0x93   : > { %2387 = vmatpush.bf16.msra.mxu2 %v4108_v49  ;;  %v3964_v49 = vor.u32 %v4406_v26, %v3963_v24  ;;  %v2928_v24 = vor.u32 %v4145_v4, %v2925_v8  ;;  %v3112_v26 = vor.u32 %v4191_v12, %v3109_v13  ;;  %v4219_v3 = vld [vmem:[%s6564_s1 + $0x254] sm:$0xf]  ;;  %v3221_v4 = vld [vmem:[%s6564_s1 + $0x258] sm:$0xf0]  ;;  %v4185_v12 = vld [vmem:[%s6564_s1 + $0x144] sm:$0xf] }
  0x94   : > { %2399 = vmatpush.bf16.msra.mxu3 %v2976_v50  ;;  %v4422_v50 = vld [vmem:[%s6564_s1 + $0x8a4] sm:$0xf0]  ;;  %v4203_v8 = vld [vmem:[%s6564_s1 + $0x1d4] sm:$0xf]  ;;  %v3085_v13 = vld [vmem:[%s6564_s1 + $0x148] sm:$0xf0]  ;;  %v3224_v14 = vor.u32 %v4219_v3, %v3221_v4 }
  0x95   : > { %2371 = vmatpush.bf16.msra.mxu1 %v4060_v57  ;;  %v4144_v57 = vld [vmem:[%s4805_s20 + $0x90] sm:$0xf0]  ;;  %v4197_v3 = vld [vmem:[%s6564_s1 + $0x1a4] sm:$0xf]  ;;  %v3133_v4 = vld [vmem:[%s6564_s1 + $0x1a8] sm:$0xf0] }
  0x96   : > { %2358 = vmatpush.bf16.msra.mxu0 %v3988_v58  ;;  %v3048_v58 = vor.u32 %v4175_v45, %v3045_v46  ;;  %v4189_v45 = vld [vmem:[%s6564_s1 + $0x164] sm:$0xf]  ;;  %v3101_v46 = vld [vmem:[%s6564_s1 + $0x168] sm:$0xf0] }
  0x97   : > { %2388 = vmatpush.bf16.msra.mxu2 %v4100_v61  ;;  %v3037_v61 = vld [vmem:[%s6564_s1 + $0xe8] sm:$0xf0] }
  0x98   : > { %2400 = vmatpush.bf16.msra.mxu3 %v2968_v62  ;;  %v4028_v62 = vor.u32 %v4422_v50, %v4027_v47  ;;  %v2913_v50 = vld [vmem:[%s4805_s20 + $0x8c] sm:$0xf0] }
  0x99   : > { %2372 = vmatpush.bf16.msra.mxu1 %v4052_v5  ;;  %v5552_v5 = vor.u32 %v4144_v57, %v2919_v56  ;;  %v3104_v56 = vor.u32 %v4189_v45, %v3101_v46  ;;  %v4205_v57 = vld [vmem:[%s6564_s1 + $0x1e4] sm:$0xf]  ;;  %v4215_v45 = vld [vmem:[%s6564_s1 + $0x234] sm:$0xf]  ;;  %v3205_v46 = vld [vmem:[%s6564_s1 + $0x238] sm:$0xf0] }
  0x9a   : > { %2359 = vmatpush.bf16.msra.mxu0 %v3980_v6  ;;  %v5557_v6 = vld [vmem:[%s6566_s3] sm:$0xff] }
  0x9b   : > { %2389 = vmatpush.bf16.msra.mxu2 %v4092_v9  ;;  %v4171_v9 = vld [vmem:[%s6564_s1 + $0xd4] sm:$0xf]  ;;  %2683 = vperm.xlu0 %4458, %v5557_v6  }
  0x9c   : > { %2401 = vmatpush.bf16.msra.mxu3 %v2960_v10  ;;  %v3040_v10 = vor.u32 %v4173_v60, %v3037_v61  ;;  %v3032_v35 = vor.u32 %v4171_v9, %v3029_v11  ;;  %v3024_v60 = vor.u32 %v4169_v51, %v3021_v52  ;;  %v4187_v61 = vld [vmem:[%s6564_s1 + $0x154] sm:$0xf]  ;;  %v3157_v9 = vld [vmem:[%s6564_s1 + $0x1d8] sm:$0xf0]  ;;  %v5656_v11 = vld [vmem:[%s6566_s3 + $0x8] sm:$0xff] }
  0x9d   : > { %2373 = vmatpush.bf16.msra.mxu1 %v4044_v17  ;;  %v3237_v17 = vld [vmem:[%s6564_s1 + $0x278] sm:$0xf0]  ;;  %v4199_v51 = vld [vmem:[%s6564_s1 + $0x1b4] sm:$0xf] }
  0x9e   : > { %2360 = vmatpush.bf16.msra.mxu0 %v3972_v18  ;;  %v4011_v18 = vld [vmem:[%s6564_s1 + $0x880] sm:$0xf]  ;;  %v3240_v39 = vor.u32 %v4223_v16, %v3237_v17  ;;  %v3005_v16 = vld [vmem:[%s6564_s1 + $0xa8] sm:$0xf0]  ;;  %v3160_v17 = vor.u32 %v4203_v8, %v3157_v9  ;;  %v3141_v52 = vld [vmem:[%s6564_s1 + $0x1b8] sm:$0xf0] }
  0x9f   : > { %2390 = vmatpush.bf16.msra.mxu2 %v4084_v22  ;;  %v2911_v22 = vld [vmem:[%s4805_s20 + $0x40] sm:$0xf]  ;;  %v4012_v47 = vor.u32 %v4418_v21, %v4011_v18  ;;  %v4217_v18 = vld [vmem:[%s6564_s1 + $0x244] sm:$0xf]  ;;  %v3088_v21 = vor.u32 %v4185_v12, %v3085_v13  ;;  %v4179_v9 = vld [vmem:[%s6564_s1 + $0x114] sm:$0xf] }
  0xa0   : > { %2402 = vmatpush.bf16.msra.mxu3 %v2952_v23  ;;  %v4143_v23 = vld [vmem:[%s4805_s20 + $0x88] sm:$0xf0] }
  0xa1   : > { %2374 = vmatpush.bf16.msra.mxu1 %v4036_v41  ;;  %v4134_v41 = vld [vmem:[%s4805_s20 + $0x44] sm:$0xf] }
  0xa2   : > { %2361 = vmatpush.bf16.msra.mxu0 %v3964_v49  ;;  %v5604_v49 = vor.u32 %v4143_v23, %v2911_v22  ;;  %v5625_v59 = vor.u32 %v4134_v41, %v2913_v50  ;;  %v4201_v22 = vld [vmem:[%s6564_s1 + $0x1c4] sm:$0xf]  ;;  %v3149_v23 = vld [vmem:[%s6564_s1 + $0x1c8] sm:$0xf0] }
  0xa3   : > { %2391 = vmatpush.bf16.msra.mxu2 %v4076_v53  ;;  %v3176_v53 = vor.u32 %v4207_v28, %v3173_v34  ;;  %2688 = vperm.xlu0 %4458, %v5656_v11   ;;  %v3077_v28 = vld [vmem:[%s6564_s1 + $0x138] sm:$0xf0]  ;;  %v3152_v41 = vor.u32 %v4201_v22, %v3149_v23  ;;  %v4195_v23 = vld [vmem:[%s6564_s1 + $0x194] sm:$0xf] }
  0xa4   : > { %2403 = vmatpush.bf16.msra.mxu3 %v2944_v54  ;;  %v4221_v54 = vld [vmem:[%s6564_s1 + $0x264] sm:$0xf] }
  0xa5   : > { %2375 = vmatpush.bf16.msra.mxu1 %v4028_v62  ;;  %v3093_v62 = vld [vmem:[%s6564_s1 + $0x158] sm:$0xf0]  ;;  %v3232_v63 = vor.u32 %v4221_v54, %v3229_v55  ;;  %v4161_v54 = vld [vmem:[%s6564_s1 + $0x84] sm:$0xf] }
  0xa6   : > { %2362 = vmatpush.bf16.msra.mxu0 %v3956_v2  ;;  %4121 = vmatmul.msk.bf16.vlgmr.msra.gmra.mxu2 %vm2128_vm0, %v5552_v5  ;;  %v4181_v55 = vld [vmem:[%s6564_s1 + $0x124] sm:$0xf] }
  0xa7   : > { %2412 = vmatpush.bf16.msrb.mxu2 %v3048_v58  ;;  %v3165_v58 = vld [vmem:[%s6564_s1 + $0x1e8] sm:$0xf0] }
  0xa8   : > { %2404 = vmatpush.bf16.msra.mxu3 %v2936_v7  ;;  %v3168_v2 = vor.u32 %v4205_v57, %v3165_v58  ;;  %v3096_v7 = vor.u32 %v4187_v61, %v3093_v62  ;;  %v3208_v57 = vor.u32 %v4215_v45, %v3205_v46  ;;  %v2989_v58 = vld [vmem:[%s6564_s1 + $0x88] sm:$0xf0]  ;;  %v3144_v62 = vor.u32 %v4199_v51, %v3141_v52  ;;  %v4255_v46 = vld [vmem:[%s6564_s1 + $0x374] sm:$0xf] }
  0xa9   : > { %2376 = vmatpush.bf16.msra.mxu1 %v4020_v15  ;;  %v4165_v15 = vld [vmem:[%s6564_s1 + $0xa4] sm:$0xf]  ;;  %v3181_v45 = vld [vmem:[%s6564_s1 + $0x208] sm:$0xf0]  ;;  %v4235_v52 = vld [vmem:[%s6564_s1 + $0x2d4] sm:$0xf] }
  0xaa   : > { %2363 = vmatpush.bf16.msra.mxu0 %v3948_v19  ;;  %v3213_v19 = vld [vmem:[%s6564_s1 + $0x248] sm:$0xf0] }
  0xab   : > { %2413 = vmatpush.bf16.msrb.mxu2 %v3040_v10  ;;  %v4473_v10 = vmov 1   ;;  %v3216_v34 = vor.u32 %v4217_v18, %v3213_v19  ;;  %v4237_v18 = vld [vmem:[%s6564_s1 + $0x2e4] sm:$0xf]  ;;  %v3293_v19 = vld [vmem:[%s6564_s1 + $0x2e8] sm:$0xf0] }
  0xac   : > { %2405 = vmatpush.bf16.msra.mxu3 %v2928_v24  ;;  %4459 = vset.pattern.permute.xlu1 %v4473_v10  ;;  %v3008_v24 = vor.u32 %v4165_v15, %v3005_v16  ;;  %v2141_v8 = vpop.f32.mrf.mxu0  ;;  %v3061_v10 = vld [vmem:[%s6564_s1 + $0x118] sm:$0xf0]  ;;  %v3136_v16 = vor.u32 %v4197_v3, %v3133_v4 }
  0xad   : > { %2377 = vmatpush.bf16.msra.mxu1 %v4012_v47  ;;  %2364 = vmatmul.bf16.vlgmr.msra.gmra.mxu0 %v5604_v49  ;;  %v5706_v47 = vld [vmem:[%s6565_s2] sm:$0x3] }
  0xae   : > { %2426 = vmatpush.bf16.msrb.mxu0 %v3112_v26  ;;  %2709 = vperm.xlu1 %4459, %v5557_v6   ;;  %v4183_v26 = vld [vmem:[%s6564_s1 + $0x134] sm:$0xf]  ;;  %v529_v61 = vperm.slane %v5706_v47, 0  ;;  %v3277_v47 = vld [vmem:[%s6564_s1 + $0x2c8] sm:$0xf0] }
  0xaf   : > { %2414 = vmatpush.bf16.msrb.mxu2 %v3032_v35  ;;  %2406 = vmatmul.bf16.vlgmr.msra.gmra.mxu3 %v4819_v20  ;;  %v3016_v20 = vor.u32 %v4167_v0, %v3013_v1  ;;  %v4163_v35 = vld [vmem:[%s6564_s1 + $0x94] sm:$0xf]  ;;  %v3080_v50 = vor.u32 %v4183_v26, %v3077_v28  ;;  %v3301_v1 = vld [vmem:[%s6564_s1 + $0x2f8] sm:$0xf0]  ;;  %v2155_v15 = vpop.f32.mrf.mxu1  ;;  %v4177_v26 = vld [vmem:[%s6564_s1 + $0x104] sm:$0xf] }
  0xb0   : > { %2454 = vmatpush.bf16.msrb.mxu3 %v3240_v39  ;;  %2378 = vmatmul.bf16.vlgmr.msra.gmra.mxu1 %v5625_v59  ;;  %v2997_v39 = vld [vmem:[%s6564_s1 + $0x98] sm:$0xf0]  ;;  %v4239_v0 = vld [vmem:[%s6564_s1 + $0x2f4] sm:$0xf]  ;;  %v2142_v13 = vadd.f32 %v2141_v8, %v529_v61  ;;  %v3053_v28 = vld [vmem:[%s6564_s1 + $0x108] sm:$0xf0] }
  0xb1   : > { %2440 = vmatpush.bf16.msrb.mxu1 %v3176_v53  ;;  %v3000_v53 = vor.u32 %v4163_v35, %v2997_v39  ;;  %v3304_v12 = vor.u32 %v4239_v0, %v3301_v1  ;;  %v4474_v35 = vmov 3   ;;  %v4271_v0 = vld [vmem:[%s6564_s1 + $0x3f4] sm:$0xf]  ;;  %v3429_v1 = vld [vmem:[%s6564_s1 + $0x3f8] sm:$0xf0] }
  0xb2   : > { %2427 = vmatpush.bf16.msrb.mxu0 %v3104_v56  ;;  %v3069_v56 = vld [vmem:[%s6564_s1 + $0x128] sm:$0xf0]  ;;  %v2156_v22 = vadd.f32 %v2155_v15, %v2142_v13  ;;  %4461 = vset.pattern.permute.xlu0 %v4474_v35  ;;  %v3432_v13 = vor.u32 %v4271_v0, %v3429_v1  ;;  %v4285_v15 = vld [vmem:[%s6564_s1 + $0x464] sm:$0xf] }
  0xb3   : > { %2415 = vmatpush.bf16.msrb.mxu2 %v3024_v60  ;;  %v4213_v60 = vld [vmem:[%s6564_s1 + $0x224] sm:$0xf]  ;;  %2758 = vperm.xlu0 %4461, %v5557_v6   ;;  %v3357_v8 = vld [vmem:[%s6564_s1 + $0x368] sm:$0xf0] }
  0xb4   : > { %2455 = vmatpush.bf16.msrb.mxu3 %v3232_v63  ;;  %v3197_v63 = vld [vmem:[%s6564_s1 + $0x228] sm:$0xf0]  ;;  %v4265_v1 = vld [vmem:[%s6564_s1 + $0x3c4] sm:$0xf] }
  0xb5   : > { %2441 = vmatpush.bf16.msrb.mxu1 %v3168_v2  ;;  %v3072_v2 = vor.u32 %v4181_v55, %v3069_v56  ;;  %v3056_v55 = vor.u32 %v4177_v26, %v3053_v28  ;;  %v3493_v56 = vld [vmem:[%s6564_s1 + $0x478] sm:$0xf0]  ;;  %v4231_v28 = vld [vmem:[%s6564_s1 + $0x2b4] sm:$0xf] }
  0xb6   : > { %2428 = vmatpush.bf16.msrb.mxu0 %v3096_v7  ;;  %2713 = vperm.xlu1 %4459, %v5656_v11   ;;  %v2992_v7 = vor.u32 %v4161_v54, %v2989_v58  ;;  %v4287_v54 = vld [vmem:[%s6564_s1 + $0x474] sm:$0xf]  ;;  %v4193_v58 = vld [vmem:[%s6564_s1 + $0x184] sm:$0xf] }
  0xb7   : > { %2416 = vmatpush.bf16.msrb.mxu2 %v3016_v20  ;;  %v3200_v20 = vor.u32 %v4213_v60, %v3197_v63  ;;  %v3117_v60 = vld [vmem:[%s6564_s1 + $0x188] sm:$0xf0] }
  0xb8   : > { %2456 = vmatpush.bf16.msrb.mxu3 %v3224_v14  ;;  %v4211_v14 = vld [vmem:[%s6564_s1 + $0x214] sm:$0xf] }
  0xb9   : > { %2442 = vmatpush.bf16.msrb.mxu1 %v3160_v17  ;;  %v3189_v17 = vld [vmem:[%s6564_s1 + $0x218] sm:$0xf0] }
  0xba   : > { %2429 = vmatpush.bf16.msrb.mxu0 %v3088_v21  ;;  %v3064_v21 = vor.u32 %v4179_v9, %v3061_v10  ;;  %v3192_v39 = vor.u32 %v4211_v14, %v3189_v17  ;;  %v3496_v9 = vor.u32 %v4287_v54, %v3493_v56  ;;  %v3120_v10 = vor.u32 %v4193_v58, %v3117_v60  ;;  %v4249_v54 = vld [vmem:[%s6564_s1 + $0x344] sm:$0xf] }
  0xbb   : > { %2417 = vmatpush.bf16.msrb.mxu2 %v3008_v24  ;;  %v3125_v24 = vld [vmem:[%s6564_s1 + $0x198] sm:$0xf0]  ;;  %v4475_v58 = vmov 2  }
  0xbc   : > { %2457 = vmatpush.bf16.msrb.mxu3 %v3216_v34  ;;  %v4209_v34 = vld [vmem:[%s6564_s1 + $0x204] sm:$0xf]  ;;  %v3128_v51 = vor.u32 %v4195_v23, %v3125_v24  ;;  %v4251_v23 = vld [vmem:[%s6564_s1 + $0x354] sm:$0xf]  ;;  %v3349_v24 = vld [vmem:[%s6564_s1 + $0x358] sm:$0xf0]  ;;  %4460 = vset.pattern.permute.xlu2 %v4475_v58 }
  0xbd   : > { %2443 = vmatpush.bf16.msrb.mxu1 %v3152_v41  ;;  %v3296_v41 = vor.u32 %v4237_v18, %v3293_v19  ;;  %v3184_v3 = vor.u32 %v4209_v34, %v3181_v45  ;;  %v4269_v19 = vld [vmem:[%s6564_s1 + $0x3e4] sm:$0xf]  ;;  %v3269_v34 = vld [vmem:[%s6564_s1 + $0x2b8] sm:$0xf0]  ;;  %2734 = vperm.xlu2 %4460, %v5557_v6  }
  0xbe   : > { %2430 = vmatpush.bf16.msrb.mxu0 %v3080_v50  ;;  %v3365_v50 = vld [vmem:[%s6564_s1 + $0x378] sm:$0xf0]  ;;  %4462 = vset.pattern.permute.xlu1 %v4474_v35 }
  0xbf   : > { %2418 = vmatpush.bf16.msrb.mxu2 %v3000_v53  ;;  %v3285_v53 = vld [vmem:[%s6564_s1 + $0x2d8] sm:$0xf0]  ;;  %2762 = vperm.xlu1 %4462, %v5656_v11  }
  0xc0   : > { %2458 = vmatpush.bf16.msrb.mxu3 %v3208_v57  ;;  %v2169_v57 = vpop.f32.mrf.mxu2  ;;  %v3288_v4 = vor.u32 %v4235_v52, %v3285_v53  ;;  %v3413_v52 = vld [vmem:[%s6564_s1 + $0x3d8] sm:$0xf0]  ;;  %v3272_v53 = vor.u32 %v4231_v28, %v3269_v34  ;;  %v3453_v28 = vld [vmem:[%s6564_s1 + $0x428] sm:$0xf0]  ;;  %v4303_v34 = vld [vmem:[%s6564_s1 + $0x4f4] sm:$0xf] }
  0xc1   : > { %2444 = vmatpush.bf16.msrb.mxu1 %v3144_v62  ;;  %v3368_v62 = vor.u32 %v4255_v46, %v3365_v50  ;;  %v2170_v63 = vadd.f32 %v2169_v57, %v2156_v22  ;;  %v3352_v46 = vor.u32 %v4251_v23, %v3349_v24  ;;  %v4229_v57 = vld [vmem:[%s6564_s1 + $0x2a4] sm:$0xf]  ;;  %v3333_v6 = vld [vmem:[%s6564_s1 + $0x338] sm:$0xf0]  ;;  %v3245_v23 = vld [vmem:[%s6564_s1 + $0x288] sm:$0xf0] }
  0xc2   : > { %2431 = vmatpush.bf16.msrb.mxu0 %v3072_v2  ;;  %v2143_v2 = vpop.f32.mrf.mxu0  ;;  %v4277_v24 = vld [vmem:[%s6564_s1 + $0x424] sm:$0xf] }
  0xc3   : > { %2419 = vmatpush.bf16.msrb.mxu2 %v2992_v7  ;;  %v4253_v7 = vld [vmem:[%s6564_s1 + $0x364] sm:$0xf] }
  0xc4   : > { %2459 = vmatpush.bf16.msrb.mxu3 %v3200_v20  ;;  %v2183_v20 = vpop.f32.mrf.mxu3  ;;  %v3360_v18 = vor.u32 %v4253_v7, %v3357_v8 }
  0xc5   : > { %2445 = vmatpush.bf16.msrb.mxu1 %v3136_v16  ;;  %v2184_v14 = vadd.f32 %v2183_v20, %v2170_v63  ;;  %v3485_v16 = vld [vmem:[%s6564_s1 + $0x468] sm:$0xf0]  ;;  %2738 = vperm.xlu2 %4460, %v5656_v11   ;;  %v4243_v11 = vld [vmem:[%s6564_s1 + $0x314] sm:$0xf] }
  0xc6   : > { %2432 = vmatpush.bf16.msrb.mxu0 %v3064_v21  ;;  %2420 = vmatmul.bf16.vlgmr.msrb.gmra.mxu2 %v4829_v27  ;;  %v2144_v27 = vadd.f32 %v2143_v2, %v529_v61  ;;  %v2157_v61 = vpop.f32.mrf.mxu1  ;;  %v3421_v21 = vld [vmem:[%s6564_s1 + $0x3e8] sm:$0xf0]  ;;  %v3488_v26 = vor.u32 %v4285_v15, %v3485_v16  ;;  %v3397_v15 = vld [vmem:[%s6564_s1 + $0x3b8] sm:$0xf0] }
  0xc7   : > { %2468 = vmatpush.bf16.msra.mxu2 %v3304_v12  ;;  %v4233_v12 = vld [vmem:[%s6564_s1 + $0x2c4] sm:$0xf]  ;;  %v3424_v35 = vor.u32 %v4269_v19, %v3421_v21  ;;  %v3469_v63 = vld [vmem:[%s6564_s1 + $0x448] sm:$0xf0] }
  0xc8   : > { %2460 = vmatpush.bf16.msrb.mxu3 %v3192_v39  ;;  %v2158_v17 = vadd.f32 %v2157_v61, %v2144_v27  ;;  %v3280_v22 = vor.u32 %v4233_v12, %v3277_v47  ;;  %v4283_v39 = vld [vmem:[%s6564_s1 + $0x454] sm:$0xf]  ;;  %v2171_v45 = vpop.f32.mrf.mxu2  ;;  %v3405_v2 = vld [vmem:[%s6564_s1 + $0x3c8] sm:$0xf0]  ;;  %v3461_v47 = vld [vmem:[%s6564_s1 + $0x438] sm:$0xf0] }
  0xc9   : > { %2446 = vmatpush.bf16.msrb.mxu1 %v3128_v51  ;;  %v4267_v51 = vld [vmem:[%s6564_s1 + $0x3d4] sm:$0xf]  ;;  %v3408_v20 = vor.u32 %v4265_v1, %v3405_v2  ;;  %v3325_v19 = vld [vmem:[%s6564_s1 + $0x328] sm:$0xf0]  ;;  %v3381_v2 = vld [vmem:[%s6564_s1 + $0x398] sm:$0xf0] }
  0xca   : > { %2433 = vmatpush.bf16.msrb.mxu0 %v3056_v55  ;;  %v2172_v50 = vadd.f32 %v2171_v45, %v2158_v17  ;;  %v3416_v60 = vor.u32 %v4267_v51, %v3413_v52  ;;  %v4247_v27 = vld [vmem:[%s6564_s1 + $0x334] sm:$0xf]  ;;  %v4261_v45 = vld [vmem:[%s6564_s1 + $0x3a4] sm:$0xf] }
  0xcb   : > { %2469 = vmatpush.bf16.msra.mxu2 %v3296_v41  ;;  %v3477_v41 = vld [vmem:[%s6564_s1 + $0x458] sm:$0xf0]  ;;  %v4279_v12 = vld [vmem:[%s6564_s1 + $0x434] sm:$0xf] }
  0xcc   : > { %2461 = vmatpush.bf16.msrb.mxu3 %v3184_v3  ;;  %v3480_v55 = vor.u32 %v4283_v39, %v3477_v41  ;;  %v2185_v56 = vpop.f32.mrf.mxu3  ;;  %v2197_v3 = vpop.f32.mrf.mxu0  ;;  %v3464_v21 = vor.u32 %v4279_v12, %v3461_v47  ;;  %v4259_v1 = vld [vmem:[%s6564_s1 + $0x394] sm:$0xf] }
  0xcd   : > { %2447 = vmatpush.bf16.msrb.mxu1 %v3120_v10  ;;  %2434 = vmatmul.bf16.vlgmr.msrb.gmra.mxu0 %v4824_v25  ;;  %v3341_v25 = vld [vmem:[%s6564_s1 + $0x348] sm:$0xf0]  ;;  %v2198_v7 = vadd.f32 %v2197_v3, %v2184_v14  ;;  %v3253_v10 = vld [vmem:[%s6564_s1 + $0x298] sm:$0xf0]  ;;  %v4263_v14 = vld [vmem:[%s6564_s1 + $0x3b4] sm:$0xf]  ;;  %v3384_v12 = vor.u32 %v4259_v1, %v3381_v2 }
  0xce   : > { %2482 = vmatpush.bf16.msra.mxu0 %v3368_v62  ;;  %v2186_v62 = vadd.f32 %v2185_v56, %v2172_v50  ;;  %v3344_v0 = vor.u32 %v4249_v54, %v3341_v25  ;;  %v2211_v61 = vpop.f32.mrf.mxu1  ;;  %v3317_v54 = vld [vmem:[%s6564_s1 + $0x318] sm:$0xf0]  ;;  %v4299_v47 = vld [vmem:[%s6564_s1 + $0x4d4] sm:$0xf] }
  0xcf   : > { %2470 = vmatpush.bf16.msra.mxu2 %v3288_v4  ;;  %2462 = vmatmul.bf16.vlgmr.msrb.gmra.mxu3 %v4960_v36  ;;  %v3261_v36 = vld [vmem:[%s6564_s1 + $0x2a8] sm:$0xf0]  ;;  %v2212_v16 = vadd.f32 %v2211_v61, %v2198_v7  ;;  %v3541_v61 = vld [vmem:[%s6564_s1 + $0x4d8] sm:$0xf0]  ;;  %v4331_v1 = vld [vmem:[%s6564_s1 + $0x5d4] sm:$0xf] }
  0xd0   : > { %2510 = vmatpush.bf16.msra.mxu3 %v3496_v9  ;;  %2448 = vmatmul.bf16.vlgmr.msrb.gmra.mxu1 %v4840_v33  ;;  %v4281_v33 = vld [vmem:[%s6564_s1 + $0x444] sm:$0xf]  ;;  %v3264_v4 = vor.u32 %v4229_v57, %v3261_v36  ;;  %v4227_v9 = vld [vmem:[%s6564_s1 + $0x294] sm:$0xf] }
  0xd1   : > { %2496 = vmatpush.bf16.msra.mxu1 %v3432_v13  ;;  %v3472_v8 = vor.u32 %v4281_v33, %v3469_v63  ;;  %v3336_v13 = vor.u32 %v4247_v27, %v3333_v6  ;;  %v3256_v17 = vor.u32 %v4227_v9, %v3253_v10  ;;  %v2225_v39 = vpop.f32.mrf.mxu2  ;;  %v4275_v57 = vld [vmem:[%s6564_s1 + $0x414] sm:$0xf]  ;;  %v4301_v33 = vld [vmem:[%s6564_s1 + $0x4e4] sm:$0xf]  ;;  %v3309_v27 = vld [vmem:[%s6564_s1 + $0x308] sm:$0xf0] }
  0xd2   : > { %2483 = vmatpush.bf16.msra.mxu0 %v3360_v18  ;;  %v4245_v18 = vld [vmem:[%s6564_s1 + $0x324] sm:$0xf]  ;;  %v2226_v50 = vadd.f32 %v2225_v39, %v2212_v16  ;;  %v3437_v9 = vld [vmem:[%s6564_s1 + $0x408] sm:$0xf0]  ;;  %v4319_v10 = vld [vmem:[%s6564_s1 + $0x574] sm:$0xf] }
  0xd3   : > { %2471 = vmatpush.bf16.msra.mxu2 %v3280_v22  ;;  %v4225_v22 = vld [vmem:[%s6564_s1 + $0x284] sm:$0xf]  ;;  %v3328_v41 = vor.u32 %v4245_v18, %v3325_v19  ;;  %v3749_v16 = vld [vmem:[%s6564_s1 + $0x678] sm:$0xf0]  ;;  %v3373_v18 = vld [vmem:[%s6564_s1 + $0x388] sm:$0xf0] }
  0xd4   : > { %2511 = vmatpush.bf16.msra.mxu3 %v3488_v26  ;;  %v3400_v26 = vor.u32 %v4263_v14, %v3397_v15  ;;  %v2199_v51 = vpop.f32.mrf.mxu0  ;;  %v2239_v52 = vpop.f32.mrf.mxu3  ;;  %v4273_v6 = vld [vmem:[%s6564_s1 + $0x404] sm:$0xf] }
  0xd5   : > { %2497 = vmatpush.bf16.msra.mxu1 %v3424_v35  ;;  %v3557_v35 = vld [vmem:[%s6564_s1 + $0x4f8] sm:$0xf0]  ;;  %v2200_v25 = vadd.f32 %v2199_v51, %v2186_v62  ;;  %v5959_v36 = vadd.f32 %v2239_v52, %v2226_v50  ;;  %v3549_v62 = vld [vmem:[%s6564_s1 + $0x4e8] sm:$0xf0]  ;;  %v4349_v51 = vld [vmem:[%s6564_s1 + $0x664] sm:$0xf] }
  0xd6   : > { %2484 = vmatpush.bf16.msra.mxu0 %v3352_v46  ;;  %v3389_v46 = vld [vmem:[%s6564_s1 + $0x3a8] sm:$0xf0]  ;;  %v3560_v56 = vor.u32 %v4303_v34, %v3557_v35  ;;  %v2213_v63 = vpop.f32.mrf.mxu1 }
  0xd7   : > { %2472 = vmatpush.bf16.msra.mxu2 %v3272_v53  ;;  %v3248_v53 = vor.u32 %v4225_v22, %v3245_v23  ;;  %v3392_v58 = vor.u32 %v4261_v45, %v3389_v46  ;;  %v2214_v3 = vadd.f32 %v2213_v63, %v2200_v25  ;;  %v3685_v23 = vld [vmem:[%s6564_s1 + $0x5f8] sm:$0xf0]  ;;  %v3613_v34 = vld [vmem:[%s6564_s1 + $0x568] sm:$0xf0]  ;;  %v4297_v45 = vld [vmem:[%s6564_s1 + $0x4c4] sm:$0xf] }
  0xd8   : > { %2512 = vmatpush.bf16.msra.mxu3 %v3480_v55  ;;  %v3456_v55 = vor.u32 %v4277_v24, %v3453_v28  ;;  %v3440_v24 = vor.u32 %v4273_v6, %v3437_v9  ;;  %v4317_v28 = vld [vmem:[%s6564_s1 + $0x564] sm:$0xf]  ;;  %v3533_v46 = vld [vmem:[%s6564_s1 + $0x4c8] sm:$0xf0]  ;;  %v3733_v63 = vld [vmem:[%s6564_s1 + $0x658] sm:$0xf0] }
  0xd9   : > { %2498 = vmatpush.bf16.msra.mxu1 %v3416_v60  ;;  %v3445_v60 = vld [vmem:[%s6564_s1 + $0x418] sm:$0xf0]  ;;  %v2227_v14 = vpop.f32.mrf.mxu2  ;;  %v3741_v52 = vld [vmem:[%s6564_s1 + $0x668] sm:$0xf0]  ;;  %v3536_v25 = vor.u32 %v4297_v45, %v3533_v46  ;;  %v4341_v46 = vld [vmem:[%s6564_s1 + $0x624] sm:$0xf] }
  0xda   : > { %2485 = vmatpush.bf16.msra.mxu0 %v3344_v0  ;;  %v3320_v0 = vor.u32 %v4243_v11, %v3317_v54  ;;  %v3448_v7 = vor.u32 %v4275_v57, %v3445_v60  ;;  %v2228_v19 = vadd.f32 %v2227_v14, %v2214_v3  ;;  %v4333_v11 = vld [vmem:[%s6564_s1 + $0x5e4] sm:$0xf]  ;;  %v3677_v54 = vld [vmem:[%s6564_s1 + $0x5e8] sm:$0xf0]  ;;  %v3744_v57 = vor.u32 %v4349_v51, %v3741_v52  ;;  %v3525_v60 = vld [vmem:[%s6564_s1 + $0x4b8] sm:$0xf0] }
  0xdb   : > { %2473 = vmatpush.bf16.msra.mxu2 %v3264_v4  ;;  %v4241_v4 = vld [vmem:[%s6564_s1 + $0x304] sm:$0xf]  ;;  %v3501_v45 = vld [vmem:[%s6564_s1 + $0x488] sm:$0xf0]  ;;  %v4367_v52 = vld [vmem:[%s6564_s1 + $0x6f4] sm:$0xf] }
  0xdc   : > { %2513 = vmatpush.bf16.msra.mxu3 %v3472_v8  ;;  %v3552_v8 = vor.u32 %v4301_v33, %v3549_v62  ;;  %v3312_v15 = vor.u32 %v4241_v4, %v3309_v27  ;;  %v3680_v33 = vor.u32 %v4333_v11, %v3677_v54  ;;  %v4347_v62 = vld [vmem:[%s6564_s1 + $0x654] sm:$0xf]  ;;  %v4313_v3 = vld [vmem:[%s6564_s1 + $0x544] sm:$0xf]  ;;  %v3709_v51 = vld [vmem:[%s6564_s1 + $0x628] sm:$0xf0] }
  0xdd   : > { %2499 = vmatpush.bf16.msra.mxu1 %v3408_v20  ;;  %v3621_v20 = vld [vmem:[%s6564_s1 + $0x578] sm:$0xf0]  ;;  %v3736_v4 = vor.u32 %v4347_v62, %v3733_v63  ;;  %v4293_v27 = vld [vmem:[%s6564_s1 + $0x4a4] sm:$0xf]  ;;  %v3712_v63 = vor.u32 %v4341_v46, %v3709_v51 }
  0xde   : > { %2486 = vmatpush.bf16.msra.mxu0 %v3336_v13  ;;  %v4351_v13 = vld [vmem:[%s6564_s1 + $0x674] sm:$0xf]  ;;  %v3624_v22 = vor.u32 %v4319_v10, %v3621_v20  ;;  %v4329_v10 = vld [vmem:[%s6564_s1 + $0x5c4] sm:$0xf]  ;;  %v3661_v20 = vld [vmem:[%s6564_s1 + $0x5c8] sm:$0xf0] }
  0xdf   : > { %2474 = vmatpush.bf16.msra.mxu2 %v3256_v17  ;;  %v4257_v17 = vld [vmem:[%s6564_s1 + $0x384] sm:$0xf]  ;;  %v3752_v39 = vor.u32 %v4351_v13, %v3749_v16  ;;  %v3509_v16 = vld [vmem:[%s6564_s1 + $0x498] sm:$0xf0] }
  0xe0   : > { %2514 = vmatpush.bf16.msra.mxu3 %v3464_v21  ;;  %v2241_v21 = vpop.f32.mrf.mxu3 }
  0xe1   : > { %2500 = vmatpush.bf16.msra.mxu1 %v3400_v26  ;;  %v3544_v26 = vor.u32 %v4299_v47, %v3541_v61  ;;  %v6025_v35 = vadd.f32 %v2241_v21, %v2228_v19  ;;  %v4311_v47 = vld [vmem:[%s6564_s1 + $0x534] sm:$0xf]  ;;  %v3589_v61 = vld [vmem:[%s6564_s1 + $0x538] sm:$0xf0] }
  0xe2   : > { %2487 = vmatpush.bf16.msra.mxu0 %v3328_v41  ;;  %v3376_v41 = vor.u32 %v4257_v17, %v3373_v18  ;;  %v3664_v18 = vor.u32 %v4329_v10, %v3661_v20  ;;  %v4343_v19 = vld [vmem:[%s6564_s1 + $0x634] sm:$0xf]  ;;  %v3717_v21 = vld [vmem:[%s6564_s1 + $0x638] sm:$0xf0]  ;;  %v3565_v10 = vld [vmem:[%s6564_s1 + $0x508] sm:$0xf0] }
  0xe3   : > { %2475 = vmatpush.bf16.msra.mxu2 %v3248_v53  ;;  %v3616_v53 = vor.u32 %v4317_v28, %v3613_v34  ;;  %v4309_v28 = vld [vmem:[%s6564_s1 + $0x524] sm:$0xf]  ;;  %v3581_v34 = vld [vmem:[%s6564_s1 + $0x528] sm:$0xf0] }
  0xe4   : > { %2515 = vmatpush.bf16.msra.mxu3 %v3456_v55  ;;  %v4315_v55 = vld [vmem:[%s6564_s1 + $0x554] sm:$0xf]  ;;  %v3584_v54 = vor.u32 %v4309_v28, %v3581_v34  ;;  %v4337_v20 = vld [vmem:[%s6564_s1 + $0x604] sm:$0xf]  ;;  %v3941_v28 = vld [vmem:[%s6564_s1 + $0x7f8] sm:$0xf0] }
  0xe5   : > { %2501 = vmatpush.bf16.msra.mxu1 %v3392_v58  ;;  %v4295_v58 = vld [vmem:[%s6564_s1 + $0x4b4] sm:$0xf] }
  0xe6   : > { %2476 = vmatmul.bf16.vlgmr.msra.gmra.mxu2 %v4985_v48  ;;  %2488 = vmatpush.bf16.msra.mxu0 %v3320_v0  ;;  %v4335_v48 = vld [vmem:[%s6564_s1 + $0x5f4] sm:$0xf]  ;;  %v3528_v2 = vor.u32 %v4295_v58, %v3525_v60 }
  0xe7   : > { %2524 = vmatpush.bf16.msrb.mxu2 %v3560_v56  ;;  %v3688_v50 = vor.u32 %v4335_v48, %v3685_v23  ;;  %v3605_v56 = vld [vmem:[%s6564_s1 + $0x558] sm:$0xf0]  ;;  %v3592_v48 = vor.u32 %v4311_v47, %v3589_v61  ;;  %v4327_v23 = vld [vmem:[%s6564_s1 + $0x5b4] sm:$0xf]  ;;  %v3693_v61 = vld [vmem:[%s6564_s1 + $0x608] sm:$0xf0] }
  0xe8   : > { %2516 = vmatpush.bf16.msra.mxu3 %v3448_v7  ;;  %v3608_v0 = vor.u32 %v4315_v55, %v3605_v56  ;;  %v4345_v7 = vld [vmem:[%s6564_s1 + $0x644] sm:$0xf]  ;;  %v3645_v55 = vld [vmem:[%s6564_s1 + $0x5a8] sm:$0xf0]  ;;  %v4307_v60 = vld [vmem:[%s6564_s1 + $0x514] sm:$0xf]  ;;  %v3696_v34 = vor.u32 %v4337_v20, %v3693_v61 }
  0xe9   : > { %2502 = vmatpush.bf16.msra.mxu1 %v3384_v12  ;;  %v4393_v20 = vld [vmem:[%s6564_s1 + $0x7c4] sm:$0xf]  ;;  %v4375_v61 = vld [vmem:[%s6564_s1 + $0x734] sm:$0xf] }
  0xea   : > { %2489 = vmatpush.bf16.msra.mxu0 %v3312_v15  ;;  %v2253_v13 = vpop.f32.mrf.mxu0  ;;  %v4291_v15 = vld [vmem:[%s6564_s1 + $0x494] sm:$0xf] }
  0xeb   : > { %2525 = vmatpush.bf16.msrb.mxu2 %v3552_v8  ;;  %v3725_v8 = vld [vmem:[%s6564_s1 + $0x648] sm:$0xf0]  ;;  %v2254_v17 = vadd.f32 %v2253_v13, %v5959_v36  ;;  %v3653_v36 = vld [vmem:[%s6564_s1 + $0x5b8] sm:$0xf0]  ;;  %v4383_v13 = vld [vmem:[%s6564_s1 + $0x774] sm:$0xf] }
  0xec   : > { %2517 = vmatpush.bf16.msra.mxu3 %v3440_v24  ;;  %v3728_v14 = vor.u32 %v4345_v7, %v3725_v8  ;;  %v3637_v7 = vld [vmem:[%s6564_s1 + $0x598] sm:$0xf0] }
  0xed   : > { %2503 = vmatpush.bf16.msra.mxu1 %v3376_v41  ;;  %2490 = vmatmul.bf16.vlgmr.msra.gmra.mxu0 %v4969_v40  ;;  %v3669_v40 = vld [vmem:[%s6564_s1 + $0x5d8] sm:$0xf0]  ;;  %v4289_v41 = vld [vmem:[%s6564_s1 + $0x484] sm:$0xf] }
  0xee   : > { %2538 = vmatpush.bf16.msrb.mxu0 %v3624_v22  ;;  %v3672_v6 = vor.u32 %v4331_v1, %v3669_v40  ;;  %v2267_v22 = vpop.f32.mrf.mxu1  ;;  %v3504_v58 = vor.u32 %v4289_v41, %v3501_v45  ;;  %v4339_v1 = vld [vmem:[%s6564_s1 + $0x614] sm:$0xf]  ;;  %v4381_v41 = vld [vmem:[%s6564_s1 + $0x764] sm:$0xf]  ;;  %v3869_v45 = vld [vmem:[%s6564_s1 + $0x768] sm:$0xf0] }
  0xef   : > { %2526 = vmatpush.bf16.msrb.mxu2 %v3544_v26  ;;  %2518 = vmatmul.bf16.vlgmr.msra.gmra.mxu3 %v5176_v29  ;;  %v3597_v29 = vld [vmem:[%s6564_s1 + $0x548] sm:$0xf0]  ;;  %v2268_v24 = vadd.f32 %v2267_v22, %v2254_v17  ;;  %v3512_v26 = vor.u32 %v4291_v15, %v3509_v16  ;;  %v4363_v16 = vld [vmem:[%s6564_s1 + $0x6d4] sm:$0xf]  ;;  %v3797_v17 = vld [vmem:[%s6564_s1 + $0x6d8] sm:$0xf0] }
  0xf0   : > { %2566 = vmatpush.bf16.msrb.mxu3 %v3752_v39  ;;  %2504 = vmatmul.bf16.vlgmr.msra.gmra.mxu1 %v4977_v44  ;;  %v3517_v44 = vld [vmem:[%s6564_s1 + $0x4a8] sm:$0xf0]  ;;  %v3600_v9 = vor.u32 %v4313_v3, %v3597_v29  ;;  %v3720_v39 = vor.u32 %v4343_v19, %v3717_v21  ;;  %v3701_v29 = vld [vmem:[%s6564_s1 + $0x618] sm:$0xf0] }
  0xf1   : > { %2552 = vmatpush.bf16.msrb.mxu1 %v3688_v50  ;;  %v3520_v12 = vor.u32 %v4293_v27, %v3517_v44  ;;  %v3656_v50 = vor.u32 %v4327_v23, %v3653_v36  ;;  %v2281_v11 = vpop.f32.mrf.mxu2  ;;  %v3805_v27 = vld [vmem:[%s6564_s1 + $0x6e8] sm:$0xf0]  ;;  %v4005_v22 = vld [vmem:[%s6564_s1 + $0x878] sm:$0xf0] }
  0xf2   : > { %2539 = vmatpush.bf16.msrb.mxu0 %v3616_v53  ;;  %v3813_v53 = vld [vmem:[%s6564_s1 + $0x6f8] sm:$0xf0]  ;;  %v2282_v56 = vadd.f32 %v2281_v11, %v2268_v24  ;;  %v2255_v62 = vpop.f32.mrf.mxu0  ;;  %v3629_v23 = vld [vmem:[%s6564_s1 + $0x588] sm:$0xf0] }
  0xf3   : > { %2527 = vmatpush.bf16.msrb.mxu2 %v3536_v25  ;;  %v4325_v25 = vld [vmem:[%s6564_s1 + $0x5a4] sm:$0xf]  ;;  %v2256_v40 = vadd.f32 %v2255_v62, %v6025_v35  ;;  %v4323_v35 = vld [vmem:[%s6564_s1 + $0x594] sm:$0xf] }
  0xf4   : > { %2567 = vmatpush.bf16.msrb.mxu3 %v3744_v57  ;;  %v2295_v57 = vpop.f32.mrf.mxu3  ;;  %v3648_v3 = vor.u32 %v4325_v25, %v3645_v55  ;;  %v3640_v15 = vor.u32 %v4323_v35, %v3637_v7  ;;  %v3997_v25 = vld [vmem:[%s6564_s1 + $0x868] sm:$0xf0]  ;;  %v3872_v55 = vor.u32 %v4381_v41, %v3869_v45  ;;  %v4357_v35 = vld [vmem:[%s6564_s1 + $0x6a4] sm:$0xf] }
  0xf5   : > { %2553 = vmatpush.bf16.msrb.mxu1 %v3680_v33  ;;  %v3573_v33 = vld [vmem:[%s6564_s1 + $0x518] sm:$0xf0]  ;;  %v3757_v41 = vld [vmem:[%s6564_s1 + $0x688] sm:$0xf0]  ;;  %v4405_v45 = vld [vmem:[%s6564_s1 + $0x824] sm:$0xf] }
  0xf6   : > { %2540 = vmatpush.bf16.msrb.mxu0 %v3608_v0  ;;  %v3816_v0 = vor.u32 %v4367_v52, %v3813_v53  ;;  %v2269_v44 = vpop.f32.mrf.mxu1  ;;  %v4361_v52 = vld [vmem:[%s6564_s1 + $0x6c4] sm:$0xf]  ;;  %v3789_v53 = vld [vmem:[%s6564_s1 + $0x6c8] sm:$0xf0] }
  0xf7   : > { %2528 = vmatpush.bf16.msrb.mxu2 %v3528_v2  ;;  %v6161_v2 = vadd.f32 %v2295_v57, %v2282_v56  ;;  %v2270_v8 = vadd.f32 %v2269_v44, %v2256_v40  ;;  %v4397_v56 = vld [vmem:[%s6564_s1 + $0x7e4] sm:$0xf]  ;;  %v3933_v57 = vld [vmem:[%s6564_s1 + $0x7e8] sm:$0xf0]  ;;  %v4411_v40 = vld [vmem:[%s6564_s1 + $0x854] sm:$0xf] }
  0xf8   : > { %2568 = vmatpush.bf16.msrb.mxu3 %v3736_v4  ;;  %v4365_v4 = vld [vmem:[%s6564_s1 + $0x6e4] sm:$0xf] }
  0xf9   : > { %2554 = vmatpush.bf16.msrb.mxu1 %v3672_v6  ;;  %v3576_v6 = vor.u32 %v4307_v60, %v3573_v33  ;;  %v3808_v47 = vor.u32 %v4365_v4, %v3805_v27  ;;  %v2283_v19 = vpop.f32.mrf.mxu2  ;;  %v4379_v60 = vld [vmem:[%s6564_s1 + $0x754] sm:$0xf]  ;;  %v3861_v33 = vld [vmem:[%s6564_s1 + $0x758] sm:$0xf0]  ;;  %v4377_v44 = vld [vmem:[%s6564_s1 + $0x744] sm:$0xf] }
  0xfa   : > { %2541 = vmatpush.bf16.msrb.mxu0 %v3600_v9  ;;  %v4305_v9 = vld [vmem:[%s6564_s1 + $0x504] sm:$0xf]  ;;  %v2284_v36 = vadd.f32 %v2283_v19, %v2270_v8  ;;  %v4395_v4 = vld [vmem:[%s6564_s1 + $0x7d4] sm:$0xf] }
  0xfb   : > { %2529 = vmatpush.bf16.msrb.mxu2 %v3520_v12  ;;  %v3704_v12 = vor.u32 %v4339_v1, %v3701_v29  ;;  %v3568_v21 = vor.u32 %v4305_v9, %v3565_v10  ;;  %v3936_v1 = vor.u32 %v4397_v56, %v3933_v57  ;;  %v3864_v29 = vor.u32 %v4379_v60, %v3861_v33  ;;  %v4409_v8 = vld [vmem:[%s6564_s1 + $0x844] sm:$0xf]  ;;  %v3981_v9 = vld [vmem:[%s6564_s1 + $0x848] sm:$0xf0]  ;;  %v4407_v19 = vld [vmem:[%s6564_s1 + $0x834] sm:$0xf] }
  0xfc   : > { %2569 = vmatpush.bf16.msrb.mxu3 %v3728_v14  ;;  %v3877_v14 = vld [vmem:[%s6564_s1 + $0x778] sm:$0xf0]  ;;  %v2297_v24 = vpop.f32.mrf.mxu3  ;;  %v4371_v57 = vld [vmem:[%s6564_s1 + $0x714] sm:$0xf] }
  0xfd   : > { %2555 = vmatpush.bf16.msrb.mxu1 %v3664_v18  ;;  %v4415_v18 = vld [vmem:[%s6564_s1 + $0x874] sm:$0xf]  ;;  %v6227_v46 = vadd.f32 %v2297_v24, %v2284_v36  ;;  %v3909_v36 = vld [vmem:[%s6564_s1 + $0x7b8] sm:$0xf0] }
  0xfe   : > { %2542 = vmatpush.bf16.msrb.mxu0 %v3592_v48  ;;  %v4321_v48 = vld [vmem:[%s6564_s1 + $0x584] sm:$0xf] }
  0xff   : > { %2530 = vmatpush.bf16.msrb.mxu2 %v3512_v26  ;;  %v3880_v26 = vor.u32 %v4383_v13, %v3877_v14  ;;  %v3632_v51 = vor.u32 %v4321_v48, %v3629_v23  ;;  %v3845_v13 = vld [vmem:[%s6564_s1 + $0x738] sm:$0xf0]  ;;  %v3984_v14 = vor.u32 %v4409_v8, %v3981_v9  ;;  %v4391_v23 = vld [vmem:[%s6564_s1 + $0x7b4] sm:$0xf] }
 0x100   : > { %2570 = vmatpush.bf16.msrb.mxu3 %v3720_v39  ;;  %v3800_v39 = vor.u32 %v4363_v16, %v3797_v17  ;;  %v3765_v16 = vld [vmem:[%s6564_s1 + $0x698] sm:$0xf0]  ;;  %v3848_v48 = vor.u32 %v4375_v61, %v3845_v13  ;;  %v3949_v61 = vld [vmem:[%s6564_s1 + $0x808] sm:$0xf0]  ;;  %v4427_v13 = vld [vmem:[%s6564_s1 + $0x8d4] sm:$0xf] }
 0x101   : > { %2556 = vmatpush.bf16.msrb.mxu1 %v3656_v50  ;;  %v4008_v50 = vor.u32 %v4415_v18, %v4005_v22 }
 0x102   : > { %2543 = vmatpush.bf16.msrb.mxu0 %v3584_v54  ;;  %v4413_v54 = vld [vmem:[%s6564_s1 + $0x864] sm:$0xf] }
 0x103   : > { %2531 = vmatpush.bf16.msrb.mxu2 %v3504_v58  ;;  %v3792_v58 = vor.u32 %v4361_v52, %v3789_v53  ;;  %v4000_v62 = vor.u32 %v4413_v54, %v3997_v25  ;;  %v4431_v52 = vld [vmem:[%s6564_s1 + $0x8f4] sm:$0xf]  ;;  %v4069_v53 = vld [vmem:[%s6564_s1 + $0x8f8] sm:$0xf0]  ;;  %v4389_v54 = vld [vmem:[%s6564_s1 + $0x7a4] sm:$0xf] }
 0x104   : > { %2571 = vmatpush.bf16.msrb.mxu3 %v3712_v63  ;;  %v4359_v63 = vld [vmem:[%s6564_s1 + $0x6b4] sm:$0xf]  ;;  %v3901_v25 = vld [vmem:[%s6564_s1 + $0x7a8] sm:$0xf0] }
 0x105   : > { %2557 = vmatpush.bf16.msrb.mxu1 %v3648_v3  ;;  %v3989_v3 = vld [vmem:[%s6564_s1 + $0x858] sm:$0xf0] }
 0x106   : > { %2532 = vmatmul.bf16.vlgmr.msrb.gmra.mxu2 %v5191_v38  ;;  %2544 = vmatpush.bf16.msrb.mxu0 %v3576_v6  ;;  %v4399_v38 = vld [vmem:[%s6564_s1 + $0x7f4] sm:$0xf]  ;;  %v3992_v6 = vor.u32 %v4411_v40, %v3989_v3  ;;  %v3904_v40 = vor.u32 %v4389_v54, %v3901_v25  ;;  %v3957_v3 = vld [vmem:[%s6564_s1 + $0x818] sm:$0xf0] }
 0x107   : > { %2580 = vmatpush.bf16.msra.mxu2 %v3816_v0  ;;  %v3944_v11 = vor.u32 %v4399_v38, %v3941_v28  ;;  %v3781_v0 = vld [vmem:[%s6564_s1 + $0x6b8] sm:$0xf0]  ;;  %v4373_v38 = vld [vmem:[%s6564_s1 + $0x724] sm:$0xf]  ;;  %v4435_v25 = vld [vmem:[%s6564_s1 + $0x914] sm:$0xf] }
 0x108   : > { %2572 = vmatpush.bf16.msrb.mxu3 %v3704_v12  ;;  %v3784_v27 = vor.u32 %v4359_v63, %v3781_v0  ;;  %v3917_v12 = vld [vmem:[%s6564_s1 + $0x7c8] sm:$0xf0]  ;;  %v4072_v63 = vor.u32 %v4431_v52, %v4069_v53  ;;  %v4403_v0 = vld [vmem:[%s6564_s1 + $0x814] sm:$0xf] }
 0x109   : > { %2558 = vmatpush.bf16.msrb.mxu1 %v3640_v15  ;;  %v4355_v15 = vld [vmem:[%s6564_s1 + $0x694] sm:$0xf]  ;;  %v3920_v18 = vor.u32 %v4393_v20, %v3917_v12  ;;  %v3960_v8 = vor.u32 %v4403_v0, %v3957_v3  ;;  %v4117_v12 = vld [vmem:[%s6564_s1 + $0x958] sm:$0xf0]  ;;  %v4093_v53 = vld [vmem:[%s6564_s1 + $0x928] sm:$0xf0] }
 0x10a   : > { %2545 = vmatpush.bf16.msrb.mxu0 %v3568_v21  ;;  %v2309_v17 = vpop.f32.mrf.mxu0  ;;  %v3973_v21 = vld [vmem:[%s6564_s1 + $0x838] sm:$0xf0]  ;;  %v4443_v20 = vld [vmem:[%s6564_s1 + $0x954] sm:$0xf]  ;;  %v4433_v0 = vld [vmem:[%s6564_s1 + $0x904] sm:$0xf] }
 0x10b   : > { %2581 = vmatpush.bf16.msra.mxu2 %v3808_v47  ;;  %v2310_v22 = vadd.f32 %v2309_v17, %v6161_v2  ;;  %v3837_v2 = vld [vmem:[%s6564_s1 + $0x728] sm:$0xf0]  ;;  %v4417_v3 = vld [vmem:[%s6564_s1 + $0x884] sm:$0xf] }
 0x10c   : > { %2573 = vmatpush.bf16.msrb.mxu3 %v3696_v34  ;;  %v3976_v34 = vor.u32 %v4407_v19, %v3973_v21  ;;  %v3885_v17 = vld [vmem:[%s6564_s1 + $0x788] sm:$0xf0]  ;;  %v4120_v19 = vor.u32 %v4443_v20, %v4117_v12 }
 0x10d   : > { %2559 = vmatpush.bf16.msrb.mxu1 %v3632_v51  ;;  %2546 = vmatmul.bf16.vlgmr.msrb.gmra.mxu0 %v5178_v30  ;;  %v3925_v30 = vld [vmem:[%s6564_s1 + $0x7d8] sm:$0xf0]  ;;  %v2323_v24 = vpop.f32.mrf.mxu1  ;;  %v3965_v51 = vld [vmem:[%s6564_s1 + $0x828] sm:$0xf0] }
 0x10e   : > { %2594 = vmatpush.bf16.msra.mxu0 %v3880_v26  ;;  %v3928_v7 = vor.u32 %v4395_v4, %v3925_v30  ;;  %v3768_v26 = vor.u32 %v4355_v15, %v3765_v16  ;;  %v2324_v28 = vadd.f32 %v2323_v24, %v2310_v22  ;;  %v4061_v4 = vld [vmem:[%s6564_s1 + $0x8e8] sm:$0xf0]  ;;  %v4385_v16 = vld [vmem:[%s6564_s1 + $0x784] sm:$0xf] }
 0x10f   : > { %2582 = vmatpush.bf16.msra.mxu2 %v3800_v39  ;;  %2574 = vmatmul.bf16.vlgmr.msrb.gmra.mxu3 %v5388_v31  ;;  %v3853_v31 = vld [vmem:[%s6564_s1 + $0x748] sm:$0xf0]  ;;  %v4353_v39 = vld [vmem:[%s6564_s1 + $0x684] sm:$0xf]  ;;  %v3888_v24 = vor.u32 %v4385_v16, %v3885_v17 }
 0x110   : > { %2622 = vmatpush.bf16.msra.mxu3 %v4008_v50  ;;  %2560 = vmatmul.bf16.vlgmr.msrb.gmra.mxu1 %v5189_v37  ;;  %v3773_v37 = vld [vmem:[%s6564_s1 + $0x6a8] sm:$0xf0]  ;;  %v3856_v10 = vor.u32 %v4377_v44, %v3853_v31  ;;  %v3912_v50 = vor.u32 %v4391_v23, %v3909_v36  ;;  %v3760_v56 = vor.u32 %v4353_v39, %v3757_v41  ;;  %v4387_v31 = vld [vmem:[%s6564_s1 + $0x794] sm:$0xf]  ;;  %v4101_v41 = vld [vmem:[%s6564_s1 + $0x938] sm:$0xf0] }
 0x111   : > { %2608 = vmatpush.bf16.msra.mxu1 %v3944_v11  ;;  %v3776_v47 = vor.u32 %v4357_v35, %v3773_v37  ;;  %v3840_v11 = vor.u32 %v4373_v38, %v3837_v2  ;;  %v4369_v37 = vld [vmem:[%s6564_s1 + $0x704] sm:$0xf]  ;;  %v4109_v36 = vld [vmem:[%s6564_s1 + $0x948] sm:$0xf0]  ;;  %v4439_v39 = vld [vmem:[%s6564_s1 + $0x934] sm:$0xf] }
 0x112   : > { %2595 = vmatpush.bf16.msra.mxu0 %v3872_v55  ;;  %v2337_v55 = vpop.f32.mrf.mxu2  ;;  %v2351_v33 = vpop.f32.mrf.mxu3  ;;  %v4045_v38 = vld [vmem:[%s6564_s1 + $0x8c8] sm:$0xf0] }
 0x113   : > { %2583 = vmatpush.bf16.msra.mxu2 %v3792_v58  ;;  %v3829_v58 = vld [vmem:[%s6564_s1 + $0x718] sm:$0xf0]  ;;  %v2338_v60 = vadd.f32 %v2337_v55, %v2324_v28 }
 0x114   : > { %2623 = vmatpush.bf16.msra.mxu3 %v4000_v62  ;;  %v3968_v62 = vor.u32 %v4405_v45, %v3965_v51  ;;  %v3832_v44 = vor.u32 %v4371_v57, %v3829_v58  ;;  %v4423_v45 = vld [vmem:[%s6564_s1 + $0x8b4] sm:$0xf]  ;;  %v4104_v51 = vor.u32 %v4439_v39, %v4101_v41  ;;  %v4085_v55 = vld [vmem:[%s6564_s1 + $0x918] sm:$0xf0] }
 0x115   : > { %2609 = vmatpush.bf16.msra.mxu1 %v3936_v1  ;;  %v2311_v1 = vpop.f32.mrf.mxu0  ;;  %v2325_v35 = vpop.f32.mrf.mxu1  ;;  %v4021_v57 = vld [vmem:[%s6564_s1 + $0x898] sm:$0xf0] }
 0x116   : > { %2596 = vmatpush.bf16.msra.mxu0 %v3864_v29  ;;  %v4429_v29 = vld [vmem:[%s6564_s1 + $0x8e4] sm:$0xf]  ;;  %v2312_v30 = vadd.f32 %v2311_v1, %v6227_v46  ;;  %v3821_v46 = vld [vmem:[%s6564_s1 + $0x708] sm:$0xf0] }
 0x117   : > { %2584 = vmatpush.bf16.msra.mxu2 %v3784_v27  ;;  %v6372_v27 = vadd.f32 %v2351_v33, %v2338_v60  ;;  %v4064_v9 = vor.u32 %v4429_v29, %v4061_v4  ;;  %v3824_v15 = vor.u32 %v4369_v37, %v3821_v46  ;;  %v4077_v1 = vld [vmem:[%s6564_s1 + $0x908] sm:$0xf0]  ;;  %v2674_v37 = vlaneseq  ;;  %v6493_v17 = vpop.permute.xlu2 %2734 }
 0x118   : > { %2624 = vmatpush.bf16.msra.mxu3 %v3992_v6  ;;  %v3893_v6 = vld [vmem:[%s6564_s1 + $0x798] sm:$0xf0]  ;;  %v4013_v29 = vld [vmem:[%s6564_s1 + $0x888] sm:$0xf0] }
 0x119   : > { %2610 = vmatpush.bf16.msra.mxu1 %v3928_v7  ;;  %v2326_v7 = vadd.f32 %v2325_v35, %v2312_v30  ;;  %v4080_v30 = vor.u32 %v4433_v0, %v4077_v1 }
 0x11a   : > { %2597 = vmatpush.bf16.msra.mxu0 %v3856_v10  ;;  %v4401_v10 = vld [vmem:[%s6564_s1 + $0x804] sm:$0xf]  ;;  %v2353_v22 = vpop.f32.mrf.mxu3 }
 0x11b   : > { %2585 = vmatpush.bf16.msra.mxu2 %v3776_v47  ;;  %v3896_v47 = vor.u32 %v4387_v31, %v3893_v6  ;;  %v6475_v6 = vpop.permute.xlu0 %2683 }
 0x11c   : > { %2625 = vmatpush.bf16.msra.mxu3 %v3984_v14  ;;  %v4053_v14 = vld [vmem:[%s6564_s1 + $0x8d8] sm:$0xf0] }
 0x11d   : > { %2611 = vmatpush.bf16.msra.mxu1 %v3920_v18  ;;  %v2339_v18 = vpop.f32.mrf.mxu2  ;;  %v4056_v23 = vor.u32 %v4427_v13, %v4053_v14 }
 0x11e   : > { %2598 = vmatpush.bf16.msra.mxu0 %v3848_v48  ;;  %v2340_v21 = vadd.f32 %v2339_v18, %v2326_v7  ;;  %v3952_v48 = vor.u32 %v4401_v10, %v3949_v61 }
 0x11f   : > { %2586 = vmatpush.bf16.msra.mxu2 %v3768_v26  ;;  %v4425_v26 = vld [vmem:[%s6564_s1 + $0x8c4] sm:$0xf] }
 0x120   : > { %2626 = vmatpush.bf16.msra.mxu3 %v3976_v34  ;;  %v2354_v2 = vadd.f32 %v2353_v22, %v2340_v21  ;;  %v4048_v34 = vor.u32 %v4425_v26, %v4045_v38  ;;  %v6482_v12 = vpop.permute.xlu1 %2709 }
 0x121   : > { %2612 = vmatpush.bf16.msra.mxu1 %v3912_v50  ;;  %v4037_v50 = vld [vmem:[%s6564_s1 + $0x8b8] sm:$0xf0] }
 0x122   : > { %2599 = vmatpush.bf16.msra.mxu0 %v3840_v11  ;;  %v4040_v52 = vor.u32 %v4423_v45, %v4037_v50  ;;  %v4421_v11 = vld [vmem:[%s6564_s1 + $0x8a4] sm:$0xf] }
 0x123   : > { %2587 = vmatpush.bf16.msra.mxu2 %v3760_v56  ;;  %v4419_v56 = vld [vmem:[%s6564_s1 + $0x894] sm:$0xf]  ;;  %v6485_v14 = vpop.permute.xlu0 %2688 }
 0x124   : > { %2627 = vmatpush.bf16.msra.mxu3 %v3968_v62  ;;  %v4088_v62 = vor.u32 %v4435_v25, %v4085_v55 }
 0x125   : > { %2613 = vmatpush.bf16.msra.mxu1 %v3904_v40 }
 0x126   : > { %2588 = vmatmul.bf16.vlgmr.msra.gmra.mxu2 %v5403_v43  ;;  %2600 = vmatpush.bf16.msra.mxu0 %v3832_v44  ;;  %v4441_v43 = vld [vmem:[%s6564_s1 + $0x944] sm:$0xf]  ;;  %v4016_v44 = vor.u32 %v4417_v3, %v4013_v29  ;;  %v4463_v3 = vld [vmem:[%s6565_s2] sm:$0x3] }
 0x127   : > { %2636 = vmatpush.bf16.msrb.mxu2 %v4072_v63  ;;  %v4112_v28 = vor.u32 %v4441_v43, %v4109_v36  ;;  %v4024_v63 = vor.u32 %v4419_v56, %v4021_v57  ;;  %v530_v29 = vperm.slane %v4463_v3, 1 }
 0x128   : > { %2628 = vmatpush.bf16.msra.mxu3 %v3960_v8  ;;  %v6496_v22 = vpop.permute.xlu1 %2713 }
 0x129   : > { %2614 = vmatpush.bf16.msra.mxu1 %v3896_v47  ;;  %v2393_v33 = vpop.f32.mrf.mxu2 }
 0x12a   : > { %2601 = vmatpush.bf16.msra.mxu0 %v3824_v15  ;;  %v2365_v58 = vpop.f32.mrf.mxu0 }
 0x12b   : > { %2637 = vmatpush.bf16.msrb.mxu2 %v4064_v9  ;;  %v2366_v60 = vadd.f32 %v2365_v58, %v6372_v27  ;;  %v6480_v9 = vshrl.u32 %v2674_v37, 7 }
 0x12c   : > { %2629 = vmatpush.bf16.msra.mxu3 %v3952_v48 }
 0x12d   : > { %2615 = vmatpush.bf16.msra.mxu1 %v3888_v24  ;;  %2602 = vmatmul.bf16.vlgmr.msra.gmra.mxu0 %v5390_v32  ;;  %v4437_v32 = vld [vmem:[%s6564_s1 + $0x924] sm:$0xf]  ;;  %v2379_v40 = vpop.f32.mrf.mxu1  ;;  %vm2676_vm1 = vcmp.lt.s32.totalorder %v6480_v9, 1  ;;  %vm2703_vm2 = vcmp.lt.s32.totalorder %v6480_v9, 7  ;;  %vm2728_vm3 = vcmp.lt.s32.totalorder %v6480_v9, 4 }
 0x12e   : > { %2652 = vmatpush.bf16.msrb.mxu0 %v4120_v19  ;;  %v2380_v4 = vadd.f32 %v2379_v40, %v2366_v60 }
 0x12f   : > { %2638 = vmatpush.bf16.msrb.mxu2 %v4056_v23  ;;  %2630 = vmatmul.bf16.vlgmr.msra.gmra.mxu3 %v5604_v49  ;;  %v4029_v49 = vld [vmem:[%s6564_s1 + $0x8a8] sm:$0xf0] }
 0x130   : > { %2616 = vmatmul.bf16.vlgmr.msra.gmra.mxu1 %v5401_v42  ;;  %v4096_v42 = vor.u32 %v4437_v32, %v4093_v53  ;;  %v4032_v54 = vor.u32 %v4421_v11, %v4029_v49  ;;  %v2394_v27 = vadd.f32 %v2393_v33, %v2380_v4  ;;  %v6515_v49 = vpop.permute.xlu0 %2758 }
 0x131   : > { %v2395_v7 = vpop.f32.mrf.mxu2  ;;  %v6513_v53 = vpop.permute.xlu1 %2762 }
 0x132   : > { %2653 = vmatpush.bf16.msrb.mxu0 %v4112_v28  ;;  %v2367_v31 = vpop.f32.mrf.mxu0  ;;  %v2664_v10 = vmax.f32 %v2394_v27, 0.0  ;;  %v6505_v28 = vpop.permute.xlu2 %2738 }
 0x133   : > { %2639 = vmatpush.bf16.msrb.mxu2 %v4048_v34  ;;  %v2368_v35 = vadd.f32 %v2367_v31, %v2354_v2  ;;  %v2407_v58 = vpop.f32.mrf.mxu3 }
 0x134   : > { %v2670_v61 = vrot.slane %v2664_v10, 7  ;;  %v2408_v4 = vadd.f32 %v2407_v58, %v530_v29 }
 0x135   : > { %v2381_v46 = vpop.f32.mrf.mxu1 }
 0x136   : > { %2654 = vmatpush.bf16.msrb.mxu0 %v4104_v51  ;;  %v2382_v8 = vadd.f32 %v2381_v46, %v2368_v35 }
 0x137   : > { %2640 = vmatpush.bf16.msrb.mxu2 %v4040_v52 }
 0x138   : > { %v2396_v20 = vadd.f32 %v2395_v7, %v2382_v8 }
 0x13a   : > { %2655 = vmatpush.bf16.msrb.mxu0 %v4096_v42  ;;  %v2666_v47 = vmax.f32 %v2396_v20, 0.0 }
 0x13b   : > { %2641 = vmatpush.bf16.msrb.mxu2 %v4032_v54 }
 0x13c   : > { %v2672_v13 = vrot.slane %v2666_v47, 7 }
 0x13e   : > { %2656 = vmatpush.bf16.msrb.mxu0 %v4088_v62  ;;  %v2677_v15 = vsel %vm2676_vm1, %v2670_v61, %v2672_v13  ;;  %v2409_v62 = vpop.f32.mrf.mxu3 }
 0x13f   : > { %2642 = vmatpush.bf16.msrb.mxu2 %v4024_v63  ;;  %v2410_v46 = vadd.f32 %v2409_v62, %v530_v29 }
 0x142   : > { %2657 = vmatpush.bf16.msrb.mxu0 %v4080_v30 }
 0x143   : > { %2643 = vmatpush.bf16.msrb.mxu2 %v4016_v44 }
 0x145   : > { %4122 = vmatmul.msk.bf16.vlgmr.msrb.gmra.mxu0 %vm2128_vm0, %v5552_v5  ;;  %v2679_v5 = vsel %vm2676_vm1, %v2672_v13, %v2670_v61 }
 0x146   : > { %2644 = vmatmul.bf16.vlgmr.msrb.gmra.mxu2 %v5625_v59  ;;  %v2693_v59 = vsub.f32 %v2677_v15, %v6485_v14  ;;  %v2691_v16 = vsub.f32 %v2679_v5, %v6475_v6 }
 0x148   : > { %v2697_v18 = vmax.f32 %v2666_v47, %v2693_v59  ;;  %v2695_v19 = vmax.f32 %v2664_v10, %v2691_v16 }
 0x149   : > { %v2421_v60 = vpop.f32.mrf.mxu2 }
 0x14a   : > { %v2701_v21 = vrot.slane %v2697_v18, 1  ;;  %v2699_v48 = vrot.slane %v2695_v19, 1  ;;  %v2435_v33 = vpop.f32.mrf.mxu0  ;;  %v2422_v35 = vadd.f32 %v2421_v60, %v2408_v4 }
 0x14c   : > { %v2704_v23 = vsel %vm2703_vm2, %v2699_v48, %v2701_v21  ;;  %v2706_v43 = vsel %vm2703_vm2, %v2701_v21, %v2699_v48  ;;  %v2436_v37 = vadd.f32 %v2435_v33, %v2422_v35 }
 0x14d   : > { %v2718_v36 = vsub.f32 %v2706_v43, %v6496_v22  ;;  %v2716_v24 = vsub.f32 %v2704_v23, %v6482_v12  ;;  %v2449_v63 = vpop.f32.mrf.mxu1 }
 0x14e   : > { %v2450_v20 = vadd.f32 %v2449_v63, %v2436_v37 }
 0x14f   : > { %v2722_v26 = vmax.f32 %v2697_v18, %v2718_v36  ;;  %v2720_v38 = vmax.f32 %v2695_v19, %v2716_v24 }
 0x151   : > { %v2726_v2 = vrot.slane %v2722_v26, 4  ;;  %v2724_v34 = vrot.slane %v2720_v38, 4  ;;  %v2423_v0 = vpop.f32.mrf.mxu2 }
 0x152   : > { %v2437_v1 = vpop.f32.mrf.mxu0  ;;  %v2463_v40 = vpop.f32.mrf.mxu3  ;;  %v2424_v61 = vadd.f32 %v2423_v0, %v2410_v46 }
 0x153   : > { %v2729_v39 = vsel %vm2728_vm3, %v2724_v34, %v2726_v2  ;;  %v2731_v41 = vsel %vm2728_vm3, %v2726_v2, %v2724_v34  ;;  %v2464_v13 = vadd.f32 %v2463_v40, %v2450_v20 }
 0x154   : > { %v2743_v45 = vsub.f32 %v2729_v39, %v6505_v28  ;;  %v2741_v50 = vsub.f32 %v2731_v41, %v6493_v17  ;;  %v2438_v15 = vadd.f32 %v2437_v1, %v2424_v61 }
 0x155   : > { %v2451_v30 = vpop.f32.mrf.mxu1 }
 0x156   : > { %v2747_v51 = vmax.f32 %v2722_v26, %v2743_v45  ;;  %v2745_v52 = vmax.f32 %v2720_v38, %v2741_v50  ;;  %v2452_v19 = vadd.f32 %v2451_v30, %v2438_v15 }
 0x158   : > { %v2751_v32 = vrot.slane %v2747_v51, 4  ;;  %v2749_v11 = vrot.slane %v2745_v52, 4 }
 0x15a   : > { %v2755_v42 = vsel %vm2728_vm3, %v2751_v32, %v2749_v11  ;;  %v2753_v54 = vsel %vm2728_vm3, %v2749_v11, %v2751_v32  ;;  %v2465_v31 = vpop.f32.mrf.mxu3 }
 0x15b   : > { %v2767_v25 = vsub.f32 %v2755_v42, %v6513_v53  ;;  %v2765_v55 = vsub.f32 %v2753_v54, %v6515_v49  ;;  %v2466_v23 = vadd.f32 %v2465_v31, %v2452_v19 }
 0x15d   : > { %v6523_v56 = vmax.f32 %v2747_v51, %v2767_v25  ;;  %v6525_v57 = vmax.f32 %v2745_v52, %v2765_v55 }
 0x169   : > { %v2477_v27 = vpop.f32.mrf.mxu2 }
 0x16a   : > { %v2491_v44 = vpop.f32.mrf.mxu0  ;;  %v2478_v16 = vadd.f32 %v2477_v27, %v2464_v13 }
 0x16c   : > { %v2492_v48 = vadd.f32 %v2491_v44, %v2478_v16 }
 0x16d   : > { %v2505_v7 = vpop.f32.mrf.mxu1 }
 0x16e   : > { %v2506_v43 = vadd.f32 %v2505_v7, %v2492_v48 }
 0x171   : > { %v2479_v8 = vpop.f32.mrf.mxu2 }
 0x172   : > { %v2493_v10 = vpop.f32.mrf.mxu0  ;;  %v2519_v47 = vpop.f32.mrf.mxu3  ;;  %v2480_v36 = vadd.f32 %v2479_v8, %v2466_v23 }
 0x173   : > { %v2520_v34 = vadd.f32 %v2519_v47, %v2506_v43 }
 0x174   : > { %v2494_v39 = vadd.f32 %v2493_v10, %v2480_v36 }
 0x175   : > { %v2507_v18 = vpop.f32.mrf.mxu1 }
 0x176   : > { %v2508_v45 = vadd.f32 %v2507_v18, %v2494_v39 }
 0x17a   : > { %v2521_v21 = vpop.f32.mrf.mxu3 }
 0x17b   : > { %v2522_v52 = vadd.f32 %v2521_v21, %v2508_v45 }
 0x189   : > { %v2533_v5 = vpop.f32.mrf.mxu2 }
 0x18a   : > { %v2547_v59 = vpop.f32.mrf.mxu0  ;;  %v2534_v41 = vadd.f32 %v2533_v5, %v2520_v34 }
 0x18c   : > { %v2548_v32 = vadd.f32 %v2547_v59, %v2534_v41 }
 0x18d   : > { %v2561_v24 = vpop.f32.mrf.mxu1 }
 0x18e   : > { %v2562_v25 = vadd.f32 %v2561_v24, %v2548_v32 }
 0x191   : > { %v2535_v26 = vpop.f32.mrf.mxu2 }
 0x192   : > { %v2549_v38 = vpop.f32.mrf.mxu0  ;;  %v2575_v2 = vpop.f32.mrf.mxu3  ;;  %v2536_v42 = vadd.f32 %v2535_v26, %v2522_v52 }
 0x193   : > { %v2576_v55 = vadd.f32 %v2575_v2, %v2562_v25 }
 0x194   : > { %v2550_v58 = vadd.f32 %v2549_v38, %v2536_v42 }
 0x195   : > { %v2563_v11 = vpop.f32.mrf.mxu1 }
 0x196   : > { %v2564_v0 = vadd.f32 %v2563_v11, %v2550_v58 }
 0x19a   : > { %v2577_v54 = vpop.f32.mrf.mxu3 }
 0x19b   : > { %v2578_v40 = vadd.f32 %v2577_v54, %v2564_v0 }
 0x1a9   : > { %v2589_v50 = vpop.f32.mrf.mxu2 }
 0x1aa   : > { %v2603_v51 = vpop.f32.mrf.mxu0  ;;  %v2590_v60 = vadd.f32 %v2589_v50, %v2576_v55 }
 0x1ac   : > { %v2604_v3 = vadd.f32 %v2603_v51, %v2590_v60 }
 0x1ad   : > { %v2617_v33 = vpop.f32.mrf.mxu1 }
 0x1ae   : > { %v2618_v4 = vadd.f32 %v2617_v33, %v2604_v3 }
 0x1b1   : > { %v2591_v62 = vpop.f32.mrf.mxu2 }
 0x1b2   : > { %v2605_v63 = vpop.f32.mrf.mxu0  ;;  %v2631_v1 = vpop.f32.mrf.mxu3  ;;  %v2592_v29 = vadd.f32 %v2591_v62, %v2578_v40 }
 0x1b3   : > { %v2632_v44 = vadd.f32 %v2631_v1, %v2618_v4 }
 0x1b4   : > { %v2606_v31 = vadd.f32 %v2605_v63, %v2592_v29 }
 0x1b5   : > { %v2619_v35 = vpop.f32.mrf.mxu1 }
 0x1b6   : > { %v2620_v7 = vadd.f32 %v2619_v35, %v2606_v31 }
 0x1ba   : > { %v2633_v46 = vpop.f32.mrf.mxu3 }
 0x1bb   : > { %v2634_v8 = vadd.f32 %v2633_v46, %v2620_v7 }
 0x1c2   : > { %v2659_v30 = vpop.f32.mrf.mxu0 }
 0x1c9   : > { %v2645_v27 = vpop.f32.mrf.mxu2 }
 0x1ca   : > { %v2646_v37 = vadd.f32 %v2645_v27, %v2632_v44  ;;  %v2661_v61 = vpop.f32.mrf.mxu0 }
 0x1cc   : > { %v2660_v10 = vadd.f32 %v2659_v30, %v2646_v37 }
 0x1ce   : > { %v2665_v13 = vmax.f32 %v2660_v10, 0.0 }
 0x1d0   : > { %v2671_v59 = vrot.slane %v2665_v13, 7 }
 0x1d1   : > { %v2647_v20 = vpop.f32.mrf.mxu2 }
 0x1d2   : > { %v2648_v47 = vadd.f32 %v2647_v20, %v2634_v8 }
 0x1d4   : > { %v2662_v15 = vadd.f32 %v2661_v61, %v2648_v47 }
 0x1d6   : > { %v2667_v5 = vmax.f32 %v2662_v15, 0.0 }
 0x1d8   : > { %v2673_v16 = vrot.slane %v2667_v5, 7 }
 0x1da   : > { %v2678_v18 = vsel %vm2676_vm1, %v2671_v59, %v2673_v16  ;;  %v2680_v19 = vsel %vm2676_vm1, %v2673_v16, %v2671_v59 }
 0x1db   : > { %v2692_v21 = vsub.f32 %v2680_v19, %v6475_v6  ;;  %v2694_v48 = vsub.f32 %v2678_v18, %v6485_v14 }
 0x1dd   : > { %v2696_v23 = vmax.f32 %v2665_v13, %v2692_v21  ;;  %v2698_v43 = vmax.f32 %v2667_v5, %v2694_v48 }
 0x1df   : > { %v2700_v36 = vrot.slane %v2696_v23, 1  ;;  %v2702_v24 = vrot.slane %v2698_v43, 1 }
 0x1e1   : > { %v2705_v26 = vsel %vm2703_vm2, %v2700_v36, %v2702_v24  ;;  %v2707_v38 = vsel %vm2703_vm2, %v2702_v24, %v2700_v36 }
 0x1e2   : > { %v2717_v2 = vsub.f32 %v2705_v26, %v6482_v12  ;;  %v2719_v34 = vsub.f32 %v2707_v38, %v6496_v22 }
 0x1e4   : > { %v2721_v39 = vmax.f32 %v2696_v23, %v2717_v2  ;;  %v2723_v41 = vmax.f32 %v2698_v43, %v2719_v34 }
 0x1e6   : > { %v2725_v6 = vrot.slane %v2721_v39, 4  ;;  %v2727_v45 = vrot.slane %v2723_v41, 4 }
 0x1e8   : > { %v2730_v14 = vsel %vm2728_vm3, %v2725_v6, %v2727_v45  ;;  %v2732_v50 = vsel %vm2728_vm3, %v2727_v45, %v2725_v6 }
 0x1e9   : > { %v2742_v51 = vsub.f32 %v2732_v50, %v6493_v17  ;;  %v2744_v52 = vsub.f32 %v2730_v14, %v6505_v28 }
 0x1eb   : > { %v2746_v32 = vmax.f32 %v2721_v39, %v2742_v51  ;;  %v2748_v11 = vmax.f32 %v2723_v41, %v2744_v52 }
 0x1ed   : > { %v2750_v12 = vrot.slane %v2746_v32, 4  ;;  %v2752_v42 = vrot.slane %v2748_v11, 4 }
 0x1ef   : > { %v2754_v22 = vsel %vm2728_vm3, %v2750_v12, %v2752_v42  ;;  %v2756_v54 = vsel %vm2728_vm3, %v2752_v42, %v2750_v12 }
 0x1f0   : > { %v2766_v25 = vsub.f32 %v2754_v22, %v6515_v49  ;;  %v2768_v55 = vsub.f32 %v2756_v54, %v6513_v53 }
 0x1f2   : > { %v2770_v58 = vmax.f32 %v2746_v32, %v2766_v25  ;;  %v2772_v60 = vmax.f32 %v2748_v11, %v2768_v55 }
 0x1f4   : > { %v2773_v17 = vpack.c.bf16 %v2770_v58, %v6525_v57  ;;  %v2774_v28 = vpack.c.bf16 %v2772_v60, %v6523_v56 }
 0x1f6   : > { %2775 = vst [vmem:[%s204_s28] sm:$0xff] %v2773_v17 }
 0x1f7   : > { %2776 = vst [vmem:[%s204_s28 + $0x8] sm:$0xff] %v2774_v28 }
 0x1f8 PF: > { %s14_s15 = sadd.s32 1, %s4470_s15  }
 0x1f9   : > { %p11_p4 = scmp.ge.s32.totalorder %s14_s15, 4  }
 0x1fb   :  { %13 = sbr.rel (!%p11_p4) target bundleno = 1 (0x1), region = 66 }

// kernel: mini_alexnet_forward.5
= control target key start
LH: loop header
LB: loop body
LE: loop exit
PB: predicated region body
PF: predicated region fallthrough
CT: control target
= control target key end

     0   :  { %s16520_s1 = inlined_call_operand.vmem [shape: bf16[4096,384], index: 1, kind: input, shape index: {}]   ;;  %s16521_s0 = inlined_call_operand.vmem [shape: bf16[8,4096], index: 0, kind: input, shape index: {}]   ;;  %s16522_s2 = inlined_call_operand.vmem [shape: f32[1,384], index: 2, kind: input, shape index: {}]   ;;  %s16523_s3 = inlined_call_operand.vmem [shape: bf16[384,256], index: 3, kind: input, shape index: {}]   ;;  %s16524_s4 = inlined_call_operand.vmem [shape: f32[1,256], index: 4, kind: input, shape index: {}]   ;;  %s16525_s5 = inlined_call_operand.vmem [shape: bf16[256,128], index: 5, kind: input, shape index: {}]   ;;  %s16526_s6 = inlined_call_operand.vmem [shape: f32[1,128], index: 6, kind: input, shape index: {}]   ;;  %s16527_s7 = inlined_call_operand.vmem [shape: f32[8,128], index: 7, kind: output, shape index: {}]  }
   0x1   :  { %v7161_v0 = vld [vmem:[%s16520_s1 + $0xa8] sm:$0xf]  ;;  %v10425_v1 = vld [vmem:[%s16520_s1 + $0xb0] sm:$0xf0]  ;;  %v7149_v11 = vld [vmem:[%s16520_s1 + $0x90] sm:$0xf] }
   0x2   :  { %v7257_v2 = vld [vmem:[%s16520_s1 + $0x168] sm:$0xf]  ;;  %v7162_v3 = vor.u32 %v10425_v1, %v7161_v0  ;;  %v10449_v4 = vld [vmem:[%s16520_s1 + $0x170] sm:$0xf0]  ;;  %v10422_v13 = vld [vmem:[%s16520_s1 + $0x98] sm:$0xf0] }
   0x3   :  { %v7353_v5 = vld [vmem:[%s16520_s1 + $0x228] sm:$0xf]  ;;  %v10473_v6 = vld [vmem:[%s16520_s1 + $0x230] sm:$0xf0]  ;;  %v7258_v7 = vor.u32 %v10449_v4, %v7257_v2  ;;  %v7245_v14 = vld [vmem:[%s16520_s1 + $0x150] sm:$0xf]  ;;  %v7150_v16 = vor.u32 %v10422_v13, %v7149_v11 }
   0x4   :  { %v7354_v8 = vor.u32 %v10473_v6, %v7353_v5  ;;  %v7449_v9 = vld [vmem:[%s16520_s1 + $0x2e8] sm:$0xf]  ;;  %v10497_v10 = vld [vmem:[%s16520_s1 + $0x2f0] sm:$0xf0]  ;;  %5282 = vmatpush.bf16.msra.mxu0 %v7162_v3  ;;  %v10446_v15 = vld [vmem:[%s16520_s1 + $0x158] sm:$0xf0] }
   0x5   :  { %v7450_v12 = vor.u32 %v10497_v10, %v7449_v9  ;;  %5295 = vmatpush.bf16.msra.mxu1 %v7258_v7  ;;  %v7246_v17 = vor.u32 %v10446_v15, %v7245_v14  ;;  %v7341_v18 = vld [vmem:[%s16520_s1 + $0x210] sm:$0xf]  ;;  %v10470_v19 = vld [vmem:[%s16520_s1 + $0x218] sm:$0xf0]  ;;  %v7137_v23 = vld [vmem:[%s16520_s1 + $0x78] sm:$0xf] }
   0x6   :  { %5308 = vmatpush.bf16.msra.mxu2 %v7354_v8  ;;  %v7437_v20 = vld [vmem:[%s16520_s1 + $0x2d0] sm:$0xf]  ;;  %v7342_v21 = vor.u32 %v10470_v19, %v7341_v18  ;;  %v10494_v22 = vld [vmem:[%s16520_s1 + $0x2d8] sm:$0xf0]  ;;  %v10419_v24 = vld [vmem:[%s16520_s1 + $0x80] sm:$0xf0] }
   0x7   :  { %5321 = vmatpush.bf16.msra.mxu3 %v7450_v12  ;;  %v7438_v25 = vor.u32 %v10494_v22, %v7437_v20  ;;  %v7233_v26 = vld [vmem:[%s16520_s1 + $0x138] sm:$0xf]  ;;  %v10443_v27 = vld [vmem:[%s16520_s1 + $0x140] sm:$0xf0]  ;;  %v7138_v29 = vor.u32 %v10419_v24, %v7137_v23  ;;  %v7125_v35 = vld [vmem:[%s16520_s1 + $0x60] sm:$0xf] }
   0x8   :  { %v7329_v28 = vld [vmem:[%s16520_s1 + $0x1f8] sm:$0xf]  ;;  %5283 = vmatpush.bf16.msra.mxu0 %v7150_v16  ;;  %v10467_v30 = vld [vmem:[%s16520_s1 + $0x200] sm:$0xf0]  ;;  %v7234_v33 = vor.u32 %v10443_v27, %v7233_v26  ;;  %v10416_v36 = vld [vmem:[%s16520_s1 + $0x68] sm:$0xf0] }
   0x9   :  { %v7425_v31 = vld [vmem:[%s16520_s1 + $0x2b8] sm:$0xf]  ;;  %v10491_v32 = vld [vmem:[%s16520_s1 + $0x2c0] sm:$0xf0]  ;;  %5296 = vmatpush.bf16.msra.mxu1 %v7246_v17  ;;  %v7330_v34 = vor.u32 %v10467_v30, %v7329_v28  ;;  %v7221_v37 = vld [vmem:[%s16520_s1 + $0x120] sm:$0xf]  ;;  %v7126_v44 = vor.u32 %v10416_v36, %v7125_v35 }
   0xa   :  { %5309 = vmatpush.bf16.msra.mxu2 %v7342_v21  ;;  %v7426_v38 = vor.u32 %v10491_v32, %v7425_v31  ;;  %v10440_v39 = vld [vmem:[%s16520_s1 + $0x128] sm:$0xf0]  ;;  %v7317_v40 = vld [vmem:[%s16520_s1 + $0x1e0] sm:$0xf]  ;;  %v7113_v47 = vld [vmem:[%s16520_s1 + $0x48] sm:$0xf] }
   0xb   :  { %5322 = vmatpush.bf16.msra.mxu3 %v7438_v25  ;;  %v10464_v41 = vld [vmem:[%s16520_s1 + $0x1e8] sm:$0xf0]  ;;  %v7413_v42 = vld [vmem:[%s16520_s1 + $0x2a0] sm:$0xf]  ;;  %v7222_v45 = vor.u32 %v10440_v39, %v7221_v37  ;;  %v10413_v48 = vld [vmem:[%s16520_s1 + $0x50] sm:$0xf0] }
   0xc   :  { %v10488_v43 = vld [vmem:[%s16520_s1 + $0x2a8] sm:$0xf0]  ;;  %5284 = vmatpush.bf16.msra.mxu0 %v7138_v29  ;;  %v7318_v46 = vor.u32 %v10464_v41, %v7317_v40  ;;  %v7209_v49 = vld [vmem:[%s16520_s1 + $0x108] sm:$0xf]  ;;  %v10437_v51 = vld [vmem:[%s16520_s1 + $0x110] sm:$0xf0]  ;;  %v7114_v56 = vor.u32 %v10413_v48, %v7113_v47 }
   0xd   :  { %5297 = vmatpush.bf16.msra.mxu1 %v7234_v33  ;;  %v7414_v50 = vor.u32 %v10488_v43, %v7413_v42  ;;  %v7305_v52 = vld [vmem:[%s16520_s1 + $0x1c8] sm:$0xf]  ;;  %v10461_v53 = vld [vmem:[%s16520_s1 + $0x1d0] sm:$0xf0]  ;;  %v7210_v57 = vor.u32 %v10437_v51, %v7209_v49  ;;  %v7101_v59 = vld [vmem:[%s16520_s1 + $0x30] sm:$0xf] }
   0xe   :  { %5310 = vmatpush.bf16.msra.mxu2 %v7330_v34  ;;  %v7401_v54 = vld [vmem:[%s16520_s1 + $0x288] sm:$0xf]  ;;  %v10485_v55 = vld [vmem:[%s16520_s1 + $0x290] sm:$0xf0]  ;;  %v7306_v58 = vor.u32 %v10461_v53, %v7305_v52  ;;  %v10410_v60 = vld [vmem:[%s16520_s1 + $0x38] sm:$0xf0] }
   0xf   :  { %5323 = vmatpush.bf16.msra.mxu3 %v7426_v38  ;;  %v7197_v61 = vld [vmem:[%s16520_s1 + $0xf0] sm:$0xf]  ;;  %v7402_v62 = vor.u32 %v10485_v55, %v7401_v54  ;;  %v10434_v63 = vld [vmem:[%s16520_s1 + $0xf8] sm:$0xf0]  ;;  %v7102_v4 = vor.u32 %v10410_v60, %v7101_v59  ;;  %v7089_v7 = vld [vmem:[%s16520_s1 + $0x18] sm:$0xf] }
  0x10   :  { %5285 = vmatpush.bf16.msra.mxu0 %v7126_v44  ;;  %v7293_v0 = vld [vmem:[%s16520_s1 + $0x1b0] sm:$0xf]  ;;  %v10458_v1 = vld [vmem:[%s16520_s1 + $0x1b8] sm:$0xf0]  ;;  %v7198_v5 = vor.u32 %v10434_v63, %v7197_v61  ;;  %v10407_v8 = vld [vmem:[%s16520_s1 + $0x20] sm:$0xf0] }
  0x11   :  { %5298 = vmatpush.bf16.msra.mxu1 %v7222_v45  ;;  %v7389_v2 = vld [vmem:[%s16520_s1 + $0x270] sm:$0xf]  ;;  %v10482_v3 = vld [vmem:[%s16520_s1 + $0x278] sm:$0xf0]  ;;  %v7294_v6 = vor.u32 %v10458_v1, %v7293_v0  ;;  %v7185_v9 = vld [vmem:[%s16520_s1 + $0xd8] sm:$0xf]  ;;  %v7090_v16 = vor.u32 %v10407_v8, %v7089_v7 }
  0x12   :  { %5311 = vmatpush.bf16.msra.mxu2 %v7318_v46  ;;  %v7390_v10 = vor.u32 %v10482_v3, %v7389_v2  ;;  %v10431_v11 = vld [vmem:[%s16520_s1 + $0xe0] sm:$0xf0]  ;;  %v7281_v12 = vld [vmem:[%s16520_s1 + $0x198] sm:$0xf]  ;;  %v7077_v17 = vld [vmem:[%s16520_s1] sm:$0xf] }
  0x13   :  { %5324 = vmatpush.bf16.msra.mxu3 %v7414_v50  ;;  %v10455_v13 = vld [vmem:[%s16520_s1 + $0x1a0] sm:$0xf0]  ;;  %v7377_v14 = vld [vmem:[%s16520_s1 + $0x258] sm:$0xf]  ;;  %v10404_v18 = vld [vmem:[%s16520_s1 + $0x8] sm:$0xf0]  ;;  %v7186_v19 = vor.u32 %v10431_v11, %v7185_v9 }
  0x14   :  { %5286 = vmatpush.bf16.msra.mxu0 %v7114_v56  ;;  %v10479_v15 = vld [vmem:[%s16520_s1 + $0x260] sm:$0xf0]  ;;  %v7282_v20 = vor.u32 %v10455_v13, %v7281_v12  ;;  %v7173_v21 = vld [vmem:[%s16520_s1 + $0xc0] sm:$0xf]  ;;  %v10428_v22 = vld [vmem:[%s16520_s1 + $0xc8] sm:$0xf0]  ;;  %v7078_v31 = vor.u32 %v10404_v18, %v7077_v17 }
  0x15   :  { %5299 = vmatpush.bf16.msra.mxu1 %v7210_v57  ;;  %v7269_v23 = vld [vmem:[%s16520_s1 + $0x180] sm:$0xf]  ;;  %v7378_v24 = vor.u32 %v10479_v15, %v7377_v14  ;;  %v10452_v25 = vld [vmem:[%s16520_s1 + $0x188] sm:$0xf0]  ;;  %v7545_v28 = vld [vmem:[%s16520_s1 + $0x3a8] sm:$0xf]  ;;  %v7174_v35 = vor.u32 %v10428_v22, %v7173_v21 }
  0x16   :  { %5312 = vmatpush.bf16.msra.mxu2 %v7306_v58  ;;  %v7365_v26 = vld [vmem:[%s16520_s1 + $0x240] sm:$0xf]  ;;  %v10476_v27 = vld [vmem:[%s16520_s1 + $0x248] sm:$0xf0]  ;;  %v10521_v29 = vld [vmem:[%s16520_s1 + $0x3b0] sm:$0xf0]  ;;  %v7270_v36 = vor.u32 %v10452_v25, %v7269_v23 }
  0x17   :  { %5325 = vmatpush.bf16.msra.mxu3 %v7402_v62  ;;  %v7641_v30 = vld [vmem:[%s16520_s1 + $0x468] sm:$0xf]  ;;  %v10545_v32 = vld [vmem:[%s16520_s1 + $0x470] sm:$0xf0]  ;;  %v7366_v39 = vor.u32 %v10476_v27, %v7365_v26  ;;  %v7546_v40 = vor.u32 %v10521_v29, %v7545_v28  ;;  %v7533_v43 = vld [vmem:[%s16520_s1 + $0x390] sm:$0xf] }
  0x18   :  { %5287 = vmatpush.bf16.msra.mxu0 %v7102_v4  ;;  %v7737_v33 = vld [vmem:[%s16520_s1 + $0x528] sm:$0xf]  ;;  %v10569_v34 = vld [vmem:[%s16520_s1 + $0x530] sm:$0xf0]  ;;  %v7642_v41 = vor.u32 %v10545_v32, %v7641_v30  ;;  %v10518_v44 = vld [vmem:[%s16520_s1 + $0x398] sm:$0xf0] }
  0x19   :  { %5300 = vmatpush.bf16.msra.mxu1 %v7198_v5  ;;  %v7833_v37 = vld [vmem:[%s16520_s1 + $0x5e8] sm:$0xf]  ;;  %v10593_v38 = vld [vmem:[%s16520_s1 + $0x5f0] sm:$0xf0]  ;;  %v7738_v42 = vor.u32 %v10569_v34, %v7737_v33  ;;  %v7629_v45 = vld [vmem:[%s16520_s1 + $0x450] sm:$0xf]  ;;  %v7534_v52 = vor.u32 %v10518_v44, %v7533_v43 }
  0x1a   :  { %5313 = vmatpush.bf16.msra.mxu2 %v7294_v6  ;;  %v7834_v46 = vor.u32 %v10593_v38, %v7833_v37  ;;  %v10542_v47 = vld [vmem:[%s16520_s1 + $0x458] sm:$0xf0]  ;;  %v7725_v48 = vld [vmem:[%s16520_s1 + $0x510] sm:$0xf]  ;;  %v7521_v53 = vld [vmem:[%s16520_s1 + $0x378] sm:$0xf] }
  0x1b   :  { %5326 = vmatpush.bf16.msra.mxu3 %v7390_v10  ;;  %v10566_v49 = vld [vmem:[%s16520_s1 + $0x518] sm:$0xf0]  ;;  %v7821_v50 = vld [vmem:[%s16520_s1 + $0x5d0] sm:$0xf]  ;;  %v7630_v54 = vor.u32 %v10542_v47, %v7629_v45  ;;  %v10515_v56 = vld [vmem:[%s16520_s1 + $0x380] sm:$0xf0] }
  0x1c   :  { %5288 = vmatpush.bf16.msra.mxu0 %v7090_v16  ;;  %v10590_v51 = vld [vmem:[%s16520_s1 + $0x5d8] sm:$0xf0]  ;;  %v7726_v55 = vor.u32 %v10566_v49, %v7725_v48  ;;  %v7617_v57 = vld [vmem:[%s16520_s1 + $0x438] sm:$0xf]  ;;  %v10539_v58 = vld [vmem:[%s16520_s1 + $0x440] sm:$0xf0]  ;;  %v7522_v0 = vor.u32 %v10515_v56, %v7521_v53 }
  0x1d   :  { %5301 = vmatpush.bf16.msra.mxu1 %v7186_v19  ;;  %v7822_v59 = vor.u32 %v10590_v51, %v7821_v50  ;;  %v7713_v60 = vld [vmem:[%s16520_s1 + $0x4f8] sm:$0xf]  ;;  %v10563_v61 = vld [vmem:[%s16520_s1 + $0x500] sm:$0xf0]  ;;  %v7618_v1 = vor.u32 %v10539_v58, %v7617_v57  ;;  %v27_v2 = vld [vmem:[%s16521_s0 + $0x8] sm:$0xff] }
  0x1e   :  { %5314 = vmatpush.bf16.msra.mxu2 %v7282_v20  ;;  %v7809_v62 = vld [vmem:[%s16520_s1 + $0x5b8] sm:$0xf]  ;;  %v10587_v63 = vld [vmem:[%s16520_s1 + $0x5c0] sm:$0xf0]  ;;  %v7714_v4 = vor.u32 %v10563_v61, %v7713_v60  ;;  %v7509_v5 = vld [vmem:[%s16520_s1 + $0x360] sm:$0xf]  ;;  %v1092_v8 = vunpack.c.l.b16 %v27_v2  ;;  %v1093_v10 = vunpack.c.h.b16 %v27_v2 }
  0x1f   :  { %5327 = vmatpush.bf16.msra.mxu3 %v7378_v24  ;;  %v26_v3 = vld [vmem:[%s16521_s0] sm:$0xff]  ;;  %v10512_v6 = vld [vmem:[%s16520_s1 + $0x368] sm:$0xf0]  ;;  %v7810_v11 = vor.u32 %v10587_v63, %v7809_v62  ;;  %v7497_v25 = vld [vmem:[%s16520_s1 + $0x348] sm:$0xf] }
  0x20   :  { %5289 = vmatpush.bf16.msra.mxu0 %v7078_v31  ;;  %v7605_v7 = vld [vmem:[%s16520_s1 + $0x420] sm:$0xf]  ;;  %v1090_v9 = vunpack.c.l.b16 %v26_v3  ;;  %v10536_v12 = vld [vmem:[%s16520_s1 + $0x428] sm:$0xf0]  ;;  %v1091_v15 = vunpack.c.h.b16 %v26_v3  ;;  %v11572_v18 = vpack.c.b16 %v1092_v8, %v1092_v8  ;;  %v11576_v20 = vpack.c.b16 %v1093_v10, %v1093_v10  ;;  %v10509_v26 = vld [vmem:[%s16520_s1 + $0x350] sm:$0xf0] }
  0x21   :  { %5302 = vmatpush.bf16.msra.mxu1 %v7174_v35  ;;  %v7701_v13 = vld [vmem:[%s16520_s1 + $0x4e0] sm:$0xf]  ;;  %v10560_v14 = vld [vmem:[%s16520_s1 + $0x4e8] sm:$0xf0]  ;;  %v7510_v21 = vor.u32 %v10512_v6, %v7509_v5  ;;  %v7606_v23 = vor.u32 %v10536_v12, %v7605_v7  ;;  %v7593_v27 = vld [vmem:[%s16520_s1 + $0x408] sm:$0xf]  ;;  %v7498_v34 = vor.u32 %v10509_v26, %v7497_v25 }
  0x22   :  { %5315 = vmatpush.bf16.msra.mxu2 %v7270_v36  ;;  %v7797_v16 = vld [vmem:[%s16520_s1 + $0x5a0] sm:$0xf]  ;;  %v10584_v17 = vld [vmem:[%s16520_s1 + $0x5a8] sm:$0xf0]  ;;  %v11574_v19 = vpack.c.b16 %v1090_v9, %v1090_v9  ;;  %v11578_v22 = vpack.c.b16 %v1091_v15, %v1091_v15  ;;  %v7702_v24 = vor.u32 %v10560_v14, %v7701_v13  ;;  %v10533_v29 = vld [vmem:[%s16520_s1 + $0x410] sm:$0xf0] }
  0x23   :  { %5328 = vmatpush.bf16.msra.mxu3 %v7366_v39  ;;  %v7798_v28 = vor.u32 %v10584_v17, %v7797_v16  ;;  %v7689_v30 = vld [vmem:[%s16520_s1 + $0x4c8] sm:$0xf]  ;;  %v10557_v31 = vld [vmem:[%s16520_s1 + $0x4d0] sm:$0xf0]  ;;  %v7594_v35 = vor.u32 %v10533_v29, %v7593_v27  ;;  %v7485_v37 = vld [vmem:[%s16520_s1 + $0x330] sm:$0xf] }
  0x24   :  { %5334 = vmatpush.bf16.msrb.mxu0 %v7546_v40  ;;  %v7785_v32 = vld [vmem:[%s16520_s1 + $0x588] sm:$0xf]  ;;  %v10581_v33 = vld [vmem:[%s16520_s1 + $0x590] sm:$0xf0]  ;;  %5303 = vmatmul.bf16.vlgmr.msra.gmra.mxu1 %v11578_v22  ;;  %v7690_v36 = vor.u32 %v10557_v31, %v7689_v30  ;;  %v10506_v38 = vld [vmem:[%s16520_s1 + $0x338] sm:$0xf0] }
  0x25   :  { %5347 = vmatpush.bf16.msrb.mxu1 %v7642_v41  ;;  %5316 = vmatmul.bf16.vlgmr.msra.gmra.mxu2 %v11572_v18  ;;  %v7581_v39 = vld [vmem:[%s16520_s1 + $0x3f0] sm:$0xf]  ;;  %v7786_v40 = vor.u32 %v10581_v33, %v7785_v32  ;;  %v10530_v41 = vld [vmem:[%s16520_s1 + $0x3f8] sm:$0xf0]  ;;  %v7473_v49 = vld [vmem:[%s16520_s1 + $0x318] sm:$0xf] }
  0x26   :  { %5360 = vmatpush.bf16.msrb.mxu2 %v7738_v42  ;;  %5290 = vmatmul.bf16.vlgmr.msra.gmra.mxu0 %v11574_v19  ;;  %v7677_v42 = vld [vmem:[%s16520_s1 + $0x4b0] sm:$0xf]  ;;  %v10554_v43 = vld [vmem:[%s16520_s1 + $0x4b8] sm:$0xf0]  ;;  %v7582_v47 = vor.u32 %v10530_v41, %v7581_v39  ;;  %v10503_v50 = vld [vmem:[%s16520_s1 + $0x320] sm:$0xf0] }
  0x27   :  { %5373 = vmatpush.bf16.msrb.mxu3 %v7834_v46  ;;  %v7773_v44 = vld [vmem:[%s16520_s1 + $0x570] sm:$0xf]  ;;  %v10578_v45 = vld [vmem:[%s16520_s1 + $0x578] sm:$0xf0]  ;;  %v7486_v46 = vor.u32 %v10506_v38, %v7485_v37  ;;  %v7678_v48 = vor.u32 %v10554_v43, %v7677_v42  ;;  %v7569_v51 = vld [vmem:[%s16520_s1 + $0x3d8] sm:$0xf] }
  0x28   :  { %5335 = vmatpush.bf16.msrb.mxu0 %v7534_v52  ;;  %5329 = vmatmul.bf16.vlgmr.msra.gmra.mxu3 %v11576_v20  ;;  %v7774_v52 = vor.u32 %v10578_v45, %v7773_v44  ;;  %v10527_v53 = vld [vmem:[%s16520_s1 + $0x3e0] sm:$0xf0]  ;;  %v7761_v56 = vld [vmem:[%s16520_s1 + $0x558] sm:$0xf]  ;;  %v7461_v58 = vld [vmem:[%s16520_s1 + $0x300] sm:$0xf] }
  0x29   :  { %5348 = vmatpush.bf16.msrb.mxu1 %v7630_v54  ;;  %v7665_v54 = vld [vmem:[%s16520_s1 + $0x498] sm:$0xf]  ;;  %v10575_v57 = vld [vmem:[%s16520_s1 + $0x560] sm:$0xf0]  ;;  %v10500_v60 = vld [vmem:[%s16520_s1 + $0x308] sm:$0xf0]  ;;  %v7570_v63 = vor.u32 %v10527_v53, %v7569_v51 }
  0x2a   :  { %5361 = vmatpush.bf16.msrb.mxu2 %v7726_v55  ;;  %v10551_v55 = vld [vmem:[%s16520_s1 + $0x4a0] sm:$0xf0]  ;;  %v7557_v61 = vld [vmem:[%s16520_s1 + $0x3c0] sm:$0xf]  ;;  %v10524_v62 = vld [vmem:[%s16520_s1 + $0x3c8] sm:$0xf0] }
  0x2b   :  { %5374 = vmatpush.bf16.msrb.mxu3 %v7822_v59  ;;  %v7474_v59 = vor.u32 %v10503_v50, %v7473_v49  ;;  %v10548_v2 = vld [vmem:[%s16520_s1 + $0x488] sm:$0xf0]  ;;  %v29_v3 = vld [vmem:[%s16521_s0 + $0x18] sm:$0xff]  ;;  %v7749_v5 = vld [vmem:[%s16520_s1 + $0x540] sm:$0xf]  ;;  %v7558_v16 = vor.u32 %v10524_v62, %v7557_v61 }
  0x2c   :  { %5336 = vmatpush.bf16.msrb.mxu0 %v7522_v0  ;;  %v7666_v0 = vor.u32 %v10551_v55, %v7665_v54  ;;  %v10572_v6 = vld [vmem:[%s16520_s1 + $0x548] sm:$0xf0]  ;;  %v28_v7 = vld [vmem:[%s16521_s0 + $0x10] sm:$0xff]  ;;  %v7929_v8 = vld [vmem:[%s16520_s1 + $0x6a8] sm:$0xf]  ;;  %v1096_v15 = vunpack.c.l.b16 %v29_v3  ;;  %v1097_v25 = vunpack.c.h.b16 %v29_v3 }
  0x2d   :  { %5349 = vmatpush.bf16.msrb.mxu1 %v7618_v1  ;;  %v7653_v1 = vld [vmem:[%s16520_s1 + $0x480] sm:$0xf]  ;;  %v10617_v9 = vld [vmem:[%s16520_s1 + $0x6b0] sm:$0xf0]  ;;  %v8025_v10 = vld [vmem:[%s16520_s1 + $0x768] sm:$0xf]  ;;  %v7750_v26 = vor.u32 %v10572_v6, %v7749_v5 }
  0x2e   :  { %5362 = vmatpush.bf16.msrb.mxu2 %v7714_v4  ;;  %v7762_v4 = vor.u32 %v10575_v57, %v7761_v56  ;;  %v10641_v12 = vld [vmem:[%s16520_s1 + $0x770] sm:$0xf0]  ;;  %v8121_v13 = vld [vmem:[%s16520_s1 + $0x828] sm:$0xf]  ;;  %v7654_v17 = vor.u32 %v10548_v2, %v7653_v1  ;;  %v7930_v27 = vor.u32 %v10617_v9, %v7929_v8  ;;  %v7917_v31 = vld [vmem:[%s16520_s1 + $0x690] sm:$0xf]  ;;  %v11728_v38 = vpack.c.b16 %v1096_v15, %v1096_v15 }
  0x2f   :  { %5375 = vmatpush.bf16.msrb.mxu3 %v7810_v11  ;;  %v7462_v11 = vor.u32 %v10500_v60, %v7461_v58  ;;  %v10665_v14 = vld [vmem:[%s16520_s1 + $0x830] sm:$0xf0]  ;;  %v8026_v29 = vor.u32 %v10641_v12, %v8025_v10  ;;  %v10614_v32 = vld [vmem:[%s16520_s1 + $0x698] sm:$0xf0]  ;;  %v8013_v33 = vld [vmem:[%s16520_s1 + $0x750] sm:$0xf]  ;;  %v11738_v42 = vpack.c.b16 %v1097_v25, %v1097_v25 }
  0x30   :  { %5337 = vmatpush.bf16.msrb.mxu0 %v7510_v21  ;;  %v8217_v21 = vld [vmem:[%s16520_s1 + $0x8e8] sm:$0xf]  ;;  %v8122_v30 = vor.u32 %v10665_v14, %v8121_v13  ;;  %v10662_v37 = vld [vmem:[%s16520_s1 + $0x818] sm:$0xf0]  ;;  %v8205_v39 = vld [vmem:[%s16520_s1 + $0x8d0] sm:$0xf]  ;;  %v7918_v43 = vor.u32 %v10614_v32, %v7917_v31 }
  0x31   :  { %5350 = vmatpush.bf16.msrb.mxu1 %v7606_v23  ;;  %v10689_v23 = vld [vmem:[%s16520_s1 + $0x8f0] sm:$0xf0]  ;;  %v8001_v49 = vld [vmem:[%s16520_s1 + $0x738] sm:$0xf]  ;;  %v10635_v51 = vld [vmem:[%s16520_s1 + $0x740] sm:$0xf0] }
  0x32   :  { %5363 = vmatpush.bf16.msrb.mxu2 %v7702_v24  ;;  %v1094_v24 = vunpack.c.l.b16 %v28_v7  ;;  %v10659_v53 = vld [vmem:[%s16520_s1 + $0x800] sm:$0xf0]  ;;  %v8193_v54 = vld [vmem:[%s16520_s1 + $0x8b8] sm:$0xf]  ;;  %v8002_v57 = vor.u32 %v10635_v51, %v8001_v49  ;;  %v10608_v60 = vld [vmem:[%s16520_s1 + $0x668] sm:$0xf0] }
  0x33   :  { %5376 = vmatpush.bf16.msrb.mxu3 %v7798_v28  ;;  %v1095_v28 = vunpack.c.h.b16 %v28_v7  ;;  %v10683_v55 = vld [vmem:[%s16520_s1 + $0x8c0] sm:$0xf0]  ;;  %v7989_v61 = vld [vmem:[%s16520_s1 + $0x720] sm:$0xf]  ;;  %v10656_v1 = vld [vmem:[%s16520_s1 + $0x7e8] sm:$0xf0] }
  0x34   :  { %5338 = vmatpush.bf16.msrb.mxu0 %v7498_v34  ;;  %v8218_v34 = vor.u32 %v10689_v23, %v8217_v21  ;;  %v11736_v41 = vpack.c.b16 %v1094_v24, %v1094_v24  ;;  %v8194_v62 = vor.u32 %v10683_v55, %v8193_v54  ;;  %v8181_v2 = vld [vmem:[%s16520_s1 + $0x8a0] sm:$0xf]  ;;  %v10680_v3 = vld [vmem:[%s16520_s1 + $0x8a8] sm:$0xf0]  ;;  %v7881_v7 = vld [vmem:[%s16520_s1 + $0x648] sm:$0xf] }
  0x35   :  { %5351 = vmatpush.bf16.msrb.mxu1 %v7594_v35  ;;  %v10638_v35 = vld [vmem:[%s16520_s1 + $0x758] sm:$0xf0]  ;;  %v11740_v44 = vpack.c.b16 %v1095_v28, %v1095_v28  ;;  %v10605_v8 = vld [vmem:[%s16520_s1 + $0x650] sm:$0xf0]  ;;  %v7977_v9 = vld [vmem:[%s16520_s1 + $0x708] sm:$0xf]  ;;  %v8182_v10 = vor.u32 %v10680_v3, %v8181_v2 }
  0x36   :  { %5364 = vmatpush.bf16.msrb.mxu2 %v7690_v36  ;;  %v8109_v36 = vld [vmem:[%s16520_s1 + $0x810] sm:$0xf]  ;;  %v8014_v45 = vor.u32 %v10638_v35, %v8013_v33  ;;  %v8073_v12 = vld [vmem:[%s16520_s1 + $0x7c8] sm:$0xf]  ;;  %v10653_v13 = vld [vmem:[%s16520_s1 + $0x7d0] sm:$0xf0] }
  0x37   :  { %5377 = vmatpush.bf16.msrb.mxu3 %v7786_v40  ;;  %v10686_v40 = vld [vmem:[%s16520_s1 + $0x8d8] sm:$0xf0]  ;;  %v8169_v14 = vld [vmem:[%s16520_s1 + $0x888] sm:$0xf]  ;;  %v10677_v15 = vld [vmem:[%s16520_s1 + $0x890] sm:$0xf0]  ;;  %v8074_v21 = vor.u32 %v10653_v13, %v8073_v12 }
  0x38   :  { %5339 = vmatpush.bf16.msrb.mxu0 %v7486_v46  ;;  %v8110_v46 = vor.u32 %v10662_v37, %v8109_v36  ;;  %v8206_v50 = vor.u32 %v10686_v40, %v8205_v39  ;;  %v7869_v23 = vld [vmem:[%s16520_s1 + $0x630] sm:$0xf]  ;;  %v10602_v24 = vld [vmem:[%s16520_s1 + $0x638] sm:$0xf0]  ;;  %v7857_v35 = vld [vmem:[%s16520_s1 + $0x618] sm:$0xf] }
  0x39   :  { %5352 = vmatpush.bf16.msrb.mxu1 %v7582_v47  ;;  %v7905_v47 = vld [vmem:[%s16520_s1 + $0x678] sm:$0xf]  ;;  %v7965_v25 = vld [vmem:[%s16520_s1 + $0x6f0] sm:$0xf]  ;;  %v10674_v31 = vld [vmem:[%s16520_s1 + $0x878] sm:$0xf0]  ;;  %v7870_v32 = vor.u32 %v10602_v24, %v7869_v23 }
  0x3a   :  { %5365 = vmatpush.bf16.msrb.mxu2 %v7678_v48  ;;  %v10611_v48 = vld [vmem:[%s16520_s1 + $0x680] sm:$0xf0]  ;;  %v8061_v28 = vld [vmem:[%s16520_s1 + $0x7b0] sm:$0xf]  ;;  %v7953_v37 = vld [vmem:[%s16520_s1 + $0x6d8] sm:$0xf] }
  0x3b   :  { %5378 = vmatpush.bf16.msrb.mxu3 %v7774_v52  ;;  %v8097_v52 = vld [vmem:[%s16520_s1 + $0x7f8] sm:$0xf]  ;;  %v7906_v56 = vor.u32 %v10611_v48, %v7905_v47  ;;  %v10599_v36 = vld [vmem:[%s16520_s1 + $0x620] sm:$0xf0]  ;;  %v7845_v48 = vld [vmem:[%s16520_s1 + $0x600] sm:$0xf] }
  0x3c   :  { %5340 = vmatpush.bf16.msrb.mxu0 %v7474_v59  ;;  %v8098_v58 = vor.u32 %v10659_v53, %v8097_v52  ;;  %v7893_v59 = vld [vmem:[%s16520_s1 + $0x660] sm:$0xf]  ;;  %v10623_v40 = vld [vmem:[%s16520_s1 + $0x6e0] sm:$0xf0]  ;;  %v7858_v49 = vor.u32 %v10599_v36, %v7857_v35  ;;  %v10620_v52 = vld [vmem:[%s16520_s1 + $0x6c8] sm:$0xf0] }
  0x3d   :  { %5353 = vmatpush.bf16.msrb.mxu1 %v7570_v63  ;;  %v10632_v63 = vld [vmem:[%s16520_s1 + $0x728] sm:$0xf0]  ;;  %v10671_v47 = vld [vmem:[%s16520_s1 + $0x860] sm:$0xf0]  ;;  %v7941_v51 = vld [vmem:[%s16520_s1 + $0x6c0] sm:$0xf]  ;;  %v7954_v53 = vor.u32 %v10623_v40, %v7953_v37 }
  0x3e   :  { %5366 = vmatpush.bf16.msrb.mxu2 %v7666_v0  ;;  %v8085_v0 = vld [vmem:[%s16520_s1 + $0x7e0] sm:$0xf]  ;;  %v7990_v5 = vor.u32 %v10632_v63, %v7989_v61  ;;  %v31_v61 = vld [vmem:[%s16521_s0 + $0x28] sm:$0xff]  ;;  %v10713_v63 = vld [vmem:[%s16520_s1 + $0x9b0] sm:$0xf0] }
  0x3f   :  { %5379 = vmatpush.bf16.msrb.mxu3 %v7762_v4  ;;  %v7894_v4 = vor.u32 %v10608_v60, %v7893_v59  ;;  %v8086_v6 = vor.u32 %v10656_v1, %v8085_v0  ;;  %v8037_v55 = vld [vmem:[%s16520_s1 + $0x780] sm:$0xf]  ;;  %v10668_v60 = vld [vmem:[%s16520_s1 + $0x848] sm:$0xf0]  ;;  %v8409_v0 = vld [vmem:[%s16520_s1 + $0xa68] sm:$0xf] }
  0x40   :  { %5341 = vmatpush.bf16.msrb.mxu0 %v7462_v11  ;;  %v10629_v11 = vld [vmem:[%s16520_s1 + $0x710] sm:$0xf0]  ;;  %v8133_v59 = vld [vmem:[%s16520_s1 + $0x840] sm:$0xf]  ;;  %v8505_v3 = vld [vmem:[%s16520_s1 + $0xb28] sm:$0xf] }
  0x41   :  { %5354 = vmatpush.bf16.msrb.mxu1 %v7558_v16  ;;  %v7882_v16 = vor.u32 %v10605_v8, %v7881_v7  ;;  %v10737_v2 = vld [vmem:[%s16520_s1 + $0xa70] sm:$0xf0]  ;;  %v8601_v8 = vld [vmem:[%s16520_s1 + $0xbe8] sm:$0xf]  ;;  %v8134_v12 = vor.u32 %v10668_v60, %v8133_v59  ;;  %v8397_v23 = vld [vmem:[%s16520_s1 + $0xa50] sm:$0xf] }
  0x42   :  { %5367 = vmatpush.bf16.msrb.mxu2 %v7654_v17  ;;  %v7978_v17 = vor.u32 %v10629_v11, %v7977_v9  ;;  %v10785_v9 = vld [vmem:[%s16520_s1 + $0xbf0] sm:$0xf0]  ;;  %v8289_v37 = vld [vmem:[%s16520_s1 + $0x978] sm:$0xf]  ;;  %v10752_v59 = vld [vmem:[%s16520_s1 + $0xae8] sm:$0xf0] }
  0x43   :  { %5380 = vmatpush.bf16.msrb.mxu3 %v7750_v26  ;;  %5342 = vmatmul.bf16.vlgmr.msrb.gmra.mxu0 %v11736_v41  ;;  %v8170_v26 = vor.u32 %v10677_v15, %v8169_v14  ;;  %v1101_v14 = vunpack.c.h.b16 %v31_v61  ;;  %v8410_v15 = vor.u32 %v10737_v2, %v8409_v0  ;;  %v8602_v24 = vor.u32 %v10785_v9, %v8601_v8  ;;  %v8385_v40 = vld [vmem:[%s16520_s1 + $0xa38] sm:$0xf]  ;;  %v8565_v60 = vld [vmem:[%s16520_s1 + $0xba0] sm:$0xf]  ;;  %v10701_v2 = vld [vmem:[%s16520_s1 + $0x950] sm:$0xf0] }
  0x44   :  { %5386 = vmatpush.bf16.msra.mxu0 %v7930_v27  ;;  %5355 = vmatmul.bf16.vlgmr.msrb.gmra.mxu1 %v11740_v44  ;;  %v10626_v27 = vld [vmem:[%s16520_s1 + $0x6f8] sm:$0xf0]  ;;  %v8553_v8 = vld [vmem:[%s16520_s1 + $0xb88] sm:$0xf]  ;;  %v10773_v9 = vld [vmem:[%s16520_s1 + $0xb90] sm:$0xf0] }
  0x45   :  { %5399 = vmatpush.bf16.msra.mxu1 %v8026_v29  ;;  %5368 = vmatmul.bf16.vlgmr.msrb.gmra.mxu2 %v11728_v38  ;;  %v10650_v29 = vld [vmem:[%s16520_s1 + $0x7b8] sm:$0xf0]  ;;  %v7966_v33 = vor.u32 %v10626_v27, %v7965_v25  ;;  %v8493_v27 = vld [vmem:[%s16520_s1 + $0xb10] sm:$0xf] }
  0x46   :  { %5412 = vmatpush.bf16.msra.mxu2 %v8122_v30  ;;  %5381 = vmatmul.bf16.vlgmr.msrb.gmra.mxu3 %v11738_v42  ;;  %v8157_v30 = vld [vmem:[%s16520_s1 + $0x870] sm:$0xf] }
  0x47   :  { %5425 = vmatpush.bf16.msra.mxu3 %v8218_v34  ;;  %v8062_v34 = vor.u32 %v10650_v29, %v8061_v28  ;;  %v8158_v39 = vor.u32 %v10674_v31, %v8157_v30  ;;  %v10758_v28 = vld [vmem:[%s16520_s1 + $0xb18] sm:$0xf0]  ;;  %v8589_v31 = vld [vmem:[%s16520_s1 + $0xbd0] sm:$0xf] }
  0x48   :  { %5387 = vmatpush.bf16.msra.mxu0 %v7918_v43  ;;  %v8049_v43 = vld [vmem:[%s16520_s1 + $0x798] sm:$0xf]  ;;  %v8494_v36 = vor.u32 %v10758_v28, %v8493_v27 }
  0x49   :  { %5400 = vmatpush.bf16.msra.mxu1 %v8014_v45  ;;  %v10647_v45 = vld [vmem:[%s16520_s1 + $0x7a0] sm:$0xf0] }
  0x4a   :  { %5413 = vmatpush.bf16.msra.mxu2 %v8110_v46  ;;  %v8145_v46 = vld [vmem:[%s16520_s1 + $0x858] sm:$0xf]  ;;  %v8050_v54 = vor.u32 %v10647_v45, %v8049_v43  ;;  %v10731_v45 = vld [vmem:[%s16520_s1 + $0xa40] sm:$0xf0] }
  0x4b   :  { %5426 = vmatpush.bf16.msra.mxu3 %v8206_v50  ;;  %v10596_v50 = vld [vmem:[%s16520_s1 + $0x608] sm:$0xf0] }
  0x4c   :  { %5388 = vmatpush.bf16.msra.mxu0 %v7906_v56  ;;  %v10644_v56 = vld [vmem:[%s16520_s1 + $0x788] sm:$0xf0]  ;;  %v7846_v1 = vor.u32 %v10596_v50, %v7845_v48  ;;  %v8577_v48 = vld [vmem:[%s16520_s1 + $0xbb8] sm:$0xf] }
  0x4d   :  { %5401 = vmatpush.bf16.msra.mxu1 %v8002_v57  ;;  %v30_v57 = vld [vmem:[%s16521_s0 + $0x20] sm:$0xff]  ;;  %v8038_v7 = vor.u32 %v10644_v56, %v8037_v55 }
  0x4e   :  { %5414 = vmatpush.bf16.msra.mxu2 %v8098_v58  ;;  %v8146_v58 = vor.u32 %v10671_v47, %v8145_v46  ;;  %v1099_v11 = vunpack.c.h.b16 %v30_v57  ;;  %v8481_v46 = vld [vmem:[%s16520_s1 + $0xaf8] sm:$0xf]  ;;  %v10755_v47 = vld [vmem:[%s16520_s1 + $0xb00] sm:$0xf0]  ;;  %v8373_v55 = vld [vmem:[%s16520_s1 + $0xa20] sm:$0xf] }
  0x4f   :  { %5427 = vmatpush.bf16.msra.mxu3 %v8194_v62  ;;  %v8313_v62 = vld [vmem:[%s16520_s1 + $0x9a8] sm:$0xf] }
  0x50   :  { %5389 = vmatpush.bf16.msra.mxu0 %v7894_v4  ;;  %v10761_v4 = vld [vmem:[%s16520_s1 + $0xb30] sm:$0xf0]  ;;  %v8314_v13 = vor.u32 %v10713_v63, %v8313_v62  ;;  %v11942_v30 = vpack.c.b16 %v1099_v11, %v1099_v11 }
  0x51   :  { %5402 = vmatpush.bf16.msra.mxu1 %v7990_v5  ;;  %v1098_v5 = vunpack.c.l.b16 %v30_v57  ;;  %v10728_v57 = vld [vmem:[%s16520_s1 + $0xa28] sm:$0xf0] }
  0x52   :  { %5415 = vmatpush.bf16.msra.mxu2 %v8086_v6  ;;  %v7942_v6 = vor.u32 %v10620_v52, %v7941_v51  ;;  %v8386_v51 = vor.u32 %v10731_v45, %v8385_v40  ;;  %v8482_v52 = vor.u32 %v10755_v47, %v8481_v46  ;;  %v8374_v63 = vor.u32 %v10728_v57, %v8373_v55  ;;  %v10743_v40 = vld [vmem:[%s16520_s1 + $0xaa0] sm:$0xf0]  ;;  %v8229_v46 = vld [vmem:[%s16520_s1 + $0x900] sm:$0xf]  ;;  %v32_v55 = vld [vmem:[%s16521_s0 + $0x30] sm:$0xff] }
  0x53   :  { %5428 = vmatpush.bf16.msra.mxu3 %v8182_v10  ;;  %v1100_v10 = vunpack.c.l.b16 %v31_v61  ;;  %v11929_v25 = vpack.c.b16 %v1098_v5, %v1098_v5  ;;  %v10776_v61 = vld [vmem:[%s16520_s1 + $0xba8] sm:$0xf0]  ;;  %v10725_v5 = vld [vmem:[%s16520_s1 + $0xa10] sm:$0xf0]  ;;  %v10767_v45 = vld [vmem:[%s16520_s1 + $0xb60] sm:$0xf0] }
  0x54   :  { %5390 = vmatpush.bf16.msra.mxu0 %v7882_v16  ;;  %v8506_v16 = vor.u32 %v10761_v4, %v8505_v3  ;;  %v8361_v3 = vld [vmem:[%s16520_s1 + $0xa08] sm:$0xf]  ;;  %v8566_v4 = vor.u32 %v10776_v61, %v8565_v60  ;;  %v8517_v57 = vld [vmem:[%s16520_s1 + $0xb40] sm:$0xf]  ;;  %v10809_v61 = vld [vmem:[%s16520_s1 + $0xcb0] sm:$0xf0] }
  0x55   :  { %5403 = vmatpush.bf16.msra.mxu1 %v7978_v17  ;;  %v8301_v17 = vld [vmem:[%s16520_s1 + $0x990] sm:$0xf]  ;;  %v11940_v29 = vpack.c.b16 %v1100_v10, %v1100_v10  ;;  %v8362_v11 = vor.u32 %v10725_v5, %v8361_v3  ;;  %v8697_v60 = vld [vmem:[%s16520_s1 + $0xca8] sm:$0xf]  ;;  %v1102_v3 = vunpack.c.l.b16 %v32_v55 }
  0x56   :  { %5416 = vmatpush.bf16.msra.mxu2 %v8074_v21  ;;  %v10710_v21 = vld [vmem:[%s16520_s1 + $0x998] sm:$0xf0] }
  0x57   :  { %5429 = vmatpush.bf16.msra.mxu3 %v8170_v26  ;;  %v10734_v26 = vld [vmem:[%s16520_s1 + $0xa58] sm:$0xf0] }
  0x58   :  { %5391 = vmatpush.bf16.msra.mxu0 %v7870_v32  ;;  %v10782_v32 = vld [vmem:[%s16520_s1 + $0xbd8] sm:$0xf0]  ;;  %v8398_v35 = vor.u32 %v10734_v26, %v8397_v23 }
  0x59   :  { %5404 = vmatpush.bf16.msra.mxu1 %v7966_v33  ;;  %v11950_v33 = vpack.c.b16 %v1101_v14, %v1101_v14  ;;  %v8590_v43 = vor.u32 %v10782_v32, %v8589_v31  ;;  %v10698_v14 = vld [vmem:[%s16520_s1 + $0x938] sm:$0xf0]  ;;  %v8241_v32 = vld [vmem:[%s16520_s1 + $0x918] sm:$0xf] }
  0x5a   :  { %5417 = vmatpush.bf16.msra.mxu2 %v8062_v34  ;;  %v8302_v34 = vor.u32 %v10710_v21, %v8301_v17  ;;  %v10722_v17 = vld [vmem:[%s16520_s1 + $0x9f8] sm:$0xf0]  ;;  %v8445_v21 = vld [vmem:[%s16520_s1 + $0xab0] sm:$0xf] }
  0x5b   :  { %5430 = vmatpush.bf16.msra.mxu3 %v8158_v39  ;;  %v10707_v39 = vld [vmem:[%s16520_s1 + $0x980] sm:$0xf0]  ;;  %v10746_v23 = vld [vmem:[%s16520_s1 + $0xab8] sm:$0xf0] }
  0x5c   :  { %5392 = vmatpush.bf16.msra.mxu0 %v7858_v49  ;;  %v10779_v49 = vld [vmem:[%s16520_s1 + $0xbc0] sm:$0xf0]  ;;  %v8290_v50 = vor.u32 %v10707_v39, %v8289_v37  ;;  %v10770_v26 = vld [vmem:[%s16520_s1 + $0xb78] sm:$0xf0]  ;;  %v8446_v31 = vor.u32 %v10746_v23, %v8445_v21  ;;  %v8433_v39 = vld [vmem:[%s16520_s1 + $0xa98] sm:$0xf]  ;;  %v12139_v23 = vpack.c.b16 %v1102_v3, %v1102_v3 }
  0x5d   :  { %5405 = vmatpush.bf16.msra.mxu1 %v7954_v53  ;;  %v8277_v53 = vld [vmem:[%s16520_s1 + $0x960] sm:$0xf]  ;;  %v8578_v56 = vor.u32 %v10779_v49, %v8577_v48  ;;  %v10719_v37 = vld [vmem:[%s16520_s1 + $0x9e0] sm:$0xf0]  ;;  %v10692_v48 = vld [vmem:[%s16520_s1 + $0x908] sm:$0xf0] }
  0x5e   :  { %5418 = vmatpush.bf16.msra.mxu2 %v8050_v54  ;;  %v10704_v54 = vld [vmem:[%s16520_s1 + $0x968] sm:$0xf0]  ;;  %v8325_v49 = vld [vmem:[%s16520_s1 + $0x9c0] sm:$0xf]  ;;  %v8649_v3 = vld [vmem:[%s16520_s1 + $0xc48] sm:$0xf] }
  0x5f   :  { %5431 = vmatpush.bf16.msra.mxu3 %v8146_v58  ;;  %v8469_v58 = vld [vmem:[%s16520_s1 + $0xae0] sm:$0xf]  ;;  %v8278_v62 = vor.u32 %v10704_v54, %v8277_v53  ;;  %v10740_v54 = vld [vmem:[%s16520_s1 + $0xa88] sm:$0xf0] }
  0x60   :  { %5393 = vmatpush.bf16.msra.mxu0 %v7846_v1  ;;  %v8470_v0 = vor.u32 %v10752_v59, %v8469_v58  ;;  %v8265_v1 = vld [vmem:[%s16520_s1 + $0x948] sm:$0xf]  ;;  %v8421_v53 = vld [vmem:[%s16520_s1 + $0xa80] sm:$0xf]  ;;  %v10764_v58 = vld [vmem:[%s16520_s1 + $0xb48] sm:$0xf0] }
  0x61   :  { %5406 = vmatpush.bf16.msra.mxu1 %v7942_v6  ;;  %v8457_v6 = vld [vmem:[%s16520_s1 + $0xac8] sm:$0xf]  ;;  %v8266_v10 = vor.u32 %v10701_v2, %v8265_v1  ;;  %v33_v59 = vld [vmem:[%s16521_s0 + $0x38] sm:$0xff]  ;;  %v10857_v2 = vld [vmem:[%s16520_s1 + $0xe30] sm:$0xf0]  ;;  %v8422_v5 = vor.u32 %v10740_v54, %v8421_v53 }
  0x62   :  { %5419 = vmatpush.bf16.msra.mxu2 %v8038_v7  ;;  %v10749_v7 = vld [vmem:[%s16520_s1 + $0xad0] sm:$0xf0]  ;;  %v8889_v1 = vld [vmem:[%s16520_s1 + $0xe28] sm:$0xf] }
  0x63   :  { %5432 = vmatpush.bf16.msra.mxu3 %v8134_v12  ;;  %5394 = vmatmul.bf16.vlgmr.msra.gmra.mxu0 %v11929_v25  ;;  %v8458_v12 = vor.u32 %v10749_v7, %v8457_v6  ;;  %v8985_v6 = vld [vmem:[%s16520_s1 + $0xee8] sm:$0xf]  ;;  %v10881_v7 = vld [vmem:[%s16520_s1 + $0xef0] sm:$0xf0] }
  0x64   :  { %5438 = vmatpush.bf16.msrb.mxu0 %v8314_v13  ;;  %5407 = vmatmul.bf16.vlgmr.msra.gmra.mxu1 %v11942_v30  ;;  %v8253_v13 = vld [vmem:[%s16520_s1 + $0x930] sm:$0xf]  ;;  %v8986_v21 = vor.u32 %v10881_v7, %v8985_v6  ;;  %v10821_v7 = vld [vmem:[%s16520_s1 + $0xd10] sm:$0xf0] }
  0x65   :  { %5451 = vmatpush.bf16.msrb.mxu1 %v8410_v15  ;;  %5420 = vmatmul.bf16.vlgmr.msra.gmra.mxu2 %v11940_v29  ;;  %v8349_v15 = vld [vmem:[%s16520_s1 + $0x9f0] sm:$0xf]  ;;  %v8254_v27 = vor.u32 %v10698_v14, %v8253_v13  ;;  %v8890_v14 = vor.u32 %v10857_v2, %v8889_v1 }
  0x66   :  { %5464 = vmatpush.bf16.msrb.mxu2 %v8506_v16  ;;  %5433 = vmatmul.bf16.vlgmr.msra.gmra.mxu3 %v11950_v33  ;;  %v8554_v16 = vor.u32 %v10773_v9, %v8553_v8  ;;  %v8350_v28 = vor.u32 %v10722_v17, %v8349_v15  ;;  %v1104_v8 = vunpack.c.l.b16 %v33_v59  ;;  %v1103_v9 = vunpack.c.h.b16 %v32_v55  ;;  %v8685_v15 = vld [vmem:[%s16520_s1 + $0xc90] sm:$0xf]  ;;  %v8661_v55 = vld [vmem:[%s16520_s1 + $0xc60] sm:$0xf] }
  0x67   :  { %5477 = vmatpush.bf16.msrb.mxu3 %v8602_v24  ;;  %v8541_v24 = vld [vmem:[%s16520_s1 + $0xb70] sm:$0xf] }
  0x68   :  { %5439 = vmatpush.bf16.msrb.mxu0 %v8302_v34  ;;  %v10695_v34 = vld [vmem:[%s16520_s1 + $0x920] sm:$0xf0]  ;;  %v8781_v17 = vld [vmem:[%s16520_s1 + $0xd50] sm:$0xf] }
  0x69   :  { %5452 = vmatpush.bf16.msrb.mxu1 %v8398_v35  ;;  %v8337_v35 = vld [vmem:[%s16520_s1 + $0x9d8] sm:$0xf]  ;;  %v8242_v47 = vor.u32 %v10695_v34, %v8241_v32  ;;  %v8973_v32 = vld [vmem:[%s16520_s1 + $0xed0] sm:$0xf]  ;;  %v10878_v34 = vld [vmem:[%s16520_s1 + $0xed8] sm:$0xf0] }
  0x6a   :  { %5465 = vmatpush.bf16.msrb.mxu2 %v8494_v36  ;;  %v8542_v36 = vor.u32 %v10770_v26, %v8541_v24  ;;  %v10830_v24 = vld [vmem:[%s16520_s1 + $0xd58] sm:$0xf0]  ;;  %v8877_v26 = vld [vmem:[%s16520_s1 + $0xe10] sm:$0xf] }
  0x6b   :  { %5478 = vmatpush.bf16.msrb.mxu3 %v8590_v43  ;;  %v8529_v43 = vld [vmem:[%s16520_s1 + $0xb58] sm:$0xf] }
  0x6c   :  { %5440 = vmatpush.bf16.msrb.mxu0 %v8290_v50  ;;  %v10716_v50 = vld [vmem:[%s16520_s1 + $0x9c8] sm:$0xf0] }
  0x6d   :  { %5453 = vmatpush.bf16.msrb.mxu1 %v8386_v51  ;;  %v8338_v51 = vor.u32 %v10719_v37, %v8337_v35  ;;  %v8782_v37 = vor.u32 %v10830_v24, %v8781_v17  ;;  %v8733_v17 = vld [vmem:[%s16520_s1 + $0xcf0] sm:$0xf]  ;;  %v10818_v24 = vld [vmem:[%s16520_s1 + $0xcf8] sm:$0xf0] }
  0x6e   :  { %5466 = vmatpush.bf16.msrb.mxu2 %v8482_v52  ;;  %v8434_v52 = vor.u32 %v10743_v40, %v8433_v39  ;;  %v8673_v40 = vld [vmem:[%s16520_s1 + $0xc78] sm:$0xf] }
  0x6f   :  { %5479 = vmatpush.bf16.msrb.mxu3 %v8578_v56  ;;  %v8530_v56 = vor.u32 %v10767_v45, %v8529_v43  ;;  %v10803_v43 = vld [vmem:[%s16520_s1 + $0xc80] sm:$0xf0]  ;;  %v8769_v45 = vld [vmem:[%s16520_s1 + $0xd38] sm:$0xf] }
  0x70   :  { %5441 = vmatpush.bf16.msrb.mxu0 %v8278_v62  ;;  %v8793_v62 = vld [vmem:[%s16520_s1 + $0xd68] sm:$0xf] }
  0x71   :  { %5454 = vmatpush.bf16.msrb.mxu1 %v8374_v63  ;;  %v8230_v63 = vor.u32 %v10692_v48, %v8229_v46  ;;  %v8974_v46 = vor.u32 %v10878_v34, %v8973_v32  ;;  %v8865_v48 = vld [vmem:[%s16520_s1 + $0xdf8] sm:$0xf]  ;;  %v8925_v32 = vld [vmem:[%s16520_s1 + $0xe70] sm:$0xf]  ;;  %v10866_v34 = vld [vmem:[%s16520_s1 + $0xe78] sm:$0xf0] }
  0x72   :  { %5467 = vmatpush.bf16.msrb.mxu2 %v8470_v0  ;;  %v10833_v0 = vld [vmem:[%s16520_s1 + $0xd70] sm:$0xf0] }
  0x73   :  { %5480 = vmatpush.bf16.msrb.mxu3 %v8566_v4  ;;  %v8326_v4 = vor.u32 %v10716_v50, %v8325_v49  ;;  %v8794_v13 = vor.u32 %v10833_v0, %v8793_v62  ;;  %v10851_v49 = vld [vmem:[%s16520_s1 + $0xe00] sm:$0xf0]  ;;  %v8961_v50 = vld [vmem:[%s16520_s1 + $0xeb8] sm:$0xf]  ;;  %v8949_v62 = vld [vmem:[%s16520_s1 + $0xea0] sm:$0xf] }
  0x74   :  { %5442 = vmatpush.bf16.msrb.mxu0 %v8266_v10  ;;  %v8518_v10 = vor.u32 %v10764_v58, %v8517_v57  ;;  %v8866_v54 = vor.u32 %v10851_v49, %v8865_v48  ;;  %v8757_v57 = vld [vmem:[%s16520_s1 + $0xd20] sm:$0xf]  ;;  %v8817_v48 = vld [vmem:[%s16520_s1 + $0xd98] sm:$0xf]  ;;  %v10839_v49 = vld [vmem:[%s16520_s1 + $0xda0] sm:$0xf0] }
  0x75   :  { %5455 = vmatpush.bf16.msrb.mxu1 %v8362_v11  ;;  %v8698_v11 = vor.u32 %v10809_v61, %v8697_v60  ;;  %v8853_v60 = vld [vmem:[%s16520_s1 + $0xde0] sm:$0xf]  ;;  %v10848_v61 = vld [vmem:[%s16520_s1 + $0xde8] sm:$0xf0] }
  0x76   :  { %5468 = vmatpush.bf16.msrb.mxu2 %v8458_v12  ;;  %v1105_v12 = vunpack.c.h.b16 %v33_v59  ;;  %v10824_v59 = vld [vmem:[%s16520_s1 + $0xd28] sm:$0xf0]  ;;  %v8854_v2 = vor.u32 %v10848_v61, %v8853_v60  ;;  %v34_v61 = vld [vmem:[%s16521_s0 + $0x40] sm:$0xff] }
  0x77   :  { %5481 = vmatpush.bf16.msrb.mxu3 %v8554_v16  ;;  %v10806_v16 = vld [vmem:[%s16520_s1 + $0xc98] sm:$0xf0]  ;;  %v8758_v1 = vor.u32 %v10824_v59, %v8757_v57  ;;  %v8805_v59 = vld [vmem:[%s16520_s1 + $0xd80] sm:$0xf]  ;;  %v10836_v60 = vld [vmem:[%s16520_s1 + $0xd88] sm:$0xf0] }
  0x78   :  { %5443 = vmatpush.bf16.msrb.mxu0 %v8254_v27  ;;  %v10854_v27 = vld [vmem:[%s16520_s1 + $0xe18] sm:$0xf0]  ;;  %v12160_v35 = vpack.c.b16 %v1105_v12, %v1105_v12 }
  0x79   :  { %5456 = vmatpush.bf16.msrb.mxu1 %v8350_v28  ;;  %v12150_v28 = vpack.c.b16 %v1104_v8, %v1104_v8  ;;  %v8878_v39 = vor.u32 %v10854_v27, %v8877_v26  ;;  %v8841_v8 = vld [vmem:[%s16520_s1 + $0xdc8] sm:$0xf]  ;;  %v8829_v26 = vld [vmem:[%s16520_s1 + $0xdb0] sm:$0xf]  ;;  %v10842_v27 = vld [vmem:[%s16520_s1 + $0xdb8] sm:$0xf0] }
  0x7a   :  { %5469 = vmatpush.bf16.msrb.mxu2 %v8446_v31  ;;  %v12152_v31 = vpack.c.b16 %v1103_v9, %v1103_v9  ;;  %v10845_v9 = vld [vmem:[%s16520_s1 + $0xdd0] sm:$0xf0] }
  0x7b   :  { %5482 = vmatpush.bf16.msrb.mxu3 %v8542_v36  ;;  %v8686_v36 = vor.u32 %v10806_v16, %v8685_v15  ;;  %v8637_v15 = vld [vmem:[%s16520_s1 + $0xc30] sm:$0xf]  ;;  %v10794_v16 = vld [vmem:[%s16520_s1 + $0xc38] sm:$0xf0] }
  0x7c   :  { %5444 = vmatpush.bf16.msrb.mxu0 %v8242_v47  ;;  %v10827_v47 = vld [vmem:[%s16520_s1 + $0xd40] sm:$0xf0] }
  0x7d   :  { %5457 = vmatpush.bf16.msrb.mxu1 %v8338_v51  ;;  %v10875_v51 = vld [vmem:[%s16520_s1 + $0xec0] sm:$0xf0]  ;;  %v8770_v53 = vor.u32 %v10827_v47, %v8769_v45  ;;  %v8721_v45 = vld [vmem:[%s16520_s1 + $0xcd8] sm:$0xf] }
  0x7e   :  { %5470 = vmatpush.bf16.msrb.mxu2 %v8434_v52  ;;  %v8674_v52 = vor.u32 %v10803_v43, %v8673_v40  ;;  %v8962_v58 = vor.u32 %v10875_v51, %v8961_v50  ;;  %v8625_v40 = vld [vmem:[%s16520_s1 + $0xc18] sm:$0xf]  ;;  %v10791_v43 = vld [vmem:[%s16520_s1 + $0xc20] sm:$0xf0] }
  0x7f   :  { %5483 = vmatpush.bf16.msrb.mxu3 %v8530_v56  ;;  %v10800_v56 = vld [vmem:[%s16520_s1 + $0xc68] sm:$0xf0]  ;;  %v10815_v47 = vld [vmem:[%s16520_s1 + $0xce0] sm:$0xf0]  ;;  %v8913_v50 = vld [vmem:[%s16520_s1 + $0xe58] sm:$0xf] }
  0x80   :  { %5445 = vmatpush.bf16.msrb.mxu0 %v8230_v63  ;;  %v10872_v63 = vld [vmem:[%s16520_s1 + $0xea8] sm:$0xf0]  ;;  %v8662_v0 = vor.u32 %v10800_v56, %v8661_v55  ;;  %v10863_v51 = vld [vmem:[%s16520_s1 + $0xe60] sm:$0xf0]  ;;  %v8709_v55 = vld [vmem:[%s16520_s1 + $0xcc0] sm:$0xf]  ;;  %v8722_v57 = vor.u32 %v10815_v47, %v8721_v45 }
  0x81   :  { %5458 = vmatpush.bf16.msrb.mxu1 %v8326_v4  ;;  %v10797_v4 = vld [vmem:[%s16520_s1 + $0xc50] sm:$0xf0]  ;;  %v8950_v6 = vor.u32 %v10872_v63, %v8949_v62  ;;  %v10812_v56 = vld [vmem:[%s16520_s1 + $0xcc8] sm:$0xf0]  ;;  %v8914_v62 = vor.u32 %v10863_v51, %v8913_v50  ;;  %v8901_v63 = vld [vmem:[%s16520_s1 + $0xe40] sm:$0xf] }
  0x82   :  { %5471 = vmatpush.bf16.msrb.mxu2 %v8422_v5  ;;  %v8745_v5 = vld [vmem:[%s16520_s1 + $0xd08] sm:$0xf]  ;;  %v8650_v12 = vor.u32 %v10797_v4, %v8649_v3  ;;  %v10905_v3 = vld [vmem:[%s16520_s1 + $0xfb0] sm:$0xf0]  ;;  %v9357_v47 = vld [vmem:[%s16520_s1 + $0x11d0] sm:$0xf] }
  0x83   :  { %5484 = vmatpush.bf16.msrb.mxu3 %v8518_v10  ;;  %5446 = vmatmul.bf16.vlgmr.msrb.gmra.mxu0 %v12139_v23  ;;  %v8937_v10 = vld [vmem:[%s16520_s1 + $0xe88] sm:$0xf] }
  0x84   :  { %5490 = vmatpush.bf16.msra.mxu0 %v8698_v11  ;;  %5459 = vmatmul.bf16.vlgmr.msrb.gmra.mxu1 %v12152_v31  ;;  %v10869_v11 = vld [vmem:[%s16520_s1 + $0xe90] sm:$0xf0]  ;;  %v9177_v4 = vld [vmem:[%s16520_s1 + $0x1068] sm:$0xf] }
  0x85   :  { %5503 = vmatpush.bf16.msra.mxu1 %v8794_v13  ;;  %5472 = vmatmul.bf16.vlgmr.msrb.gmra.mxu2 %v12150_v28  ;;  %v8746_v13 = vor.u32 %v10821_v7, %v8745_v5  ;;  %v9273_v7 = vld [vmem:[%s16520_s1 + $0x1128] sm:$0xf] }
  0x86   :  { %5516 = vmatpush.bf16.msra.mxu2 %v8890_v14  ;;  %5485 = vmatmul.bf16.vlgmr.msrb.gmra.mxu3 %v12160_v35  ;;  %v8842_v14 = vor.u32 %v10845_v9, %v8841_v8  ;;  %v10953_v8 = vld [vmem:[%s16520_s1 + $0x1130] sm:$0xf0]  ;;  %v1106_v9 = vunpack.c.l.b16 %v34_v61 }
  0x87   :  { %5529 = vmatpush.bf16.msra.mxu3 %v8986_v21  ;;  %v8938_v21 = vor.u32 %v10869_v11, %v8937_v10  ;;  %v8710_v10 = vor.u32 %v10812_v56, %v8709_v55  ;;  %v8806_v11 = vor.u32 %v10836_v60, %v8805_v59  ;;  %v9153_v55 = vld [vmem:[%s16520_s1 + $0x1038] sm:$0xf]  ;;  %v10947_v59 = vld [vmem:[%s16520_s1 + $0x1100] sm:$0xf0] }
  0x88   :  { %5491 = vmatpush.bf16.msra.mxu0 %v8686_v36  ;;  %v8638_v36 = vor.u32 %v10794_v16, %v8637_v15  ;;  %v1107_v15 = vunpack.c.h.b16 %v34_v61  ;;  %v9345_v60 = vld [vmem:[%s16520_s1 + $0x11b8] sm:$0xf]  ;;  %v10971_v61 = vld [vmem:[%s16520_s1 + $0x11c0] sm:$0xf0] }
  0x89   :  { %5504 = vmatpush.bf16.msra.mxu1 %v8782_v37  ;;  %v8734_v37 = vor.u32 %v10818_v24, %v8733_v17 }
  0x8a   :  { %5517 = vmatpush.bf16.msra.mxu2 %v8878_v39  ;;  %v8830_v39 = vor.u32 %v10842_v27, %v8829_v26  ;;  %v9274_v26 = vor.u32 %v10953_v8, %v9273_v7  ;;  %v9069_v27 = vld [vmem:[%s16520_s1 + $0xf90] sm:$0xf]  ;;  %v10944_v7 = vld [vmem:[%s16520_s1 + $0x10e8] sm:$0xf0]  ;;  %v9333_v8 = vld [vmem:[%s16520_s1 + $0x11a0] sm:$0xf] }
  0x8b   :  { %5530 = vmatpush.bf16.msra.mxu3 %v8974_v46  ;;  %v8926_v46 = vor.u32 %v10866_v34, %v8925_v32  ;;  %v10902_v32 = vld [vmem:[%s16520_s1 + $0xf98] sm:$0xf0]  ;;  %v9165_v34 = vld [vmem:[%s16520_s1 + $0x1050] sm:$0xf] }
  0x8c   :  { %5492 = vmatpush.bf16.msra.mxu0 %v8674_v52  ;;  %v8613_v52 = vld [vmem:[%s16520_s1 + $0xc00] sm:$0xf]  ;;  %v9070_v50 = vor.u32 %v10902_v32, %v9069_v27  ;;  %v9321_v27 = vld [vmem:[%s16520_s1 + $0x1188] sm:$0xf]  ;;  %v10965_v32 = vld [vmem:[%s16520_s1 + $0x1190] sm:$0xf0] }
  0x8d   :  { %5505 = vmatpush.bf16.msra.mxu1 %v8770_v53  ;;  %v8626_v53 = vor.u32 %v10791_v43, %v8625_v40  ;;  %v9261_v40 = vld [vmem:[%s16520_s1 + $0x1110] sm:$0xf]  ;;  %v10950_v43 = vld [vmem:[%s16520_s1 + $0x1118] sm:$0xf0] }
  0x8e   :  { %5518 = vmatpush.bf16.msra.mxu2 %v8866_v54  ;;  %v10788_v54 = vld [vmem:[%s16520_s1 + $0xc08] sm:$0xf0] }
  0x8f   :  { %5531 = vmatpush.bf16.msra.mxu3 %v8962_v58  ;;  %v8818_v58 = vor.u32 %v10839_v49, %v8817_v48  ;;  %v8614_v5 = vor.u32 %v10788_v54, %v8613_v52  ;;  %v10974_v48 = vld [vmem:[%s16520_s1 + $0x11d8] sm:$0xf0]  ;;  %v9262_v52 = vor.u32 %v10950_v43, %v9261_v40  ;;  %v10899_v54 = vld [vmem:[%s16520_s1 + $0xf80] sm:$0xf0] }
  0x90   :  { %5493 = vmatpush.bf16.msra.mxu0 %v8662_v0  ;;  %v10860_v0 = vld [vmem:[%s16520_s1 + $0xe48] sm:$0xf0]  ;;  %v9358_v56 = vor.u32 %v10974_v48, %v9357_v47  ;;  %v10890_v43 = vld [vmem:[%s16520_s1 + $0xf38] sm:$0xf0]  ;;  %v9117_v47 = vld [vmem:[%s16520_s1 + $0xff0] sm:$0xf] }
  0x91   :  { %5506 = vmatpush.bf16.msra.mxu1 %v8758_v1  ;;  %v35_v1 = vld [vmem:[%s16521_s0 + $0x48] sm:$0xff]  ;;  %v8902_v16 = vor.u32 %v10860_v0, %v8901_v63 }
  0x92   :  { %5519 = vmatpush.bf16.msra.mxu2 %v8854_v2  ;;  %v9081_v2 = vld [vmem:[%s16520_s1 + $0xfa8] sm:$0xf] }
  0x93   :  { %5532 = vmatpush.bf16.msra.mxu3 %v8950_v6  ;;  %v10929_v6 = vld [vmem:[%s16520_s1 + $0x1070] sm:$0xf0]  ;;  %v9082_v17 = vor.u32 %v10905_v3, %v9081_v2  ;;  %v10896_v2 = vld [vmem:[%s16520_s1 + $0xf68] sm:$0xf0]  ;;  %v9141_v3 = vld [vmem:[%s16520_s1 + $0x1020] sm:$0xf] }
  0x94   :  { %5494 = vmatpush.bf16.msra.mxu0 %v8650_v12  ;;  %v9369_v12 = vld [vmem:[%s16520_s1 + $0x11e8] sm:$0xf]  ;;  %v9178_v24 = vor.u32 %v10929_v6, %v9177_v4  ;;  %v9346_v4 = vor.u32 %v10971_v61, %v9345_v60  ;;  %v9237_v6 = vld [vmem:[%s16520_s1 + $0x10e0] sm:$0xf]  ;;  %v9009_v60 = vld [vmem:[%s16520_s1 + $0xf18] sm:$0xf] }
  0x95   :  { %5507 = vmatpush.bf16.msra.mxu1 %v8746_v13  ;;  %v10977_v13 = vld [vmem:[%s16520_s1 + $0x11f0] sm:$0xf0]  ;;  %v10887_v61 = vld [vmem:[%s16520_s1 + $0xf20] sm:$0xf0] }
  0x96   :  { %5520 = vmatpush.bf16.msra.mxu2 %v8842_v14  ;;  %v1108_v14 = vunpack.c.l.b16 %v35_v1 }
  0x97   :  { %5533 = vmatpush.bf16.msra.mxu3 %v8938_v21  ;;  %v1109_v21 = vunpack.c.h.b16 %v35_v1  ;;  %v9045_v1 = vld [vmem:[%s16520_s1 + $0xf60] sm:$0xf] }
  0x98   :  { %5495 = vmatpush.bf16.msra.mxu0 %v8638_v36  ;;  %v9370_v36 = vor.u32 %v10977_v13, %v9369_v12  ;;  %v12360_v45 = vpack.c.b16 %v1108_v14, %v1108_v14  ;;  %v9238_v13 = vor.u32 %v10944_v7, %v9237_v6  ;;  %v10893_v14 = vld [vmem:[%s16520_s1 + $0xf50] sm:$0xf0]  ;;  %v10959_v6 = vld [vmem:[%s16520_s1 + $0x1160] sm:$0xf0]  ;;  %v8997_v7 = vld [vmem:[%s16520_s1 + $0xf00] sm:$0xf] }
  0x99   :  { %5508 = vmatpush.bf16.msra.mxu1 %v8734_v37  ;;  %v12349_v37 = vpack.c.b16 %v1106_v9, %v1106_v9  ;;  %v12370_v49 = vpack.c.b16 %v1109_v21, %v1109_v21  ;;  %v10968_v9 = vld [vmem:[%s16520_s1 + $0x11a8] sm:$0xf0]  ;;  %v9225_v21 = vld [vmem:[%s16520_s1 + $0x10c8] sm:$0xf] }
  0x9a   :  { %5521 = vmatpush.bf16.msra.mxu2 %v8830_v39  ;;  %v10926_v39 = vld [vmem:[%s16520_s1 + $0x1058] sm:$0xf0] }
  0x9b   :  { %5534 = vmatpush.bf16.msra.mxu3 %v8926_v46  ;;  %v12362_v46 = vpack.c.b16 %v1107_v15, %v1107_v15  ;;  %v9166_v51 = vor.u32 %v10926_v39, %v9165_v34  ;;  %v9129_v15 = vld [vmem:[%s16520_s1 + $0x1008] sm:$0xf] }
  0x9c   :  { %5496 = vmatpush.bf16.msra.mxu0 %v8626_v53  ;;  %v9057_v53 = vld [vmem:[%s16520_s1 + $0xf78] sm:$0xf] }
  0x9d   :  { %5509 = vmatpush.bf16.msra.mxu1 %v8722_v57  ;;  %v10923_v57 = vld [vmem:[%s16520_s1 + $0x1040] sm:$0xf0] }
  0x9e   :  { %5522 = vmatpush.bf16.msra.mxu2 %v8818_v58  ;;  %v9249_v58 = vld [vmem:[%s16520_s1 + $0x10f8] sm:$0xf]  ;;  %v9154_v63 = vor.u32 %v10923_v57, %v9153_v55  ;;  %v10962_v55 = vld [vmem:[%s16520_s1 + $0x1178] sm:$0xf0] }
  0x9f   :  { %5535 = vmatpush.bf16.msra.mxu3 %v8914_v62  ;;  %v9058_v62 = vor.u32 %v10899_v54, %v9057_v53  ;;  %v9250_v0 = vor.u32 %v10947_v59, %v9249_v58  ;;  %v10938_v53 = vld [vmem:[%s16520_s1 + $0x10b8] sm:$0xf0]  ;;  %v9309_v54 = vld [vmem:[%s16520_s1 + $0x1170] sm:$0xf] }
  0xa0   :  { %5497 = vmatpush.bf16.msra.mxu0 %v8614_v5  ;;  %v10920_v5 = vld [vmem:[%s16520_s1 + $0x1028] sm:$0xf0] }
  0xa1   :  { %5510 = vmatpush.bf16.msra.mxu1 %v8710_v10  ;;  %v9046_v10 = vor.u32 %v10896_v2, %v9045_v1  ;;  %v9142_v12 = vor.u32 %v10920_v5, %v9141_v3  ;;  %v9310_v1 = vor.u32 %v10962_v55, %v9309_v54  ;;  %v10911_v2 = vld [vmem:[%s16520_s1 + $0xfe0] sm:$0xf0]  ;;  %v9201_v3 = vld [vmem:[%s16520_s1 + $0x1098] sm:$0xf] }
  0xa2   :  { %5523 = vmatpush.bf16.msra.mxu2 %v8806_v11  ;;  %v9033_v11 = vld [vmem:[%s16520_s1 + $0xf48] sm:$0xf]  ;;  %v9297_v5 = vld [vmem:[%s16520_s1 + $0x1158] sm:$0xf] }
  0xa3   :  { %5536 = vmatpush.bf16.msra.mxu3 %v8902_v16  ;;  %5498 = vmatmul.bf16.vlgmr.msra.gmra.mxu0 %v12349_v37  ;;  %v10917_v16 = vld [vmem:[%s16520_s1 + $0x1010] sm:$0xf0]  ;;  %v9034_v34 = vor.u32 %v10893_v14, %v9033_v11  ;;  %v5291_v57 = vpop.f32.mrf.mxu0  ;;  %v9093_v11 = vld [vmem:[%s16520_s1 + $0xfc0] sm:$0xf] }
  0xa4   :  { %5542 = vmatpush.bf16.msrb.mxu0 %v9082_v17  ;;  %5511 = vmatmul.bf16.vlgmr.msra.gmra.mxu1 %v12362_v46  ;;  %v9334_v17 = vor.u32 %v10968_v9, %v9333_v8  ;;  %v9130_v39 = vor.u32 %v10917_v16, %v9129_v15  ;;  %v9010_v9 = vor.u32 %v10887_v61, %v9009_v60  ;;  %v9189_v15 = vld [vmem:[%s16520_s1 + $0x1080] sm:$0xf]  ;;  %v10932_v16 = vld [vmem:[%s16520_s1 + $0x1088] sm:$0xf0] }
  0xa5   :  { %5555 = vmatpush.bf16.msrb.mxu1 %v9178_v24  ;;  %5524 = vmatmul.bf16.vlgmr.msra.gmra.mxu2 %v12360_v45  ;;  %v10941_v24 = vld [vmem:[%s16520_s1 + $0x10d0] sm:$0xf0] }
  0xa6   :  { %5568 = vmatpush.bf16.msrb.mxu2 %v9274_v26  ;;  %5537 = vmatmul.bf16.vlgmr.msra.gmra.mxu3 %v12370_v49  ;;  %v1066_v26 = vld [vmem:[%s16522_s2] sm:$0x7]  ;;  %v9226_v40 = vor.u32 %v10941_v24, %v9225_v21  ;;  %v9298_v24 = vor.u32 %v10959_v6, %v9297_v5  ;;  %v9549_v5 = vld [vmem:[%s16520_s1 + $0x1350] sm:$0xf] }
  0xa7   :  { %5581 = vmatpush.bf16.msrb.mxu3 %v9370_v36  ;;  %v9021_v36 = vld [vmem:[%s16520_s1 + $0xf30] sm:$0xf]  ;;  %v1068_v48 = vperm.slane %v1066_v26, 0  ;;  %v9285_v26 = vld [vmem:[%s16520_s1 + $0x1140] sm:$0xf] }
  0xa8   :  { %5543 = vmatpush.bf16.msrb.mxu0 %v9070_v50  ;;  %v9322_v50 = vor.u32 %v10965_v32, %v9321_v27  ;;  %v5317_v21 = vpop.f32.mrf.mxu2  ;;  %v10956_v27 = vld [vmem:[%s16520_s1 + $0x1148] sm:$0xf0]  ;;  %v37_v32 = vld [vmem:[%s16521_s0 + $0x58] sm:$0xff] }
  0xa9   :  { %5556 = vmatpush.bf16.msrb.mxu1 %v9166_v51  ;;  %v10914_v51 = vld [vmem:[%s16520_s1 + $0xff8] sm:$0xf0] }
  0xaa   :  { %5569 = vmatpush.bf16.msrb.mxu2 %v9262_v52  ;;  %v9213_v52 = vld [vmem:[%s16520_s1 + $0x10b0] sm:$0xf]  ;;  %v9118_v58 = vor.u32 %v10914_v51, %v9117_v47  ;;  %v11049_v51 = vld [vmem:[%s16520_s1 + $0x1430] sm:$0xf0] }
  0xab   :  { %5582 = vmatpush.bf16.msrb.mxu3 %v9358_v56  ;;  %v9022_v56 = vor.u32 %v10890_v43, %v9021_v36  ;;  %v9214_v59 = vor.u32 %v10938_v53, %v9213_v52  ;;  %v5330_v36 = vpop.f32.mrf.mxu3  ;;  %v9561_v43 = vld [vmem:[%s16520_s1 + $0x1368] sm:$0xf]  ;;  %v5293_v54 = vpop.f32.mrf.mxu0 }
  0xac   :  { %5544 = vmatpush.bf16.msrb.mxu0 %v9058_v62  ;;  %v9105_v62 = vld [vmem:[%s16520_s1 + $0xfd8] sm:$0xf]  ;;  %v9429_v54 = vld [vmem:[%s16520_s1 + $0x1260] sm:$0xf] }
  0xad   :  { %5557 = vmatpush.bf16.msrb.mxu1 %v9154_v63  ;;  %v5292_v63 = vadd.f32 %v5291_v57, %v1068_v48  ;;  %v11025_v48 = vld [vmem:[%s16520_s1 + $0x1370] sm:$0xf0]  ;;  %v9753_v57 = vld [vmem:[%s16520_s1 + $0x14e8] sm:$0xf] }
  0xae   :  { %5570 = vmatpush.bf16.msrb.mxu2 %v9250_v0  ;;  %v5304_v0 = vpop.f32.mrf.mxu1 }
  0xaf   :  { %5583 = vmatpush.bf16.msrb.mxu3 %v9346_v4  ;;  %v10935_v4 = vld [vmem:[%s16520_s1 + $0x10a0] sm:$0xf0]  ;;  %v5305_v8 = vadd.f32 %v5304_v0, %v5292_v63  ;;  %v1113_v0 = vunpack.c.h.b16 %v37_v32 }
  0xb0   :  { %5545 = vmatpush.bf16.msrb.mxu0 %v9046_v10  ;;  %v10884_v10 = vld [vmem:[%s16520_s1 + $0xf08] sm:$0xf0]  ;;  %v9202_v14 = vor.u32 %v10935_v4, %v9201_v3  ;;  %v9453_v3 = vld [vmem:[%s16520_s1 + $0x1290] sm:$0xf]  ;;  %v10998_v4 = vld [vmem:[%s16520_s1 + $0x1298] sm:$0xf0] }
  0xb1   :  { %5558 = vmatpush.bf16.msrb.mxu1 %v9142_v12  ;;  %v10908_v12 = vld [vmem:[%s16520_s1 + $0xfc8] sm:$0xf0]  ;;  %v8998_v47 = vor.u32 %v10884_v10, %v8997_v7  ;;  %v11046_v10 = vld [vmem:[%s16520_s1 + $0x1418] sm:$0xf0] }
  0xb2   :  { %5571 = vmatpush.bf16.msrb.mxu2 %v9238_v13  ;;  %v9106_v13 = vor.u32 %v10911_v2, %v9105_v62  ;;  %v9094_v55 = vor.u32 %v10908_v12, %v9093_v11  ;;  %v9286_v62 = vor.u32 %v10956_v27, %v9285_v26  ;;  %v9441_v27 = vld [vmem:[%s16520_s1 + $0x1278] sm:$0xf] }
  0xb3   :  { %5584 = vmatpush.bf16.msrb.mxu3 %v9334_v17  ;;  %v36_v17 = vld [vmem:[%s16521_s0 + $0x50] sm:$0xff] }
  0xb4   :  { %5546 = vmatpush.bf16.msrb.mxu0 %v9034_v34  ;;  %v5318_v34 = vadd.f32 %v5317_v21, %v5305_v8  ;;  %v1110_v52 = vunpack.c.l.b16 %v36_v17  ;;  %v1111_v60 = vunpack.c.h.b16 %v36_v17  ;;  %v11022_v8 = vld [vmem:[%s16520_s1 + $0x1358] sm:$0xf0]  ;;  %v9454_v17 = vor.u32 %v10998_v4, %v9453_v3  ;;  %v5332_v21 = vpop.f32.mrf.mxu3  ;;  %v9417_v3 = vld [vmem:[%s16520_s1 + $0x1248] sm:$0xf]  ;;  %v10989_v4 = vld [vmem:[%s16520_s1 + $0x1250] sm:$0xf0] }
  0xb5   :  { %5559 = vmatpush.bf16.msrb.mxu1 %v9130_v39  ;;  %v9465_v39 = vld [vmem:[%s16520_s1 + $0x12a8] sm:$0xf]  ;;  %v9418_v21 = vor.u32 %v10989_v4, %v9417_v3  ;;  %v9681_v3 = vld [vmem:[%s16520_s1 + $0x1458] sm:$0xf]  ;;  %v11055_v4 = vld [vmem:[%s16520_s1 + $0x1460] sm:$0xf0] }
  0xb6   :  { %5572 = vmatpush.bf16.msrb.mxu2 %v9226_v40  ;;  %v11001_v40 = vld [vmem:[%s16520_s1 + $0x12b0] sm:$0xf0]  ;;  %v12547_v53 = vadd.f32 %v5330_v36, %v5318_v34  ;;  %v5306_v61 = vpop.f32.mrf.mxu1  ;;  %v12564_v7 = vpack.c.b16 %v1110_v52, %v1110_v52  ;;  %v12577_v12 = vpack.c.b16 %v1111_v60, %v1111_v60  ;;  %v9537_v34 = vld [vmem:[%s16520_s1 + $0x1338] sm:$0xf]  ;;  %v11040_v60 = vld [vmem:[%s16520_s1 + $0x13e8] sm:$0xf0] }
  0xb7   :  { %5585 = vmatpush.bf16.msrb.mxu3 %v9322_v50  ;;  %v9657_v50 = vld [vmem:[%s16520_s1 + $0x1428] sm:$0xf]  ;;  %v9466_v63 = vor.u32 %v11001_v40, %v9465_v39  ;;  %v11019_v39 = vld [vmem:[%s16520_s1 + $0x1340] sm:$0xf0]  ;;  %v9633_v40 = vld [vmem:[%s16520_s1 + $0x13f8] sm:$0xf] }
  0xb8   :  { %5547 = vmatpush.bf16.msrb.mxu0 %v9022_v56  ;;  %v9190_v56 = vor.u32 %v10932_v16, %v9189_v15  ;;  %v9658_v2 = vor.u32 %v11049_v51, %v9657_v50  ;;  %v5319_v15 = vpop.f32.mrf.mxu2  ;;  %v12585_v16 = vpack.c.b16 %v1113_v0, %v1113_v0  ;;  %v9538_v51 = vor.u32 %v11019_v39, %v9537_v34  ;;  %v9717_v61 = vld [vmem:[%s16520_s1 + $0x14a0] sm:$0xf]  ;;  %v9501_v34 = vld [vmem:[%s16520_s1 + $0x12f0] sm:$0xf] }
  0xb9   :  { %5560 = vmatpush.bf16.msrb.mxu1 %v9118_v58  ;;  %v11073_v58 = vld [vmem:[%s16520_s1 + $0x14f0] sm:$0xf0]  ;;  %v9705_v15 = vld [vmem:[%s16520_s1 + $0x1488] sm:$0xf] }
  0xba   :  { %5573 = vmatpush.bf16.msrb.mxu2 %v9214_v59  ;;  %v1112_v59 = vunpack.c.l.b16 %v37_v32  ;;  %v9754_v6 = vor.u32 %v11073_v58, %v9753_v57  ;;  %v10995_v32 = vld [vmem:[%s16520_s1 + $0x1280] sm:$0xf0]  ;;  %v11016_v58 = vld [vmem:[%s16520_s1 + $0x1328] sm:$0xf0] }
  0xbb   :  { %5586 = vmatpush.bf16.msrb.mxu3 %v9310_v1  ;;  %v9562_v1 = vor.u32 %v11025_v48, %v9561_v43  ;;  %v11043_v43 = vld [vmem:[%s16520_s1 + $0x1400] sm:$0xf0]  ;;  %v9442_v50 = vor.u32 %v10995_v32, %v9441_v27  ;;  %v9405_v27 = vld [vmem:[%s16520_s1 + $0x1230] sm:$0xf]  ;;  %v10986_v32 = vld [vmem:[%s16520_s1 + $0x1238] sm:$0xf0] }
  0xbc   :  { %5548 = vmatpush.bf16.msrb.mxu0 %v9010_v9  ;;  %v9645_v9 = vld [vmem:[%s16520_s1 + $0x1410] sm:$0xf]  ;;  %v12575_v11 = vpack.c.b16 %v1112_v59, %v1112_v59  ;;  %v11067_v48 = vld [vmem:[%s16520_s1 + $0x14c0] sm:$0xf0]  ;;  %v9634_v52 = vor.u32 %v11043_v43, %v9633_v40  ;;  %v9621_v59 = vld [vmem:[%s16520_s1 + $0x13e0] sm:$0xf] }
  0xbd   :  { %5561 = vmatpush.bf16.msrb.mxu1 %v9106_v13  ;;  %v9741_v13 = vld [vmem:[%s16520_s1 + $0x14d0] sm:$0xf]  ;;  %v9646_v26 = vor.u32 %v11046_v10, %v9645_v9  ;;  %v11013_v10 = vld [vmem:[%s16520_s1 + $0x1310] sm:$0xf0]  ;;  %v11010_v40 = vld [vmem:[%s16520_s1 + $0x12f8] sm:$0xf0] }
  0xbe   :  { %5574 = vmatpush.bf16.msrb.mxu2 %v9202_v14  ;;  %v11070_v14 = vld [vmem:[%s16520_s1 + $0x14d8] sm:$0xf0]  ;;  %v9597_v43 = vld [vmem:[%s16520_s1 + $0x13b0] sm:$0xf] }
  0xbf   :  { %5587 = vmatpush.bf16.msrb.mxu3 %v9298_v24  ;;  %v9550_v24 = vor.u32 %v11022_v8, %v9549_v5  ;;  %v9742_v36 = vor.u32 %v11070_v14, %v9741_v13  ;;  %v9513_v5 = vld [vmem:[%s16520_s1 + $0x1308] sm:$0xf]  ;;  %v11037_v14 = vld [vmem:[%s16520_s1 + $0x13d0] sm:$0xf0] }
  0xc0   :  { %5549 = vmatpush.bf16.msrb.mxu0 %v8998_v47  ;;  %v9729_v47 = vld [vmem:[%s16520_s1 + $0x14b8] sm:$0xf]  ;;  %v5343_v0 = vpop.f32.mrf.mxu0  ;;  %v9609_v13 = vld [vmem:[%s16520_s1 + $0x13c8] sm:$0xf] }
  0xc1   :  { %5562 = vmatpush.bf16.msrb.mxu1 %v9094_v55  ;;  %v10992_v55 = vld [vmem:[%s16520_s1 + $0x1268] sm:$0xf0]  ;;  %v9730_v57 = vor.u32 %v11067_v48, %v9729_v47  ;;  %v5356_v8 = vpop.f32.mrf.mxu1  ;;  %v11034_v47 = vld [vmem:[%s16520_s1 + $0x13b8] sm:$0xf0] }
  0xc2   :  { %5575 = vmatpush.bf16.msrb.mxu2 %v9190_v56  ;;  %v9525_v56 = vld [vmem:[%s16520_s1 + $0x1320] sm:$0xf] }
  0xc3   :  { %5588 = vmatpush.bf16.msrb.mxu3 %v9286_v62  ;;  %5550 = vmatmul.bf16.vlgmr.msrb.gmra.mxu0 %v12564_v7  ;;  %v11064_v62 = vld [vmem:[%s16520_s1 + $0x14a8] sm:$0xf0] }
  0xc4   :  { %5594 = vmatpush.bf16.msra.mxu0 %v9466_v63  ;;  %5563 = vmatmul.bf16.vlgmr.msrb.gmra.mxu1 %v12577_v12  ;;  %v9430_v63 = vor.u32 %v10992_v55, %v9429_v54  ;;  %v9718_v9 = vor.u32 %v11064_v62, %v9717_v61  ;;  %v9406_v54 = vor.u32 %v10986_v32, %v9405_v27  ;;  %v9489_v61 = vld [vmem:[%s16520_s1 + $0x12d8] sm:$0xf]  ;;  %v11052_v27 = vld [vmem:[%s16520_s1 + $0x1448] sm:$0xf0] }
  0xc5   :  { %5607 = vmatpush.bf16.msra.mxu1 %v9562_v1  ;;  %5576 = vmatmul.bf16.vlgmr.msrb.gmra.mxu2 %v12575_v11  ;;  %v9526_v1 = vor.u32 %v11016_v58, %v9525_v56  ;;  %v9598_v58 = vor.u32 %v11034_v47, %v9597_v43  ;;  %v39_v32 = vld [vmem:[%s16521_s0 + $0x68] sm:$0xff]  ;;  %v11121_v47 = vld [vmem:[%s16520_s1 + $0x1670] sm:$0xf0] }
  0xc6   :  { %5620 = vmatpush.bf16.msra.mxu2 %v9658_v2  ;;  %5589 = vmatmul.bf16.vlgmr.msrb.gmra.mxu3 %v12585_v16  ;;  %v9622_v2 = vor.u32 %v11040_v60, %v9621_v59  ;;  %v9393_v59 = vld [vmem:[%s16520_s1 + $0x1218] sm:$0xf]  ;;  %v10983_v60 = vld [vmem:[%s16520_s1 + $0x1220] sm:$0xf0] }
  0xc7   :  { %5633 = vmatpush.bf16.msra.mxu3 %v9754_v6  ;;  %v5344_v6 = vadd.f32 %v5343_v0, %v12547_v53  ;;  %v11061_v53 = vld [vmem:[%s16520_s1 + $0x1490] sm:$0xf0]  ;;  %v11007_v0 = vld [vmem:[%s16520_s1 + $0x12e0] sm:$0xf0] }
  0xc8   :  { %5595 = vmatpush.bf16.msra.mxu0 %v9454_v17  ;;  %v9706_v39 = vor.u32 %v11061_v53, %v9705_v15  ;;  %v5345_v56 = vpop.f32.mrf.mxu0  ;;  %v9573_v15 = vld [vmem:[%s16520_s1 + $0x1380] sm:$0xf]  ;;  %v11028_v53 = vld [vmem:[%s16520_s1 + $0x1388] sm:$0xf0] }
  0xc9   :  { %5608 = vmatpush.bf16.msra.mxu1 %v9550_v24  ;;  %v5357_v17 = vadd.f32 %v5356_v8, %v5344_v6  ;;  %v9514_v24 = vor.u32 %v11013_v10, %v9513_v5  ;;  %v5358_v62 = vpop.f32.mrf.mxu1  ;;  %v9381_v5 = vld [vmem:[%s16520_s1 + $0x1200] sm:$0xf]  ;;  %v9394_v6 = vor.u32 %v10983_v60, %v9393_v59  ;;  %v10980_v8 = vld [vmem:[%s16520_s1 + $0x1208] sm:$0xf0]  ;;  %v10137_v56 = vld [vmem:[%s16520_s1 + $0x17e8] sm:$0xf] }
  0xca   :  { %5621 = vmatpush.bf16.msra.mxu2 %v9646_v26  ;;  %v9610_v26 = vor.u32 %v11037_v14, %v9609_v13  ;;  %v11004_v10 = vld [vmem:[%s16520_s1 + $0x12c8] sm:$0xf0]  ;;  %v9490_v13 = vor.u32 %v11007_v0, %v9489_v61  ;;  %v9382_v43 = vor.u32 %v10980_v8, %v9381_v5  ;;  %v1117_v62 = vunpack.c.h.b16 %v39_v32  ;;  %v10029_v8 = vld [vmem:[%s16520_s1 + $0x1710] sm:$0xf] }
  0xcb   :  { %5634 = vmatpush.bf16.msra.mxu3 %v9742_v36  ;;  %v5369_v36 = vpop.f32.mrf.mxu2 }
  0xcc   :  { %5596 = vmatpush.bf16.msra.mxu0 %v9442_v50  ;;  %v5370_v48 = vadd.f32 %v5369_v36, %v5357_v17  ;;  %v5382_v50 = vpop.f32.mrf.mxu3  ;;  %v38_v17 = vld [vmem:[%s16521_s0 + $0x60] sm:$0xff]  ;;  %v9849_v36 = vld [vmem:[%s16520_s1 + $0x15a8] sm:$0xf] }
  0xcd   :  { %5609 = vmatpush.bf16.msra.mxu1 %v9538_v51  ;;  %v9693_v51 = vld [vmem:[%s16520_s1 + $0x1470] sm:$0xf]  ;;  %v1115_v59 = vunpack.c.h.b16 %v38_v17 }
  0xce   :  { %5622 = vmatpush.bf16.msra.mxu2 %v9634_v52  ;;  %v11058_v52 = vld [vmem:[%s16520_s1 + $0x1478] sm:$0xf0]  ;;  %v12688_v55 = vadd.f32 %v5382_v50, %v5370_v48  ;;  %v10041_v48 = vld [vmem:[%s16520_s1 + $0x1728] sm:$0xf]  ;;  %v11145_v50 = vld [vmem:[%s16520_s1 + $0x1730] sm:$0xf0] }
  0xcf   :  { %5635 = vmatpush.bf16.msra.mxu3 %v9730_v57  ;;  %v9502_v57 = vor.u32 %v11010_v40, %v9501_v34  ;;  %v9945_v40 = vld [vmem:[%s16520_s1 + $0x1668] sm:$0xf]  ;;  %v10042_v0 = vor.u32 %v11145_v50, %v10041_v48 }
  0xd0   :  { %5597 = vmatpush.bf16.msra.mxu0 %v9430_v63  ;;  %v9694_v63 = vor.u32 %v11058_v52, %v9693_v51  ;;  %v1114_v51 = vunpack.c.l.b16 %v38_v17 }
  0xd1   :  { %5610 = vmatpush.bf16.msra.mxu1 %v9526_v1  ;;  %v9585_v1 = vld [vmem:[%s16520_s1 + $0x1398] sm:$0xf] }
  0xd2   :  { %5623 = vmatpush.bf16.msra.mxu2 %v9622_v2  ;;  %v11031_v2 = vld [vmem:[%s16520_s1 + $0x13a0] sm:$0xf0]  ;;  %v12777_v5 = vpack.c.b16 %v1114_v51, %v1114_v51 }
  0xd3   :  { %5636 = vmatpush.bf16.msra.mxu3 %v9718_v9  ;;  %v9477_v9 = vld [vmem:[%s16520_s1 + $0x12c0] sm:$0xf]  ;;  %v9586_v14 = vor.u32 %v11031_v2, %v9585_v1  ;;  %v9837_v1 = vld [vmem:[%s16520_s1 + $0x1590] sm:$0xf]  ;;  %v11094_v2 = vld [vmem:[%s16520_s1 + $0x1598] sm:$0xf0] }
  0xd4   :  { %5598 = vmatpush.bf16.msra.mxu0 %v9418_v21  ;;  %v5371_v21 = vpop.f32.mrf.mxu2  ;;  %v5384_v34 = vpop.f32.mrf.mxu3  ;;  %v9478_v52 = vor.u32 %v11004_v10, %v9477_v9  ;;  %v11142_v9 = vld [vmem:[%s16520_s1 + $0x1718] sm:$0xf0]  ;;  %v9838_v17 = vor.u32 %v11094_v2, %v9837_v1 }
  0xd5   :  { %5611 = vmatpush.bf16.msra.mxu1 %v9514_v24  ;;  %v9682_v24 = vor.u32 %v11055_v4, %v9681_v3  ;;  %v9933_v3 = vld [vmem:[%s16520_s1 + $0x1650] sm:$0xf] }
  0xd6   :  { %5624 = vmatpush.bf16.msra.mxu2 %v9610_v26  ;;  %v9669_v26 = vld [vmem:[%s16520_s1 + $0x1440] sm:$0xf] }
  0xd7   :  { %5637 = vmatpush.bf16.msra.mxu3 %v9706_v39  ;;  %v11097_v39 = vld [vmem:[%s16520_s1 + $0x15b0] sm:$0xf0]  ;;  %v9670_v60 = vor.u32 %v11052_v27, %v9669_v26  ;;  %v9825_v26 = vld [vmem:[%s16520_s1 + $0x1578] sm:$0xf]  ;;  %v11091_v27 = vld [vmem:[%s16520_s1 + $0x1580] sm:$0xf0] }
  0xd8   :  { %5599 = vmatpush.bf16.msra.mxu0 %v9406_v54  ;;  %v9574_v54 = vor.u32 %v11028_v53, %v9573_v15  ;;  %v9850_v61 = vor.u32 %v11097_v39, %v9849_v36  ;;  %v11166_v15 = vld [vmem:[%s16520_s1 + $0x17d8] sm:$0xf0]  ;;  %v12798_v53 = vpack.c.b16 %v1117_v62, %v1117_v62  ;;  %v11115_v36 = vld [vmem:[%s16520_s1 + $0x1640] sm:$0xf0]  ;;  %v10017_v39 = vld [vmem:[%s16520_s1 + $0x16f8] sm:$0xf]  ;;  %v9826_v48 = vor.u32 %v11091_v27, %v9825_v26 }
  0xd9   :  { %5612 = vmatpush.bf16.msra.mxu1 %v9502_v57  ;;  %v11169_v57 = vld [vmem:[%s16520_s1 + $0x17f0] sm:$0xf0]  ;;  %v10101_v62 = vld [vmem:[%s16520_s1 + $0x17a0] sm:$0xf] }
  0xda   :  { %5625 = vmatpush.bf16.msra.mxu2 %v9598_v58  ;;  %v1116_v58 = vunpack.c.l.b16 %v39_v32  ;;  %v10138_v4 = vor.u32 %v11169_v57, %v10137_v56  ;;  %v9921_v32 = vld [vmem:[%s16520_s1 + $0x1638] sm:$0xf]  ;;  %v9909_v56 = vld [vmem:[%s16520_s1 + $0x1620] sm:$0xf]  ;;  %v11157_v26 = vld [vmem:[%s16520_s1 + $0x1790] sm:$0xf0] }
  0xdb   :  { %5638 = vmatpush.bf16.msra.mxu3 %v9694_v63  ;;  %v9946_v63 = vor.u32 %v11121_v47, %v9945_v40  ;;  %v11139_v40 = vld [vmem:[%s16520_s1 + $0x1700] sm:$0xf0]  ;;  %v9922_v50 = vor.u32 %v11115_v36, %v9921_v32  ;;  %v9789_v36 = vld [vmem:[%s16520_s1 + $0x1530] sm:$0xf] }
  0xdc   :  { %5600 = vmatpush.bf16.msra.mxu0 %v9394_v6  ;;  %v11118_v6 = vld [vmem:[%s16520_s1 + $0x1658] sm:$0xf0]  ;;  %v12788_v10 = vpack.c.b16 %v1116_v58, %v1116_v58  ;;  %v11163_v47 = vld [vmem:[%s16520_s1 + $0x17c0] sm:$0xf0]  ;;  %v10018_v51 = vor.u32 %v11139_v40, %v10017_v39  ;;  %v11112_v58 = vld [vmem:[%s16520_s1 + $0x1628] sm:$0xf0] }
  0xdd   :  { %5613 = vmatpush.bf16.msra.mxu1 %v9490_v13  ;;  %v12790_v13 = vpack.c.b16 %v1115_v59, %v1115_v59  ;;  %v9934_v21 = vor.u32 %v11118_v6, %v9933_v3  ;;  %v10005_v59 = vld [vmem:[%s16520_s1 + $0x16e0] sm:$0xf]  ;;  %v9910_v3 = vor.u32 %v11112_v58, %v9909_v56  ;;  %v9801_v6 = vld [vmem:[%s16520_s1 + $0x1548] sm:$0xf]  ;;  %v11082_v39 = vld [vmem:[%s16520_s1 + $0x1538] sm:$0xf0] }
  0xde   :  { %5626 = vmatpush.bf16.msra.mxu2 %v9586_v14  ;;  %v10125_v14 = vld [vmem:[%s16520_s1 + $0x17d0] sm:$0xf] }
  0xdf   :  { %5639 = vmatpush.bf16.msra.mxu3 %v9682_v24  ;;  %v10030_v24 = vor.u32 %v11142_v9, %v10029_v8  ;;  %v10126_v34 = vor.u32 %v11166_v15, %v10125_v14  ;;  %v11085_v8 = vld [vmem:[%s16520_s1 + $0x1550] sm:$0xf0]  ;;  %v9897_v9 = vld [vmem:[%s16520_s1 + $0x1608] sm:$0xf]  ;;  %v9885_v40 = vld [vmem:[%s16520_s1 + $0x15f0] sm:$0xf] }
  0xe0   :  { %5601 = vmatpush.bf16.msra.mxu0 %v9382_v43  ;;  %v10113_v43 = vld [vmem:[%s16520_s1 + $0x17b8] sm:$0xf]  ;;  %v11109_v15 = vld [vmem:[%s16520_s1 + $0x1610] sm:$0xf0]  ;;  %v9802_v27 = vor.u32 %v11085_v8, %v9801_v6  ;;  %v10077_v56 = vld [vmem:[%s16520_s1 + $0x1770] sm:$0xf] }
  0xe1   :  { %5614 = vmatpush.bf16.msra.mxu1 %v9478_v52  ;;  %v9813_v52 = vld [vmem:[%s16520_s1 + $0x1560] sm:$0xf]  ;;  %v10114_v57 = vor.u32 %v11163_v47, %v10113_v43  ;;  %v5408_v2 = vpop.f32.mrf.mxu1  ;;  %v9898_v32 = vor.u32 %v11109_v15, %v9897_v9  ;;  %v9969_v6 = vld [vmem:[%s16520_s1 + $0x1698] sm:$0xf]  ;;  %v11127_v8 = vld [vmem:[%s16520_s1 + $0x16a0] sm:$0xf0] }
  0xe2   :  { %5627 = vmatpush.bf16.msra.mxu2 %v9574_v54  ;;  %v11088_v54 = vld [vmem:[%s16520_s1 + $0x1568] sm:$0xf0]  ;;  %v10065_v9 = vld [vmem:[%s16520_s1 + $0x1758] sm:$0xf] }
  0xe3   :  { %5640 = vmatpush.bf16.msra.mxu3 %v9670_v60  ;;  %5602 = vmatmul.bf16.vlgmr.msra.gmra.mxu0 %v12777_v5  ;;  %v11136_v60 = vld [vmem:[%s16520_s1 + $0x16e8] sm:$0xf0]  ;;  %v9814_v1 = vor.u32 %v11088_v54, %v9813_v52 }
  0xe4   :  { %5646 = vmatpush.bf16.msrb.mxu0 %v9850_v61  ;;  %5615 = vmatmul.bf16.vlgmr.msra.gmra.mxu1 %v12790_v13  ;;  %v5395_v61 = vpop.f32.mrf.mxu0 }
  0xe5   :  { %5659 = vmatpush.bf16.msrb.mxu1 %v9946_v63  ;;  %5628 = vmatmul.bf16.vlgmr.msra.gmra.mxu2 %v12788_v10  ;;  %v11160_v63 = vld [vmem:[%s16520_s1 + $0x17a8] sm:$0xf0] }
  0xe6   :  { %5672 = vmatpush.bf16.msrb.mxu2 %v10042_v0  ;;  %5641 = vmatmul.bf16.vlgmr.msra.gmra.mxu3 %v12798_v53  ;;  %v5396_v0 = vadd.f32 %v5395_v61, %v12688_v55  ;;  %v10102_v55 = vor.u32 %v11160_v63, %v10101_v62 }
  0xe7   :  { %5685 = vmatpush.bf16.msrb.mxu3 %v10138_v4  ;;  %v10006_v4 = vor.u32 %v11136_v60, %v10005_v59  ;;  %v9790_v59 = vor.u32 %v11082_v39, %v9789_v36  ;;  %v40_v36 = vld [vmem:[%s16521_s0 + $0x70] sm:$0xff] }
  0xe8   :  { %5647 = vmatpush.bf16.msrb.mxu0 %v9838_v17  ;;  %v5409_v14 = vadd.f32 %v5408_v2, %v5396_v0  ;;  %v9993_v17 = vld [vmem:[%s16520_s1 + $0x16c8] sm:$0xf]  ;;  %v5421_v47 = vpop.f32.mrf.mxu2  ;;  %v9777_v0 = vld [vmem:[%s16520_s1 + $0x1518] sm:$0xf] }
  0xe9   :  { %5660 = vmatpush.bf16.msrb.mxu1 %v9934_v21  ;;  %v11133_v21 = vld [vmem:[%s16520_s1 + $0x16d0] sm:$0xf0]  ;;  %v5434_v54 = vpop.f32.mrf.mxu3  ;;  %v5410_v60 = vpop.f32.mrf.mxu1  ;;  %v9873_v2 = vld [vmem:[%s16520_s1 + $0x15d8] sm:$0xf] }
  0xea   :  { %5673 = vmatpush.bf16.msrb.mxu2 %v10030_v24  ;;  %v10089_v24 = vld [vmem:[%s16520_s1 + $0x1788] sm:$0xf]  ;;  %v5422_v52 = vadd.f32 %v5421_v47, %v5409_v14  ;;  %v9765_v14 = vld [vmem:[%s16520_s1 + $0x1500] sm:$0xf]  ;;  %v41_v47 = vld [vmem:[%s16521_s0 + $0x78] sm:$0xff]  ;;  %v1118_v60 = vunpack.c.l.b16 %v40_v36 }
  0xeb   :  { %5686 = vmatpush.bf16.msrb.mxu3 %v10126_v34  ;;  %v9994_v34 = vor.u32 %v11133_v21, %v9993_v17  ;;  %v10090_v43 = vor.u32 %v11157_v26, %v10089_v24  ;;  %v11076_v17 = vld [vmem:[%s16520_s1 + $0x1508] sm:$0xf0]  ;;  %v9861_v21 = vld [vmem:[%s16520_s1 + $0x15c0] sm:$0xf] }
  0xec   :  { %5648 = vmatpush.bf16.msrb.mxu0 %v9826_v48  ;;  %v11106_v48 = vld [vmem:[%s16520_s1 + $0x15f8] sm:$0xf0]  ;;  %v5397_v58 = vpop.f32.mrf.mxu0  ;;  %v12901_v61 = vadd.f32 %v5434_v54, %v5422_v52  ;;  %v11100_v24 = vld [vmem:[%s16520_s1 + $0x15c8] sm:$0xf0] }
  0xed   :  { %5661 = vmatpush.bf16.msrb.mxu1 %v9922_v50  ;;  %v9981_v50 = vld [vmem:[%s16520_s1 + $0x16b0] sm:$0xf]  ;;  %v9886_v62 = vor.u32 %v11106_v48, %v9885_v40  ;;  %v10053_v40 = vld [vmem:[%s16520_s1 + $0x1740] sm:$0xf]  ;;  %v10448_v52 = vld [vmem:[%s16520_s1 + $0x16c] sm:$0xf] }
  0xee   :  { %5674 = vmatpush.bf16.msrb.mxu2 %v10018_v51  ;;  %v11130_v51 = vld [vmem:[%s16520_s1 + $0x16b8] sm:$0xf0]  ;;  %v10472_v58 = vld [vmem:[%s16520_s1 + $0x22c] sm:$0xf] }
  0xef   :  { %5687 = vmatpush.bf16.msrb.mxu3 %v10114_v57  ;;  %v11154_v57 = vld [vmem:[%s16520_s1 + $0x1778] sm:$0xf0]  ;;  %v9982_v63 = vor.u32 %v11130_v51, %v9981_v50  ;;  %v10424_v50 = vld [vmem:[%s16520_s1 + $0xac] sm:$0xf]  ;;  %v7163_v51 = vld [vmem:[%s16520_s1 + $0xb4] sm:$0xf0] }
  0xf0   :  { %5649 = vmatpush.bf16.msrb.mxu0 %v9814_v1  ;;  %v11079_v1 = vld [vmem:[%s16520_s1 + $0x1520] sm:$0xf0]  ;;  %v5423_v48 = vpop.f32.mrf.mxu2 }
  0xf1   :  { %5662 = vmatpush.bf16.msrb.mxu1 %v9910_v3  ;;  %v10078_v3 = vor.u32 %v11154_v57, %v10077_v56  ;;  %v9778_v15 = vor.u32 %v11079_v1, %v9777_v0  ;;  %v5436_v54 = vpop.f32.mrf.mxu3  ;;  %v9766_v56 = vor.u32 %v11076_v17, %v9765_v14  ;;  %v7259_v57 = vld [vmem:[%s16520_s1 + $0x174] sm:$0xf0]  ;;  %v10496_v0 = vld [vmem:[%s16520_s1 + $0x2ec] sm:$0xf]  ;;  %v10421_v14 = vld [vmem:[%s16520_s1 + $0x94] sm:$0xf] }
  0xf2   :  { %5675 = vmatpush.bf16.msrb.mxu2 %v10006_v4  ;;  %v11103_v4 = vld [vmem:[%s16520_s1 + $0x15e0] sm:$0xf0]  ;;  %v7451_v1 = vld [vmem:[%s16520_s1 + $0x2f4] sm:$0xf0]  ;;  %v10445_v17 = vld [vmem:[%s16520_s1 + $0x154] sm:$0xf] }
  0xf3   :  { %5688 = vmatpush.bf16.msrb.mxu3 %v10102_v55  ;;  %v11151_v55 = vld [vmem:[%s16520_s1 + $0x1760] sm:$0xf0]  ;;  %v9874_v26 = vor.u32 %v11103_v4, %v9873_v2  ;;  %v1120_v2 = vunpack.c.l.b16 %v41_v47  ;;  %v10442_v54 = vld [vmem:[%s16520_s1 + $0x13c] sm:$0xf] }
  0xf4   :  { %5650 = vmatpush.bf16.msrb.mxu0 %v9802_v27  ;;  %v9970_v27 = vor.u32 %v11127_v8, %v9969_v6  ;;  %v10066_v39 = vor.u32 %v11151_v55, %v10065_v9  ;;  %v7166_v6 = vor.u32 %v10424_v50, %v7163_v51  ;;  %v1121_v8 = vunpack.c.h.b16 %v41_v47  ;;  %v10418_v51 = vld [vmem:[%s16520_s1 + $0x7c] sm:$0xf] }
  0xf5   :  { %5663 = vmatpush.bf16.msrb.mxu1 %v9898_v32  ;;  %v9957_v32 = vld [vmem:[%s16520_s1 + $0x1680] sm:$0xf]  ;;  %v7262_v9 = vor.u32 %v10448_v52, %v7259_v57  ;;  %v7139_v52 = vld [vmem:[%s16520_s1 + $0x84] sm:$0xf0] }
  0xf6   :  { %5676 = vmatpush.bf16.msrb.mxu2 %v9994_v34  ;;  %v11124_v34 = vld [vmem:[%s16520_s1 + $0x1688] sm:$0xf0]  ;;  %v7235_v57 = vld [vmem:[%s16520_s1 + $0x144] sm:$0xf0] }
  0xf7   :  { %5689 = vmatpush.bf16.msrb.mxu3 %v10090_v43  ;;  %v11148_v43 = vld [vmem:[%s16520_s1 + $0x1748] sm:$0xf0] }
  0xf8   :  { %5651 = vmatpush.bf16.msrb.mxu0 %v9790_v59  ;;  %v7355_v59 = vld [vmem:[%s16520_s1 + $0x234] sm:$0xf0]  ;;  %v10054_v4 = vor.u32 %v11148_v43, %v10053_v40  ;;  %v7439_v40 = vld [vmem:[%s16520_s1 + $0x2dc] sm:$0xf0]  ;;  %v13011_v43 = vpack.c.b16 %v1121_v8, %v1121_v8  ;;  %v7223_v8 = vld [vmem:[%s16520_s1 + $0x12c] sm:$0xf0] }
  0xf9   :  { %5664 = vmatpush.bf16.msrb.mxu1 %v9886_v62  ;;  %v9862_v62 = vor.u32 %v11100_v24, %v9861_v21  ;;  %v7358_v55 = vor.u32 %v10472_v58, %v7355_v59  ;;  %v7454_v21 = vor.u32 %v10496_v0, %v7451_v1  ;;  %v12990_v24 = vpack.c.b16 %v1118_v60, %v1118_v60  ;;  %v10466_v58 = vld [vmem:[%s16520_s1 + $0x1fc] sm:$0xf]  ;;  %v7331_v59 = vld [vmem:[%s16520_s1 + $0x204] sm:$0xf0] }
  0xfa   :  { %5677 = vmatpush.bf16.msrb.mxu2 %v9982_v63  ;;  %v9958_v63 = vor.u32 %v11124_v34, %v9957_v32  ;;  %v7343_v32 = vld [vmem:[%s16520_s1 + $0x21c] sm:$0xf0]  ;;  %v13001_v34 = vpack.c.b16 %v1120_v2, %v1120_v2  ;;  %v10490_v60 = vld [vmem:[%s16520_s1 + $0x2bc] sm:$0xf]  ;;  %v7238_v0 = vor.u32 %v10442_v54, %v7235_v57  ;;  %v7334_v1 = vor.u32 %v10466_v58, %v7331_v59  ;;  %v10415_v2 = vld [vmem:[%s16520_s1 + $0x64] sm:$0xf] }
  0xfb   :  { %5690 = vmatpush.bf16.msrb.mxu3 %v10078_v3  ;;  %v1119_v3 = vunpack.c.h.b16 %v40_v36  ;;  %v7307_v54 = vld [vmem:[%s16520_s1 + $0x1d4] sm:$0xf0] }
  0xfc   :  { %5652 = vmatpush.bf16.msrb.mxu0 %v9778_v15  ;;  %v7151_v15 = vld [vmem:[%s16520_s1 + $0x9c] sm:$0xf0]  ;;  %v7403_v57 = vld [vmem:[%s16520_s1 + $0x294] sm:$0xf0] }
  0xfd   :  { %5665 = vmatpush.bf16.msrb.mxu1 %v9874_v26  ;;  %v7247_v26 = vld [vmem:[%s16520_s1 + $0x15c] sm:$0xf0]  ;;  %v13003_v36 = vpack.c.b16 %v1119_v3, %v1119_v3  ;;  %v7154_v47 = vor.u32 %v10421_v14, %v7151_v15  ;;  %v7127_v3 = vld [vmem:[%s16520_s1 + $0x6c] sm:$0xf0]  ;;  %v10487_v15 = vld [vmem:[%s16520_s1 + $0x2a4] sm:$0xf] }
  0xfe   :  { %5678 = vmatpush.bf16.msrb.mxu2 %v9970_v27  ;;  %v10469_v27 = vld [vmem:[%s16520_s1 + $0x214] sm:$0xf]  ;;  %v7250_v48 = vor.u32 %v10445_v17, %v7247_v26  ;;  %v7415_v17 = vld [vmem:[%s16520_s1 + $0x2ac] sm:$0xf0]  ;;  %v7130_v26 = vor.u32 %v10415_v2, %v7127_v3  ;;  %v7199_v3 = vld [vmem:[%s16520_s1 + $0xfc] sm:$0xf0] }
  0xff   :  { %5691 = vmatpush.bf16.msrb.mxu3 %v10066_v39  ;;  %v10493_v39 = vld [vmem:[%s16520_s1 + $0x2d4] sm:$0xf]  ;;  %v7346_v50 = vor.u32 %v10469_v27, %v7343_v32 }
 0x100   :  { %5653 = vmatpush.bf16.msrb.mxu0 %v9766_v56  ;;  %v7442_v56 = vor.u32 %v10493_v39, %v7439_v40  ;;  %v5447_v14 = vpop.f32.mrf.mxu0  ;;  %v10412_v40 = vld [vmem:[%s16520_s1 + $0x4c] sm:$0xf] }
 0x101   :  { %5666 = vmatpush.bf16.msrb.mxu1 %v9862_v62  ;;  %v7427_v62 = vld [vmem:[%s16520_s1 + $0x2c4] sm:$0xf0]  ;;  %v5460_v27 = vpop.f32.mrf.mxu1 }
 0x102   :  { %5679 = vmatpush.bf16.msrb.mxu2 %v9958_v63  ;;  %v7142_v63 = vor.u32 %v10418_v51, %v7139_v52  ;;  %v7211_v51 = vld [vmem:[%s16520_s1 + $0x114] sm:$0xf0]  ;;  %v10460_v52 = vld [vmem:[%s16520_s1 + $0x1cc] sm:$0xf] }
 0x103   :  { %5692 = vmatpush.bf16.msrb.mxu3 %v10054_v4  ;;  %5654 = vmatmul.bf16.vlgmr.msrb.gmra.mxu0 %v12990_v24  ;;  %v10439_v4 = vld [vmem:[%s16520_s1 + $0x124] sm:$0xf] }
 0x104   :  { %5698 = vmatpush.bf16.msra.mxu0 %v7166_v6  ;;  %5667 = vmatmul.bf16.vlgmr.msrb.gmra.mxu1 %v13003_v36  ;;  %v7430_v6 = vor.u32 %v10490_v60, %v7427_v62  ;;  %v7226_v32 = vor.u32 %v10439_v4, %v7223_v8  ;;  %v7310_v60 = vor.u32 %v10460_v52, %v7307_v54  ;;  %v10409_v62 = vld [vmem:[%s16520_s1 + $0x34] sm:$0xf]  ;;  %v10478_v52 = vld [vmem:[%s16520_s1 + $0x25c] sm:$0xf]  ;;  %v7379_v54 = vld [vmem:[%s16520_s1 + $0x264] sm:$0xf0] }
 0x105   :  { %5711 = vmatpush.bf16.msra.mxu1 %v7262_v9  ;;  %5680 = vmatmul.bf16.vlgmr.msrb.gmra.mxu2 %v13001_v34  ;;  %v10463_v9 = vld [vmem:[%s16520_s1 + $0x1e4] sm:$0xf]  ;;  %v10457_v4 = vld [vmem:[%s16520_s1 + $0x1b4] sm:$0xf] }
 0x106   :  { %5724 = vmatpush.bf16.msra.mxu2 %v7358_v55  ;;  %5693 = vmatmul.bf16.vlgmr.msrb.gmra.mxu3 %v13011_v43  ;;  %v7319_v55 = vld [vmem:[%s16520_s1 + $0x1ec] sm:$0xf0] }
 0x107   :  { %5737 = vmatpush.bf16.msra.mxu3 %v7454_v21  ;;  %v5448_v21 = vadd.f32 %v5447_v14, %v12901_v61  ;;  %v7322_v39 = vor.u32 %v10463_v9, %v7319_v55  ;;  %v7418_v61 = vor.u32 %v10487_v15, %v7415_v17  ;;  %v10481_v55 = vld [vmem:[%s16520_s1 + $0x274] sm:$0xf]  ;;  %v7391_v14 = vld [vmem:[%s16520_s1 + $0x27c] sm:$0xf0] }
 0x108   :  { %5699 = vmatpush.bf16.msra.mxu0 %v7154_v47  ;;  %v7115_v47 = vld [vmem:[%s16520_s1 + $0x54] sm:$0xf0]  ;;  %v5473_v2 = vpop.f32.mrf.mxu2  ;;  %v5449_v15 = vpop.f32.mrf.mxu0 }
 0x109   :  { %5712 = vmatpush.bf16.msra.mxu1 %v7250_v48  ;;  %v10436_v48 = vld [vmem:[%s16520_s1 + $0x10c] sm:$0xf]  ;;  %v7118_v58 = vor.u32 %v10412_v40, %v7115_v47  ;;  %v5486_v9 = vpop.f32.mrf.mxu3  ;;  %v7091_v40 = vld [vmem:[%s16520_s1 + $0x24] sm:$0xf0]  ;;  %v10430_v47 = vld [vmem:[%s16520_s1 + $0xdc] sm:$0xf] }
 0x10a   :  { %5725 = vmatpush.bf16.msra.mxu2 %v7346_v50  ;;  %v5461_v50 = vadd.f32 %v5460_v27, %v5448_v21  ;;  %v7214_v59 = vor.u32 %v10436_v48, %v7211_v51  ;;  %v5462_v21 = vpop.f32.mrf.mxu1  ;;  %v7394_v48 = vor.u32 %v10481_v55, %v7391_v14  ;;  %v7283_v51 = vld [vmem:[%s16520_s1 + $0x1a4] sm:$0xf0]  ;;  %v10544_v55 = vld [vmem:[%s16520_s1 + $0x46c] sm:$0xf] }
 0x10b   :  { %5738 = vmatpush.bf16.msra.mxu3 %v7442_v56  ;;  %v10484_v56 = vld [vmem:[%s16520_s1 + $0x28c] sm:$0xf] }
 0x10c   :  { %5700 = vmatpush.bf16.msra.mxu0 %v7142_v63  ;;  %v7103_v63 = vld [vmem:[%s16520_s1 + $0x3c] sm:$0xf0]  ;;  %v5474_v8 = vadd.f32 %v5473_v2, %v5461_v50  ;;  %v10454_v50 = vld [vmem:[%s16520_s1 + $0x19c] sm:$0xf]  ;;  %v7271_v2 = vld [vmem:[%s16520_s1 + $0x18c] sm:$0xf0] }
 0x10d   :  { %5713 = vmatpush.bf16.msra.mxu1 %v7238_v0  ;;  %v10433_v0 = vld [vmem:[%s16520_s1 + $0xf4] sm:$0xf]  ;;  %v7106_v17 = vor.u32 %v10409_v62, %v7103_v63  ;;  %v10427_v62 = vld [vmem:[%s16520_s1 + $0xc4] sm:$0xf]  ;;  %v7175_v63 = vld [vmem:[%s16520_s1 + $0xcc] sm:$0xf0] }
 0x10e   :  { %5726 = vmatpush.bf16.msra.mxu2 %v7334_v1  ;;  %v7406_v1 = vor.u32 %v10484_v56, %v7403_v57  ;;  %v7202_v27 = vor.u32 %v10433_v0, %v7199_v3  ;;  %v10403_v57 = vld [vmem:[%s16520_s1 + $0x4] sm:$0xf]  ;;  %v10568_v21 = vld [vmem:[%s16520_s1 + $0x52c] sm:$0xf] }
 0x10f   :  { %5739 = vmatpush.bf16.msra.mxu3 %v7430_v6  ;;  %v7295_v6 = vld [vmem:[%s16520_s1 + $0x1bc] sm:$0xf0]  ;;  %v10451_v0 = vld [vmem:[%s16520_s1 + $0x184] sm:$0xf] }
 0x110   :  { %5701 = vmatpush.bf16.msra.mxu0 %v7130_v26  ;;  %v13114_v26 = vadd.f32 %v5486_v9, %v5474_v8  ;;  %v10475_v3 = vld [vmem:[%s16520_s1 + $0x244] sm:$0xf]  ;;  %v10520_v8 = vld [vmem:[%s16520_s1 + $0x3ac] sm:$0xf]  ;;  %v7547_v9 = vld [vmem:[%s16520_s1 + $0x3b4] sm:$0xf0] }
 0x111   :  { %5714 = vmatpush.bf16.msra.mxu1 %v7226_v32  ;;  %v7298_v32 = vor.u32 %v10457_v4, %v7295_v6  ;;  %v7367_v4 = vld [vmem:[%s16520_s1 + $0x24c] sm:$0xf0]  ;;  %v5475_v6 = vpop.f32.mrf.mxu2  ;;  %v5488_v14 = vpop.f32.mrf.mxu3 }
 0x112   :  { %5727 = vmatpush.bf16.msra.mxu2 %v7322_v39  ;;  %v10406_v39 = vld [vmem:[%s16520_s1 + $0x1c] sm:$0xf]  ;;  %v7715_v14 = vld [vmem:[%s16520_s1 + $0x504] sm:$0xf0] }
 0x113   :  { %5740 = vmatpush.bf16.msra.mxu3 %v7418_v61  ;;  %v7187_v61 = vld [vmem:[%s16520_s1 + $0xe4] sm:$0xf0]  ;;  %v7094_v56 = vor.u32 %v10406_v39, %v7091_v40  ;;  %v7274_v39 = vor.u32 %v10451_v0, %v7271_v2  ;;  %v10592_v40 = vld [vmem:[%s16520_s1 + $0x5ec] sm:$0xf]  ;;  %v10538_v6 = vld [vmem:[%s16520_s1 + $0x43c] sm:$0xf] }
 0x114   :  { %5702 = vmatpush.bf16.msra.mxu0 %v7118_v58  ;;  %v7079_v58 = vld [vmem:[%s16520_s1 + $0xc] sm:$0xf0] }
 0x115   :  { %5715 = vmatpush.bf16.msra.mxu1 %v7214_v59  ;;  %v7190_v59 = vor.u32 %v10430_v47, %v7187_v61  ;;  %v7082_v15 = vor.u32 %v10403_v57, %v7079_v58  ;;  %v7835_v47 = vld [vmem:[%s16520_s1 + $0x5f4] sm:$0xf0]  ;;  %v7550_v61 = vor.u32 %v10520_v8, %v7547_v9  ;;  %v7631_v58 = vld [vmem:[%s16520_s1 + $0x45c] sm:$0xf0]  ;;  %v7619_v9 = vld [vmem:[%s16520_s1 + $0x444] sm:$0xf0] }
 0x116   :  { %5728 = vmatpush.bf16.msra.mxu2 %v7310_v60  ;;  %v7286_v60 = vor.u32 %v10454_v50, %v7283_v51  ;;  %v7838_v57 = vor.u32 %v10592_v40, %v7835_v47  ;;  %v7511_v40 = vld [vmem:[%s16520_s1 + $0x36c] sm:$0xf0]  ;;  %v10535_v47 = vld [vmem:[%s16520_s1 + $0x424] sm:$0xf] }
 0x117   :  { %5741 = vmatpush.bf16.msra.mxu3 %v7406_v1  ;;  %v7382_v1 = vor.u32 %v10478_v52, %v7379_v54  ;;  %v10517_v52 = vld [vmem:[%s16520_s1 + $0x394] sm:$0xf]  ;;  %v7535_v54 = vld [vmem:[%s16520_s1 + $0x39c] sm:$0xf0] }
 0x118   :  { %5703 = vmatpush.bf16.msra.mxu0 %v7106_v17  ;;  %v7643_v17 = vld [vmem:[%s16520_s1 + $0x474] sm:$0xf0]  ;;  %v7538_v0 = vor.u32 %v10517_v52, %v7535_v54  ;;  %v10583_v54 = vld [vmem:[%s16520_s1 + $0x5a4] sm:$0xf] }
 0x119   :  { %5716 = vmatpush.bf16.msra.mxu1 %v7202_v27  ;;  %v7739_v27 = vld [vmem:[%s16520_s1 + $0x534] sm:$0xf0]  ;;  %v7646_v50 = vor.u32 %v10544_v55, %v7643_v17  ;;  %v10562_v55 = vld [vmem:[%s16520_s1 + $0x4fc] sm:$0xf]  ;;  %v7811_v17 = vld [vmem:[%s16520_s1 + $0x5c4] sm:$0xf0] }
 0x11a   :  { %5729 = vmatpush.bf16.msra.mxu2 %v7298_v32  ;;  %v7178_v32 = vor.u32 %v10427_v62, %v7175_v63  ;;  %v7742_v51 = vor.u32 %v10568_v21, %v7739_v27  ;;  %v10589_v62 = vld [vmem:[%s16520_s1 + $0x5d4] sm:$0xf]  ;;  %v7823_v63 = vld [vmem:[%s16520_s1 + $0x5dc] sm:$0xf0]  ;;  %v7622_v27 = vor.u32 %v10538_v6, %v7619_v9  ;;  %v7691_v6 = vld [vmem:[%s16520_s1 + $0x4d4] sm:$0xf0] }
 0x11b   :  { %5742 = vmatpush.bf16.msra.mxu3 %v7394_v48  ;;  %v7370_v48 = vor.u32 %v10475_v3, %v7367_v4  ;;  %v10514_v3 = vld [vmem:[%s16520_s1 + $0x37c] sm:$0xf]  ;;  %v7523_v4 = vld [vmem:[%s16520_s1 + $0x384] sm:$0xf0]  ;;  %v7826_v8 = vor.u32 %v10589_v62, %v7823_v63  ;;  %v10508_v63 = vld [vmem:[%s16520_s1 + $0x34c] sm:$0xf] }
 0x11c   :  { %5704 = vmatpush.bf16.msra.mxu0 %v7094_v56  ;;  %v10541_v56 = vld [vmem:[%s16520_s1 + $0x454] sm:$0xf]  ;;  %v7526_v21 = vor.u32 %v10514_v3, %v7523_v4  ;;  %v7595_v3 = vld [vmem:[%s16520_s1 + $0x414] sm:$0xf0]  ;;  %v10556_v4 = vld [vmem:[%s16520_s1 + $0x4cc] sm:$0xf] }
 0x11d   :  { %5717 = vmatpush.bf16.msra.mxu1 %v7190_v59  ;;  %v10565_v59 = vld [vmem:[%s16520_s1 + $0x514] sm:$0xf]  ;;  %v7787_v9 = vld [vmem:[%s16520_s1 + $0x594] sm:$0xf0] }
 0x11e   :  { %5730 = vmatpush.bf16.msra.mxu2 %v7286_v60  ;;  %v7727_v60 = vld [vmem:[%s16520_s1 + $0x51c] sm:$0xf0] }
 0x11f   :  { %5743 = vmatpush.bf16.msra.mxu3 %v7382_v1  ;;  %v7634_v1 = vor.u32 %v10541_v56, %v7631_v58  ;;  %v7730_v2 = vor.u32 %v10565_v59, %v7727_v60  ;;  %v7799_v56 = vld [vmem:[%s16520_s1 + $0x5ac] sm:$0xf0] }
 0x120   :  { %5705 = vmatpush.bf16.msra.mxu0 %v7082_v15  ;;  %v10586_v15 = vld [vmem:[%s16520_s1 + $0x5bc] sm:$0xf]  ;;  %v5499_v52 = vpop.f32.mrf.mxu0 }
 0x121   :  { %5718 = vmatpush.bf16.msra.mxu1 %v7178_v32  ;;  %v7718_v32 = vor.u32 %v10562_v55, %v7715_v14  ;;  %v5512_v59 = vpop.f32.mrf.mxu1 }
 0x122   :  { %5731 = vmatpush.bf16.msra.mxu2 %v7274_v39  ;;  %v10511_v39 = vld [vmem:[%s16520_s1 + $0x364] sm:$0xf] }
 0x123   :  { %5744 = vmatpush.bf16.msra.mxu3 %v7370_v48  ;;  %5706 = vmatmul.bf16.vlgmr.msra.gmra.mxu0 %v11574_v19  ;;  %v7814_v48 = vor.u32 %v10586_v15, %v7811_v17  ;;  %v7514_v58 = vor.u32 %v10511_v39, %v7511_v40  ;;  %v7694_v15 = vor.u32 %v10556_v4, %v7691_v6  ;;  %v10505_v17 = vld [vmem:[%s16520_s1 + $0x334] sm:$0xf]  ;;  %v7583_v40 = vld [vmem:[%s16520_s1 + $0x3fc] sm:$0xf0]  ;;  %v10574_v4 = vld [vmem:[%s16520_s1 + $0x55c] sm:$0xf] }
 0x124   :  { %5750 = vmatpush.bf16.msrb.mxu0 %v7550_v61  ;;  %5719 = vmatmul.bf16.vlgmr.msra.gmra.mxu1 %v11578_v22  ;;  %v7607_v61 = vld [vmem:[%s16520_s1 + $0x42c] sm:$0xf0]  ;;  %v7763_v6 = vld [vmem:[%s16520_s1 + $0x564] sm:$0xf0] }
 0x125   :  { %5763 = vmatpush.bf16.msrb.mxu1 %v7646_v50  ;;  %5732 = vmatmul.bf16.vlgmr.msra.gmra.mxu2 %v11572_v18  ;;  %v10559_v50 = vld [vmem:[%s16520_s1 + $0x4e4] sm:$0xf]  ;;  %v7610_v60 = vor.u32 %v10535_v47, %v7607_v61  ;;  %v10553_v47 = vld [vmem:[%s16520_s1 + $0x4b4] sm:$0xf] }
 0x126   :  { %5776 = vmatpush.bf16.msrb.mxu2 %v7742_v51  ;;  %5745 = vmatmul.bf16.vlgmr.msra.gmra.mxu3 %v11576_v20  ;;  %v7703_v51 = vld [vmem:[%s16520_s1 + $0x4ec] sm:$0xf0] }
 0x127   :  { %5789 = vmatpush.bf16.msrb.mxu3 %v7838_v57  ;;  %v5500_v57 = vadd.f32 %v5499_v52, %v13114_v26  ;;  %v7706_v62 = vor.u32 %v10559_v50, %v7703_v51  ;;  %v7802_v26 = vor.u32 %v10583_v54, %v7799_v56  ;;  %v10577_v51 = vld [vmem:[%s16520_s1 + $0x574] sm:$0xf]  ;;  %v7775_v52 = vld [vmem:[%s16520_s1 + $0x57c] sm:$0xf0] }
 0x128   :  { %5751 = vmatpush.bf16.msrb.mxu0 %v7538_v0  ;;  %v7499_v0 = vld [vmem:[%s16520_s1 + $0x354] sm:$0xf0]  ;;  %v5525_v39 = vpop.f32.mrf.mxu2  ;;  %v5501_v54 = vpop.f32.mrf.mxu0 }
 0x129   :  { %5764 = vmatpush.bf16.msrb.mxu1 %v7634_v1  ;;  %v10532_v1 = vld [vmem:[%s16520_s1 + $0x40c] sm:$0xf]  ;;  %v7502_v55 = vor.u32 %v10508_v63, %v7499_v0  ;;  %v5538_v50 = vpop.f32.mrf.mxu3  ;;  %v7475_v63 = vld [vmem:[%s16520_s1 + $0x324] sm:$0xf0]  ;;  %v10526_v0 = vld [vmem:[%s16520_s1 + $0x3dc] sm:$0xf] }
 0x12a   :  { %5777 = vmatpush.bf16.msrb.mxu2 %v7730_v2  ;;  %v5513_v2 = vadd.f32 %v5512_v59, %v5500_v57  ;;  %v7598_v14 = vor.u32 %v10532_v1, %v7595_v3  ;;  %v5514_v57 = vpop.f32.mrf.mxu1  ;;  %v7778_v1 = vor.u32 %v10577_v51, %v7775_v52  ;;  %v7667_v3 = vld [vmem:[%s16520_s1 + $0x4a4] sm:$0xf0]  ;;  %v10640_v51 = vld [vmem:[%s16520_s1 + $0x76c] sm:$0xf] }
 0x12b   :  { %5790 = vmatpush.bf16.msrb.mxu3 %v7826_v8  ;;  %v10580_v8 = vld [vmem:[%s16520_s1 + $0x58c] sm:$0xf] }
 0x12c   :  { %5752 = vmatpush.bf16.msrb.mxu0 %v7526_v21  ;;  %v7487_v21 = vld [vmem:[%s16520_s1 + $0x33c] sm:$0xf0]  ;;  %v5526_v61 = vadd.f32 %v5525_v39, %v5513_v2  ;;  %v10550_v2 = vld [vmem:[%s16520_s1 + $0x49c] sm:$0xf]  ;;  %v7655_v39 = vld [vmem:[%s16520_s1 + $0x48c] sm:$0xf0] }
 0x12d   :  { %5765 = vmatpush.bf16.msrb.mxu1 %v7622_v27  ;;  %v10529_v27 = vld [vmem:[%s16520_s1 + $0x3f4] sm:$0xf]  ;;  %v7490_v56 = vor.u32 %v10505_v17, %v7487_v21  ;;  %v10523_v17 = vld [vmem:[%s16520_s1 + $0x3c4] sm:$0xf]  ;;  %v7559_v21 = vld [vmem:[%s16520_s1 + $0x3cc] sm:$0xf0] }
 0x12e   :  { %5778 = vmatpush.bf16.msrb.mxu2 %v7718_v32  ;;  %v7790_v32 = vor.u32 %v10580_v8, %v7787_v9  ;;  %v7586_v59 = vor.u32 %v10529_v27, %v7583_v40  ;;  %v10499_v9 = vld [vmem:[%s16520_s1 + $0x304] sm:$0xf]  ;;  %v10664_v57 = vld [vmem:[%s16520_s1 + $0x82c] sm:$0xf] }
 0x12f   :  { %5791 = vmatpush.bf16.msrb.mxu3 %v7814_v48  ;;  %v7679_v48 = vld [vmem:[%s16520_s1 + $0x4bc] sm:$0xf0]  ;;  %v10547_v27 = vld [vmem:[%s16520_s1 + $0x484] sm:$0xf] }
 0x130   :  { %5753 = vmatpush.bf16.msrb.mxu0 %v7514_v58  ;;  %v13313_v58 = vadd.f32 %v5538_v50, %v5526_v61  ;;  %v10571_v40 = vld [vmem:[%s16520_s1 + $0x544] sm:$0xf]  ;;  %v10616_v61 = vld [vmem:[%s16520_s1 + $0x6ac] sm:$0xf]  ;;  %v7931_v50 = vld [vmem:[%s16520_s1 + $0x6b4] sm:$0xf0] }
 0x131   :  { %5766 = vmatpush.bf16.msrb.mxu1 %v7610_v60  ;;  %v7682_v60 = vor.u32 %v10553_v47, %v7679_v48  ;;  %v7751_v47 = vld [vmem:[%s16520_s1 + $0x54c] sm:$0xf0]  ;;  %v5527_v48 = vpop.f32.mrf.mxu2  ;;  %v5540_v52 = vpop.f32.mrf.mxu3 }
 0x132   :  { %5779 = vmatpush.bf16.msrb.mxu2 %v7706_v62  ;;  %v10502_v62 = vld [vmem:[%s16520_s1 + $0x31c] sm:$0xf]  ;;  %v8099_v52 = vld [vmem:[%s16520_s1 + $0x804] sm:$0xf0] }
 0x133   :  { %5792 = vmatpush.bf16.msrb.mxu3 %v7802_v26  ;;  %v7571_v26 = vld [vmem:[%s16520_s1 + $0x3e4] sm:$0xf0]  ;;  %v7478_v8 = vor.u32 %v10502_v62, %v7475_v63  ;;  %v7658_v62 = vor.u32 %v10547_v27, %v7655_v39  ;;  %v10688_v63 = vld [vmem:[%s16520_s1 + $0x8ec] sm:$0xf]  ;;  %v10634_v48 = vld [vmem:[%s16520_s1 + $0x73c] sm:$0xf] }
 0x134   :  { %5754 = vmatpush.bf16.msrb.mxu0 %v7502_v55  ;;  %v7463_v55 = vld [vmem:[%s16520_s1 + $0x30c] sm:$0xf0] }
 0x135   :  { %5767 = vmatpush.bf16.msrb.mxu1 %v7598_v14  ;;  %v7574_v14 = vor.u32 %v10526_v0, %v7571_v26  ;;  %v7466_v54 = vor.u32 %v10499_v9, %v7463_v55  ;;  %v8219_v0 = vld [vmem:[%s16520_s1 + $0x8f4] sm:$0xf0]  ;;  %v7934_v26 = vor.u32 %v10616_v61, %v7931_v50  ;;  %v8015_v55 = vld [vmem:[%s16520_s1 + $0x75c] sm:$0xf0]  ;;  %v8003_v50 = vld [vmem:[%s16520_s1 + $0x744] sm:$0xf0] }
 0x136   :  { %5780 = vmatpush.bf16.msrb.mxu2 %v7694_v15  ;;  %v7670_v15 = vor.u32 %v10550_v2, %v7667_v3  ;;  %v8222_v9 = vor.u32 %v10688_v63, %v8219_v0  ;;  %v7895_v63 = vld [vmem:[%s16520_s1 + $0x66c] sm:$0xf0]  ;;  %v10631_v0 = vld [vmem:[%s16520_s1 + $0x724] sm:$0xf] }
 0x137   :  { %5793 = vmatpush.bf16.msrb.mxu3 %v7790_v32  ;;  %v7766_v32 = vor.u32 %v10574_v4, %v7763_v6  ;;  %v10613_v4 = vld [vmem:[%s16520_s1 + $0x694] sm:$0xf]  ;;  %v7919_v6 = vld [vmem:[%s16520_s1 + $0x69c] sm:$0xf0] }
 0x138   :  { %5755 = vmatpush.bf16.msrb.mxu0 %v7490_v56  ;;  %v8027_v56 = vld [vmem:[%s16520_s1 + $0x774] sm:$0xf0]  ;;  %v7922_v27 = vor.u32 %v10613_v4, %v7919_v6  ;;  %v10679_v6 = vld [vmem:[%s16520_s1 + $0x8a4] sm:$0xf] }
 0x139   :  { %5768 = vmatpush.bf16.msrb.mxu1 %v7586_v59  ;;  %v8123_v59 = vld [vmem:[%s16520_s1 + $0x834] sm:$0xf0]  ;;  %v8030_v2 = vor.u32 %v10640_v51, %v8027_v56  ;;  %v10658_v51 = vld [vmem:[%s16520_s1 + $0x7fc] sm:$0xf]  ;;  %v8195_v56 = vld [vmem:[%s16520_s1 + $0x8c4] sm:$0xf0] }
 0x13a   :  { %5781 = vmatpush.bf16.msrb.mxu2 %v7682_v60  ;;  %v7562_v60 = vor.u32 %v10523_v17, %v7559_v21  ;;  %v8126_v3 = vor.u32 %v10664_v57, %v8123_v59  ;;  %v10685_v17 = vld [vmem:[%s16520_s1 + $0x8d4] sm:$0xf]  ;;  %v8207_v21 = vld [vmem:[%s16520_s1 + $0x8dc] sm:$0xf0]  ;;  %v8006_v59 = vor.u32 %v10634_v48, %v8003_v50  ;;  %v8075_v48 = vld [vmem:[%s16520_s1 + $0x7d4] sm:$0xf0] }
 0x13b   :  { %5794 = vmatpush.bf16.msrb.mxu3 %v7778_v1  ;;  %v7754_v1 = vor.u32 %v10571_v40, %v7751_v47  ;;  %v10610_v40 = vld [vmem:[%s16520_s1 + $0x67c] sm:$0xf]  ;;  %v7907_v47 = vld [vmem:[%s16520_s1 + $0x684] sm:$0xf0]  ;;  %v8210_v61 = vor.u32 %v10685_v17, %v8207_v21  ;;  %v10604_v21 = vld [vmem:[%s16520_s1 + $0x64c] sm:$0xf] }
 0x13c   :  { %5756 = vmatpush.bf16.msrb.mxu0 %v7478_v8  ;;  %v10637_v8 = vld [vmem:[%s16520_s1 + $0x754] sm:$0xf]  ;;  %v7910_v57 = vor.u32 %v10610_v40, %v7907_v47  ;;  %v7979_v40 = vld [vmem:[%s16520_s1 + $0x714] sm:$0xf0]  ;;  %v10652_v47 = vld [vmem:[%s16520_s1 + $0x7cc] sm:$0xf] }
 0x13d   :  { %5769 = vmatpush.bf16.msrb.mxu1 %v7574_v14  ;;  %v10661_v14 = vld [vmem:[%s16520_s1 + $0x814] sm:$0xf]  ;;  %v8171_v50 = vld [vmem:[%s16520_s1 + $0x894] sm:$0xf0] }
 0x13e   :  { %5782 = vmatpush.bf16.msrb.mxu2 %v7670_v15  ;;  %v8111_v15 = vld [vmem:[%s16520_s1 + $0x81c] sm:$0xf0] }
 0x13f   :  { %5795 = vmatpush.bf16.msrb.mxu3 %v7766_v32  ;;  %v8018_v32 = vor.u32 %v10637_v8, %v8015_v55  ;;  %v8114_v39 = vor.u32 %v10661_v14, %v8111_v15  ;;  %v8183_v8 = vld [vmem:[%s16520_s1 + $0x8ac] sm:$0xf0] }
 0x140   :  { %5757 = vmatpush.bf16.msrb.mxu0 %v7466_v54  ;;  %v10682_v54 = vld [vmem:[%s16520_s1 + $0x8bc] sm:$0xf]  ;;  %v5551_v4 = vpop.f32.mrf.mxu0 }
 0x141   :  { %5770 = vmatpush.bf16.msrb.mxu1 %v7562_v60  ;;  %v8102_v60 = vor.u32 %v10658_v51, %v8099_v52  ;;  %v5564_v14 = vpop.f32.mrf.mxu1 }
 0x142   :  { %5783 = vmatpush.bf16.msrb.mxu2 %v7658_v62  ;;  %v10607_v62 = vld [vmem:[%s16520_s1 + $0x664] sm:$0xf] }
 0x143   :  { %5796 = vmatpush.bf16.msrb.mxu3 %v7754_v1  ;;  %5758 = vmatmul.bf16.vlgmr.msrb.gmra.mxu0 %v11736_v41  ;;  %v8198_v1 = vor.u32 %v10682_v54, %v8195_v56  ;;  %v7898_v55 = vor.u32 %v10607_v62, %v7895_v63  ;;  %v8078_v54 = vor.u32 %v10652_v47, %v8075_v48  ;;  %v10601_v56 = vld [vmem:[%s16520_s1 + $0x634] sm:$0xf]  ;;  %v7967_v63 = vld [vmem:[%s16520_s1 + $0x6fc] sm:$0xf0]  ;;  %v10670_v47 = vld [vmem:[%s16520_s1 + $0x85c] sm:$0xf] }
 0x144   :  { %5802 = vmatpush.bf16.msra.mxu0 %v7934_v26  ;;  %5771 = vmatmul.bf16.vlgmr.msrb.gmra.mxu1 %v11740_v44  ;;  %v7991_v26 = vld [vmem:[%s16520_s1 + $0x72c] sm:$0xf0]  ;;  %v8147_v48 = vld [vmem:[%s16520_s1 + $0x864] sm:$0xf0] }
 0x145   :  { %5815 = vmatpush.bf16.msra.mxu1 %v8030_v2  ;;  %5784 = vmatmul.bf16.vlgmr.msrb.gmra.mxu2 %v11728_v38  ;;  %v10655_v2 = vld [vmem:[%s16520_s1 + $0x7e4] sm:$0xf]  ;;  %v7994_v15 = vor.u32 %v10631_v0, %v7991_v26  ;;  %v10649_v0 = vld [vmem:[%s16520_s1 + $0x7b4] sm:$0xf] }
 0x146   :  { %5828 = vmatpush.bf16.msra.mxu2 %v8126_v3  ;;  %5797 = vmatmul.bf16.vlgmr.msrb.gmra.mxu3 %v11738_v42  ;;  %v8087_v3 = vld [vmem:[%s16520_s1 + $0x7ec] sm:$0xf0] }
 0x147   :  { %5841 = vmatpush.bf16.msra.mxu3 %v8222_v9  ;;  %v5552_v9 = vadd.f32 %v5551_v4, %v13313_v58  ;;  %v8090_v17 = vor.u32 %v10655_v2, %v8087_v3  ;;  %v8186_v58 = vor.u32 %v10679_v6, %v8183_v8  ;;  %v10673_v3 = vld [vmem:[%s16520_s1 + $0x874] sm:$0xf]  ;;  %v8159_v4 = vld [vmem:[%s16520_s1 + $0x87c] sm:$0xf0] }
 0x148   :  { %5803 = vmatpush.bf16.msra.mxu0 %v7922_v27  ;;  %v7883_v27 = vld [vmem:[%s16520_s1 + $0x654] sm:$0xf0]  ;;  %v5577_v62 = vpop.f32.mrf.mxu2  ;;  %v5553_v6 = vpop.f32.mrf.mxu0 }
 0x149   :  { %5816 = vmatpush.bf16.msra.mxu1 %v8018_v32  ;;  %v10628_v32 = vld [vmem:[%s16520_s1 + $0x70c] sm:$0xf]  ;;  %v7886_v51 = vor.u32 %v10604_v21, %v7883_v27  ;;  %v5590_v2 = vpop.f32.mrf.mxu3  ;;  %v7859_v21 = vld [vmem:[%s16520_s1 + $0x624] sm:$0xf0]  ;;  %v10622_v27 = vld [vmem:[%s16520_s1 + $0x6dc] sm:$0xf] }
 0x14a   :  { %5829 = vmatpush.bf16.msra.mxu2 %v8114_v39  ;;  %v5565_v39 = vadd.f32 %v5564_v14, %v5552_v9  ;;  %v7982_v52 = vor.u32 %v10628_v32, %v7979_v40  ;;  %v5566_v9 = vpop.f32.mrf.mxu1  ;;  %v8162_v32 = vor.u32 %v10673_v3, %v8159_v4  ;;  %v8051_v40 = vld [vmem:[%s16520_s1 + $0x7a4] sm:$0xf0]  ;;  %v10736_v3 = vld [vmem:[%s16520_s1 + $0xa6c] sm:$0xf] }
 0x14b   :  { %5842 = vmatpush.bf16.msra.mxu3 %v8210_v61  ;;  %v10676_v61 = vld [vmem:[%s16520_s1 + $0x88c] sm:$0xf] }
 0x14c   :  { %5804 = vmatpush.bf16.msra.mxu0 %v7910_v57  ;;  %v7871_v57 = vld [vmem:[%s16520_s1 + $0x63c] sm:$0xf0]  ;;  %v5578_v26 = vadd.f32 %v5577_v62, %v5565_v39  ;;  %v10646_v39 = vld [vmem:[%s16520_s1 + $0x79c] sm:$0xf]  ;;  %v8039_v62 = vld [vmem:[%s16520_s1 + $0x78c] sm:$0xf0] }
 0x14d   :  { %5817 = vmatpush.bf16.msra.mxu1 %v8006_v59  ;;  %v10625_v59 = vld [vmem:[%s16520_s1 + $0x6f4] sm:$0xf]  ;;  %v7874_v8 = vor.u32 %v10601_v56, %v7871_v57  ;;  %v10619_v56 = vld [vmem:[%s16520_s1 + $0x6c4] sm:$0xf]  ;;  %v7943_v57 = vld [vmem:[%s16520_s1 + $0x6cc] sm:$0xf0] }
 0x14e   :  { %5830 = vmatpush.bf16.msra.mxu2 %v8102_v60  ;;  %v8174_v60 = vor.u32 %v10676_v61, %v8171_v50  ;;  %v7970_v14 = vor.u32 %v10625_v59, %v7967_v63  ;;  %v10595_v50 = vld [vmem:[%s16520_s1 + $0x604] sm:$0xf]  ;;  %v10760_v9 = vld [vmem:[%s16520_s1 + $0xb2c] sm:$0xf] }
 0x14f   :  { %5843 = vmatpush.bf16.msra.mxu3 %v8198_v1  ;;  %v8063_v1 = vld [vmem:[%s16520_s1 + $0x7bc] sm:$0xf0]  ;;  %v10643_v59 = vld [vmem:[%s16520_s1 + $0x784] sm:$0xf] }
 0x150   :  { %5805 = vmatpush.bf16.msra.mxu0 %v7898_v55  ;;  %v13512_v55 = vadd.f32 %v5590_v2, %v5578_v26  ;;  %v10667_v63 = vld [vmem:[%s16520_s1 + $0x844] sm:$0xf]  ;;  %v10712_v26 = vld [vmem:[%s16520_s1 + $0x9ac] sm:$0xf]  ;;  %v8315_v2 = vld [vmem:[%s16520_s1 + $0x9b4] sm:$0xf0] }
 0x151   :  { %5818 = vmatpush.bf16.msra.mxu1 %v7994_v15  ;;  %v8066_v15 = vor.u32 %v10649_v0, %v8063_v1  ;;  %v8135_v0 = vld [vmem:[%s16520_s1 + $0x84c] sm:$0xf0]  ;;  %v5579_v1 = vpop.f32.mrf.mxu2  ;;  %v5592_v4 = vpop.f32.mrf.mxu3 }
 0x152   :  { %5831 = vmatpush.bf16.msra.mxu2 %v8090_v17  ;;  %v10598_v17 = vld [vmem:[%s16520_s1 + $0x61c] sm:$0xf]  ;;  %v8483_v4 = vld [vmem:[%s16520_s1 + $0xb04] sm:$0xf0] }
 0x153   :  { %5844 = vmatpush.bf16.msra.mxu3 %v8186_v58  ;;  %v7955_v58 = vld [vmem:[%s16520_s1 + $0x6e4] sm:$0xf0]  ;;  %v7862_v61 = vor.u32 %v10598_v17, %v7859_v21  ;;  %v8042_v17 = vor.u32 %v10643_v59, %v8039_v62  ;;  %v10784_v21 = vld [vmem:[%s16520_s1 + $0xbec] sm:$0xf]  ;;  %v10730_v1 = vld [vmem:[%s16520_s1 + $0xa3c] sm:$0xf] }
 0x154   :  { %5806 = vmatpush.bf16.msra.mxu0 %v7886_v51  ;;  %v7847_v51 = vld [vmem:[%s16520_s1 + $0x60c] sm:$0xf0] }
 0x155   :  { %5819 = vmatpush.bf16.msra.mxu1 %v7982_v52  ;;  %v7958_v52 = vor.u32 %v10622_v27, %v7955_v58  ;;  %v7850_v6 = vor.u32 %v10595_v50, %v7847_v51  ;;  %v8603_v27 = vld [vmem:[%s16520_s1 + $0xbf4] sm:$0xf0]  ;;  %v8318_v58 = vor.u32 %v10712_v26, %v8315_v2  ;;  %v8399_v51 = vld [vmem:[%s16520_s1 + $0xa5c] sm:$0xf0]  ;;  %v8387_v2 = vld [vmem:[%s16520_s1 + $0xa44] sm:$0xf0] }
 0x156   :  { %5832 = vmatpush.bf16.msra.mxu2 %v8078_v54  ;;  %v8054_v54 = vor.u32 %v10646_v39, %v8051_v40  ;;  %v8606_v50 = vor.u32 %v10784_v21, %v8603_v27  ;;  %v8279_v21 = vld [vmem:[%s16520_s1 + $0x96c] sm:$0xf0]  ;;  %v10727_v27 = vld [vmem:[%s16520_s1 + $0xa24] sm:$0xf] }
 0x157   :  { %5845 = vmatpush.bf16.msra.mxu3 %v8174_v60  ;;  %v8150_v60 = vor.u32 %v10670_v47, %v8147_v48  ;;  %v10709_v47 = vld [vmem:[%s16520_s1 + $0x994] sm:$0xf]  ;;  %v8303_v48 = vld [vmem:[%s16520_s1 + $0x99c] sm:$0xf0] }
 0x158   :  { %5807 = vmatpush.bf16.msra.mxu0 %v7874_v8  ;;  %v8411_v8 = vld [vmem:[%s16520_s1 + $0xa74] sm:$0xf0]  ;;  %v8306_v59 = vor.u32 %v10709_v47, %v8303_v48  ;;  %v10775_v48 = vld [vmem:[%s16520_s1 + $0xba4] sm:$0xf] }
 0x159   :  { %5820 = vmatpush.bf16.msra.mxu1 %v7970_v14  ;;  %v8507_v14 = vld [vmem:[%s16520_s1 + $0xb34] sm:$0xf0]  ;;  %v8414_v39 = vor.u32 %v10736_v3, %v8411_v8  ;;  %v10754_v3 = vld [vmem:[%s16520_s1 + $0xafc] sm:$0xf]  ;;  %v8579_v8 = vld [vmem:[%s16520_s1 + $0xbc4] sm:$0xf0] }
 0x15a   :  { %5833 = vmatpush.bf16.msra.mxu2 %v8066_v15  ;;  %v7946_v15 = vor.u32 %v10619_v56, %v7943_v57  ;;  %v8510_v40 = vor.u32 %v10760_v9, %v8507_v14  ;;  %v10781_v56 = vld [vmem:[%s16520_s1 + $0xbd4] sm:$0xf]  ;;  %v8591_v57 = vld [vmem:[%s16520_s1 + $0xbdc] sm:$0xf0]  ;;  %v8390_v14 = vor.u32 %v10730_v1, %v8387_v2  ;;  %v8459_v1 = vld [vmem:[%s16520_s1 + $0xad4] sm:$0xf0] }
 0x15b   :  { %5846 = vmatpush.bf16.msra.mxu3 %v8162_v32  ;;  %v8138_v32 = vor.u32 %v10667_v63, %v8135_v0  ;;  %v10706_v63 = vld [vmem:[%s16520_s1 + $0x97c] sm:$0xf]  ;;  %v8291_v0 = vld [vmem:[%s16520_s1 + $0x984] sm:$0xf0]  ;;  %v8594_v26 = vor.u32 %v10781_v56, %v8591_v57  ;;  %v10700_v57 = vld [vmem:[%s16520_s1 + $0x94c] sm:$0xf] }
 0x15c   :  { %5808 = vmatpush.bf16.msra.mxu0 %v7862_v61  ;;  %v10733_v61 = vld [vmem:[%s16520_s1 + $0xa54] sm:$0xf]  ;;  %v8294_v9 = vor.u32 %v10706_v63, %v8291_v0  ;;  %v8363_v63 = vld [vmem:[%s16520_s1 + $0xa14] sm:$0xf0]  ;;  %v10748_v0 = vld [vmem:[%s16520_s1 + $0xacc] sm:$0xf] }
 0x15d   :  { %5821 = vmatpush.bf16.msra.mxu1 %v7958_v52  ;;  %v10757_v52 = vld [vmem:[%s16520_s1 + $0xb14] sm:$0xf]  ;;  %v8555_v2 = vld [vmem:[%s16520_s1 + $0xb94] sm:$0xf0] }
 0x15e   :  { %5834 = vmatpush.bf16.msra.mxu2 %v8054_v54  ;;  %v8495_v54 = vld [vmem:[%s16520_s1 + $0xb1c] sm:$0xf0] }
 0x15f   :  { %5847 = vmatpush.bf16.msra.mxu3 %v8150_v60  ;;  %v8402_v60 = vor.u32 %v10733_v61, %v8399_v51  ;;  %v8498_v62 = vor.u32 %v10757_v52, %v8495_v54  ;;  %v8567_v61 = vld [vmem:[%s16520_s1 + $0xbac] sm:$0xf0] }
 0x160   :  { %5809 = vmatpush.bf16.msra.mxu0 %v7850_v6  ;;  %v10778_v6 = vld [vmem:[%s16520_s1 + $0xbbc] sm:$0xf]  ;;  %v5603_v47 = vpop.f32.mrf.mxu0 }
 0x161   :  { %5822 = vmatpush.bf16.msra.mxu1 %v7946_v15  ;;  %v8486_v15 = vor.u32 %v10754_v3, %v8483_v4  ;;  %v5616_v52 = vpop.f32.mrf.mxu1 }
 0x162   :  { %5835 = vmatpush.bf16.msra.mxu2 %v8042_v17  ;;  %v10703_v17 = vld [vmem:[%s16520_s1 + $0x964] sm:$0xf] }
 0x163   :  { %5848 = vmatpush.bf16.msra.mxu3 %v8138_v32  ;;  %5810 = vmatmul.bf16.vlgmr.msra.gmra.mxu0 %v11929_v25  ;;  %v8582_v32 = vor.u32 %v10778_v6, %v8579_v8  ;;  %v8282_v51 = vor.u32 %v10703_v17, %v8279_v21  ;;  %v8462_v6 = vor.u32 %v10748_v0, %v8459_v1  ;;  %v10697_v8 = vld [vmem:[%s16520_s1 + $0x934] sm:$0xf]  ;;  %v8351_v21 = vld [vmem:[%s16520_s1 + $0x9fc] sm:$0xf0]  ;;  %v10766_v0 = vld [vmem:[%s16520_s1 + $0xb5c] sm:$0xf] }
 0x164   :  { %5854 = vmatpush.bf16.msrb.mxu0 %v8318_v58  ;;  %5823 = vmatmul.bf16.vlgmr.msra.gmra.mxu1 %v11942_v30  ;;  %v8375_v58 = vld [vmem:[%s16520_s1 + $0xa2c] sm:$0xf0]  ;;  %v8531_v1 = vld [vmem:[%s16520_s1 + $0xb64] sm:$0xf0] }
 0x165   :  { %5867 = vmatpush.bf16.msrb.mxu1 %v8414_v39  ;;  %5836 = vmatmul.bf16.vlgmr.msra.gmra.mxu2 %v11940_v29  ;;  %v10751_v39 = vld [vmem:[%s16520_s1 + $0xae4] sm:$0xf]  ;;  %v8378_v54 = vor.u32 %v10727_v27, %v8375_v58  ;;  %v10745_v27 = vld [vmem:[%s16520_s1 + $0xab4] sm:$0xf] }
 0x166   :  { %5880 = vmatpush.bf16.msrb.mxu2 %v8510_v40  ;;  %5849 = vmatmul.bf16.vlgmr.msra.gmra.mxu3 %v11950_v33  ;;  %v8471_v40 = vld [vmem:[%s16520_s1 + $0xaec] sm:$0xf0] }
 0x167   :  { %5893 = vmatpush.bf16.msrb.mxu3 %v8606_v50  ;;  %v5604_v50 = vadd.f32 %v5603_v47, %v13512_v55  ;;  %v8474_v56 = vor.u32 %v10751_v39, %v8471_v40  ;;  %v8570_v55 = vor.u32 %v10775_v48, %v8567_v61  ;;  %v10769_v40 = vld [vmem:[%s16520_s1 + $0xb74] sm:$0xf]  ;;  %v8543_v47 = vld [vmem:[%s16520_s1 + $0xb7c] sm:$0xf0] }
 0x168   :  { %5855 = vmatpush.bf16.msrb.mxu0 %v8306_v59  ;;  %v8267_v59 = vld [vmem:[%s16520_s1 + $0x954] sm:$0xf0]  ;;  %v5629_v17 = vpop.f32.mrf.mxu2  ;;  %v5605_v48 = vpop.f32.mrf.mxu0 }
 0x169   :  { %5868 = vmatpush.bf16.msrb.mxu1 %v8402_v60  ;;  %v10724_v60 = vld [vmem:[%s16520_s1 + $0xa0c] sm:$0xf]  ;;  %v8270_v3 = vor.u32 %v10700_v57, %v8267_v59  ;;  %v5642_v39 = vpop.f32.mrf.mxu3  ;;  %v8243_v57 = vld [vmem:[%s16520_s1 + $0x924] sm:$0xf0]  ;;  %v10718_v59 = vld [vmem:[%s16520_s1 + $0x9dc] sm:$0xf] }
 0x16a   :  { %5881 = vmatpush.bf16.msrb.mxu2 %v8498_v62  ;;  %v5617_v62 = vadd.f32 %v5616_v52, %v5604_v50  ;;  %v8366_v4 = vor.u32 %v10724_v60, %v8363_v63  ;;  %v5618_v50 = vpop.f32.mrf.mxu1  ;;  %v8546_v60 = vor.u32 %v10769_v40, %v8543_v47  ;;  %v8435_v63 = vld [vmem:[%s16520_s1 + $0xaa4] sm:$0xf0]  ;;  %v10832_v40 = vld [vmem:[%s16520_s1 + $0xd6c] sm:$0xf] }
 0x16b   :  { %5894 = vmatpush.bf16.msrb.mxu3 %v8594_v26  ;;  %v10772_v26 = vld [vmem:[%s16520_s1 + $0xb8c] sm:$0xf] }
 0x16c   :  { %5856 = vmatpush.bf16.msrb.mxu0 %v8294_v9  ;;  %v8255_v9 = vld [vmem:[%s16520_s1 + $0x93c] sm:$0xf0]  ;;  %v5630_v58 = vadd.f32 %v5629_v17, %v5617_v62  ;;  %v10742_v62 = vld [vmem:[%s16520_s1 + $0xa9c] sm:$0xf]  ;;  %v8423_v17 = vld [vmem:[%s16520_s1 + $0xa8c] sm:$0xf0] }
 0x16d   :  { %5869 = vmatpush.bf16.msrb.mxu1 %v8390_v14  ;;  %v10721_v14 = vld [vmem:[%s16520_s1 + $0x9f4] sm:$0xf]  ;;  %v8258_v61 = vor.u32 %v10697_v8, %v8255_v9  ;;  %v10715_v8 = vld [vmem:[%s16520_s1 + $0x9c4] sm:$0xf]  ;;  %v8327_v9 = vld [vmem:[%s16520_s1 + $0x9cc] sm:$0xf0] }
 0x16e   :  { %5882 = vmatpush.bf16.msrb.mxu2 %v8486_v15  ;;  %v8558_v15 = vor.u32 %v10772_v26, %v8555_v2  ;;  %v8354_v52 = vor.u32 %v10721_v14, %v8351_v21  ;;  %v10691_v2 = vld [vmem:[%s16520_s1 + $0x904] sm:$0xf]  ;;  %v10856_v50 = vld [vmem:[%s16520_s1 + $0xe2c] sm:$0xf] }
 0x16f   :  { %5895 = vmatpush.bf16.msrb.mxu3 %v8582_v32  ;;  %v8447_v32 = vld [vmem:[%s16520_s1 + $0xabc] sm:$0xf0]  ;;  %v10739_v14 = vld [vmem:[%s16520_s1 + $0xa84] sm:$0xf] }
 0x170   :  { %5857 = vmatpush.bf16.msrb.mxu0 %v8282_v51  ;;  %v13711_v51 = vadd.f32 %v5642_v39, %v5630_v58  ;;  %v10763_v21 = vld [vmem:[%s16520_s1 + $0xb44] sm:$0xf]  ;;  %v10808_v58 = vld [vmem:[%s16520_s1 + $0xcac] sm:$0xf]  ;;  %v8699_v39 = vld [vmem:[%s16520_s1 + $0xcb4] sm:$0xf0] }
 0x171   :  { %5870 = vmatpush.bf16.msrb.mxu1 %v8378_v54  ;;  %v8450_v54 = vor.u32 %v10745_v27, %v8447_v32  ;;  %v8519_v27 = vld [vmem:[%s16520_s1 + $0xb4c] sm:$0xf0]  ;;  %v5631_v32 = vpop.f32.mrf.mxu2  ;;  %v5644_v47 = vpop.f32.mrf.mxu3 }
 0x172   :  { %5883 = vmatpush.bf16.msrb.mxu2 %v8474_v56  ;;  %v10694_v56 = vld [vmem:[%s16520_s1 + $0x91c] sm:$0xf]  ;;  %v8867_v47 = vld [vmem:[%s16520_s1 + $0xe04] sm:$0xf0] }
 0x173   :  { %5896 = vmatpush.bf16.msrb.mxu3 %v8570_v55  ;;  %v8339_v55 = vld [vmem:[%s16520_s1 + $0x9e4] sm:$0xf0]  ;;  %v8246_v26 = vor.u32 %v10694_v56, %v8243_v57  ;;  %v8426_v56 = vor.u32 %v10739_v14, %v8423_v17  ;;  %v10880_v57 = vld [vmem:[%s16520_s1 + $0xeec] sm:$0xf]  ;;  %v10826_v32 = vld [vmem:[%s16520_s1 + $0xd3c] sm:$0xf] }
 0x174   :  { %5858 = vmatpush.bf16.msrb.mxu0 %v8270_v3  ;;  %v8231_v3 = vld [vmem:[%s16520_s1 + $0x90c] sm:$0xf0] }
 0x175   :  { %5871 = vmatpush.bf16.msrb.mxu1 %v8366_v4  ;;  %v8342_v4 = vor.u32 %v10718_v59, %v8339_v55  ;;  %v8234_v48 = vor.u32 %v10691_v2, %v8231_v3  ;;  %v8987_v59 = vld [vmem:[%s16520_s1 + $0xef4] sm:$0xf0]  ;;  %v8702_v55 = vor.u32 %v10808_v58, %v8699_v39  ;;  %v8783_v3 = vld [vmem:[%s16520_s1 + $0xd5c] sm:$0xf0]  ;;  %v8771_v39 = vld [vmem:[%s16520_s1 + $0xd44] sm:$0xf0] }
 0x176   :  { %5884 = vmatpush.bf16.msrb.mxu2 %v8462_v6  ;;  %v8438_v6 = vor.u32 %v10742_v62, %v8435_v63  ;;  %v8990_v2 = vor.u32 %v10880_v57, %v8987_v59  ;;  %v8663_v57 = vld [vmem:[%s16520_s1 + $0xc6c] sm:$0xf0]  ;;  %v10823_v59 = vld [vmem:[%s16520_s1 + $0xd24] sm:$0xf] }
 0x177   :  { %5897 = vmatpush.bf16.msrb.mxu3 %v8558_v15  ;;  %v8534_v15 = vor.u32 %v10766_v0, %v8531_v1  ;;  %v10805_v0 = vld [vmem:[%s16520_s1 + $0xc94] sm:$0xf]  ;;  %v8687_v1 = vld [vmem:[%s16520_s1 + $0xc9c] sm:$0xf0] }
 0x178   :  { %5859 = vmatpush.bf16.msrb.mxu0 %v8258_v61  ;;  %v8795_v61 = vld [vmem:[%s16520_s1 + $0xd74] sm:$0xf0]  ;;  %v8690_v14 = vor.u32 %v10805_v0, %v8687_v1  ;;  %v10871_v1 = vld [vmem:[%s16520_s1 + $0xea4] sm:$0xf] }
 0x179   :  { %5872 = vmatpush.bf16.msrb.mxu1 %v8354_v52  ;;  %v8891_v52 = vld [vmem:[%s16520_s1 + $0xe34] sm:$0xf0]  ;;  %v8798_v62 = vor.u32 %v10832_v40, %v8795_v61  ;;  %v10850_v40 = vld [vmem:[%s16520_s1 + $0xdfc] sm:$0xf]  ;;  %v8963_v61 = vld [vmem:[%s16520_s1 + $0xec4] sm:$0xf0] }
 0x17a   :  { %5885 = vmatpush.bf16.msrb.mxu2 %v8450_v54  ;;  %v8330_v54 = vor.u32 %v10715_v8, %v8327_v9  ;;  %v8894_v63 = vor.u32 %v10856_v50, %v8891_v52  ;;  %v10877_v8 = vld [vmem:[%s16520_s1 + $0xed4] sm:$0xf]  ;;  %v8975_v9 = vld [vmem:[%s16520_s1 + $0xedc] sm:$0xf0]  ;;  %v8774_v52 = vor.u32 %v10826_v32, %v8771_v39  ;;  %v8843_v32 = vld [vmem:[%s16520_s1 + $0xdd4] sm:$0xf0] }
 0x17b   :  { %5898 = vmatpush.bf16.msrb.mxu3 %v8546_v60  ;;  %v8522_v60 = vor.u32 %v10763_v21, %v8519_v27  ;;  %v10802_v21 = vld [vmem:[%s16520_s1 + $0xc7c] sm:$0xf]  ;;  %v8675_v27 = vld [vmem:[%s16520_s1 + $0xc84] sm:$0xf0]  ;;  %v8978_v58 = vor.u32 %v10877_v8, %v8975_v9  ;;  %v10796_v9 = vld [vmem:[%s16520_s1 + $0xc4c] sm:$0xf] }
 0x17c   :  { %5860 = vmatpush.bf16.msrb.mxu0 %v8246_v26  ;;  %v10829_v26 = vld [vmem:[%s16520_s1 + $0xd54] sm:$0xf]  ;;  %v8678_v50 = vor.u32 %v10802_v21, %v8675_v27  ;;  %v8747_v21 = vld [vmem:[%s16520_s1 + $0xd14] sm:$0xf0]  ;;  %v10844_v27 = vld [vmem:[%s16520_s1 + $0xdcc] sm:$0xf] }
 0x17d   :  { %5873 = vmatpush.bf16.msrb.mxu1 %v8342_v4  ;;  %v10853_v4 = vld [vmem:[%s16520_s1 + $0xe14] sm:$0xf]  ;;  %v8939_v39 = vld [vmem:[%s16520_s1 + $0xe94] sm:$0xf0] }
 0x17e   :  { %5886 = vmatpush.bf16.msrb.mxu2 %v8438_v6  ;;  %v8879_v6 = vld [vmem:[%s16520_s1 + $0xe1c] sm:$0xf0] }
 0x17f   :  { %5899 = vmatpush.bf16.msrb.mxu3 %v8534_v15  ;;  %v8786_v15 = vor.u32 %v10829_v26, %v8783_v3  ;;  %v8882_v17 = vor.u32 %v10853_v4, %v8879_v6  ;;  %v8951_v26 = vld [vmem:[%s16520_s1 + $0xeac] sm:$0xf0] }
 0x180   :  { %5861 = vmatpush.bf16.msrb.mxu0 %v8234_v48  ;;  %v10874_v48 = vld [vmem:[%s16520_s1 + $0xebc] sm:$0xf]  ;;  %v5655_v0 = vpop.f32.mrf.mxu0 }
 0x181   :  { %5874 = vmatpush.bf16.msrb.mxu1 %v8330_v54  ;;  %v8870_v54 = vor.u32 %v10850_v40, %v8867_v47  ;;  %v5668_v4 = vpop.f32.mrf.mxu1 }
 0x182   :  { %5887 = vmatpush.bf16.msrb.mxu2 %v8426_v56  ;;  %v10799_v56 = vld [vmem:[%s16520_s1 + $0xc64] sm:$0xf] }
 0x183   :  { %5900 = vmatpush.bf16.msrb.mxu3 %v8522_v60  ;;  %5862 = vmatmul.bf16.vlgmr.msrb.gmra.mxu0 %v12139_v23  ;;  %v8966_v60 = vor.u32 %v10874_v48, %v8963_v61  ;;  %v8666_v3 = vor.u32 %v10799_v56, %v8663_v57  ;;  %v8846_v48 = vor.u32 %v10844_v27, %v8843_v32  ;;  %v10793_v61 = vld [vmem:[%s16520_s1 + $0xc34] sm:$0xf]  ;;  %v8735_v57 = vld [vmem:[%s16520_s1 + $0xcfc] sm:$0xf0]  ;;  %v10862_v27 = vld [vmem:[%s16520_s1 + $0xe5c] sm:$0xf] }
 0x184   :  { %5906 = vmatpush.bf16.msra.mxu0 %v8702_v55  ;;  %5875 = vmatmul.bf16.vlgmr.msrb.gmra.mxu1 %v12152_v31  ;;  %v8759_v55 = vld [vmem:[%s16520_s1 + $0xd2c] sm:$0xf0]  ;;  %v8915_v32 = vld [vmem:[%s16520_s1 + $0xe64] sm:$0xf0] }
 0x185   :  { %5919 = vmatpush.bf16.msra.mxu1 %v8798_v62  ;;  %5888 = vmatmul.bf16.vlgmr.msrb.gmra.mxu2 %v12150_v28  ;;  %v10847_v62 = vld [vmem:[%s16520_s1 + $0xde4] sm:$0xf]  ;;  %v8762_v6 = vor.u32 %v10823_v59, %v8759_v55  ;;  %v10841_v59 = vld [vmem:[%s16520_s1 + $0xdb4] sm:$0xf] }
 0x186   :  { %5932 = vmatpush.bf16.msra.mxu2 %v8894_v63  ;;  %5901 = vmatmul.bf16.vlgmr.msrb.gmra.mxu3 %v12160_v35  ;;  %v8855_v63 = vld [vmem:[%s16520_s1 + $0xdec] sm:$0xf0] }
 0x187   :  { %5945 = vmatpush.bf16.msra.mxu3 %v8990_v2  ;;  %v5656_v2 = vadd.f32 %v5655_v0, %v13711_v51  ;;  %v8858_v8 = vor.u32 %v10847_v62, %v8855_v63  ;;  %v8954_v51 = vor.u32 %v10871_v1, %v8951_v26  ;;  %v10865_v63 = vld [vmem:[%s16520_s1 + $0xe74] sm:$0xf]  ;;  %v8927_v0 = vld [vmem:[%s16520_s1 + $0xe7c] sm:$0xf0] }
 0x188   :  { %5907 = vmatpush.bf16.msra.mxu0 %v8690_v14  ;;  %v8651_v14 = vld [vmem:[%s16520_s1 + $0xc54] sm:$0xf0]  ;;  %v5681_v56 = vpop.f32.mrf.mxu2  ;;  %v5657_v1 = vpop.f32.mrf.mxu0 }
 0x189   :  { %5920 = vmatpush.bf16.msra.mxu1 %v8786_v15  ;;  %v10820_v15 = vld [vmem:[%s16520_s1 + $0xd0c] sm:$0xf]  ;;  %v8654_v40 = vor.u32 %v10796_v9, %v8651_v14  ;;  %v5694_v62 = vpop.f32.mrf.mxu3  ;;  %v8627_v9 = vld [vmem:[%s16520_s1 + $0xc24] sm:$0xf0]  ;;  %v10814_v14 = vld [vmem:[%s16520_s1 + $0xcdc] sm:$0xf] }
 0x18a   :  { %5933 = vmatpush.bf16.msra.mxu2 %v8882_v17  ;;  %v5669_v17 = vadd.f32 %v5668_v4, %v5656_v2  ;;  %v8750_v47 = vor.u32 %v10820_v15, %v8747_v21  ;;  %v5670_v2 = vpop.f32.mrf.mxu1  ;;  %v8930_v15 = vor.u32 %v10865_v63, %v8927_v0  ;;  %v8819_v21 = vld [vmem:[%s16520_s1 + $0xda4] sm:$0xf0]  ;;  %v10928_v63 = vld [vmem:[%s16520_s1 + $0x106c] sm:$0xf] }
 0x18b   :  { %5946 = vmatpush.bf16.msra.mxu3 %v8978_v58  ;;  %v10868_v58 = vld [vmem:[%s16520_s1 + $0xe8c] sm:$0xf] }
 0x18c   :  { %5908 = vmatpush.bf16.msra.mxu0 %v8678_v50  ;;  %v8639_v50 = vld [vmem:[%s16520_s1 + $0xc3c] sm:$0xf0]  ;;  %v5682_v55 = vadd.f32 %v5681_v56, %v5669_v17  ;;  %v10838_v17 = vld [vmem:[%s16520_s1 + $0xd9c] sm:$0xf]  ;;  %v8807_v56 = vld [vmem:[%s16520_s1 + $0xd8c] sm:$0xf0] }
 0x18d   :  { %5921 = vmatpush.bf16.msra.mxu1 %v8774_v52  ;;  %v10817_v52 = vld [vmem:[%s16520_s1 + $0xcf4] sm:$0xf]  ;;  %v8642_v26 = vor.u32 %v10793_v61, %v8639_v50  ;;  %v10811_v61 = vld [vmem:[%s16520_s1 + $0xcc4] sm:$0xf]  ;;  %v8711_v50 = vld [vmem:[%s16520_s1 + $0xccc] sm:$0xf0] }
 0x18e   :  { %5934 = vmatpush.bf16.msra.mxu2 %v8870_v54  ;;  %v8942_v54 = vor.u32 %v10868_v58, %v8939_v39  ;;  %v8738_v4 = vor.u32 %v10817_v52, %v8735_v57  ;;  %v10787_v39 = vld [vmem:[%s16520_s1 + $0xc04] sm:$0xf]  ;;  %v10952_v2 = vld [vmem:[%s16520_s1 + $0x112c] sm:$0xf] }
 0x18f   :  { %5947 = vmatpush.bf16.msra.mxu3 %v8966_v60  ;;  %v8831_v60 = vld [vmem:[%s16520_s1 + $0xdbc] sm:$0xf0]  ;;  %v10835_v52 = vld [vmem:[%s16520_s1 + $0xd84] sm:$0xf] }
 0x190   :  { %5909 = vmatpush.bf16.msra.mxu0 %v8666_v3  ;;  %v13910_v3 = vadd.f32 %v5694_v62, %v5682_v55  ;;  %v10859_v57 = vld [vmem:[%s16520_s1 + $0xe44] sm:$0xf]  ;;  %v10904_v55 = vld [vmem:[%s16520_s1 + $0xfac] sm:$0xf]  ;;  %v9083_v62 = vld [vmem:[%s16520_s1 + $0xfb4] sm:$0xf0] }
 0x191   :  { %5922 = vmatpush.bf16.msra.mxu1 %v8762_v6  ;;  %v8834_v6 = vor.u32 %v10841_v59, %v8831_v60  ;;  %v8903_v59 = vld [vmem:[%s16520_s1 + $0xe4c] sm:$0xf0]  ;;  %v5683_v60 = vpop.f32.mrf.mxu2  ;;  %v5696_v0 = vpop.f32.mrf.mxu3 }
 0x192   :  { %5935 = vmatpush.bf16.msra.mxu2 %v8858_v8  ;;  %v10790_v8 = vld [vmem:[%s16520_s1 + $0xc1c] sm:$0xf]  ;;  %v9251_v0 = vld [vmem:[%s16520_s1 + $0x1104] sm:$0xf0] }
 0x193   :  { %5948 = vmatpush.bf16.msra.mxu3 %v8954_v51  ;;  %v8723_v51 = vld [vmem:[%s16520_s1 + $0xce4] sm:$0xf0]  ;;  %v8630_v58 = vor.u32 %v10790_v8, %v8627_v9  ;;  %v8810_v8 = vor.u32 %v10835_v52, %v8807_v56  ;;  %v10976_v9 = vld [vmem:[%s16520_s1 + $0x11ec] sm:$0xf]  ;;  %v10922_v60 = vld [vmem:[%s16520_s1 + $0x103c] sm:$0xf] }
 0x194   :  { %5910 = vmatpush.bf16.msra.mxu0 %v8654_v40  ;;  %v8615_v40 = vld [vmem:[%s16520_s1 + $0xc0c] sm:$0xf0] }
 0x195   :  { %5923 = vmatpush.bf16.msra.mxu1 %v8750_v47  ;;  %v8726_v47 = vor.u32 %v10814_v14, %v8723_v51  ;;  %v8618_v1 = vor.u32 %v10787_v39, %v8615_v40  ;;  %v9371_v14 = vld [vmem:[%s16520_s1 + $0x11f4] sm:$0xf0]  ;;  %v9086_v51 = vor.u32 %v10904_v55, %v9083_v62  ;;  %v9167_v40 = vld [vmem:[%s16520_s1 + $0x105c] sm:$0xf0]  ;;  %v9155_v62 = vld [vmem:[%s16520_s1 + $0x1044] sm:$0xf0] }
 0x196   :  { %5936 = vmatpush.bf16.msra.mxu2 %v8846_v48  ;;  %v8822_v48 = vor.u32 %v10838_v17, %v8819_v21  ;;  %v9374_v39 = vor.u32 %v10976_v9, %v9371_v14  ;;  %v9047_v9 = vld [vmem:[%s16520_s1 + $0xf6c] sm:$0xf0]  ;;  %v10919_v14 = vld [vmem:[%s16520_s1 + $0x1024] sm:$0xf] }
 0x197   :  { %5949 = vmatpush.bf16.msra.mxu3 %v8942_v54  ;;  %v8918_v54 = vor.u32 %v10862_v27, %v8915_v32  ;;  %v10901_v27 = vld [vmem:[%s16520_s1 + $0xf94] sm:$0xf]  ;;  %v9071_v32 = vld [vmem:[%s16520_s1 + $0xf9c] sm:$0xf0] }
 0x198   :  { %5911 = vmatpush.bf16.msra.mxu0 %v8642_v26  ;;  %v9179_v26 = vld [vmem:[%s16520_s1 + $0x1074] sm:$0xf0]  ;;  %v9074_v52 = vor.u32 %v10901_v27, %v9071_v32  ;;  %v10943_v27 = vld [vmem:[%s16520_s1 + $0x10e4] sm:$0xf]  ;;  %v9239_v32 = vld [vmem:[%s16520_s1 + $0x10ec] sm:$0xf0] }
 0x199   :  { %5924 = vmatpush.bf16.msra.mxu1 %v8738_v4  ;;  %v9275_v4 = vld [vmem:[%s16520_s1 + $0x1134] sm:$0xf0]  ;;  %v9182_v17 = vor.u32 %v10928_v63, %v9179_v26  ;;  %v10946_v63 = vld [vmem:[%s16520_s1 + $0x10fc] sm:$0xf]  ;;  %v9347_v26 = vld [vmem:[%s16520_s1 + $0x11c4] sm:$0xf0] }
 0x19a   :  { %5937 = vmatpush.bf16.msra.mxu2 %v8834_v6  ;;  %v8714_v6 = vor.u32 %v10811_v61, %v8711_v50  ;;  %v9278_v21 = vor.u32 %v10952_v2, %v9275_v4  ;;  %v10973_v61 = vld [vmem:[%s16520_s1 + $0x11d4] sm:$0xf]  ;;  %v9359_v50 = vld [vmem:[%s16520_s1 + $0x11dc] sm:$0xf0]  ;;  %v10895_v4 = vld [vmem:[%s16520_s1 + $0xf64] sm:$0xf] }
 0x19b   :  { %5950 = vmatpush.bf16.msra.mxu3 %v8930_v15  ;;  %v8906_v15 = vor.u32 %v10859_v57, %v8903_v59  ;;  %v10898_v57 = vld [vmem:[%s16520_s1 + $0xf7c] sm:$0xf]  ;;  %v9059_v59 = vld [vmem:[%s16520_s1 + $0xf84] sm:$0xf0]  ;;  %v9362_v55 = vor.u32 %v10973_v61, %v9359_v50  ;;  %v9242_v61 = vor.u32 %v10943_v27, %v9239_v32  ;;  %v10892_v50 = vld [vmem:[%s16520_s1 + $0xf4c] sm:$0xf] }
 0x19c   :  { %5912 = vmatpush.bf16.msra.mxu0 %v8630_v58  ;;  %v10925_v58 = vld [vmem:[%s16520_s1 + $0x1054] sm:$0xf]  ;;  %v9062_v2 = vor.u32 %v10898_v57, %v9059_v59 }
 0x19d   :  { %5925 = vmatpush.bf16.msra.mxu1 %v8726_v47  ;;  %v10949_v47 = vld [vmem:[%s16520_s1 + $0x1114] sm:$0xf] }
 0x19e   :  { %5938 = vmatpush.bf16.msra.mxu2 %v8822_v48  ;;  %v9263_v48 = vld [vmem:[%s16520_s1 + $0x111c] sm:$0xf0] }
 0x19f   :  { %5951 = vmatpush.bf16.msra.mxu3 %v8918_v54  ;;  %v9170_v54 = vor.u32 %v10925_v58, %v9167_v40  ;;  %v9266_v56 = vor.u32 %v10949_v47, %v9263_v48  ;;  %v10967_v58 = vld [vmem:[%s16520_s1 + $0x11a4] sm:$0xf]  ;;  %v9050_v40 = vor.u32 %v10895_v4, %v9047_v9  ;;  %v10913_v9 = vld [vmem:[%s16520_s1 + $0xff4] sm:$0xf] }
 0x1a0   :  { %5913 = vmatpush.bf16.msra.mxu0 %v8618_v1  ;;  %v10970_v1 = vld [vmem:[%s16520_s1 + $0x11bc] sm:$0xf]  ;;  %v5707_v47 = vpop.f32.mrf.mxu0 }
 0x1a1   :  { %5926 = vmatpush.bf16.msra.mxu1 %v8714_v6  ;;  %v9158_v6 = vor.u32 %v10922_v60, %v9155_v62  ;;  %v5720_v57 = vpop.f32.mrf.mxu1  ;;  %v9131_v60 = vld [vmem:[%s16520_s1 + $0x1014] sm:$0xf0] }
 0x1a2   :  { %5939 = vmatpush.bf16.msra.mxu2 %v8810_v8  ;;  %v9254_v8 = vor.u32 %v10946_v63, %v9251_v0  ;;  %v9227_v62 = vld [vmem:[%s16520_s1 + $0x10d4] sm:$0xf0]  ;;  %v10964_v63 = vld [vmem:[%s16520_s1 + $0x118c] sm:$0xf] }
 0x1a3   :  { %5952 = vmatpush.bf16.msra.mxu3 %v8906_v15  ;;  %5914 = vmatmul.bf16.vlgmr.msra.gmra.mxu0 %v12349_v37  ;;  %v11236_v15 = vld [vmem:[%s16522_s2] sm:$0x7]  ;;  %v9323_v0 = vld [vmem:[%s16520_s1 + $0x1194] sm:$0xf0] }
 0x1a4   :  { %5958 = vmatpush.bf16.msrb.mxu0 %v9086_v51  ;;  %5927 = vmatmul.bf16.vlgmr.msra.gmra.mxu1 %v12362_v46  ;;  %v1069_v51 = vperm.slane %v11236_v15, 1  ;;  %v9326_v15 = vor.u32 %v10964_v63, %v9323_v0  ;;  %v10958_v63 = vld [vmem:[%s16520_s1 + $0x115c] sm:$0xf]  ;;  %v9299_v0 = vld [vmem:[%s16520_s1 + $0x1164] sm:$0xf0] }
 0x1a5   :  { %5971 = vmatpush.bf16.msrb.mxu1 %v9182_v17  ;;  %5940 = vmatmul.bf16.vlgmr.msra.gmra.mxu2 %v12360_v45  ;;  %v9350_v17 = vor.u32 %v10970_v1, %v9347_v26 }
 0x1a6   :  { %5984 = vmatpush.bf16.msrb.mxu2 %v9278_v21  ;;  %5953 = vmatmul.bf16.vlgmr.msra.gmra.mxu3 %v12370_v49  ;;  %v9143_v21 = vld [vmem:[%s16520_s1 + $0x102c] sm:$0xf0] }
 0x1a7   :  { %5997 = vmatpush.bf16.msrb.mxu3 %v9374_v39  ;;  %v9335_v39 = vld [vmem:[%s16520_s1 + $0x11ac] sm:$0xf0]  ;;  %v9146_v48 = vor.u32 %v10919_v14, %v9143_v21  ;;  %v9215_v21 = vld [vmem:[%s16520_s1 + $0x10bc] sm:$0xf0] }
 0x1a8   :  { %5959 = vmatpush.bf16.msrb.mxu0 %v9074_v52  ;;  %v9035_v52 = vld [vmem:[%s16520_s1 + $0xf54] sm:$0xf0]  ;;  %v9338_v59 = vor.u32 %v10967_v58, %v9335_v39  ;;  %v5733_v14 = vpop.f32.mrf.mxu2  ;;  %v10961_v58 = vld [vmem:[%s16520_s1 + $0x1174] sm:$0xf]  ;;  %v9311_v39 = vld [vmem:[%s16520_s1 + $0x117c] sm:$0xf0] }
 0x1a9   :  { %5972 = vmatpush.bf16.msrb.mxu1 %v9170_v54  ;;  %v10916_v54 = vld [vmem:[%s16520_s1 + $0x100c] sm:$0xf]  ;;  %v9038_v26 = vor.u32 %v10892_v50, %v9035_v52  ;;  %v5746_v32 = vpop.f32.mrf.mxu3  ;;  %v10886_v52 = vld [vmem:[%s16520_s1 + $0xf1c] sm:$0xf] }
 0x1aa   :  { %5985 = vmatpush.bf16.msrb.mxu2 %v9266_v56  ;;  %v5708_v56 = vadd.f32 %v5707_v47, %v1069_v51  ;;  %v9119_v51 = vld [vmem:[%s16520_s1 + $0xffc] sm:$0xf0] }
 0x1ab   :  { %5998 = vmatpush.bf16.msrb.mxu3 %v9362_v55  ;;  %v10940_v55 = vld [vmem:[%s16520_s1 + $0x10cc] sm:$0xf] }
 0x1ac   :  { %5960 = vmatpush.bf16.msrb.mxu0 %v9062_v2  ;;  %v5721_v1 = vadd.f32 %v5720_v57, %v5708_v56  ;;  %v9134_v2 = vor.u32 %v10916_v54, %v9131_v60  ;;  %v9230_v4 = vor.u32 %v10940_v55, %v9227_v62  ;;  %v9011_v54 = vld [vmem:[%s16520_s1 + $0xf24] sm:$0xf0]  ;;  %v10910_v56 = vld [vmem:[%s16520_s1 + $0xfdc] sm:$0xf]  ;;  %v5722_v57 = vpop.f32.mrf.mxu1 }
 0x1ad   :  { %5973 = vmatpush.bf16.msrb.mxu1 %v9158_v6  ;;  %v10889_v6 = vld [vmem:[%s16520_s1 + $0xf34] sm:$0xf]  ;;  %v9107_v60 = vld [vmem:[%s16520_s1 + $0xfe4] sm:$0xf0]  ;;  %v10934_v55 = vld [vmem:[%s16520_s1 + $0x109c] sm:$0xf] }
 0x1ae   :  { %5986 = vmatpush.bf16.msrb.mxu2 %v9254_v8  ;;  %v9023_v8 = vld [vmem:[%s16520_s1 + $0xf3c] sm:$0xf0]  ;;  %v5734_v27 = vadd.f32 %v5733_v14, %v5721_v1  ;;  %v9203_v62 = vld [vmem:[%s16520_s1 + $0x10a4] sm:$0xf0]  ;;  %v9014_v1 = vor.u32 %v10886_v52, %v9011_v54  ;;  %v10931_v14 = vld [vmem:[%s16520_s1 + $0x1084] sm:$0xf] }
 0x1af   :  { %5999 = vmatpush.bf16.msrb.mxu3 %v9350_v17  ;;  %v10937_v17 = vld [vmem:[%s16520_s1 + $0x10b4] sm:$0xf]  ;;  %v9659_v52 = vld [vmem:[%s16520_s1 + $0x1434] sm:$0xf0]  ;;  %v11072_v57 = vld [vmem:[%s16520_s1 + $0x14ec] sm:$0xf] }
 0x1b0   :  { %5961 = vmatpush.bf16.msrb.mxu0 %v9050_v40  ;;  %v9026_v40 = vor.u32 %v10889_v6, %v9023_v8  ;;  %v14111_v47 = vadd.f32 %v5746_v32, %v5734_v27  ;;  %v9218_v50 = vor.u32 %v10937_v17, %v9215_v21  ;;  %v9206_v6 = vor.u32 %v10934_v55, %v9203_v62  ;;  %v10907_v8 = vld [vmem:[%s16520_s1 + $0xfc4] sm:$0xf]  ;;  %v9191_v17 = vld [vmem:[%s16520_s1 + $0x108c] sm:$0xf0] }
 0x1b1   :  { %5974 = vmatpush.bf16.msrb.mxu1 %v9146_v48  ;;  %v5709_v48 = vpop.f32.mrf.mxu0  ;;  %v10955_v21 = vld [vmem:[%s16520_s1 + $0x1144] sm:$0xf]  ;;  %v9287_v27 = vld [vmem:[%s16520_s1 + $0x114c] sm:$0xf0]  ;;  %v5748_v32 = vpop.f32.mrf.mxu3 }
 0x1b2   :  { %5987 = vmatpush.bf16.msrb.mxu2 %v9242_v61  ;;  %v9122_v61 = vor.u32 %v10913_v9, %v9119_v51  ;;  %v9095_v9 = vld [vmem:[%s16520_s1 + $0xfcc] sm:$0xf0]  ;;  %v9302_v51 = vor.u32 %v10958_v63, %v9299_v0  ;;  %v10997_v0 = vld [vmem:[%s16520_s1 + $0x1294] sm:$0xf]  ;;  %v11018_v32 = vld [vmem:[%s16520_s1 + $0x133c] sm:$0xf] }
 0x1b3   :  { %6000 = vmatpush.bf16.msrb.mxu3 %v9338_v59  ;;  %v9314_v59 = vor.u32 %v10961_v58, %v9311_v39  ;;  %v11000_v58 = vld [vmem:[%s16520_s1 + $0x12ac] sm:$0xf]  ;;  %v9467_v39 = vld [vmem:[%s16520_s1 + $0x12b4] sm:$0xf0]  ;;  %v9098_v54 = vor.u32 %v10907_v8, %v9095_v9  ;;  %v9647_v8 = vld [vmem:[%s16520_s1 + $0x141c] sm:$0xf0] }
 0x1b4   :  { %5962 = vmatpush.bf16.msrb.mxu0 %v9038_v26  ;;  %v10883_v26 = vld [vmem:[%s16520_s1 + $0xf04] sm:$0xf]  ;;  %v9470_v55 = vor.u32 %v11000_v58, %v9467_v39  ;;  %v11069_v9 = vld [vmem:[%s16520_s1 + $0x14d4] sm:$0xf]  ;;  %v9539_v39 = vld [vmem:[%s16520_s1 + $0x1344] sm:$0xf0] }
 0x1b5   :  { %5975 = vmatpush.bf16.msrb.mxu1 %v9134_v2  ;;  %v8999_v2 = vld [vmem:[%s16520_s1 + $0xf0c] sm:$0xf0] }
 0x1b6   :  { %5988 = vmatpush.bf16.msrb.mxu2 %v9230_v4  ;;  %v9110_v4 = vor.u32 %v10910_v56, %v9107_v60  ;;  %v9002_v48 = vor.u32 %v10883_v26, %v8999_v2  ;;  %v9194_v56 = vor.u32 %v10931_v14, %v9191_v17  ;;  %v9290_v60 = vor.u32 %v10955_v21, %v9287_v27  ;;  %v11021_v26 = vld [vmem:[%s16520_s1 + $0x1354] sm:$0xf]  ;;  %v9743_v14 = vld [vmem:[%s16520_s1 + $0x14dc] sm:$0xf0]  ;;  %v10994_v21 = vld [vmem:[%s16520_s1 + $0x127c] sm:$0xf] }
 0x1b7   :  { %6001 = vmatpush.bf16.msrb.mxu3 %v9326_v15  ;;  %v5735_v15 = vpop.f32.mrf.mxu2  ;;  %v9443_v27 = vld [vmem:[%s16520_s1 + $0x1284] sm:$0xf0]  ;;  %v9746_v58 = vor.u32 %v11069_v9, %v9743_v14  ;;  %v10988_v9 = vld [vmem:[%s16520_s1 + $0x124c] sm:$0xf]  ;;  %v9419_v14 = vld [vmem:[%s16520_s1 + $0x1254] sm:$0xf0] }
 0x1b8   :  { %5963 = vmatpush.bf16.msrb.mxu0 %v9026_v40  ;;  %v11024_v40 = vld [vmem:[%s16520_s1 + $0x136c] sm:$0xf] }
 0x1b9   :  { %5976 = vmatpush.bf16.msrb.mxu1 %v9122_v61  ;;  %v9563_v61 = vld [vmem:[%s16520_s1 + $0x1374] sm:$0xf0] }
 0x1ba   :  { %5989 = vmatpush.bf16.msrb.mxu2 %v9218_v50  ;;  %v11048_v50 = vld [vmem:[%s16520_s1 + $0x142c] sm:$0xf]  ;;  %v9566_v62 = vor.u32 %v11024_v40, %v9563_v61  ;;  %v11042_v40 = vld [vmem:[%s16520_s1 + $0x13fc] sm:$0xf] }
 0x1bb   :  { %6002 = vmatpush.bf16.msrb.mxu3 %v9314_v59  ;;  %v9755_v59 = vld [vmem:[%s16520_s1 + $0x14f4] sm:$0xf0]  ;;  %v9662_v63 = vor.u32 %v11048_v50, %v9659_v52  ;;  %v11066_v61 = vld [vmem:[%s16520_s1 + $0x14bc] sm:$0xf]  ;;  %v9731_v50 = vld [vmem:[%s16520_s1 + $0x14c4] sm:$0xf0]  ;;  %v9446_v52 = vor.u32 %v10994_v21, %v9443_v27 }
 0x1bc   :  { %5964 = vmatpush.bf16.msrb.mxu0 %v9014_v1  ;;  %v9455_v1 = vld [vmem:[%s16520_s1 + $0x129c] sm:$0xf0]  ;;  %v9758_v2 = vor.u32 %v11072_v57, %v9755_v59  ;;  %v10991_v57 = vld [vmem:[%s16520_s1 + $0x1264] sm:$0xf]  ;;  %v9431_v59 = vld [vmem:[%s16520_s1 + $0x126c] sm:$0xf0] }
 0x1bd   :  { %5977 = vmatpush.bf16.msrb.mxu1 %v9110_v4  ;;  %v9551_v4 = vld [vmem:[%s16520_s1 + $0x135c] sm:$0xf0]  ;;  %v9458_v15 = vor.u32 %v10997_v0, %v9455_v1  ;;  %v9623_v0 = vld [vmem:[%s16520_s1 + $0x13ec] sm:$0xf0]  ;;  %v11063_v1 = vld [vmem:[%s16520_s1 + $0x14a4] sm:$0xf] }
 0x1be   :  { %5990 = vmatpush.bf16.msrb.mxu2 %v9206_v6  ;;  %v11045_v6 = vld [vmem:[%s16520_s1 + $0x1414] sm:$0xf]  ;;  %v9515_v27 = vld [vmem:[%s16520_s1 + $0x1314] sm:$0xf0] }
 0x1bf   :  { %6003 = vmatpush.bf16.msrb.mxu3 %v9302_v51  ;;  %v9554_v51 = vor.u32 %v11021_v26, %v9551_v4  ;;  %v9650_v17 = vor.u32 %v11045_v6, %v9647_v8  ;;  %v9719_v26 = vld [vmem:[%s16520_s1 + $0x14ac] sm:$0xf0] }
 0x1c0   :  { %5965 = vmatpush.bf16.msrb.mxu0 %v9002_v48  ;;  %v9635_v48 = vld [vmem:[%s16520_s1 + $0x1404] sm:$0xf0]  ;;  %v5759_v4 = vpop.f32.mrf.mxu0  ;;  %v9722_v21 = vor.u32 %v11063_v1, %v9719_v26  ;;  %v11057_v1 = vld [vmem:[%s16520_s1 + $0x1474] sm:$0xf]  ;;  %v9695_v26 = vld [vmem:[%s16520_s1 + $0x147c] sm:$0xf0] }
 0x1c1   :  { %5978 = vmatpush.bf16.msrb.mxu1 %v9098_v54  ;;  %v9542_v54 = vor.u32 %v11018_v32, %v9539_v39  ;;  %v11036_v32 = vld [vmem:[%s16520_s1 + $0x13cc] sm:$0xf] }
 0x1c2   :  { %5991 = vmatpush.bf16.msrb.mxu2 %v9194_v56  ;;  %v9638_v56 = vor.u32 %v11042_v40, %v9635_v48  ;;  %v11060_v39 = vld [vmem:[%s16520_s1 + $0x148c] sm:$0xf]  ;;  %v9422_v48 = vor.u32 %v10988_v9, %v9419_v14  ;;  %v10982_v14 = vld [vmem:[%s16520_s1 + $0x121c] sm:$0xf] }
 0x1c3   :  { %6004 = vmatpush.bf16.msrb.mxu3 %v9290_v60  ;;  %5966 = vmatmul.bf16.vlgmr.msrb.gmra.mxu0 %v12564_v7  ;;  %v11015_v60 = vld [vmem:[%s16520_s1 + $0x1324] sm:$0xf] }
 0x1c4   :  { %6010 = vmatpush.bf16.msra.mxu0 %v9470_v55  ;;  %5979 = vmatmul.bf16.vlgmr.msrb.gmra.mxu1 %v12577_v12  ;;  %v9734_v55 = vor.u32 %v11066_v61, %v9731_v50 }
 0x1c5   :  { %6023 = vmatpush.bf16.msra.mxu1 %v9566_v62  ;;  %5992 = vmatmul.bf16.vlgmr.msrb.gmra.mxu2 %v12575_v11  ;;  %v9527_v62 = vld [vmem:[%s16520_s1 + $0x132c] sm:$0xf0] }
 0x1c6   :  { %6036 = vmatpush.bf16.msra.mxu2 %v9662_v63  ;;  %6005 = vmatmul.bf16.vlgmr.msrb.gmra.mxu3 %v12585_v16  ;;  %v11039_v63 = vld [vmem:[%s16520_s1 + $0x13e4] sm:$0xf]  ;;  %v9530_v6 = vor.u32 %v11015_v60, %v9527_v62  ;;  %v9503_v60 = vld [vmem:[%s16520_s1 + $0x12fc] sm:$0xf0] }
 0x1c7   :  { %6049 = vmatpush.bf16.msra.mxu3 %v9758_v2  ;;  %v9434_v2 = vor.u32 %v10991_v57, %v9431_v59  ;;  %v9626_v8 = vor.u32 %v11039_v63, %v9623_v0  ;;  %v9599_v62 = vld [vmem:[%s16520_s1 + $0x13bc] sm:$0xf0] }
 0x1c8   :  { %6011 = vmatpush.bf16.msra.mxu0 %v9458_v15  ;;  %v11012_v15 = vld [vmem:[%s16520_s1 + $0x130c] sm:$0xf]  ;;  %v5785_v57 = vpop.f32.mrf.mxu2 }
 0x1c9   :  { %6024 = vmatpush.bf16.msra.mxu1 %v9554_v51  ;;  %v5760_v51 = vadd.f32 %v5759_v4, %v14111_v47  ;;  %v9707_v47 = vld [vmem:[%s16520_s1 + $0x1494] sm:$0xf0]  ;;  %v9518_v61 = vor.u32 %v11012_v15, %v9515_v27  ;;  %v5798_v0 = vpop.f32.mrf.mxu3  ;;  %v9395_v15 = vld [vmem:[%s16520_s1 + $0x1224] sm:$0xf0] }
 0x1ca   :  { %6037 = vmatpush.bf16.msra.mxu2 %v9650_v17  ;;  %v5772_v17 = vpop.f32.mrf.mxu1  ;;  %v9710_v59 = vor.u32 %v11060_v39, %v9707_v47  ;;  %v9491_v27 = vld [vmem:[%s16520_s1 + $0x12e4] sm:$0xf0]  ;;  %v11054_v39 = vld [vmem:[%s16520_s1 + $0x145c] sm:$0xf] }
 0x1cb   :  { %6050 = vmatpush.bf16.msra.mxu3 %v9746_v58  ;;  %v9611_v58 = vld [vmem:[%s16520_s1 + $0x13d4] sm:$0xf0]  ;;  %v5773_v40 = vadd.f32 %v5772_v17, %v5760_v51  ;;  %v11006_v51 = vld [vmem:[%s16520_s1 + $0x12dc] sm:$0xf]  ;;  %v9683_v47 = vld [vmem:[%s16520_s1 + $0x1464] sm:$0xf0] }
 0x1cc   :  { %6012 = vmatpush.bf16.msra.mxu0 %v9446_v52  ;;  %v9614_v50 = vor.u32 %v11036_v32, %v9611_v58  ;;  %v10985_v52 = vld [vmem:[%s16520_s1 + $0x1234] sm:$0xf]  ;;  %v11030_v32 = vld [vmem:[%s16520_s1 + $0x139c] sm:$0xf]  ;;  %v9587_v58 = vld [vmem:[%s16520_s1 + $0x13a4] sm:$0xf0] }
 0x1cd   :  { %6025 = vmatpush.bf16.msra.mxu1 %v9542_v54  ;;  %v9407_v54 = vld [vmem:[%s16520_s1 + $0x123c] sm:$0xf0]  ;;  %v5786_v63 = vadd.f32 %v5785_v57, %v5773_v40  ;;  %v9398_v40 = vor.u32 %v10982_v14, %v9395_v15  ;;  %v11027_v57 = vld [vmem:[%s16520_s1 + $0x1384] sm:$0xf]  ;;  %v10043_v14 = vld [vmem:[%s16520_s1 + $0x1734] sm:$0xf0] }
 0x1ce   :  { %6038 = vmatpush.bf16.msra.mxu2 %v9638_v56  ;;  %v11009_v56 = vld [vmem:[%s16520_s1 + $0x12f4] sm:$0xf] }
 0x1cf   :  { %6051 = vmatpush.bf16.msra.mxu3 %v9734_v55  ;;  %v11033_v55 = vld [vmem:[%s16520_s1 + $0x13b4] sm:$0xf]  ;;  %v14310_v4 = vadd.f32 %v5798_v0, %v5786_v63  ;;  %v9671_v63 = vld [vmem:[%s16520_s1 + $0x144c] sm:$0xf0] }
 0x1d0   :  { %6013 = vmatpush.bf16.msra.mxu0 %v9434_v2  ;;  %v9410_v2 = vor.u32 %v10985_v52, %v9407_v54  ;;  %v9602_v9 = vor.u32 %v11033_v55, %v9599_v62  ;;  %v9590_v52 = vor.u32 %v11030_v32, %v9587_v58  ;;  %v11003_v54 = vld [vmem:[%s16520_s1 + $0x12c4] sm:$0xf]  ;;  %v9575_v55 = vld [vmem:[%s16520_s1 + $0x138c] sm:$0xf0] }
 0x1d1   :  { %6026 = vmatpush.bf16.msra.mxu1 %v9530_v6  ;;  %v5761_v6 = vpop.f32.mrf.mxu0  ;;  %v11051_v62 = vld [vmem:[%s16520_s1 + $0x1444] sm:$0xf]  ;;  %v5800_v0 = vpop.f32.mrf.mxu3 }
 0x1d2   :  { %6039 = vmatpush.bf16.msra.mxu2 %v9626_v8  ;;  %v9506_v8 = vor.u32 %v11009_v56, %v9503_v60  ;;  %v5774_v17 = vpop.f32.mrf.mxu1  ;;  %v9479_v56 = vld [vmem:[%s16520_s1 + $0x12cc] sm:$0xf0]  ;;  %v9686_v60 = vor.u32 %v11054_v39, %v9683_v47  ;;  %v11093_v47 = vld [vmem:[%s16520_s1 + $0x1594] sm:$0xf]  ;;  %v11114_v0 = vld [vmem:[%s16520_s1 + $0x163c] sm:$0xf] }
 0x1d3   :  { %6052 = vmatpush.bf16.msra.mxu3 %v9722_v21  ;;  %v9698_v21 = vor.u32 %v11057_v1, %v9695_v26  ;;  %v11096_v1 = vld [vmem:[%s16520_s1 + $0x15ac] sm:$0xf]  ;;  %v9851_v26 = vld [vmem:[%s16520_s1 + $0x15b4] sm:$0xf0]  ;;  %v9482_v15 = vor.u32 %v11003_v54, %v9479_v56  ;;  %v10031_v54 = vld [vmem:[%s16520_s1 + $0x171c] sm:$0xf0] }
 0x1d4   :  { %6014 = vmatpush.bf16.msra.mxu0 %v9422_v48  ;;  %v10979_v48 = vld [vmem:[%s16520_s1 + $0x1204] sm:$0xf]  ;;  %v11168_v17 = vld [vmem:[%s16520_s1 + $0x17ec] sm:$0xf]  ;;  %v9854_v32 = vor.u32 %v11096_v1, %v9851_v26  ;;  %v11165_v56 = vld [vmem:[%s16520_s1 + $0x17d4] sm:$0xf] }
 0x1d5   :  { %6027 = vmatpush.bf16.msra.mxu1 %v9518_v61  ;;  %v9383_v61 = vld [vmem:[%s16520_s1 + $0x120c] sm:$0xf0]  ;;  %v9923_v26 = vld [vmem:[%s16520_s1 + $0x1644] sm:$0xf0] }
 0x1d6   :  { %6040 = vmatpush.bf16.msra.mxu2 %v9614_v50  ;;  %v9494_v50 = vor.u32 %v11006_v51, %v9491_v27  ;;  %v9386_v6 = vor.u32 %v10979_v48, %v9383_v61  ;;  %v9578_v51 = vor.u32 %v11027_v57, %v9575_v55  ;;  %v9674_v27 = vor.u32 %v11051_v62, %v9671_v63  ;;  %v11117_v48 = vld [vmem:[%s16520_s1 + $0x1654] sm:$0xf]  ;;  %v10127_v57 = vld [vmem:[%s16520_s1 + $0x17dc] sm:$0xf0]  ;;  %v11090_v62 = vld [vmem:[%s16520_s1 + $0x157c] sm:$0xf] }
 0x1d7   :  { %6053 = vmatpush.bf16.msra.mxu3 %v9710_v59  ;;  %v5787_v59 = vpop.f32.mrf.mxu2  ;;  %v9827_v63 = vld [vmem:[%s16520_s1 + $0x1584] sm:$0xf0]  ;;  %v10130_v1 = vor.u32 %v11165_v56, %v10127_v57 }
 0x1d8   :  { %6015 = vmatpush.bf16.msra.mxu0 %v9410_v2  ;;  %v11120_v2 = vld [vmem:[%s16520_s1 + $0x166c] sm:$0xf] }
 0x1d9   :  { %6028 = vmatpush.bf16.msra.mxu1 %v9506_v8  ;;  %v9947_v8 = vld [vmem:[%s16520_s1 + $0x1674] sm:$0xf0] }
 0x1da   :  { %6041 = vmatpush.bf16.msra.mxu2 %v9602_v9  ;;  %v11144_v9 = vld [vmem:[%s16520_s1 + $0x172c] sm:$0xf]  ;;  %v9950_v58 = vor.u32 %v11120_v2, %v9947_v8  ;;  %v11138_v2 = vld [vmem:[%s16520_s1 + $0x16fc] sm:$0xf] }
 0x1db   :  { %6054 = vmatpush.bf16.msra.mxu3 %v9698_v21  ;;  %v10139_v21 = vld [vmem:[%s16520_s1 + $0x17f4] sm:$0xf0]  ;;  %v10046_v39 = vor.u32 %v11144_v9, %v10043_v14  ;;  %v11162_v8 = vld [vmem:[%s16520_s1 + $0x17bc] sm:$0xf]  ;;  %v10115_v9 = vld [vmem:[%s16520_s1 + $0x17c4] sm:$0xf0]  ;;  %v9830_v14 = vor.u32 %v11090_v62, %v9827_v63 }
 0x1dc   :  { %6016 = vmatpush.bf16.msra.mxu0 %v9398_v40  ;;  %v9839_v40 = vld [vmem:[%s16520_s1 + $0x159c] sm:$0xf0]  ;;  %v10142_v61 = vor.u32 %v11168_v17, %v10139_v21  ;;  %v11087_v17 = vld [vmem:[%s16520_s1 + $0x1564] sm:$0xf]  ;;  %v9815_v21 = vld [vmem:[%s16520_s1 + $0x156c] sm:$0xf0] }
 0x1dd   :  { %6029 = vmatpush.bf16.msra.mxu1 %v9494_v50  ;;  %v9935_v50 = vld [vmem:[%s16520_s1 + $0x165c] sm:$0xf0]  ;;  %v9842_v59 = vor.u32 %v11093_v47, %v9839_v40  ;;  %v10007_v47 = vld [vmem:[%s16520_s1 + $0x16ec] sm:$0xf0]  ;;  %v9899_v63 = vld [vmem:[%s16520_s1 + $0x1614] sm:$0xf0] }
 0x1de   :  { %6042 = vmatpush.bf16.msra.mxu2 %v9590_v52  ;;  %v11141_v52 = vld [vmem:[%s16520_s1 + $0x1714] sm:$0xf] }
 0x1df   :  { %6055 = vmatpush.bf16.msra.mxu3 %v9686_v60  ;;  %v9938_v60 = vor.u32 %v11117_v48, %v9935_v50  ;;  %v10034_v55 = vor.u32 %v11141_v52, %v10031_v54  ;;  %v11159_v48 = vld [vmem:[%s16520_s1 + $0x17a4] sm:$0xf]  ;;  %v9818_v52 = vor.u32 %v11087_v17, %v9815_v21 }
 0x1e0   :  { %6017 = vmatpush.bf16.msra.mxu0 %v9386_v6  ;;  %v10019_v6 = vld [vmem:[%s16520_s1 + $0x1704] sm:$0xf0]  ;;  %v5811_v40 = vpop.f32.mrf.mxu0 }
 0x1e1   :  { %6030 = vmatpush.bf16.msra.mxu1 %v9482_v15  ;;  %v9926_v15 = vor.u32 %v11114_v0, %v9923_v26  ;;  %v5812_v50 = vadd.f32 %v5811_v40, %v14310_v4  ;;  %v5824_v54 = vpop.f32.mrf.mxu1  ;;  %v11132_v0 = vld [vmem:[%s16520_s1 + $0x16cc] sm:$0xf]  ;;  %v11153_v40 = vld [vmem:[%s16520_s1 + $0x1774] sm:$0xf] }
 0x1e2   :  { %6043 = vmatpush.bf16.msra.mxu2 %v9578_v51  ;;  %v10022_v51 = vor.u32 %v11138_v2, %v10019_v6  ;;  %v11156_v26 = vld [vmem:[%s16520_s1 + $0x178c] sm:$0xf]  ;;  %v10091_v2 = vld [vmem:[%s16520_s1 + $0x1794] sm:$0xf0] }
 0x1e3   :  { %6056 = vmatpush.bf16.msra.mxu3 %v9674_v27  ;;  %6018 = vmatmul.bf16.vlgmr.msra.gmra.mxu0 %v12777_v5  ;;  %v11111_v27 = vld [vmem:[%s16520_s1 + $0x1624] sm:$0xf]  ;;  %v5825_v62 = vadd.f32 %v5824_v54, %v5812_v50  ;;  %v10094_v17 = vor.u32 %v11156_v26, %v10091_v2  ;;  %v10067_v26 = vld [vmem:[%s16520_s1 + $0x1764] sm:$0xf0] }
 0x1e4   :  { %6062 = vmatpush.bf16.msrb.mxu0 %v9854_v32  ;;  %6031 = vmatmul.bf16.vlgmr.msra.gmra.mxu1 %v12790_v13  ;;  %v10118_v32 = vor.u32 %v11162_v8, %v10115_v9 }
 0x1e5   :  { %6075 = vmatpush.bf16.msrb.mxu1 %v9950_v58  ;;  %6044 = vmatmul.bf16.vlgmr.msra.gmra.mxu2 %v12788_v10  ;;  %v9911_v58 = vld [vmem:[%s16520_s1 + $0x162c] sm:$0xf0] }
 0x1e6   :  { %6088 = vmatpush.bf16.msrb.mxu2 %v10046_v39  ;;  %6057 = vmatmul.bf16.vlgmr.msra.gmra.mxu3 %v12798_v53  ;;  %v11135_v39 = vld [vmem:[%s16520_s1 + $0x16e4] sm:$0xf]  ;;  %v9914_v56 = vor.u32 %v11111_v27, %v9911_v58  ;;  %v9887_v27 = vld [vmem:[%s16520_s1 + $0x15fc] sm:$0xf0] }
 0x1e7   :  { %6101 = vmatpush.bf16.msrb.mxu3 %v10142_v61  ;;  %v10103_v61 = vld [vmem:[%s16520_s1 + $0x17ac] sm:$0xf0]  ;;  %v10010_v57 = vor.u32 %v11135_v39, %v10007_v47  ;;  %v9983_v58 = vld [vmem:[%s16520_s1 + $0x16bc] sm:$0xf0] }
 0x1e8   :  { %6063 = vmatpush.bf16.msrb.mxu0 %v9842_v59  ;;  %v11084_v59 = vld [vmem:[%s16520_s1 + $0x154c] sm:$0xf]  ;;  %v10106_v4 = vor.u32 %v11159_v48, %v10103_v61  ;;  %v5837_v21 = vpop.f32.mrf.mxu2  ;;  %v10079_v48 = vld [vmem:[%s16520_s1 + $0x177c] sm:$0xf0]  ;;  %v5813_v61 = vpop.f32.mrf.mxu0 }
 0x1e9   :  { %6076 = vmatpush.bf16.msrb.mxu1 %v9938_v60  ;;  %v9803_v60 = vld [vmem:[%s16520_s1 + $0x1554] sm:$0xf0]  ;;  %v5838_v39 = vadd.f32 %v5837_v21, %v5825_v62  ;;  %v5850_v47 = vpop.f32.mrf.mxu3  ;;  %v9875_v62 = vld [vmem:[%s16520_s1 + $0x15e4] sm:$0xf0] }
 0x1ea   :  { %6089 = vmatpush.bf16.msrb.mxu2 %v10034_v55  ;;  %v11108_v55 = vld [vmem:[%s16520_s1 + $0x160c] sm:$0xf]  ;;  %v9806_v6 = vor.u32 %v11084_v59, %v9803_v60  ;;  %v11078_v59 = vld [vmem:[%s16520_s1 + $0x151c] sm:$0xf]  ;;  %v9779_v60 = vld [vmem:[%s16520_s1 + $0x1524] sm:$0xf0] }
 0x1eb   :  { %6102 = vmatpush.bf16.msrb.mxu3 %v10130_v1  ;;  %v9995_v1 = vld [vmem:[%s16520_s1 + $0x16d4] sm:$0xf0]  ;;  %v9902_v8 = vor.u32 %v11108_v55, %v9899_v63  ;;  %v14509_v54 = vadd.f32 %v5850_v47, %v5838_v39  ;;  %v11102_v55 = vld [vmem:[%s16520_s1 + $0x15dc] sm:$0xf]  ;;  %v9782_v2 = vor.u32 %v11078_v59, %v9779_v60  ;;  %v7169_v47 = vld [vmem:[%s16520_s1 + $0xb0] sm:$0xf] }
 0x1ec   :  { %6064 = vmatpush.bf16.msrb.mxu0 %v9830_v14  ;;  %v9998_v9 = vor.u32 %v11132_v0, %v9995_v1  ;;  %v11081_v14 = vld [vmem:[%s16520_s1 + $0x1534] sm:$0xf]  ;;  %v11126_v63 = vld [vmem:[%s16520_s1 + $0x169c] sm:$0xf]  ;;  %v9971_v0 = vld [vmem:[%s16520_s1 + $0x16a4] sm:$0xf0] }
 0x1ed   :  { %6077 = vmatpush.bf16.msrb.mxu1 %v9926_v15  ;;  %v9791_v15 = vld [vmem:[%s16520_s1 + $0x153c] sm:$0xf0]  ;;  %v11150_v1 = vld [vmem:[%s16520_s1 + $0x175c] sm:$0xf] }
 0x1ee   :  { %6090 = vmatpush.bf16.msrb.mxu2 %v10022_v51  ;;  %v11105_v51 = vld [vmem:[%s16520_s1 + $0x15f4] sm:$0xf]  ;;  %v9794_v50 = vor.u32 %v11081_v14, %v9791_v15  ;;  %v9974_v14 = vor.u32 %v11126_v63, %v9971_v0  ;;  %v11099_v15 = vld [vmem:[%s16520_s1 + $0x15c4] sm:$0xf]  ;;  %v10070_v21 = vor.u32 %v11150_v1, %v10067_v26  ;;  %v7157_v26 = vld [vmem:[%s16520_s1 + $0x98] sm:$0xf] }
 0x1ef   :  { %6103 = vmatpush.bf16.msrb.mxu3 %v10118_v32  ;;  %v11129_v32 = vld [vmem:[%s16520_s1 + $0x16b4] sm:$0xf] }
 0x1f0   :  { %6065 = vmatpush.bf16.msrb.mxu0 %v9818_v52  ;;  %v5826_v52 = vpop.f32.mrf.mxu1  ;;  %v5839_v39 = vpop.f32.mrf.mxu2 }
 0x1f1   :  { %6078 = vmatpush.bf16.msrb.mxu1 %v9914_v56  ;;  %v9890_v56 = vor.u32 %v11105_v51, %v9887_v27  ;;  %v9863_v51 = vld [vmem:[%s16520_s1 + $0x15cc] sm:$0xf0]  ;;  %v5852_v61 = vpop.f32.mrf.mxu3  ;;  %v10450_v52 = vld [vmem:[%s16520_s1 + $0x178] sm:$0xf0]  ;;  %v10420_v39 = vld [vmem:[%s16520_s1 + $0x88] sm:$0xf0] }
 0x1f2   :  { %6091 = vmatpush.bf16.msrb.mxu2 %v10010_v57  ;;  %v9986_v57 = vor.u32 %v11129_v32, %v9983_v58  ;;  %v9959_v27 = vld [vmem:[%s16520_s1 + $0x168c] sm:$0xf0]  ;;  %v11147_v32 = vld [vmem:[%s16520_s1 + $0x1744] sm:$0xf]  ;;  %v9866_v59 = vor.u32 %v11099_v15, %v9863_v51  ;;  %v7445_v51 = vld [vmem:[%s16520_s1 + $0x2d8] sm:$0xf] }
 0x1f3   :  { %6104 = vmatpush.bf16.msrb.mxu3 %v10106_v4  ;;  %v10082_v4 = vor.u32 %v11153_v40, %v10079_v48  ;;  %v10055_v58 = vld [vmem:[%s16520_s1 + $0x174c] sm:$0xf0]  ;;  %v10426_v40 = vld [vmem:[%s16520_s1 + $0xb8] sm:$0xf0]  ;;  %v10471_v15 = vld [vmem:[%s16520_s1 + $0x220] sm:$0xf0] }
 0x1f4   :  { %6066 = vmatpush.bf16.msrb.mxu0 %v9806_v6  ;;  %v11075_v6 = vld [vmem:[%s16520_s1 + $0x1504] sm:$0xf]  ;;  %v7265_v48 = vld [vmem:[%s16520_s1 + $0x170] sm:$0xf]  ;;  %v7170_v63 = vor.u32 %v10426_v40, %v7169_v47  ;;  %v7241_v47 = vld [vmem:[%s16520_s1 + $0x140] sm:$0xf] }
 0x1f5   :  { %6079 = vmatpush.bf16.msrb.mxu1 %v9902_v8  ;;  %v9767_v8 = vld [vmem:[%s16520_s1 + $0x150c] sm:$0xf0]  ;;  %v7266_v0 = vor.u32 %v10450_v52, %v7265_v48  ;;  %v10444_v48 = vld [vmem:[%s16520_s1 + $0x148] sm:$0xf0]  ;;  %v7337_v61 = vld [vmem:[%s16520_s1 + $0x200] sm:$0xf] }
 0x1f6   :  { %6092 = vmatpush.bf16.msrb.mxu2 %v9998_v9  ;;  %v9878_v9 = vor.u32 %v11102_v55, %v9875_v62  ;;  %v7457_v55 = vld [vmem:[%s16520_s1 + $0x2f0] sm:$0xf]  ;;  %v10058_v62 = vor.u32 %v11147_v32, %v10055_v58  ;;  %v7145_v58 = vld [vmem:[%s16520_s1 + $0x80] sm:$0xf] }
 0x1f7   :  { %6105 = vmatpush.bf16.msrb.mxu3 %v10094_v17  ;;  %v11123_v17 = vld [vmem:[%s16520_s1 + $0x1684] sm:$0xf]  ;;  %v7433_v52 = vld [vmem:[%s16520_s1 + $0x2c0] sm:$0xf] }
 0x1f8   :  { %6067 = vmatpush.bf16.msrb.mxu0 %v9794_v50  ;;  %v9770_v50 = vor.u32 %v11075_v6, %v9767_v8  ;;  %v9962_v60 = vor.u32 %v11123_v17, %v9959_v27  ;;  %v7253_v6 = vld [vmem:[%s16520_s1 + $0x158] sm:$0xf]  ;;  %v10495_v17 = vld [vmem:[%s16520_s1 + $0x2e0] sm:$0xf0] }
 0x1f9   :  { %6080 = vmatpush.bf16.msrb.mxu1 %v9890_v56  ;;  %v7361_v56 = vld [vmem:[%s16520_s1 + $0x230] sm:$0xf]  ;;  %v7446_v40 = vor.u32 %v10495_v17, %v7445_v51 }
 0x1fa   :  { %6093 = vmatpush.bf16.msrb.mxu2 %v9986_v57  ;;  %v10474_v57 = vld [vmem:[%s16520_s1 + $0x238] sm:$0xf0] }
 0x1fb   :  { %6106 = vmatpush.bf16.msrb.mxu3 %v10082_v4  ;;  %v10498_v4 = vld [vmem:[%s16520_s1 + $0x2f8] sm:$0xf0]  ;;  %v7362_v1 = vor.u32 %v10474_v57, %v7361_v56  ;;  %v10492_v56 = vld [vmem:[%s16520_s1 + $0x2c8] sm:$0xf0]  ;;  %v7146_v57 = vor.u32 %v10420_v39, %v7145_v58 }
 0x1fc   :  { %6068 = vmatpush.bf16.msrb.mxu0 %v9782_v2  ;;  %v10423_v2 = vld [vmem:[%s16520_s1 + $0xa0] sm:$0xf0]  ;;  %v7458_v8 = vor.u32 %v10498_v4, %v7457_v55  ;;  %v7133_v55 = vld [vmem:[%s16520_s1 + $0x68] sm:$0xf]  ;;  %v10417_v4 = vld [vmem:[%s16520_s1 + $0x70] sm:$0xf0] }
 0x1fd   :  { %6081 = vmatpush.bf16.msrb.mxu1 %v9878_v9  ;;  %v10447_v9 = vld [vmem:[%s16520_s1 + $0x160] sm:$0xf0]  ;;  %v10438_v39 = vld [vmem:[%s16520_s1 + $0x118] sm:$0xf0] }
 0x1fe   :  { %6094 = vmatpush.bf16.msrb.mxu2 %v9974_v14  ;;  %v7349_v14 = vld [vmem:[%s16520_s1 + $0x218] sm:$0xf]  ;;  %v7254_v27 = vor.u32 %v10447_v9, %v7253_v6  ;;  %v7421_v6 = vld [vmem:[%s16520_s1 + $0x2a8] sm:$0xf] }
 0x1ff   :  { %6107 = vmatpush.bf16.msrb.mxu3 %v10070_v21  ;;  %v7158_v21 = vor.u32 %v10423_v2, %v7157_v26  ;;  %v7350_v32 = vor.u32 %v10471_v15, %v7349_v14  ;;  %v10465_v26 = vld [vmem:[%s16520_s1 + $0x1f0] sm:$0xf0]  ;;  %v7134_v14 = vor.u32 %v10417_v4, %v7133_v55 }
 0x200   :  { %6069 = vmatpush.bf16.msrb.mxu0 %v9770_v50  ;;  %v10468_v50 = vld [vmem:[%s16520_s1 + $0x208] sm:$0xf0]  ;;  %v5863_v2 = vpop.f32.mrf.mxu0 }
 0x201   :  { %6082 = vmatpush.bf16.msrb.mxu1 %v9866_v59  ;;  %v7242_v59 = vor.u32 %v10444_v48, %v7241_v47  ;;  %v5864_v9 = vadd.f32 %v5863_v2, %v14509_v54  ;;  %v5876_v15 = vpop.f32.mrf.mxu1  ;;  %v7313_v47 = vld [vmem:[%s16520_s1 + $0x1d0] sm:$0xf]  ;;  %v7397_v2 = vld [vmem:[%s16520_s1 + $0x278] sm:$0xf] }
 0x202   :  { %6095 = vmatpush.bf16.msrb.mxu2 %v9962_v60  ;;  %v7338_v60 = vor.u32 %v10468_v50, %v7337_v61  ;;  %v7409_v48 = vld [vmem:[%s16520_s1 + $0x290] sm:$0xf]  ;;  %v10486_v61 = vld [vmem:[%s16520_s1 + $0x298] sm:$0xf0] }
 0x203   :  { %6108 = vmatpush.bf16.msrb.mxu3 %v10058_v62  ;;  %6070 = vmatmul.bf16.vlgmr.msrb.gmra.mxu0 %v12990_v24  ;;  %v7229_v62 = vld [vmem:[%s16520_s1 + $0x128] sm:$0xf]  ;;  %v5877_v58 = vadd.f32 %v5876_v15, %v5864_v9  ;;  %v7410_v55 = vor.u32 %v10486_v61, %v7409_v48  ;;  %v10480_v48 = vld [vmem:[%s16520_s1 + $0x268] sm:$0xf0] }
 0x204   :  { %6114 = vmatpush.bf16.msra.mxu0 %v7170_v63  ;;  %6083 = vmatmul.bf16.vlgmr.msrb.gmra.mxu1 %v13003_v36  ;;  %v7434_v63 = vor.u32 %v10492_v56, %v7433_v52 }
 0x205   :  { %6127 = vmatpush.bf16.msra.mxu1 %v7266_v0  ;;  %6096 = vmatmul.bf16.vlgmr.msrb.gmra.mxu2 %v13001_v34  ;;  %v10441_v0 = vld [vmem:[%s16520_s1 + $0x130] sm:$0xf0] }
 0x206   :  { %6140 = vmatpush.bf16.msra.mxu2 %v7362_v1  ;;  %6109 = vmatmul.bf16.vlgmr.msrb.gmra.mxu3 %v13011_v43  ;;  %v7325_v1 = vld [vmem:[%s16520_s1 + $0x1e8] sm:$0xf]  ;;  %v7230_v51 = vor.u32 %v10441_v0, %v7229_v62  ;;  %v10435_v62 = vld [vmem:[%s16520_s1 + $0x100] sm:$0xf0] }
 0x207   :  { %6153 = vmatpush.bf16.msra.mxu3 %v7458_v8  ;;  %v10489_v8 = vld [vmem:[%s16520_s1 + $0x2b0] sm:$0xf0]  ;;  %v7326_v17 = vor.u32 %v10465_v26, %v7325_v1  ;;  %v10459_v0 = vld [vmem:[%s16520_s1 + $0x1c0] sm:$0xf0] }
 0x208   :  { %6115 = vmatpush.bf16.msra.mxu0 %v7158_v21  ;;  %v7121_v21 = vld [vmem:[%s16520_s1 + $0x50] sm:$0xf]  ;;  %v7422_v54 = vor.u32 %v10489_v8, %v7421_v6  ;;  %v5889_v4 = vpop.f32.mrf.mxu2  ;;  %v10483_v6 = vld [vmem:[%s16520_s1 + $0x280] sm:$0xf0]  ;;  %v5865_v8 = vpop.f32.mrf.mxu0 }
 0x209   :  { %6128 = vmatpush.bf16.msra.mxu1 %v7254_v27  ;;  %v10414_v27 = vld [vmem:[%s16520_s1 + $0x58] sm:$0xf0]  ;;  %v5890_v1 = vadd.f32 %v5889_v4, %v5877_v58  ;;  %v5902_v26 = vpop.f32.mrf.mxu3  ;;  %v10432_v58 = vld [vmem:[%s16520_s1 + $0xe8] sm:$0xf0] }
 0x20a   :  { %6141 = vmatpush.bf16.msra.mxu2 %v7350_v32  ;;  %v7217_v32 = vld [vmem:[%s16520_s1 + $0x110] sm:$0xf]  ;;  %v7122_v50 = vor.u32 %v10414_v27, %v7121_v21  ;;  %v7097_v21 = vld [vmem:[%s16520_s1 + $0x20] sm:$0xf]  ;;  %v10408_v27 = vld [vmem:[%s16520_s1 + $0x28] sm:$0xf0] }
 0x20b   :  { %6154 = vmatpush.bf16.msra.mxu3 %v7446_v40  ;;  %v10462_v40 = vld [vmem:[%s16520_s1 + $0x1d8] sm:$0xf0]  ;;  %v7218_v52 = vor.u32 %v10438_v39, %v7217_v32  ;;  %v14708_v15 = vadd.f32 %v5902_v26, %v5890_v1  ;;  %v7193_v32 = vld [vmem:[%s16520_s1 + $0xe0] sm:$0xf]  ;;  %v7098_v61 = vor.u32 %v10408_v27, %v7097_v21  ;;  %v7553_v26 = vld [vmem:[%s16520_s1 + $0x3b0] sm:$0xf] }
 0x20c   :  { %6116 = vmatpush.bf16.msra.mxu0 %v7146_v57  ;;  %v7314_v56 = vor.u32 %v10462_v40, %v7313_v47  ;;  %v7109_v57 = vld [vmem:[%s16520_s1 + $0x38] sm:$0xf]  ;;  %v7289_v39 = vld [vmem:[%s16520_s1 + $0x1a0] sm:$0xf]  ;;  %v10456_v47 = vld [vmem:[%s16520_s1 + $0x1a8] sm:$0xf0] }
 0x20d   :  { %6129 = vmatpush.bf16.msra.mxu1 %v7242_v59  ;;  %v10411_v59 = vld [vmem:[%s16520_s1 + $0x40] sm:$0xf0]  ;;  %v7385_v40 = vld [vmem:[%s16520_s1 + $0x260] sm:$0xf] }
 0x20e   :  { %6142 = vmatpush.bf16.msra.mxu2 %v7338_v60  ;;  %v7205_v60 = vld [vmem:[%s16520_s1 + $0xf8] sm:$0xf]  ;;  %v7110_v9 = vor.u32 %v10411_v59, %v7109_v57  ;;  %v7290_v57 = vor.u32 %v10456_v47, %v7289_v39  ;;  %v7181_v59 = vld [vmem:[%s16520_s1 + $0xc8] sm:$0xf]  ;;  %v7386_v4 = vor.u32 %v10480_v48, %v7385_v40 }
 0x20f   :  { %6155 = vmatpush.bf16.msra.mxu3 %v7434_v63  ;;  %v7301_v63 = vld [vmem:[%s16520_s1 + $0x1b8] sm:$0xf] }
 0x210   :  { %6117 = vmatpush.bf16.msra.mxu0 %v7134_v14  ;;  %v5878_v14 = vpop.f32.mrf.mxu1  ;;  %v5891_v1 = vpop.f32.mrf.mxu2  ;;  %v7541_v48 = vld [vmem:[%s16520_s1 + $0x398] sm:$0xf] }
 0x211   :  { %6130 = vmatpush.bf16.msra.mxu1 %v7230_v51  ;;  %v7206_v51 = vor.u32 %v10435_v62, %v7205_v60  ;;  %v10429_v60 = vld [vmem:[%s16520_s1 + $0xd0] sm:$0xf0]  ;;  %v5904_v8 = vpop.f32.mrf.mxu3  ;;  %v10546_v14 = vld [vmem:[%s16520_s1 + $0x478] sm:$0xf0]  ;;  %v10516_v1 = vld [vmem:[%s16520_s1 + $0x388] sm:$0xf0] }
 0x212   :  { %6143 = vmatpush.bf16.msra.mxu2 %v7326_v17  ;;  %v7302_v17 = vor.u32 %v10459_v0, %v7301_v63  ;;  %v10453_v62 = vld [vmem:[%s16520_s1 + $0x190] sm:$0xf0]  ;;  %v7373_v63 = vld [vmem:[%s16520_s1 + $0x248] sm:$0xf]  ;;  %v7182_v21 = vor.u32 %v10429_v60, %v7181_v59  ;;  %v10567_v59 = vld [vmem:[%s16520_s1 + $0x520] sm:$0xf0] }
 0x213   :  { %6156 = vmatpush.bf16.msra.mxu3 %v7422_v54  ;;  %v7398_v54 = vor.u32 %v10483_v6, %v7397_v2  ;;  %v10477_v0 = vld [vmem:[%s16520_s1 + $0x250] sm:$0xf0]  ;;  %v10522_v2 = vld [vmem:[%s16520_s1 + $0x3b8] sm:$0xf0]  ;;  %v7649_v6 = vld [vmem:[%s16520_s1 + $0x470] sm:$0xf] }
 0x214   :  { %6118 = vmatpush.bf16.msra.mxu0 %v7122_v50  ;;  %v7085_v50 = vld [vmem:[%s16520_s1 + $0x8] sm:$0xf]  ;;  %v7554_v39 = vor.u32 %v10522_v2, %v7553_v26  ;;  %v7650_v47 = vor.u32 %v10546_v14, %v7649_v6  ;;  %v7829_v60 = vld [vmem:[%s16520_s1 + $0x5d8] sm:$0xf]  ;;  %v7625_v26 = vld [vmem:[%s16520_s1 + $0x440] sm:$0xf] }
 0x215   :  { %6131 = vmatpush.bf16.msra.mxu1 %v7218_v52  ;;  %v10405_v52 = vld [vmem:[%s16520_s1 + $0x10] sm:$0xf0]  ;;  %v10540_v6 = vld [vmem:[%s16520_s1 + $0x448] sm:$0xf0]  ;;  %v7721_v8 = vld [vmem:[%s16520_s1 + $0x500] sm:$0xf] }
 0x216   :  { %6144 = vmatpush.bf16.msra.mxu2 %v7314_v56  ;;  %v7194_v56 = vor.u32 %v10432_v58, %v7193_v32  ;;  %v7841_v32 = vld [vmem:[%s16520_s1 + $0x5f0] sm:$0xf]  ;;  %v7374_v58 = vor.u32 %v10477_v0, %v7373_v63  ;;  %v7529_v0 = vld [vmem:[%s16520_s1 + $0x380] sm:$0xf] }
 0x217   :  { %6157 = vmatpush.bf16.msra.mxu3 %v7410_v55  ;;  %v7277_v55 = vld [vmem:[%s16520_s1 + $0x188] sm:$0xf]  ;;  %v7817_v14 = vld [vmem:[%s16520_s1 + $0x5c0] sm:$0xf] }
 0x218   :  { %6119 = vmatpush.bf16.msra.mxu0 %v7110_v9  ;;  %v7086_v9 = vor.u32 %v10405_v52, %v7085_v50  ;;  %v7278_v27 = vor.u32 %v10453_v62, %v7277_v55  ;;  %v7637_v50 = vld [vmem:[%s16520_s1 + $0x458] sm:$0xf]  ;;  %v10591_v55 = vld [vmem:[%s16520_s1 + $0x5e0] sm:$0xf0] }
 0x219   :  { %6132 = vmatpush.bf16.msra.mxu1 %v7206_v51  ;;  %v7745_v51 = vld [vmem:[%s16520_s1 + $0x530] sm:$0xf]  ;;  %v7830_v2 = vor.u32 %v10591_v55, %v7829_v60 }
 0x21a   :  { %6145 = vmatpush.bf16.msra.mxu2 %v7302_v17  ;;  %v10570_v17 = vld [vmem:[%s16520_s1 + $0x538] sm:$0xf0]  ;;  %v7601_v60 = vld [vmem:[%s16520_s1 + $0x410] sm:$0xf] }
 0x21b   :  { %6158 = vmatpush.bf16.msra.mxu3 %v7398_v54  ;;  %v10594_v54 = vld [vmem:[%s16520_s1 + $0x5f8] sm:$0xf0]  ;;  %v7746_v40 = vor.u32 %v10570_v17, %v7745_v51  ;;  %v10588_v51 = vld [vmem:[%s16520_s1 + $0x5c8] sm:$0xf0]  ;;  %v7530_v17 = vor.u32 %v10516_v1, %v7529_v0  ;;  %v7793_v0 = vld [vmem:[%s16520_s1 + $0x590] sm:$0xf] }
 0x21c   :  { %6120 = vmatpush.bf16.msra.mxu0 %v7098_v61  ;;  %v10519_v61 = vld [vmem:[%s16520_s1 + $0x3a0] sm:$0xf0]  ;;  %v7842_v52 = vor.u32 %v10594_v54, %v7841_v32  ;;  %v10513_v32 = vld [vmem:[%s16520_s1 + $0x370] sm:$0xf0]  ;;  %v7709_v54 = vld [vmem:[%s16520_s1 + $0x4e8] sm:$0xf] }
 0x21d   :  { %6133 = vmatpush.bf16.msra.mxu1 %v7194_v56  ;;  %v10543_v56 = vld [vmem:[%s16520_s1 + $0x460] sm:$0xf0]  ;;  %v10582_v1 = vld [vmem:[%s16520_s1 + $0x598] sm:$0xf0] }
 0x21e   :  { %6146 = vmatpush.bf16.msra.mxu2 %v7290_v57  ;;  %v7733_v57 = vld [vmem:[%s16520_s1 + $0x518] sm:$0xf]  ;;  %v7638_v62 = vor.u32 %v10543_v56, %v7637_v50 }
 0x21f   :  { %6159 = vmatpush.bf16.msra.mxu3 %v7386_v4  ;;  %v7542_v4 = vor.u32 %v10519_v61, %v7541_v48  ;;  %v7734_v63 = vor.u32 %v10567_v59, %v7733_v57  ;;  %v7505_v57 = vld [vmem:[%s16520_s1 + $0x350] sm:$0xf]  ;;  %v10510_v59 = vld [vmem:[%s16520_s1 + $0x358] sm:$0xf0] }
 0x220   :  { %6121 = vmatpush.bf16.msra.mxu0 %v7086_v9  ;;  %v10564_v9 = vld [vmem:[%s16520_s1 + $0x508] sm:$0xf0] }
 0x221   :  { %6134 = vmatpush.bf16.msra.mxu1 %v7182_v21  ;;  %v7626_v21 = vor.u32 %v10540_v6, %v7625_v26  ;;  %v5928_v50 = vpop.f32.mrf.mxu1  ;;  %v7506_v26 = vor.u32 %v10510_v59, %v7505_v57  ;;  %v10528_v57 = vld [vmem:[%s16520_s1 + $0x3e8] sm:$0xf0]  ;;  %v7673_v59 = vld [vmem:[%s16520_s1 + $0x4a0] sm:$0xf] }
 0x222   :  { %6147 = vmatpush.bf16.msra.mxu2 %v7278_v27  ;;  %v7517_v27 = vld [vmem:[%s16520_s1 + $0x368] sm:$0xf] }
 0x223   :  { %6160 = vmatpush.bf16.msra.mxu3 %v7374_v58  ;;  %6122 = vmatmul.bf16.vlgmr.msra.gmra.mxu0 %v11574_v19  ;;  %v7613_v19 = vld [vmem:[%s16520_s1 + $0x428] sm:$0xf]  ;;  %v10561_v58 = vld [vmem:[%s16520_s1 + $0x4f0] sm:$0xf0]  ;;  %v7518_v61 = vor.u32 %v10513_v32, %v7517_v27  ;;  %v10555_v27 = vld [vmem:[%s16520_s1 + $0x4c0] sm:$0xf0] }
 0x224   :  { %6166 = vmatpush.bf16.msrb.mxu0 %v7554_v39  ;;  %6135 = vmatmul.bf16.vlgmr.msra.gmra.mxu1 %v11578_v22  ;;  %v10537_v22 = vld [vmem:[%s16520_s1 + $0x430] sm:$0xf0]  ;;  %v5915_v39 = vpop.f32.mrf.mxu0  ;;  %v7710_v56 = vor.u32 %v10561_v58, %v7709_v54 }
 0x225   :  { %6179 = vmatpush.bf16.msrb.mxu1 %v7650_v47  ;;  %6148 = vmatmul.bf16.vlgmr.msra.gmra.mxu2 %v11572_v18  ;;  %v7722_v18 = vor.u32 %v10564_v9, %v7721_v8  ;;  %v7805_v47 = vld [vmem:[%s16520_s1 + $0x5a8] sm:$0xf]  ;;  %v5916_v48 = vadd.f32 %v5915_v39, %v14708_v15  ;;  %v7493_v8 = vld [vmem:[%s16520_s1 + $0x338] sm:$0xf]  ;;  %v10507_v9 = vld [vmem:[%s16520_s1 + $0x340] sm:$0xf0] }
 0x226   :  { %6192 = vmatpush.bf16.msrb.mxu2 %v7746_v40  ;;  %6161 = vmatmul.bf16.vlgmr.msra.gmra.mxu3 %v11576_v20  ;;  %v7818_v20 = vor.u32 %v10588_v51, %v7817_v14  ;;  %v10585_v40 = vld [vmem:[%s16520_s1 + $0x5b0] sm:$0xf0]  ;;  %v7589_v14 = vld [vmem:[%s16520_s1 + $0x3f8] sm:$0xf]  ;;  %v7794_v51 = vor.u32 %v10582_v1, %v7793_v0  ;;  %v7494_v58 = vor.u32 %v10507_v9, %v7493_v8 }
 0x227   :  { %6205 = vmatpush.bf16.msrb.mxu3 %v7842_v52  ;;  %v7614_v52 = vor.u32 %v10537_v22, %v7613_v19  ;;  %v7806_v15 = vor.u32 %v10585_v40, %v7805_v47  ;;  %v5929_v55 = vadd.f32 %v5928_v50, %v5916_v48  ;;  %v10579_v22 = vld [vmem:[%s16520_s1 + $0x580] sm:$0xf0]  ;;  %v10504_v50 = vld [vmem:[%s16520_s1 + $0x328] sm:$0xf0]  ;;  %v10549_v9 = vld [vmem:[%s16520_s1 + $0x490] sm:$0xf0] }
 0x228   :  { %6167 = vmatpush.bf16.msrb.mxu0 %v7542_v4  ;;  %v10534_v4 = vld [vmem:[%s16520_s1 + $0x418] sm:$0xf0] }
 0x229   :  { %6180 = vmatpush.bf16.msrb.mxu1 %v7638_v62  ;;  %v7697_v62 = vld [vmem:[%s16520_s1 + $0x4d0] sm:$0xf]  ;;  %v5954_v19 = vpop.f32.mrf.mxu3  ;;  %v5930_v39 = vpop.f32.mrf.mxu1 }
 0x22a   :  { %6193 = vmatpush.bf16.msrb.mxu2 %v7734_v63  ;;  %v10558_v63 = vld [vmem:[%s16520_s1 + $0x4d8] sm:$0xf0] }
 0x22b   :  { %6206 = vmatpush.bf16.msrb.mxu3 %v7830_v2  ;;  %v7602_v2 = vor.u32 %v10534_v4, %v7601_v60  ;;  %v7698_v6 = vor.u32 %v10558_v63, %v7697_v62  ;;  %v10552_v60 = vld [vmem:[%s16520_s1 + $0x4a8] sm:$0xf0]  ;;  %v7469_v62 = vld [vmem:[%s16520_s1 + $0x308] sm:$0xf]  ;;  %v10501_v63 = vld [vmem:[%s16520_s1 + $0x310] sm:$0xf0] }
 0x22c   :  { %6168 = vmatpush.bf16.msrb.mxu0 %v7530_v17  ;;  %v5941_v17 = vpop.f32.mrf.mxu2  ;;  %v5917_v54 = vpop.f32.mrf.mxu0  ;;  %v7674_v1 = vor.u32 %v10552_v60, %v7673_v59  ;;  %v10615_v59 = vld [vmem:[%s16520_s1 + $0x6a0] sm:$0xf0]  ;;  %v8021_v60 = vld [vmem:[%s16520_s1 + $0x758] sm:$0xf] }
 0x22d   :  { %6181 = vmatpush.bf16.msrb.mxu1 %v7626_v21  ;;  %v10531_v21 = vld [vmem:[%s16520_s1 + $0x400] sm:$0xf0]  ;;  %v5942_v32 = vadd.f32 %v5941_v17, %v5929_v55  ;;  %v10576_v55 = vld [vmem:[%s16520_s1 + $0x568] sm:$0xf0]  ;;  %v10666_v54 = vld [vmem:[%s16520_s1 + $0x838] sm:$0xf0] }
 0x22e   :  { %6194 = vmatpush.bf16.msrb.mxu2 %v7722_v18  ;;  %v7685_v18 = vld [vmem:[%s16520_s1 + $0x4b8] sm:$0xf]  ;;  %v7590_v40 = vor.u32 %v10531_v21, %v7589_v14  ;;  %v7757_v14 = vld [vmem:[%s16520_s1 + $0x548] sm:$0xf]  ;;  %v7937_v21 = vld [vmem:[%s16520_s1 + $0x6b0] sm:$0xf] }
 0x22f   :  { %6207 = vmatpush.bf16.msrb.mxu3 %v7818_v20  ;;  %v7781_v20 = vld [vmem:[%s16520_s1 + $0x578] sm:$0xf]  ;;  %v14907_v47 = vadd.f32 %v5954_v19, %v5942_v32  ;;  %v7686_v48 = vor.u32 %v10555_v27, %v7685_v18  ;;  %v10618_v18 = vld [vmem:[%s16520_s1 + $0x6b8] sm:$0xf0]  ;;  %v8033_v27 = vld [vmem:[%s16520_s1 + $0x770] sm:$0xf]  ;;  %v7470_v19 = vor.u32 %v10501_v63, %v7469_v62 }
 0x230   :  { %6169 = vmatpush.bf16.msrb.mxu0 %v7518_v61  ;;  %v7481_v61 = vld [vmem:[%s16520_s1 + $0x320] sm:$0xf]  ;;  %v10663_v62 = vld [vmem:[%s16520_s1 + $0x820] sm:$0xf0]  ;;  %v8213_v63 = vld [vmem:[%s16520_s1 + $0x8d8] sm:$0xf] }
 0x231   :  { %6182 = vmatpush.bf16.msrb.mxu1 %v7614_v52  ;;  %v7577_v52 = vld [vmem:[%s16520_s1 + $0x3e0] sm:$0xf]  ;;  %v7482_v4 = vor.u32 %v10504_v50, %v7481_v61  ;;  %v5956_v32 = vpop.f32.mrf.mxu3  ;;  %v7938_v50 = vor.u32 %v10618_v18, %v7937_v21  ;;  %v10660_v21 = vld [vmem:[%s16520_s1 + $0x808] sm:$0xf0] }
 0x232   :  { %6195 = vmatpush.bf16.msrb.mxu2 %v7710_v56  ;;  %v7782_v56 = vor.u32 %v10579_v22, %v7781_v20  ;;  %v7578_v0 = vor.u32 %v10528_v57, %v7577_v52  ;;  %v10642_v20 = vld [vmem:[%s16520_s1 + $0x778] sm:$0xf0]  ;;  %v8129_v22 = vld [vmem:[%s16520_s1 + $0x830] sm:$0xf]  ;;  %v7925_v57 = vld [vmem:[%s16520_s1 + $0x698] sm:$0xf] }
 0x233   :  { %6208 = vmatpush.bf16.msrb.mxu3 %v7806_v15  ;;  %v7769_v15 = vld [vmem:[%s16520_s1 + $0x560] sm:$0xf]  ;;  %v8034_v52 = vor.u32 %v10642_v20, %v8033_v27  ;;  %v7901_v20 = vld [vmem:[%s16520_s1 + $0x668] sm:$0xf] }
 0x234   :  { %6170 = vmatpush.bf16.msrb.mxu0 %v7506_v26  ;;  %v7565_v26 = vld [vmem:[%s16520_s1 + $0x3c8] sm:$0xf]  ;;  %v7770_v8 = vor.u32 %v10576_v55, %v7769_v15  ;;  %v5943_v17 = vpop.f32.mrf.mxu2  ;;  %v10639_v55 = vld [vmem:[%s16520_s1 + $0x760] sm:$0xf0]  ;;  %v8201_v18 = vld [vmem:[%s16520_s1 + $0x8c0] sm:$0xf] }
 0x235   :  { %6183 = vmatpush.bf16.msrb.mxu1 %v7602_v2  ;;  %v10525_v2 = vld [vmem:[%s16520_s1 + $0x3d0] sm:$0xf0]  ;;  %v8105_v17 = vld [vmem:[%s16520_s1 + $0x800] sm:$0xf] }
 0x236   :  { %6196 = vmatpush.bf16.msrb.mxu2 %v7698_v6  ;;  %v7661_v6 = vld [vmem:[%s16520_s1 + $0x488] sm:$0xf] }
 0x237   :  { %6209 = vmatpush.bf16.msrb.mxu3 %v7794_v51  ;;  %v10573_v51 = vld [vmem:[%s16520_s1 + $0x550] sm:$0xf0]  ;;  %v7662_v39 = vor.u32 %v10549_v9, %v7661_v6  ;;  %v7913_v6 = vld [vmem:[%s16520_s1 + $0x680] sm:$0xf] }
 0x238   :  { %6171 = vmatpush.bf16.msrb.mxu0 %v7494_v58  ;;  %v7566_v58 = vor.u32 %v10525_v2, %v7565_v26  ;;  %v7758_v61 = vor.u32 %v10573_v51, %v7757_v14  ;;  %v8022_v26 = vor.u32 %v10639_v55, %v8021_v60  ;;  %v8009_v9 = vld [vmem:[%s16520_s1 + $0x740] sm:$0xf]  ;;  %v10636_v51 = vld [vmem:[%s16520_s1 + $0x748] sm:$0xf0]  ;;  %v10606_v60 = vld [vmem:[%s16520_s1 + $0x658] sm:$0xf0] }
 0x239   :  { %6184 = vmatpush.bf16.msrb.mxu1 %v7590_v40  ;;  %v8225_v40 = vld [vmem:[%s16520_s1 + $0x8f0] sm:$0xf]  ;;  %v8010_v32 = vor.u32 %v10636_v51, %v8009_v9  ;;  %v10603_v9 = vld [vmem:[%s16520_s1 + $0x640] sm:$0xf0] }
 0x23a   :  { %6197 = vmatpush.bf16.msrb.mxu2 %v7686_v48  ;;  %v10690_v48 = vld [vmem:[%s16520_s1 + $0x8f8] sm:$0xf0] }
 0x23b   :  { %6210 = vmatpush.bf16.msrb.mxu3 %v7782_v56  ;;  %v8130_v56 = vor.u32 %v10666_v54, %v8129_v22  ;;  %v8226_v15 = vor.u32 %v10690_v48, %v8225_v40  ;;  %v10609_v22 = vld [vmem:[%s16520_s1 + $0x670] sm:$0xf0]  ;;  %v8093_v54 = vld [vmem:[%s16520_s1 + $0x7e8] sm:$0xf] }
 0x23c   :  { %6172 = vmatpush.bf16.msrb.mxu0 %v7482_v4  ;;  %v8117_v4 = vld [vmem:[%s16520_s1 + $0x818] sm:$0xf]  ;;  %v8189_v40 = vld [vmem:[%s16520_s1 + $0x8a8] sm:$0xf]  ;;  %v10681_v48 = vld [vmem:[%s16520_s1 + $0x8b0] sm:$0xf0] }
 0x23d   :  { %6185 = vmatpush.bf16.msrb.mxu1 %v7578_v0  ;;  %v10687_v0 = vld [vmem:[%s16520_s1 + $0x8e0] sm:$0xf0]  ;;  %v8118_v2 = vor.u32 %v10663_v62, %v8117_v4  ;;  %v10630_v4 = vld [vmem:[%s16520_s1 + $0x718] sm:$0xf0]  ;;  %v8081_v62 = vld [vmem:[%s16520_s1 + $0x7d0] sm:$0xf] }
 0x23e   :  { %6198 = vmatpush.bf16.msrb.mxu2 %v7674_v1  ;;  %v7926_v1 = vor.u32 %v10615_v59, %v7925_v57  ;;  %v8214_v14 = vor.u32 %v10687_v0, %v8213_v63  ;;  %v7889_v59 = vld [vmem:[%s16520_s1 + $0x650] sm:$0xf]  ;;  %v10654_v63 = vld [vmem:[%s16520_s1 + $0x7d8] sm:$0xf0] }
 0x23f   :  { %6211 = vmatpush.bf16.msrb.mxu3 %v7770_v8  ;;  %v10612_v8 = vld [vmem:[%s16520_s1 + $0x688] sm:$0xf0]  ;;  %v8177_v0 = vld [vmem:[%s16520_s1 + $0x890] sm:$0xf] }
 0x240   :  { %6173 = vmatpush.bf16.msrb.mxu0 %v7470_v19  ;;  %v7914_v27 = vor.u32 %v10612_v8, %v7913_v6  ;;  %v8106_v19 = vor.u32 %v10660_v21, %v8105_v17  ;;  %v8082_v6 = vor.u32 %v10654_v63, %v8081_v62  ;;  %v7877_v8 = vld [vmem:[%s16520_s1 + $0x638] sm:$0xf]  ;;  %v10627_v21 = vld [vmem:[%s16520_s1 + $0x700] sm:$0xf0]  ;;  %v7949_v62 = vld [vmem:[%s16520_s1 + $0x6c8] sm:$0xf] }
 0x241   :  { %6186 = vmatpush.bf16.msrb.mxu1 %v7566_v58  ;;  %v10657_v58 = vld [vmem:[%s16520_s1 + $0x7f0] sm:$0xf0] }
 0x242   :  { %6199 = vmatpush.bf16.msrb.mxu2 %v7662_v39  ;;  %v5967_v39 = vpop.f32.mrf.mxu0  ;;  %v8094_v57 = vor.u32 %v10657_v58, %v8093_v54  ;;  %v10621_v63 = vld [vmem:[%s16520_s1 + $0x6d0] sm:$0xf0] }
 0x243   :  { %6212 = vmatpush.bf16.msrb.mxu3 %v7758_v61  ;;  %6174 = vmatmul.bf16.vlgmr.msrb.gmra.mxu0 %v11736_v41  ;;  %v7997_v41 = vld [vmem:[%s16520_s1 + $0x728] sm:$0xf]  ;;  %v5968_v61 = vadd.f32 %v5967_v39, %v14907_v47  ;;  %v8190_v47 = vor.u32 %v10681_v48, %v8189_v40  ;;  %v7865_v39 = vld [vmem:[%s16520_s1 + $0x620] sm:$0xf]  ;;  %v10600_v40 = vld [vmem:[%s16520_s1 + $0x628] sm:$0xf0] }
 0x244   :  { %6218 = vmatpush.bf16.msra.mxu0 %v7938_v50  ;;  %6187 = vmatmul.bf16.vlgmr.msrb.gmra.mxu1 %v11740_v44  ;;  %v10633_v44 = vld [vmem:[%s16520_s1 + $0x730] sm:$0xf0]  ;;  %v7902_v50 = vor.u32 %v10609_v22, %v7901_v20  ;;  %v10675_v20 = vld [vmem:[%s16520_s1 + $0x880] sm:$0xf0]  ;;  %v7961_v48 = vld [vmem:[%s16520_s1 + $0x6e0] sm:$0xf] }
 0x245   :  { %6231 = vmatpush.bf16.msra.mxu1 %v8034_v52  ;;  %6200 = vmatmul.bf16.vlgmr.msrb.gmra.mxu2 %v11728_v38  ;;  %v10684_v38 = vld [vmem:[%s16520_s1 + $0x8c8] sm:$0xf0]  ;;  %v5980_v52 = vpop.f32.mrf.mxu1 }
 0x246   :  { %6244 = vmatpush.bf16.msra.mxu2 %v8130_v56  ;;  %6213 = vmatmul.bf16.vlgmr.msrb.gmra.mxu3 %v11738_v42  ;;  %v8202_v42 = vor.u32 %v10684_v38, %v8201_v18  ;;  %v7998_v56 = vor.u32 %v10633_v44, %v7997_v41  ;;  %v5981_v55 = vadd.f32 %v5980_v52, %v5968_v61  ;;  %v8069_v18 = vld [vmem:[%s16520_s1 + $0x7b8] sm:$0xf]  ;;  %v10651_v38 = vld [vmem:[%s16520_s1 + $0x7c0] sm:$0xf0]  ;;  %v8057_v52 = vld [vmem:[%s16520_s1 + $0x7a0] sm:$0xf] }
 0x247   :  { %6257 = vmatpush.bf16.msra.mxu3 %v8226_v15  ;;  %v7985_v15 = vld [vmem:[%s16520_s1 + $0x710] sm:$0xf]  ;;  %v7878_v41 = vor.u32 %v10603_v9, %v7877_v8  ;;  %v8070_v58 = vor.u32 %v10651_v38, %v8069_v18  ;;  %v10738_v18 = vld [vmem:[%s16520_s1 + $0xa78] sm:$0xf0] }
 0x248   :  { %6219 = vmatpush.bf16.msra.mxu0 %v7926_v1  ;;  %v10678_v1 = vld [vmem:[%s16520_s1 + $0x898] sm:$0xf0]  ;;  %v5993_v17 = vpop.f32.mrf.mxu2  ;;  %v8321_v9 = vld [vmem:[%s16520_s1 + $0x9b0] sm:$0xf] }
 0x249   :  { %6232 = vmatpush.bf16.msra.mxu1 %v8022_v26  ;;  %v7890_v26 = vor.u32 %v10606_v60, %v7889_v59  ;;  %v8178_v51 = vor.u32 %v10678_v1, %v8177_v0  ;;  %v10672_v59 = vld [vmem:[%s16520_s1 + $0x868] sm:$0xf0]  ;;  %v7866_v60 = vor.u32 %v10600_v40, %v7865_v39  ;;  %v8045_v0 = vld [vmem:[%s16520_s1 + $0x788] sm:$0xf]  ;;  %v8513_v38 = vld [vmem:[%s16520_s1 + $0xb30] sm:$0xf] }
 0x24a   :  { %6245 = vmatpush.bf16.msra.mxu2 %v8118_v2  ;;  %v7986_v2 = vor.u32 %v10630_v4, %v7985_v15  ;;  %v5969_v22 = vpop.f32.mrf.mxu0  ;;  %v7853_v15 = vld [vmem:[%s16520_s1 + $0x608] sm:$0xf]  ;;  %v8309_v39 = vld [vmem:[%s16520_s1 + $0x998] sm:$0xf]  ;;  %v10711_v40 = vld [vmem:[%s16520_s1 + $0x9a0] sm:$0xf0] }
 0x24b   :  { %6258 = vmatpush.bf16.msra.mxu3 %v8214_v14  ;;  %v7973_v14 = vld [vmem:[%s16520_s1 + $0x6f8] sm:$0xf]  ;;  %v10786_v22 = vld [vmem:[%s16520_s1 + $0xbf8] sm:$0xf0] }
 0x24c   :  { %6220 = vmatpush.bf16.msra.mxu0 %v7914_v27  ;;  %v5994_v27 = vadd.f32 %v5993_v17, %v5981_v55  ;;  %v7974_v54 = vor.u32 %v10627_v21, %v7973_v14  ;;  %v10714_v14 = vld [vmem:[%s16520_s1 + $0x9b8] sm:$0xf0] }
 0x24d   :  { %6233 = vmatpush.bf16.msra.mxu1 %v8010_v32  ;;  %v6006_v32 = vpop.f32.mrf.mxu3 }
 0x24e   :  { %6246 = vmatpush.bf16.msra.mxu2 %v8106_v19  ;;  %v8165_v19 = vld [vmem:[%s16520_s1 + $0x878] sm:$0xf]  ;;  %v15106_v44 = vadd.f32 %v6006_v32, %v5994_v27  ;;  %v10762_v27 = vld [vmem:[%s16520_s1 + $0xb38] sm:$0xf0]  ;;  %v7950_v32 = vor.u32 %v10621_v63, %v7949_v62  ;;  %v8393_v62 = vld [vmem:[%s16520_s1 + $0xa40] sm:$0xf] }
 0x24f   :  { %6259 = vmatpush.bf16.msra.mxu3 %v8202_v42  ;;  %v5982_v42 = vpop.f32.mrf.mxu1  ;;  %v8166_v61 = vor.u32 %v10675_v20, %v8165_v19  ;;  %v8609_v20 = vld [vmem:[%s16520_s1 + $0xbf0] sm:$0xf] }
 0x250   :  { %6221 = vmatpush.bf16.msra.mxu0 %v7902_v50  ;;  %v10624_v50 = vld [vmem:[%s16520_s1 + $0x6e8] sm:$0xf0]  ;;  %v5995_v8 = vpop.f32.mrf.mxu2  ;;  %v8322_v42 = vor.u32 %v10714_v14, %v8321_v9  ;;  %v8381_v14 = vld [vmem:[%s16520_s1 + $0xa28] sm:$0xf] }
 0x251   :  { %6234 = vmatpush.bf16.msra.mxu1 %v7998_v56  ;;  %v10648_v56 = vld [vmem:[%s16520_s1 + $0x7a8] sm:$0xf0]  ;;  %v7962_v55 = vor.u32 %v10624_v50, %v7961_v48  ;;  %v8405_v48 = vld [vmem:[%s16520_s1 + $0xa58] sm:$0xf]  ;;  %v10735_v50 = vld [vmem:[%s16520_s1 + $0xa60] sm:$0xf0] }
 0x252   :  { %6247 = vmatpush.bf16.msra.mxu2 %v8094_v57  ;;  %v8153_v57 = vld [vmem:[%s16520_s1 + $0x860] sm:$0xf]  ;;  %v8058_v4 = vor.u32 %v10648_v56, %v8057_v52  ;;  %v8501_v52 = vld [vmem:[%s16520_s1 + $0xb18] sm:$0xf]  ;;  %v10759_v56 = vld [vmem:[%s16520_s1 + $0xb20] sm:$0xf0] }
 0x253   :  { %6260 = vmatpush.bf16.msra.mxu3 %v8190_v47  ;;  %v10597_v47 = vld [vmem:[%s16520_s1 + $0x610] sm:$0xf0]  ;;  %v8154_v1 = vor.u32 %v10672_v59, %v8153_v57  ;;  %v8597_v57 = vld [vmem:[%s16520_s1 + $0xbd8] sm:$0xf]  ;;  %v10783_v59 = vld [vmem:[%s16520_s1 + $0xbe0] sm:$0xf0] }
 0x254   :  { %6222 = vmatpush.bf16.msra.mxu0 %v7890_v26  ;;  %v10645_v26 = vld [vmem:[%s16520_s1 + $0x790] sm:$0xf0]  ;;  %v7854_v21 = vor.u32 %v10597_v47, %v7853_v15  ;;  %v8406_v15 = vor.u32 %v10735_v50, %v8405_v48  ;;  %v8502_v47 = vor.u32 %v10759_v56, %v8501_v52  ;;  %v8598_v63 = vor.u32 %v10783_v59, %v8597_v57  ;;  %v8465_v48 = vld [vmem:[%s16520_s1 + $0xad0] sm:$0xf]  ;;  %v10774_v52 = vld [vmem:[%s16520_s1 + $0xb98] sm:$0xf0] }
 0x255   :  { %6235 = vmatpush.bf16.msra.mxu1 %v7986_v2  ;;  %v8141_v2 = vld [vmem:[%s16520_s1 + $0x848] sm:$0xf]  ;;  %v6008_v17 = vpop.f32.mrf.mxu3  ;;  %v8046_v19 = vor.u32 %v10645_v26, %v8045_v0  ;;  %v10732_v0 = vld [vmem:[%s16520_s1 + $0xa48] sm:$0xf0]  ;;  %v8561_v50 = vld [vmem:[%s16520_s1 + $0xb90] sm:$0xf] }
 0x256   :  { %6248 = vmatpush.bf16.msra.mxu2 %v8082_v6  ;;  %v10669_v6 = vld [vmem:[%s16520_s1 + $0x850] sm:$0xf0]  ;;  %v10756_v26 = vld [vmem:[%s16520_s1 + $0xb08] sm:$0xf0]  ;;  %v8394_v8 = vor.u32 %v10732_v0, %v8393_v62  ;;  %v8477_v17 = vld [vmem:[%s16520_s1 + $0xae8] sm:$0xf] }
 0x257   :  { %6261 = vmatpush.bf16.msra.mxu3 %v8178_v51  ;;  %v8417_v51 = vld [vmem:[%s16520_s1 + $0xa70] sm:$0xf]  ;;  %v10723_v62 = vld [vmem:[%s16520_s1 + $0xa00] sm:$0xf0] }
 0x258   :  { %6223 = vmatpush.bf16.msra.mxu0 %v7878_v41  ;;  %v8142_v41 = vor.u32 %v10669_v6, %v8141_v2  ;;  %v10780_v2 = vld [vmem:[%s16520_s1 + $0xbc8] sm:$0xf0]  ;;  %v10747_v0 = vld [vmem:[%s16520_s1 + $0xac0] sm:$0xf0] }
 0x259   :  { %6236 = vmatpush.bf16.msra.mxu1 %v7974_v54  ;;  %v8418_v54 = vor.u32 %v10738_v18, %v8417_v51  ;;  %v10729_v51 = vld [vmem:[%s16520_s1 + $0xa30] sm:$0xf0] }
 0x25a   :  { %6249 = vmatpush.bf16.msra.mxu2 %v8070_v58  ;;  %v8514_v58 = vor.u32 %v10762_v27, %v8513_v38  ;;  %v8573_v38 = vld [vmem:[%s16520_s1 + $0xba8] sm:$0xf]  ;;  %v10777_v27 = vld [vmem:[%s16520_s1 + $0xbb0] sm:$0xf0] }
 0x25b   :  { %6262 = vmatpush.bf16.msra.mxu3 %v8166_v61  ;;  %v8610_v61 = vor.u32 %v10786_v22, %v8609_v20  ;;  %v8382_v22 = vor.u32 %v10729_v51, %v8381_v14  ;;  %v10696_v51 = vld [vmem:[%s16520_s1 + $0x928] sm:$0xf0] }
 0x25c   :  { %6224 = vmatpush.bf16.msra.mxu0 %v7866_v60  ;;  %v8310_v60 = vor.u32 %v10711_v40, %v8309_v39  ;;  %v10726_v40 = vld [vmem:[%s16520_s1 + $0xa18] sm:$0xf0] }
 0x25d   :  { %6237 = vmatpush.bf16.msra.mxu1 %v7962_v55  ;;  %v8297_v55 = vld [vmem:[%s16520_s1 + $0x980] sm:$0xf] }
 0x25e   :  { %6250 = vmatpush.bf16.msra.mxu2 %v8058_v4  ;;  %v10708_v4 = vld [vmem:[%s16520_s1 + $0x988] sm:$0xf0] }
 0x25f   :  { %6263 = vmatpush.bf16.msra.mxu3 %v8154_v1  ;;  %v8489_v1 = vld [vmem:[%s16520_s1 + $0xb00] sm:$0xf]  ;;  %v8298_v6 = vor.u32 %v10708_v4, %v8297_v55  ;;  %v8562_v55 = vor.u32 %v10774_v52, %v8561_v50  ;;  %v10765_v50 = vld [vmem:[%s16520_s1 + $0xb50] sm:$0xf0] }
 0x260   :  { %6225 = vmatpush.bf16.msra.mxu0 %v7854_v21  ;;  %v8490_v9 = vor.u32 %v10756_v26, %v8489_v1  ;;  %v10753_v21 = vld [vmem:[%s16520_s1 + $0xaf0] sm:$0xf0]  ;;  %v6019_v18 = vpop.f32.mrf.mxu0 }
 0x261   :  { %6238 = vmatpush.bf16.msra.mxu1 %v7950_v32  ;;  %v6020_v32 = vadd.f32 %v6019_v18, %v15106_v44  ;;  %v6032_v20 = vpop.f32.mrf.mxu1  ;;  %v8574_v44 = vor.u32 %v10777_v27, %v8573_v38  ;;  %v10720_v18 = vld [vmem:[%s16520_s1 + $0x9e8] sm:$0xf0]  ;;  %v8441_v38 = vld [vmem:[%s16520_s1 + $0xaa0] sm:$0xf] }
 0x262   :  { %6251 = vmatpush.bf16.msra.mxu2 %v8046_v19  ;;  %v10744_v27 = vld [vmem:[%s16520_s1 + $0xaa8] sm:$0xf0] }
 0x263   :  { %6264 = vmatpush.bf16.msra.mxu3 %v8142_v41  ;;  %6226 = vmatmul.bf16.vlgmr.msra.gmra.mxu0 %v11929_v25  ;;  %v8585_v25 = vld [vmem:[%s16520_s1 + $0xbc0] sm:$0xf]  ;;  %v8478_v41 = vor.u32 %v10753_v21, %v8477_v17  ;;  %v6033_v39 = vadd.f32 %v6032_v20, %v6020_v32 }
 0x264   :  { %6270 = vmatpush.bf16.msrb.mxu0 %v8322_v42  ;;  %6239 = vmatmul.bf16.vlgmr.msra.gmra.mxu1 %v11942_v30  ;;  %v10705_v30 = vld [vmem:[%s16520_s1 + $0x970] sm:$0xf0]  ;;  %v8273_v42 = vld [vmem:[%s16520_s1 + $0x950] sm:$0xf]  ;;  %v8345_v17 = vld [vmem:[%s16520_s1 + $0x9e0] sm:$0xf] }
 0x265   :  { %6283 = vmatpush.bf16.msrb.mxu1 %v8418_v54  ;;  %6252 = vmatmul.bf16.vlgmr.msra.gmra.mxu2 %v11940_v29  ;;  %v8285_v29 = vld [vmem:[%s16520_s1 + $0x968] sm:$0xf]  ;;  %v10702_v54 = vld [vmem:[%s16520_s1 + $0x958] sm:$0xf0]  ;;  %v8537_v32 = vld [vmem:[%s16520_s1 + $0xb60] sm:$0xf] }
 0x266   :  { %6296 = vmatpush.bf16.msrb.mxu2 %v8514_v58  ;;  %6265 = vmatmul.bf16.vlgmr.msra.gmra.mxu3 %v11950_v33  ;;  %v8586_v33 = vor.u32 %v10780_v2, %v8585_v25  ;;  %v8286_v19 = vor.u32 %v10705_v30, %v8285_v29  ;;  %v8369_v58 = vld [vmem:[%s16520_s1 + $0xa10] sm:$0xf]  ;;  %v8274_v56 = vor.u32 %v10702_v54, %v8273_v42  ;;  %v8549_v25 = vld [vmem:[%s16520_s1 + $0xb78] sm:$0xf]  ;;  %v10771_v2 = vld [vmem:[%s16520_s1 + $0xb80] sm:$0xf0] }
 0x267   :  { %6309 = vmatpush.bf16.msrb.mxu3 %v8610_v61  ;;  %v10750_v61 = vld [vmem:[%s16520_s1 + $0xad8] sm:$0xf0]  ;;  %v8370_v57 = vor.u32 %v10726_v40, %v8369_v58  ;;  %v8550_v21 = vor.u32 %v10771_v2, %v8549_v25  ;;  %v8346_v42 = vor.u32 %v10720_v18, %v8345_v17  ;;  %v8442_v54 = vor.u32 %v10744_v27, %v8441_v38  ;;  %v8333_v58 = vld [vmem:[%s16520_s1 + $0x9c8] sm:$0xf]  ;;  %v10855_v17 = vld [vmem:[%s16520_s1 + $0xe20] sm:$0xf0] }
 0x268   :  { %6271 = vmatpush.bf16.msrb.mxu0 %v8310_v60  ;;  %v8466_v59 = vor.u32 %v10750_v61, %v8465_v48  ;;  %v8261_v60 = vld [vmem:[%s16520_s1 + $0x938] sm:$0xf]  ;;  %v6045_v4 = vpop.f32.mrf.mxu2  ;;  %v10741_v48 = vld [vmem:[%s16520_s1 + $0xa90] sm:$0xf0]  ;;  %v8525_v61 = vld [vmem:[%s16520_s1 + $0xb48] sm:$0xf] }
 0x269   :  { %6284 = vmatpush.bf16.msrb.mxu1 %v8406_v15  ;;  %v10699_v15 = vld [vmem:[%s16520_s1 + $0x940] sm:$0xf0]  ;;  %v6046_v1 = vadd.f32 %v6045_v4, %v6033_v39  ;;  %v6058_v26 = vpop.f32.mrf.mxu3  ;;  %v8429_v39 = vld [vmem:[%s16520_s1 + $0xa88] sm:$0xf]  ;;  %v10858_v4 = vld [vmem:[%s16520_s1 + $0xe38] sm:$0xf0] }
 0x26a   :  { %6297 = vmatpush.bf16.msrb.mxu2 %v8502_v47  ;;  %v8357_v47 = vld [vmem:[%s16520_s1 + $0x9f8] sm:$0xf]  ;;  %v10879_v18 = vld [vmem:[%s16520_s1 + $0xee0] sm:$0xf0] }
 0x26b   :  { %6310 = vmatpush.bf16.msrb.mxu3 %v8598_v63  ;;  %v8453_v63 = vld [vmem:[%s16520_s1 + $0xab8] sm:$0xf]  ;;  %v15305_v29 = vadd.f32 %v6058_v26, %v6046_v1  ;;  %v8358_v30 = vor.u32 %v10723_v62, %v8357_v47  ;;  %v10834_v47 = vld [vmem:[%s16520_s1 + $0xd78] sm:$0xf0]  ;;  %v8526_v26 = vor.u32 %v10765_v50, %v8525_v61  ;;  %v8765_v61 = vld [vmem:[%s16520_s1 + $0xd28] sm:$0xf] }
 0x26c   :  { %6272 = vmatpush.bf16.msrb.mxu0 %v8298_v6  ;;  %v6021_v6 = vpop.f32.mrf.mxu0  ;;  %v8454_v14 = vor.u32 %v10747_v0, %v8453_v63  ;;  %v8430_v63 = vor.u32 %v10741_v48, %v8429_v39  ;;  %v8993_v0 = vld [vmem:[%s16520_s1 + $0xef0] sm:$0xf]  ;;  %v10882_v1 = vld [vmem:[%s16520_s1 + $0xef8] sm:$0xf0]  ;;  %v10825_v50 = vld [vmem:[%s16520_s1 + $0xd30] sm:$0xf0] }
 0x26d   :  { %6285 = vmatpush.bf16.msrb.mxu1 %v8394_v8  ;;  %v8262_v8 = vor.u32 %v10699_v15, %v8261_v60 }
 0x26e   :  { %6298 = vmatpush.bf16.msrb.mxu2 %v8490_v9  ;;  %v6034_v9 = vpop.f32.mrf.mxu1 }
 0x26f   :  { %6311 = vmatpush.bf16.msrb.mxu3 %v8586_v33  ;;  %v8249_v33 = vld [vmem:[%s16520_s1 + $0x920] sm:$0xf]  ;;  %v10807_v9 = vld [vmem:[%s16520_s1 + $0xca0] sm:$0xf0] }
 0x270   :  { %6273 = vmatpush.bf16.msrb.mxu0 %v8286_v19  ;;  %v10768_v19 = vld [vmem:[%s16520_s1 + $0xb68] sm:$0xf0]  ;;  %v8250_v20 = vor.u32 %v10696_v51, %v8249_v33  ;;  %v6047_v52 = vpop.f32.mrf.mxu2  ;;  %v10831_v33 = vld [vmem:[%s16520_s1 + $0xd60] sm:$0xf0]  ;;  %v8885_v51 = vld [vmem:[%s16520_s1 + $0xe18] sm:$0xf] }
 0x271   :  { %6286 = vmatpush.bf16.msrb.mxu1 %v8382_v22  ;;  %v8237_v22 = vld [vmem:[%s16520_s1 + $0x908] sm:$0xf]  ;;  %v8538_v40 = vor.u32 %v10768_v19, %v8537_v32  ;;  %v6060_v60 = vpop.f32.mrf.mxu3  ;;  %v8886_v32 = vor.u32 %v10855_v17, %v8885_v51  ;;  %v8681_v19 = vld [vmem:[%s16520_s1 + $0xc80] sm:$0xf]  ;;  %v8645_v51 = vld [vmem:[%s16520_s1 + $0xc38] sm:$0xf] }
 0x272   :  { %6299 = vmatpush.bf16.msrb.mxu2 %v8478_v41  ;;  %v10693_v41 = vld [vmem:[%s16520_s1 + $0x910] sm:$0xf0]  ;;  %v8861_v52 = vld [vmem:[%s16520_s1 + $0xde8] sm:$0xf]  ;;  %v10795_v17 = vld [vmem:[%s16520_s1 + $0xc40] sm:$0xf0] }
 0x273   :  { %6312 = vmatpush.bf16.msrb.mxu3 %v8574_v44  ;;  %v10717_v44 = vld [vmem:[%s16520_s1 + $0x9d0] sm:$0xf0]  ;;  %v8238_v15 = vor.u32 %v10693_v41, %v8237_v22  ;;  %v8777_v22 = vld [vmem:[%s16520_s1 + $0xd40] sm:$0xf] }
 0x274   :  { %6274 = vmatpush.bf16.msrb.mxu0 %v8274_v56  ;;  %v8705_v56 = vld [vmem:[%s16520_s1 + $0xcb0] sm:$0xf]  ;;  %v8334_v62 = vor.u32 %v10717_v44, %v8333_v58  ;;  %v10852_v58 = vld [vmem:[%s16520_s1 + $0xe08] sm:$0xf0]  ;;  %v10873_v60 = vld [vmem:[%s16520_s1 + $0xeb0] sm:$0xf0] }
 0x275   :  { %6287 = vmatpush.bf16.msrb.mxu1 %v8370_v57  ;;  %v10810_v57 = vld [vmem:[%s16520_s1 + $0xcb8] sm:$0xf0]  ;;  %v10876_v44 = vld [vmem:[%s16520_s1 + $0xec8] sm:$0xf0] }
 0x276   :  { %6300 = vmatpush.bf16.msrb.mxu2 %v8466_v59  ;;  %v8801_v59 = vld [vmem:[%s16520_s1 + $0xd70] sm:$0xf]  ;;  %v8706_v25 = vor.u32 %v10810_v57, %v8705_v56  ;;  %v10849_v56 = vld [vmem:[%s16520_s1 + $0xdf0] sm:$0xf0] }
 0x277   :  { %6313 = vmatpush.bf16.msrb.mxu3 %v8562_v55  ;;  %v8897_v55 = vld [vmem:[%s16520_s1 + $0xe30] sm:$0xf]  ;;  %v8802_v2 = vor.u32 %v10834_v47, %v8801_v59  ;;  %v8957_v59 = vld [vmem:[%s16520_s1 + $0xea8] sm:$0xf] }
 0x278   :  { %6275 = vmatpush.bf16.msrb.mxu0 %v8262_v8  ;;  %v8898_v6 = vor.u32 %v10858_v4, %v8897_v55  ;;  %v8693_v8 = vld [vmem:[%s16520_s1 + $0xc98] sm:$0xf]  ;;  %v8766_v4 = vor.u32 %v10825_v50, %v8765_v61  ;;  %v8825_v50 = vld [vmem:[%s16520_s1 + $0xda0] sm:$0xf] }
 0x279   :  { %6288 = vmatpush.bf16.msrb.mxu1 %v8358_v30  ;;  %v8789_v30 = vld [vmem:[%s16520_s1 + $0xd58] sm:$0xf]  ;;  %v8694_v38 = vor.u32 %v10807_v9, %v8693_v8  ;;  %v8945_v8 = vld [vmem:[%s16520_s1 + $0xe90] sm:$0xf]  ;;  %v10870_v9 = vld [vmem:[%s16520_s1 + $0xe98] sm:$0xf0] }
 0x27a   :  { %6301 = vmatpush.bf16.msrb.mxu2 %v8454_v14  ;;  %v8994_v14 = vor.u32 %v10882_v1, %v8993_v0  ;;  %v8790_v27 = vor.u32 %v10831_v33, %v8789_v30  ;;  %v10798_v0 = vld [vmem:[%s16520_s1 + $0xc58] sm:$0xf0]  ;;  %v8753_v1 = vld [vmem:[%s16520_s1 + $0xd10] sm:$0xf] }
 0x27b   :  { %6314 = vmatpush.bf16.msrb.mxu3 %v8550_v21  ;;  %v8981_v21 = vld [vmem:[%s16520_s1 + $0xed8] sm:$0xf] }
 0x27c   :  { %6276 = vmatpush.bf16.msrb.mxu0 %v8250_v20  ;;  %v10804_v20 = vld [vmem:[%s16520_s1 + $0xc88] sm:$0xf0]  ;;  %v8982_v41 = vor.u32 %v10879_v18, %v8981_v21  ;;  %v8741_v21 = vld [vmem:[%s16520_s1 + $0xcf8] sm:$0xf]  ;;  %v8946_v18 = vor.u32 %v10870_v9, %v8945_v8  ;;  %v9185_v8 = vld [vmem:[%s16520_s1 + $0x1070] sm:$0xf] }
 0x27d   :  { %6289 = vmatpush.bf16.msrb.mxu1 %v8346_v42  ;;  %v10828_v42 = vld [vmem:[%s16520_s1 + $0xd48] sm:$0xf0]  ;;  %v8682_v39 = vor.u32 %v10804_v20, %v8681_v19  ;;  %v10843_v19 = vld [vmem:[%s16520_s1 + $0xdc0] sm:$0xf0] }
 0x27e   :  { %6302 = vmatpush.bf16.msrb.mxu2 %v8442_v54  ;;  %v8873_v54 = vld [vmem:[%s16520_s1 + $0xe00] sm:$0xf] }
 0x27f   :  { %6315 = vmatpush.bf16.msrb.mxu3 %v8538_v40  ;;  %v8778_v40 = vor.u32 %v10828_v42, %v8777_v22  ;;  %v8874_v48 = vor.u32 %v10852_v58, %v8873_v54  ;;  %v10867_v42 = vld [vmem:[%s16520_s1 + $0xe80] sm:$0xf0]  ;;  %v8646_v58 = vor.u32 %v10795_v17, %v8645_v51  ;;  %v10954_v51 = vld [vmem:[%s16520_s1 + $0x1138] sm:$0xf0] }
 0x280   :  { %6277 = vmatpush.bf16.msrb.mxu0 %v8238_v15  ;;  %v6071_v57 = vpop.f32.mrf.mxu0 }
 0x281   :  { %6290 = vmatpush.bf16.msrb.mxu1 %v8334_v62  ;;  %v6072_v15 = vadd.f32 %v6071_v57, %v15305_v29  ;;  %v6084_v55 = vpop.f32.mrf.mxu1  ;;  %v8862_v62 = vor.u32 %v10849_v56, %v8861_v52  ;;  %v8958_v29 = vor.u32 %v10873_v60, %v8957_v59  ;;  %v10840_v52 = vld [vmem:[%s16520_s1 + $0xda8] sm:$0xf0]  ;;  %v8921_v56 = vld [vmem:[%s16520_s1 + $0xe60] sm:$0xf]  ;;  %v8621_v60 = vld [vmem:[%s16520_s1 + $0xc08] sm:$0xf] }
 0x282   :  { %6303 = vmatpush.bf16.msrb.mxu2 %v8430_v63  ;;  %v8657_v63 = vld [vmem:[%s16520_s1 + $0xc50] sm:$0xf]  ;;  %v10864_v57 = vld [vmem:[%s16520_s1 + $0xe68] sm:$0xf0] }
 0x283   :  { %6316 = vmatpush.bf16.msrb.mxu3 %v8526_v26  ;;  %6278 = vmatmul.bf16.vlgmr.msrb.gmra.mxu0 %v12139_v23  ;;  %v8969_v23 = vld [vmem:[%s16520_s1 + $0xec0] sm:$0xf]  ;;  %v6085_v26 = vadd.f32 %v6084_v55, %v6072_v15  ;;  %v8658_v30 = vor.u32 %v10798_v0, %v8657_v63  ;;  %v10789_v15 = vld [vmem:[%s16520_s1 + $0xc10] sm:$0xf0]  ;;  %v8826_v55 = vor.u32 %v10840_v52, %v8825_v50  ;;  %v8813_v63 = vld [vmem:[%s16520_s1 + $0xd88] sm:$0xf] }
 0x284   :  { %6322 = vmatpush.bf16.msra.mxu0 %v8706_v25  ;;  %6291 = vmatmul.bf16.vlgmr.msrb.gmra.mxu1 %v12152_v31  ;;  %v10801_v31 = vld [vmem:[%s16520_s1 + $0xc70] sm:$0xf0]  ;;  %v10822_v25 = vld [vmem:[%s16520_s1 + $0xd18] sm:$0xf0]  ;;  %v8922_v0 = vor.u32 %v10864_v57, %v8921_v56  ;;  %v10900_v50 = vld [vmem:[%s16520_s1 + $0xf88] sm:$0xf0] }
 0x285   :  { %6335 = vmatpush.bf16.msra.mxu1 %v8802_v2  ;;  %6304 = vmatmul.bf16.vlgmr.msrb.gmra.mxu2 %v12150_v28  ;;  %v8669_v28 = vld [vmem:[%s16520_s1 + $0xc68] sm:$0xf]  ;;  %v8849_v2 = vld [vmem:[%s16520_s1 + $0xdd0] sm:$0xf]  ;;  %v9161_v52 = vld [vmem:[%s16520_s1 + $0x1040] sm:$0xf] }
 0x286   :  { %6348 = vmatpush.bf16.msra.mxu2 %v8898_v6  ;;  %6317 = vmatmul.bf16.vlgmr.msrb.gmra.mxu3 %v12160_v35  ;;  %v8970_v35 = vor.u32 %v10876_v44, %v8969_v23  ;;  %v8670_v47 = vor.u32 %v10801_v31, %v8669_v28  ;;  %v10846_v6 = vld [vmem:[%s16520_s1 + $0xdd8] sm:$0xf0]  ;;  %v10792_v28 = vld [vmem:[%s16520_s1 + $0xc28] sm:$0xf0]  ;;  %v8729_v31 = vld [vmem:[%s16520_s1 + $0xce0] sm:$0xf] }
 0x287   :  { %6361 = vmatpush.bf16.msra.mxu3 %v8994_v14  ;;  %v8754_v14 = vor.u32 %v10822_v25, %v8753_v1  ;;  %v8850_v33 = vor.u32 %v10846_v6, %v8849_v2  ;;  %v10837_v1 = vld [vmem:[%s16520_s1 + $0xd90] sm:$0xf0]  ;;  %v9089_v2 = vld [vmem:[%s16520_s1 + $0xfb0] sm:$0xf]  ;;  %v10906_v6 = vld [vmem:[%s16520_s1 + $0xfb8] sm:$0xf0] }
 0x288   :  { %6323 = vmatpush.bf16.msra.mxu0 %v8694_v38  ;;  %v6097_v38 = vpop.f32.mrf.mxu2  ;;  %v6073_v54 = vpop.f32.mrf.mxu0  ;;  %v10924_v57 = vld [vmem:[%s16520_s1 + $0x1048] sm:$0xf0] }
 0x289   :  { %6336 = vmatpush.bf16.msra.mxu1 %v8790_v27  ;;  %v10819_v27 = vld [vmem:[%s16520_s1 + $0xd00] sm:$0xf0]  ;;  %v6098_v20 = vadd.f32 %v6097_v38, %v6085_v26  ;;  %v6110_v22 = vpop.f32.mrf.mxu3  ;;  %v6086_v23 = vpop.f32.mrf.mxu1  ;;  %v10861_v26 = vld [vmem:[%s16520_s1 + $0xe50] sm:$0xf0]  ;;  %v10978_v38 = vld [vmem:[%s16520_s1 + $0x11f8] sm:$0xf0] }
 0x28a   :  { %6349 = vmatpush.bf16.msra.mxu2 %v8886_v32  ;;  %v8837_v32 = vld [vmem:[%s16520_s1 + $0xdb8] sm:$0xf] }
 0x28b   :  { %6362 = vmatpush.bf16.msra.mxu3 %v8982_v41  ;;  %v8933_v41 = vld [vmem:[%s16520_s1 + $0xe78] sm:$0xf]  ;;  %v15504_v44 = vadd.f32 %v6110_v22, %v6098_v20 }
 0x28c   :  { %6324 = vmatpush.bf16.msra.mxu0 %v8682_v39  ;;  %v8742_v39 = vor.u32 %v10819_v27, %v8741_v21  ;;  %v8934_v61 = vor.u32 %v10867_v42, %v8933_v41  ;;  %v8814_v21 = vor.u32 %v10837_v1, %v8813_v63  ;;  %v9077_v22 = vld [vmem:[%s16520_s1 + $0xf98] sm:$0xf]  ;;  %v10903_v41 = vld [vmem:[%s16520_s1 + $0xfa0] sm:$0xf0]  ;;  %v10921_v1 = vld [vmem:[%s16520_s1 + $0x1030] sm:$0xf0] }
 0x28d   :  { %6337 = vmatpush.bf16.msra.mxu1 %v8778_v40  ;;  %v8838_v40 = vor.u32 %v10843_v19, %v8837_v32  ;;  %v9090_v32 = vor.u32 %v10906_v6, %v9089_v2  ;;  %v9173_v42 = vld [vmem:[%s16520_s1 + $0x1058] sm:$0xf]  ;;  %v10969_v2 = vld [vmem:[%s16520_s1 + $0x11b0] sm:$0xf0] }
 0x28e   :  { %6350 = vmatpush.bf16.msra.mxu2 %v8874_v48  ;;  %v8633_v48 = vld [vmem:[%s16520_s1 + $0xc20] sm:$0xf]  ;;  %v9269_v23 = vld [vmem:[%s16520_s1 + $0x1118] sm:$0xf] }
 0x28f   :  { %6363 = vmatpush.bf16.msra.mxu3 %v8970_v35  ;;  %v10816_v35 = vld [vmem:[%s16520_s1 + $0xce8] sm:$0xf0]  ;;  %v8634_v59 = vor.u32 %v10792_v28, %v8633_v48  ;;  %v10975_v48 = vld [vmem:[%s16520_s1 + $0x11e0] sm:$0xf0]  ;;  %v9078_v28 = vor.u32 %v10903_v41, %v9077_v22 }
 0x290   :  { %6325 = vmatpush.bf16.msra.mxu0 %v8670_v47  ;;  %v8730_v47 = vor.u32 %v10816_v35, %v8729_v31  ;;  %v6099_v25 = vpop.f32.mrf.mxu2  ;;  %v9065_v35 = vld [vmem:[%s16520_s1 + $0xf80] sm:$0xf] }
 0x291   :  { %6338 = vmatpush.bf16.msra.mxu1 %v8766_v4  ;;  %v8717_v4 = vld [vmem:[%s16520_s1 + $0xcc8] sm:$0xf]  ;;  %v6112_v9 = vpop.f32.mrf.mxu3 }
 0x292   :  { %6351 = vmatpush.bf16.msra.mxu2 %v8862_v62  ;;  %v10813_v62 = vld [vmem:[%s16520_s1 + $0xcd0] sm:$0xf0]  ;;  %v9341_v25 = vld [vmem:[%s16520_s1 + $0x11a8] sm:$0xf] }
 0x293   :  { %6364 = vmatpush.bf16.msra.mxu3 %v8958_v29  ;;  %v8909_v29 = vld [vmem:[%s16520_s1 + $0xe48] sm:$0xf]  ;;  %v8718_v17 = vor.u32 %v10813_v62, %v8717_v4  ;;  %v10897_v4 = vld [vmem:[%s16520_s1 + $0xf70] sm:$0xf0] }
 0x294   :  { %6326 = vmatpush.bf16.msra.mxu0 %v8658_v30  ;;  %v8622_v30 = vor.u32 %v10789_v15, %v8621_v60  ;;  %v8910_v27 = vor.u32 %v10861_v26, %v8909_v29  ;;  %v10948_v60 = vld [vmem:[%s16520_s1 + $0x1108] sm:$0xf0]  ;;  %v9149_v62 = vld [vmem:[%s16520_s1 + $0x1028] sm:$0xf]  ;;  %v10945_v26 = vld [vmem:[%s16520_s1 + $0x10f0] sm:$0xf0] }
 0x295   :  { %6339 = vmatpush.bf16.msra.mxu1 %v8754_v14  ;;  %v10930_v14 = vld [vmem:[%s16520_s1 + $0x1078] sm:$0xf0]  ;;  %v10972_v15 = vld [vmem:[%s16520_s1 + $0x11c8] sm:$0xf0]  ;;  %v9245_v29 = vld [vmem:[%s16520_s1 + $0x10e8] sm:$0xf]  ;;  %v9150_v9 = vor.u32 %v10921_v1, %v9149_v62 }
 0x296   :  { %6352 = vmatpush.bf16.msra.mxu2 %v8850_v33  ;;  %v9281_v33 = vld [vmem:[%s16520_s1 + $0x1130] sm:$0xf]  ;;  %v9186_v19 = vor.u32 %v10930_v14, %v9185_v8  ;;  %v10912_v62 = vld [vmem:[%s16520_s1 + $0xfe8] sm:$0xf0] }
 0x297   :  { %6365 = vmatpush.bf16.msra.mxu3 %v8946_v18  ;;  %v9377_v18 = vld [vmem:[%s16520_s1 + $0x11f0] sm:$0xf]  ;;  %v9282_v20 = vor.u32 %v10954_v51, %v9281_v33  ;;  %v10894_v33 = vld [vmem:[%s16520_s1 + $0xf58] sm:$0xf0]  ;;  %v10960_v1 = vld [vmem:[%s16520_s1 + $0x1168] sm:$0xf0] }
 0x298   :  { %6327 = vmatpush.bf16.msra.mxu0 %v8646_v58  ;;  %v9378_v54 = vor.u32 %v10978_v38, %v9377_v18  ;;  %v10927_v58 = vld [vmem:[%s16520_s1 + $0x1060] sm:$0xf0]  ;;  %v9041_v14 = vld [vmem:[%s16520_s1 + $0xf50] sm:$0xf]  ;;  %v9342_v18 = vor.u32 %v10969_v2, %v9341_v25  ;;  %v10918_v38 = vld [vmem:[%s16520_s1 + $0x1018] sm:$0xf0] }
 0x299   :  { %6340 = vmatpush.bf16.msra.mxu1 %v8742_v39  ;;  %v10951_v39 = vld [vmem:[%s16520_s1 + $0x1120] sm:$0xf0]  ;;  %v9174_v31 = vor.u32 %v10927_v58, %v9173_v42  ;;  %v9137_v51 = vld [vmem:[%s16520_s1 + $0x1010] sm:$0xf]  ;;  %v9042_v41 = vor.u32 %v10894_v33, %v9041_v14  ;;  %v9029_v58 = vld [vmem:[%s16520_s1 + $0xf38] sm:$0xf] }
 0x29a   :  { %6353 = vmatpush.bf16.msra.mxu2 %v8838_v40  ;;  %v9365_v40 = vld [vmem:[%s16520_s1 + $0x11d8] sm:$0xf]  ;;  %v9138_v42 = vor.u32 %v10918_v38, %v9137_v51  ;;  %v10885_v25 = vld [vmem:[%s16520_s1 + $0xf10] sm:$0xf0]  ;;  %v9473_v38 = vld [vmem:[%s16520_s1 + $0x12b0] sm:$0xf] }
 0x29b   :  { %6366 = vmatpush.bf16.msra.mxu3 %v8934_v61  ;;  %v9270_v61 = vor.u32 %v10951_v39, %v9269_v23  ;;  %v9366_v56 = vor.u32 %v10975_v48, %v9365_v40  ;;  %v10891_v23 = vld [vmem:[%s16520_s1 + $0xf40] sm:$0xf0]  ;;  %v9125_v39 = vld [vmem:[%s16520_s1 + $0xff8] sm:$0xf]  ;;  %v10933_v51 = vld [vmem:[%s16520_s1 + $0x1090] sm:$0xf0] }
 0x29c   :  { %6328 = vmatpush.bf16.msra.mxu0 %v8634_v59  ;;  %v9257_v59 = vld [vmem:[%s16520_s1 + $0x1100] sm:$0xf] }
 0x29d   :  { %6341 = vmatpush.bf16.msra.mxu1 %v8730_v47  ;;  %v9066_v47 = vor.u32 %v10900_v50, %v9065_v35 }
 0x29e   :  { %6354 = vmatpush.bf16.msra.mxu2 %v8826_v55  ;;  %v9053_v55 = vld [vmem:[%s16520_s1 + $0xf68] sm:$0xf] }
 0x29f   :  { %6367 = vmatpush.bf16.msra.mxu3 %v8922_v0  ;;  %v9054_v6 = vor.u32 %v10897_v4, %v9053_v55  ;;  %v10888_v55 = vld [vmem:[%s16520_s1 + $0xf28] sm:$0xf0] }
 0x2a0   :  { %6329 = vmatpush.bf16.msra.mxu0 %v8622_v30  ;;  %v6123_v8 = vpop.f32.mrf.mxu0  ;;  %v9246_v30 = vor.u32 %v10945_v26, %v9245_v29  ;;  %v9005_v26 = vld [vmem:[%s16520_s1 + $0xf08] sm:$0xf] }
 0x2a1   :  { %6342 = vmatpush.bf16.msra.mxu1 %v8718_v17 }
 0x2a2   :  { %6355 = vmatpush.bf16.msra.mxu2 %v8814_v21  ;;  %v6136_v21 = vpop.f32.mrf.mxu1 }
 0x2a3   :  { %6368 = vmatpush.bf16.msra.mxu3 %v8910_v27  ;;  %6330 = vmatmul.bf16.vlgmr.msra.gmra.mxu0 %v12349_v37  ;;  %v9353_v37 = vld [vmem:[%s16520_s1 + $0x11c0] sm:$0xf]  ;;  %v9233_v27 = vld [vmem:[%s16520_s1 + $0x10d0] sm:$0xf] }
 0x2a4   :  { %6374 = vmatpush.bf16.msrb.mxu0 %v9090_v32  ;;  %6343 = vmatmul.bf16.vlgmr.msra.gmra.mxu1 %v12362_v46  ;;  %v9258_v46 = vor.u32 %v10948_v60, %v9257_v59  ;;  %v9354_v0 = vor.u32 %v10972_v15, %v9353_v37  ;;  %v10942_v32 = vld [vmem:[%s16520_s1 + $0x10d8] sm:$0xf0] }
 0x2a5   :  { %6387 = vmatpush.bf16.msrb.mxu1 %v9186_v19  ;;  %6356 = vmatmul.bf16.vlgmr.msra.gmra.mxu2 %v12360_v45  ;;  %v9162_v45 = vor.u32 %v10924_v57, %v9161_v52  ;;  %v9329_v19 = vld [vmem:[%s16520_s1 + $0x1190] sm:$0xf]  ;;  %v9317_v52 = vld [vmem:[%s16520_s1 + $0x1178] sm:$0xf]  ;;  %v9030_v57 = vor.u32 %v10891_v23, %v9029_v58  ;;  %v11074_v23 = vld [vmem:[%s16520_s1 + $0x14f8] sm:$0xf0] }
 0x2a6   :  { %6400 = vmatpush.bf16.msrb.mxu2 %v9282_v20  ;;  %6369 = vmatmul.bf16.vlgmr.msra.gmra.mxu3 %v12370_v49  ;;  %v11237_v49 = vld [vmem:[%s16522_s2] sm:$0x7]  ;;  %v10966_v20 = vld [vmem:[%s16520_s1 + $0x1198] sm:$0xf0]  ;;  %v9761_v58 = vld [vmem:[%s16520_s1 + $0x14f0] sm:$0xf] }
 0x2a7   :  { %6413 = vmatpush.bf16.msrb.mxu3 %v9378_v54  ;;  %v1070_v63 = vperm.slane %v11237_v49, 2  ;;  %v9234_v54 = vor.u32 %v10942_v32, %v9233_v27  ;;  %v9330_v48 = vor.u32 %v10966_v20, %v9329_v19  ;;  %v9209_v49 = vld [vmem:[%s16520_s1 + $0x10a0] sm:$0xf]  ;;  %v11002_v27 = vld [vmem:[%s16520_s1 + $0x12b8] sm:$0xf0]  ;;  %v9006_v19 = vor.u32 %v10885_v25, %v9005_v26 }
 0x2a8   :  { %6375 = vmatpush.bf16.msrb.mxu0 %v9078_v28  ;;  %v6149_v40 = vpop.f32.mrf.mxu2  ;;  %v10915_v28 = vld [vmem:[%s16520_s1 + $0x1000] sm:$0xf0]  ;;  %v6125_v60 = vpop.f32.mrf.mxu0  ;;  %v9569_v32 = vld [vmem:[%s16520_s1 + $0x1370] sm:$0xf]  ;;  %v11026_v20 = vld [vmem:[%s16520_s1 + $0x1378] sm:$0xf0] }
 0x2a9   :  { %6388 = vmatpush.bf16.msrb.mxu1 %v9174_v31  ;;  %v6124_v17 = vadd.f32 %v6123_v8, %v1070_v63  ;;  %v9221_v31 = vld [vmem:[%s16520_s1 + $0x10b8] sm:$0xf]  ;;  %v6162_v50 = vpop.f32.mrf.mxu3  ;;  %v9126_v37 = vor.u32 %v10915_v28, %v9125_v39  ;;  %v10936_v63 = vld [vmem:[%s16520_s1 + $0x10a8] sm:$0xf0]  ;;  %v9101_v8 = vld [vmem:[%s16520_s1 + $0xfc8] sm:$0xf] }
 0x2aa   :  { %6401 = vmatpush.bf16.msrb.mxu2 %v9270_v61  ;;  %v10939_v61 = vld [vmem:[%s16520_s1 + $0x10c0] sm:$0xf0]  ;;  %v9749_v60 = vld [vmem:[%s16520_s1 + $0x14d8] sm:$0xf] }
 0x2ab   :  { %6414 = vmatpush.bf16.msrb.mxu3 %v9366_v56  ;;  %v6137_v22 = vadd.f32 %v6136_v21, %v6124_v17  ;;  %v10963_v56 = vld [vmem:[%s16520_s1 + $0x1180] sm:$0xf0]  ;;  %v9222_v15 = vor.u32 %v10939_v61, %v9221_v31  ;;  %v9293_v17 = vld [vmem:[%s16520_s1 + $0x1148] sm:$0xf]  ;;  %v10957_v21 = vld [vmem:[%s16520_s1 + $0x1150] sm:$0xf0] }
 0x2ac   :  { %6376 = vmatpush.bf16.msrb.mxu0 %v9066_v47  ;;  %v9017_v47 = vld [vmem:[%s16520_s1 + $0xf20] sm:$0xf]  ;;  %v9318_v4 = vor.u32 %v10963_v56, %v9317_v52  ;;  %v9294_v39 = vor.u32 %v10957_v21, %v9293_v17  ;;  %v9461_v31 = vld [vmem:[%s16520_s1 + $0x1298] sm:$0xf]  ;;  %v10999_v61 = vld [vmem:[%s16520_s1 + $0x12a0] sm:$0xf0] }
 0x2ad   :  { %6389 = vmatpush.bf16.msrb.mxu1 %v9162_v45  ;;  %v6150_v35 = vadd.f32 %v6149_v40, %v6137_v22  ;;  %v9113_v45 = vld [vmem:[%s16520_s1 + $0xfe0] sm:$0xf]  ;;  %v9018_v29 = vor.u32 %v10888_v55, %v9017_v47  ;;  %v9665_v22 = vld [vmem:[%s16520_s1 + $0x1430] sm:$0xf]  ;;  %v9474_v40 = vor.u32 %v11002_v27, %v9473_v38  ;;  %v11023_v52 = vld [vmem:[%s16520_s1 + $0x1360] sm:$0xf0] }
 0x2ae   :  { %6402 = vmatpush.bf16.msrb.mxu2 %v9258_v46  ;;  %v6138_v46 = vpop.f32.mrf.mxu1  ;;  %v9114_v2 = vor.u32 %v10912_v62, %v9113_v45  ;;  %v9653_v56 = vld [vmem:[%s16520_s1 + $0x1418] sm:$0xf]  ;;  %v9449_v45 = vld [vmem:[%s16520_s1 + $0x1280] sm:$0xf]  ;;  %v10990_v38 = vld [vmem:[%s16520_s1 + $0x1258] sm:$0xf0] }
 0x2af   :  { %6415 = vmatpush.bf16.msrb.mxu3 %v9354_v0  ;;  %v15705_v59 = vadd.f32 %v6162_v50, %v6150_v35  ;;  %v9305_v0 = vld [vmem:[%s16520_s1 + $0x1160] sm:$0xf]  ;;  %v9557_v35 = vld [vmem:[%s16520_s1 + $0x1358] sm:$0xf]  ;;  %v9762_v50 = vor.u32 %v11074_v23, %v9761_v58  ;;  %v10996_v46 = vld [vmem:[%s16520_s1 + $0x1288] sm:$0xf0] }
 0x2b0   :  { %6377 = vmatpush.bf16.msrb.mxu0 %v9054_v6  ;;  %v9210_v6 = vor.u32 %v10936_v63, %v9209_v49  ;;  %v6151_v14 = vpop.f32.mrf.mxu2  ;;  %v9306_v33 = vor.u32 %v10960_v1, %v9305_v0  ;;  %v9558_v47 = vor.u32 %v11023_v52, %v9557_v35  ;;  %v11020_v49 = vld [vmem:[%s16520_s1 + $0x1348] sm:$0xf0]  ;;  %v9641_v63 = vld [vmem:[%s16520_s1 + $0x1400] sm:$0xf]  ;;  %v9521_v27 = vld [vmem:[%s16520_s1 + $0x1310] sm:$0xf] }
 0x2b1   :  { %6390 = vmatpush.bf16.msrb.mxu1 %v9150_v9  ;;  %v10909_v9 = vld [vmem:[%s16520_s1 + $0xfd0] sm:$0xf0]  ;;  %v11044_v0 = vld [vmem:[%s16520_s1 + $0x1408] sm:$0xf0]  ;;  %v9605_v52 = vld [vmem:[%s16520_s1 + $0x13b8] sm:$0xf] }
 0x2b2   :  { %6403 = vmatpush.bf16.msrb.mxu2 %v9246_v30  ;;  %v9197_v30 = vld [vmem:[%s16520_s1 + $0x1088] sm:$0xf]  ;;  %v11068_v1 = vld [vmem:[%s16520_s1 + $0x14c8] sm:$0xf0]  ;;  %v9642_v25 = vor.u32 %v11044_v0, %v9641_v63  ;;  %v11065_v14 = vld [vmem:[%s16520_s1 + $0x14b0] sm:$0xf0] }
 0x2b3   :  { %6416 = vmatpush.bf16.msrb.mxu3 %v9342_v18  ;;  %v6164_v18 = vpop.f32.mrf.mxu3  ;;  %v9497_v63 = vld [vmem:[%s16520_s1 + $0x12e0] sm:$0xf] }
 0x2b4   :  { %6378 = vmatpush.bf16.msrb.mxu0 %v9042_v41  ;;  %v11050_v41 = vld [vmem:[%s16520_s1 + $0x1438] sm:$0xf0]  ;;  %v9425_v18 = vld [vmem:[%s16520_s1 + $0x1250] sm:$0xf] }
 0x2b5   :  { %6391 = vmatpush.bf16.msrb.mxu1 %v9138_v42  ;;  %v9102_v42 = vor.u32 %v10909_v9, %v9101_v8  ;;  %v9666_v28 = vor.u32 %v11050_v41, %v9665_v22  ;;  %v9629_v8 = vld [vmem:[%s16520_s1 + $0x13e8] sm:$0xf]  ;;  %v11041_v9 = vld [vmem:[%s16520_s1 + $0x13f0] sm:$0xf0]  ;;  %v11014_v22 = vld [vmem:[%s16520_s1 + $0x1318] sm:$0xf0]  ;;  %v9426_v23 = vor.u32 %v10990_v38, %v9425_v18 }
 0x2b6   :  { %6404 = vmatpush.bf16.msrb.mxu2 %v9234_v54  ;;  %v9198_v54 = vor.u32 %v10933_v51, %v9197_v30  ;;  %v9725_v30 = vld [vmem:[%s16520_s1 + $0x14a8] sm:$0xf]  ;;  %v9630_v21 = vor.u32 %v11041_v9, %v9629_v8  ;;  %v9617_v41 = vld [vmem:[%s16520_s1 + $0x13d0] sm:$0xf]  ;;  %v11053_v18 = vld [vmem:[%s16520_s1 + $0x1450] sm:$0xf0] }
 0x2b7   :  { %6417 = vmatpush.bf16.msrb.mxu3 %v9330_v48  ;;  %v9570_v48 = vor.u32 %v11026_v20, %v9569_v32  ;;  %v9726_v20 = vor.u32 %v11065_v14, %v9725_v30  ;;  %v9485_v9 = vld [vmem:[%s16520_s1 + $0x12c8] sm:$0xf]  ;;  %v11005_v30 = vld [vmem:[%s16520_s1 + $0x12d0] sm:$0xf0] }
 0x2b8   :  { %6379 = vmatpush.bf16.msrb.mxu0 %v9030_v57  ;;  %v11047_v57 = vld [vmem:[%s16520_s1 + $0x1420] sm:$0xf0]  ;;  %v9581_v14 = vld [vmem:[%s16520_s1 + $0x1388] sm:$0xf] }
 0x2b9   :  { %6392 = vmatpush.bf16.msrb.mxu1 %v9126_v37  ;;  %v11071_v37 = vld [vmem:[%s16520_s1 + $0x14e0] sm:$0xf0]  ;;  %v9654_v55 = vor.u32 %v11047_v57, %v9653_v56 }
 0x2ba   :  { %6405 = vmatpush.bf16.msrb.mxu2 %v9222_v15  ;;  %v9462_v15 = vor.u32 %v10999_v61, %v9461_v31  ;;  %v9750_v62 = vor.u32 %v11071_v37, %v9749_v60  ;;  %v9509_v31 = vld [vmem:[%s16520_s1 + $0x12f8] sm:$0xf]  ;;  %v11035_v56 = vld [vmem:[%s16520_s1 + $0x13c0] sm:$0xf0] }
 0x2bb   :  { %6418 = vmatpush.bf16.msrb.mxu3 %v9318_v4  ;;  %v9545_v4 = vld [vmem:[%s16520_s1 + $0x1340] sm:$0xf]  ;;  %v9701_v37 = vld [vmem:[%s16520_s1 + $0x1478] sm:$0xf] }
 0x2bc   :  { %6380 = vmatpush.bf16.msrb.mxu0 %v9018_v29  ;;  %v9450_v29 = vor.u32 %v10996_v46, %v9449_v45  ;;  %v9546_v26 = vor.u32 %v11020_v49, %v9545_v4  ;;  %v9606_v4 = vor.u32 %v11035_v56, %v9605_v52  ;;  %v10984_v49 = vld [vmem:[%s16520_s1 + $0x1228] sm:$0xf0]  ;;  %v11119_v52 = vld [vmem:[%s16520_s1 + $0x1660] sm:$0xf0]  ;;  %v10037_v56 = vld [vmem:[%s16520_s1 + $0x1718] sm:$0xf] }
 0x2bd   :  { %6393 = vmatpush.bf16.msrb.mxu1 %v9114_v2  ;;  %v9533_v2 = vld [vmem:[%s16520_s1 + $0x1328] sm:$0xf] }
 0x2be   :  { %6406 = vmatpush.bf16.msrb.mxu2 %v9210_v6  ;;  %v11017_v6 = vld [vmem:[%s16520_s1 + $0x1330] sm:$0xf0] }
 0x2bf   :  { %6419 = vmatpush.bf16.msrb.mxu3 %v9306_v33  ;;  %v9534_v17 = vor.u32 %v11017_v6, %v9533_v2  ;;  %v9389_v2 = vld [vmem:[%s16520_s1 + $0x1208] sm:$0xf] }
 0x2c0   :  { %6381 = vmatpush.bf16.msrb.mxu0 %v9006_v19  ;;  %v6175_v51 = vpop.f32.mrf.mxu0 }
 0x2c1   :  { %6394 = vmatpush.bf16.msrb.mxu1 %v9102_v42  ;;  %v6176_v32 = vadd.f32 %v6175_v51, %v15705_v59  ;;  %v6188_v19 = vpop.f32.mrf.mxu1  ;;  %v11038_v42 = vld [vmem:[%s16520_s1 + $0x13d8] sm:$0xf0] }
 0x2c2   :  { %6407 = vmatpush.bf16.msrb.mxu2 %v9198_v54  ;;  %v9713_v54 = vld [vmem:[%s16520_s1 + $0x1490] sm:$0xf]  ;;  %v11062_v59 = vld [vmem:[%s16520_s1 + $0x1498] sm:$0xf0] }
 0x2c3   :  { %6420 = vmatpush.bf16.msrb.mxu3 %v9294_v39  ;;  %6382 = vmatmul.bf16.vlgmr.msrb.gmra.mxu0 %v12564_v7  ;;  %v9737_v7 = vld [vmem:[%s16520_s1 + $0x14c0] sm:$0xf]  ;;  %v6189_v58 = vadd.f32 %v6188_v19, %v6176_v32  ;;  %v9522_v39 = vor.u32 %v11014_v22, %v9521_v27  ;;  %v9714_v35 = vor.u32 %v11062_v59, %v9713_v54  ;;  %v9857_v27 = vld [vmem:[%s16520_s1 + $0x15b0] sm:$0xf]  ;;  %v11098_v32 = vld [vmem:[%s16520_s1 + $0x15b8] sm:$0xf0] }
 0x2c4   :  { %6426 = vmatpush.bf16.msra.mxu0 %v9474_v40  ;;  %6395 = vmatmul.bf16.vlgmr.msrb.gmra.mxu1 %v12577_v12  ;;  %v10993_v12 = vld [vmem:[%s16520_s1 + $0x1270] sm:$0xf0]  ;;  %v9618_v40 = vor.u32 %v11038_v42, %v9617_v41  ;;  %v9953_v19 = vld [vmem:[%s16520_s1 + $0x1670] sm:$0xf]  ;;  %v11122_v22 = vld [vmem:[%s16520_s1 + $0x1678] sm:$0xf0]  ;;  %v9486_v54 = vor.u32 %v11005_v30, %v9485_v9 }
 0x2c5   :  { %6439 = vmatpush.bf16.msra.mxu1 %v9570_v48  ;;  %6408 = vmatmul.bf16.vlgmr.msrb.gmra.mxu2 %v12575_v11  ;;  %v9437_v11 = vld [vmem:[%s16520_s1 + $0x1268] sm:$0xf]  ;;  %v9413_v48 = vld [vmem:[%s16520_s1 + $0x1238] sm:$0xf]  ;;  %v10049_v41 = vld [vmem:[%s16520_s1 + $0x1730] sm:$0xf] }
 0x2c6   :  { %6452 = vmatpush.bf16.msra.mxu2 %v9666_v28  ;;  %6421 = vmatmul.bf16.vlgmr.msrb.gmra.mxu3 %v12585_v16  ;;  %v9738_v16 = vor.u32 %v11068_v1, %v9737_v7  ;;  %v9438_v33 = vor.u32 %v10993_v12, %v9437_v11  ;;  %v10987_v28 = vld [vmem:[%s16520_s1 + $0x1240] sm:$0xf0]  ;;  %v11008_v1 = vld [vmem:[%s16520_s1 + $0x12e8] sm:$0xf0]  ;;  %v11146_v42 = vld [vmem:[%s16520_s1 + $0x1738] sm:$0xf0] }
 0x2c7   :  { %6465 = vmatpush.bf16.msra.mxu3 %v9762_v50  ;;  %v11011_v50 = vld [vmem:[%s16520_s1 + $0x1300] sm:$0xf0]  ;;  %v11056_v11 = vld [vmem:[%s16520_s1 + $0x1468] sm:$0xf0]  ;;  %v9498_v6 = vor.u32 %v11008_v1, %v9497_v63  ;;  %v11161_v9 = vld [vmem:[%s16520_s1 + $0x17b0] sm:$0xf0] }
 0x2c8   :  { %6427 = vmatpush.bf16.msra.mxu0 %v9462_v15  ;;  %v6201_v61 = vpop.f32.mrf.mxu2  ;;  %v11059_v15 = vld [vmem:[%s16520_s1 + $0x1480] sm:$0xf0]  ;;  %v6177_v45 = vpop.f32.mrf.mxu0  ;;  %v9510_v46 = vor.u32 %v11011_v50, %v9509_v31  ;;  %v9845_v31 = vld [vmem:[%s16520_s1 + $0x1598] sm:$0xf]  ;;  %v11116_v63 = vld [vmem:[%s16520_s1 + $0x1648] sm:$0xf0] }
 0x2c9   :  { %6440 = vmatpush.bf16.msra.mxu1 %v9558_v47  ;;  %v6202_v57 = vadd.f32 %v6201_v61, %v6189_v58  ;;  %v6214_v60 = vpop.f32.mrf.mxu3  ;;  %v9414_v47 = vor.u32 %v10987_v28, %v9413_v48  ;;  %v6190_v0 = vpop.f32.mrf.mxu1  ;;  %v9702_v7 = vor.u32 %v11059_v15, %v9701_v37  ;;  %v10145_v58 = vld [vmem:[%s16520_s1 + $0x17f0] sm:$0xf]  ;;  %v9954_v48 = vor.u32 %v11122_v22, %v9953_v19  ;;  %v11095_v61 = vld [vmem:[%s16520_s1 + $0x15a0] sm:$0xf0]  ;;  %v11164_v1 = vld [vmem:[%s16520_s1 + $0x17c8] sm:$0xf0] }
 0x2ca   :  { %6453 = vmatpush.bf16.msra.mxu2 %v9654_v55  ;;  %v10050_v28 = vor.u32 %v11146_v42, %v10049_v41  ;;  %v11167_v37 = vld [vmem:[%s16520_s1 + $0x17e0] sm:$0xf0]  ;;  %v9846_v15 = vor.u32 %v11095_v61, %v9845_v31  ;;  %v10025_v0 = vld [vmem:[%s16520_s1 + $0x1700] sm:$0xf]  ;;  %v10001_v19 = vld [vmem:[%s16520_s1 + $0x16d0] sm:$0xf] }
 0x2cb   :  { %6466 = vmatpush.bf16.msra.mxu3 %v9750_v62  ;;  %v15904_v55 = vadd.f32 %v6214_v60, %v6202_v57  ;;  %v9401_v62 = vld [vmem:[%s16520_s1 + $0x1220] sm:$0xf]  ;;  %v11143_v57 = vld [vmem:[%s16520_s1 + $0x1720] sm:$0xf0]  ;;  %v10133_v60 = vld [vmem:[%s16520_s1 + $0x17d8] sm:$0xf] }
 0x2cc   :  { %6428 = vmatpush.bf16.msra.mxu0 %v9450_v29  ;;  %v9593_v29 = vld [vmem:[%s16520_s1 + $0x13a0] sm:$0xf]  ;;  %v9402_v12 = vor.u32 %v10984_v49, %v9401_v62  ;;  %v10038_v45 = vor.u32 %v11143_v57, %v10037_v56  ;;  %v10134_v49 = vor.u32 %v11167_v37, %v10133_v60  ;;  %v10097_v22 = vld [vmem:[%s16520_s1 + $0x1790] sm:$0xf]  ;;  %v11158_v41 = vld [vmem:[%s16520_s1 + $0x1798] sm:$0xf0] }
 0x2cd   :  { %6441 = vmatpush.bf16.msra.mxu1 %v9546_v26  ;;  %v11032_v26 = vld [vmem:[%s16520_s1 + $0x13a8] sm:$0xf0]  ;;  %v9929_v62 = vld [vmem:[%s16520_s1 + $0x1640] sm:$0xf]  ;;  %v9989_v31 = vld [vmem:[%s16520_s1 + $0x16b8] sm:$0xf] }
 0x2ce   :  { %6454 = vmatpush.bf16.msra.mxu2 %v9642_v25  ;;  %v9689_v25 = vld [vmem:[%s16520_s1 + $0x1460] sm:$0xf]  ;;  %v9594_v8 = vor.u32 %v11032_v26, %v9593_v29  ;;  %v9930_v26 = vor.u32 %v11116_v63, %v9929_v62  ;;  %v11131_v61 = vld [vmem:[%s16520_s1 + $0x16c0] sm:$0xf0]  ;;  %v11104_v63 = vld [vmem:[%s16520_s1 + $0x15e8] sm:$0xf0] }
 0x2cf   :  { %6467 = vmatpush.bf16.msra.mxu3 %v9738_v16  ;;  %v10981_v16 = vld [vmem:[%s16520_s1 + $0x1210] sm:$0xf0]  ;;  %v9690_v51 = vor.u32 %v11056_v11, %v9689_v25  ;;  %v9917_v11 = vld [vmem:[%s16520_s1 + $0x1628] sm:$0xf]  ;;  %v11155_v56 = vld [vmem:[%s16520_s1 + $0x1780] sm:$0xf0] }
 0x2d0   :  { %6429 = vmatpush.bf16.msra.mxu0 %v9438_v33  ;;  %v6203_v33 = vpop.f32.mrf.mxu2  ;;  %v9881_v62 = vld [vmem:[%s16520_s1 + $0x15e0] sm:$0xf] }
 0x2d1   :  { %6442 = vmatpush.bf16.msra.mxu1 %v9534_v17  ;;  %v11029_v17 = vld [vmem:[%s16520_s1 + $0x1390] sm:$0xf0]  ;;  %v6216_v38 = vpop.f32.mrf.mxu3 }
 0x2d2   :  { %6455 = vmatpush.bf16.msra.mxu2 %v9630_v21  ;;  %v9677_v21 = vld [vmem:[%s16520_s1 + $0x1448] sm:$0xf]  ;;  %v9582_v59 = vor.u32 %v11029_v17, %v9581_v14  ;;  %v9905_v38 = vld [vmem:[%s16520_s1 + $0x1610] sm:$0xf] }
 0x2d3   :  { %6468 = vmatpush.bf16.msra.mxu3 %v9726_v20  ;;  %v9390_v20 = vor.u32 %v10981_v16, %v9389_v2  ;;  %v10013_v2 = vld [vmem:[%s16520_s1 + $0x16e8] sm:$0xf]  ;;  %v11137_v16 = vld [vmem:[%s16520_s1 + $0x16f0] sm:$0xf0] }
 0x2d4   :  { %6430 = vmatpush.bf16.msra.mxu0 %v9426_v23  ;;  %v11170_v23 = vld [vmem:[%s16520_s1 + $0x17f8] sm:$0xf0]  ;;  %v10014_v17 = vor.u32 %v11137_v16, %v10013_v2  ;;  %v11125_v16 = vld [vmem:[%s16520_s1 + $0x1690] sm:$0xf0] }
 0x2d5   :  { %6443 = vmatpush.bf16.msra.mxu1 %v9522_v39  ;;  %v9678_v39 = vor.u32 %v11053_v18, %v9677_v21  ;;  %v10146_v50 = vor.u32 %v11170_v23, %v10145_v58  ;;  %v9809_v21 = vld [vmem:[%s16520_s1 + $0x1550] sm:$0xf]  ;;  %v11086_v18 = vld [vmem:[%s16520_s1 + $0x1558] sm:$0xf0]  ;;  %v9797_v58 = vld [vmem:[%s16520_s1 + $0x1538] sm:$0xf] }
 0x2d6   :  { %6456 = vmatpush.bf16.msra.mxu2 %v9618_v40  ;;  %v9858_v40 = vor.u32 %v11098_v32, %v9857_v27  ;;  %v11110_v32 = vld [vmem:[%s16520_s1 + $0x1618] sm:$0xf0]  ;;  %v9810_v42 = vor.u32 %v11086_v18, %v9809_v21  ;;  %v11083_v23 = vld [vmem:[%s16520_s1 + $0x1540] sm:$0xf0]  ;;  %v11202_v21 = vld [vmem:[%s16523_s3 + $0xf4] sm:$0xf0] }
 0x2d7   :  { %6469 = vmatpush.bf16.msra.mxu3 %v9714_v35  ;;  %v9941_v35 = vld [vmem:[%s16520_s1 + $0x1658] sm:$0xf]  ;;  %v9798_v60 = vor.u32 %v11083_v23, %v9797_v58  ;;  %v11185_v18 = vld [vmem:[%s16523_s3 + $0x74] sm:$0xf]  ;;  %v11183_v58 = vld [vmem:[%s16523_s3 + $0x64] sm:$0xf] }
 0x2d8   :  { %6431 = vmatpush.bf16.msra.mxu0 %v9414_v47  ;;  %v9942_v47 = vor.u32 %v11119_v52, %v9941_v35  ;;  %v10085_v52 = vld [vmem:[%s16520_s1 + $0x1778] sm:$0xf]  ;;  %v10199_v23 = vld [vmem:[%s16523_s3 + $0x68] sm:$0xf0] }
 0x2d9   :  { %6444 = vmatpush.bf16.msra.mxu1 %v9510_v46  ;;  %v9833_v46 = vld [vmem:[%s16520_s1 + $0x1580] sm:$0xf] }
 0x2da   :  { %6457 = vmatpush.bf16.msra.mxu2 %v9606_v4  ;;  %v11092_v4 = vld [vmem:[%s16520_s1 + $0x1588] sm:$0xf0] }
 0x2db   :  { %6470 = vmatpush.bf16.msra.mxu3 %v9702_v7  ;;  %v11140_v7 = vld [vmem:[%s16520_s1 + $0x1708] sm:$0xf0]  ;;  %v9834_v29 = vor.u32 %v11092_v4, %v9833_v46  ;;  %v9785_v46 = vld [vmem:[%s16520_s1 + $0x1520] sm:$0xf] }
 0x2dc   :  { %6432 = vmatpush.bf16.msra.mxu0 %v9402_v12  ;;  %v10026_v25 = vor.u32 %v11140_v7, %v10025_v0  ;;  %v11113_v12 = vld [vmem:[%s16520_s1 + $0x1630] sm:$0xf0]  ;;  %v11080_v4 = vld [vmem:[%s16520_s1 + $0x1528] sm:$0xf0]  ;;  %v9977_v0 = vld [vmem:[%s16520_s1 + $0x16a0] sm:$0xf] }
 0x2dd   :  { %6445 = vmatpush.bf16.msra.mxu1 %v9498_v6  ;;  %v11128_v7 = vld [vmem:[%s16520_s1 + $0x16a8] sm:$0xf0] }
 0x2de   :  { %6458 = vmatpush.bf16.msra.mxu2 %v9594_v8  ;;  %v10109_v8 = vld [vmem:[%s16520_s1 + $0x17a8] sm:$0xf] }
 0x2df   :  { %6471 = vmatpush.bf16.msra.mxu3 %v9690_v51  ;;  %v9918_v51 = vor.u32 %v11113_v12, %v9917_v11  ;;  %v9869_v11 = vld [vmem:[%s16520_s1 + $0x15c8] sm:$0xf] }
 0x2e0   :  { %6433 = vmatpush.bf16.msra.mxu0 %v9390_v20  ;;  %v6227_v6 = vpop.f32.mrf.mxu0  ;;  %v11134_v20 = vld [vmem:[%s16520_s1 + $0x16d8] sm:$0xf0]  ;;  %v9965_v12 = vld [vmem:[%s16520_s1 + $0x1688] sm:$0xf] }
 0x2e1   :  { %6446 = vmatpush.bf16.msra.mxu1 %v9486_v54  ;;  %v6228_v30 = vadd.f32 %v6227_v6, %v15904_v55  ;;  %v6240_v33 = vpop.f32.mrf.mxu1  ;;  %v10110_v55 = vor.u32 %v11161_v9, %v10109_v8  ;;  %v9906_v54 = vor.u32 %v11110_v32, %v9905_v38  ;;  %v10061_v6 = vld [vmem:[%s16520_s1 + $0x1748] sm:$0xf]  ;;  %v11149_v8 = vld [vmem:[%s16520_s1 + $0x1750] sm:$0xf0]  ;;  %v10207_v38 = vld [vmem:[%s16523_s3 + $0x78] sm:$0xf0] }
 0x2e2   :  { %6459 = vmatpush.bf16.msra.mxu2 %v9582_v59  ;;  %v10002_v59 = vor.u32 %v11134_v20, %v10001_v19  ;;  %v10062_v32 = vor.u32 %v11149_v8, %v10061_v6  ;;  %v11175_v6 = vld [vmem:[%s16523_s3 + $0x24] sm:$0xf]  ;;  %v10167_v8 = vld [vmem:[%s16523_s3 + $0x28] sm:$0xf0] }
 0x2e3   :  { %6472 = vmatpush.bf16.msra.mxu3 %v9678_v39  ;;  %6434 = vmatmul.bf16.vlgmr.msra.gmra.mxu0 %v12777_v5  ;;  %v10121_v5 = vld [vmem:[%s16520_s1 + $0x17c0] sm:$0xf]  ;;  %v6241_v27 = vadd.f32 %v6240_v33, %v6228_v30  ;;  %v9893_v39 = vld [vmem:[%s16520_s1 + $0x15f8] sm:$0xf]  ;;  %v10205_v30 = vld [vmem:[%s16523_s3 + $0x70] sm:$0xf] }
 0x2e4   :  { %6478 = vmatpush.bf16.msrb.mxu0 %v9858_v40  ;;  %6447 = vmatmul.bf16.vlgmr.msra.gmra.mxu1 %v12790_v13  ;;  %v11089_v13 = vld [vmem:[%s16520_s1 + $0x1570] sm:$0xf0]  ;;  %v10098_v40 = vor.u32 %v11158_v41, %v10097_v22  ;;  %v10269_v33 = vld [vmem:[%s16523_s3 + $0xf0] sm:$0xf]  ;;  %v10210_v22 = vor.u32 %v11185_v18, %v10207_v38  ;;  %v10197_v41 = vld [vmem:[%s16523_s3 + $0x60] sm:$0xf]  ;;  %v10170_v18 = vor.u32 %v11175_v6, %v10167_v8 }
 0x2e5   :  { %6491 = vmatpush.bf16.msrb.mxu1 %v9954_v48  ;;  %6460 = vmatmul.bf16.vlgmr.msra.gmra.mxu2 %v12788_v10  ;;  %v9821_v10 = vld [vmem:[%s16520_s1 + $0x1568] sm:$0xf]  ;;  %v10270_v20 = vor.u32 %v11202_v21, %v10269_v33  ;;  %v10157_v38 = vld [vmem:[%s16523_s3 + $0x10] sm:$0xf]  ;;  %v11187_v8 = vld [vmem:[%s16523_s3 + $0x84] sm:$0xf] }
 0x2e6   :  { %6504 = vmatpush.bf16.msrb.mxu2 %v10050_v28  ;;  %6473 = vmatmul.bf16.vlgmr.msra.gmra.mxu3 %v12798_v53  ;;  %v10122_v53 = vor.u32 %v11164_v1, %v10121_v5  ;;  %v9822_v14 = vor.u32 %v11089_v13, %v9821_v10  ;;  %v11107_v28 = vld [vmem:[%s16520_s1 + $0x1600] sm:$0xf0]  ;;  %v10073_v5 = vld [vmem:[%s16520_s1 + $0x1760] sm:$0xf]  ;;  %v11152_v1 = vld [vmem:[%s16520_s1 + $0x1768] sm:$0xf0]  ;;  %v9882_v10 = vor.u32 %v11104_v63, %v9881_v62 }
 0x2e7   :  { %6517 = vmatpush.bf16.msrb.mxu3 %v10146_v50  ;;  %v9978_v13 = vor.u32 %v11128_v7, %v9977_v0  ;;  %v10074_v2 = vor.u32 %v11152_v1, %v10073_v5  ;;  %v10173_v0 = vld [vmem:[%s16523_s3 + $0x30] sm:$0xf]  ;;  %v11178_v7 = vld [vmem:[%s16523_s3 + $0x34] sm:$0xf0] }
 0x2e8   :  { %6479 = vmatpush.bf16.msrb.mxu0 %v9846_v15  ;;  %v6253_v48 = vpop.f32.mrf.mxu2  ;;  %v6229_v57 = vpop.f32.mrf.mxu0  ;;  %v10237_v5 = vld [vmem:[%s16523_s3 + $0xb0] sm:$0xf] }
 0x2e9   :  { %6492 = vmatpush.bf16.msrb.mxu1 %v9942_v47  ;;  %v6254_v35 = vadd.f32 %v6253_v48, %v6241_v27  ;;  %v6266_v50 = vpop.f32.mrf.mxu3  ;;  %v6242_v37 = vpop.f32.mrf.mxu1  ;;  %v9894_v47 = vor.u32 %v11107_v28, %v9893_v39  ;;  %v9966_v27 = vor.u32 %v11125_v16, %v9965_v12  ;;  %v10202_v48 = vor.u32 %v11183_v58, %v10199_v23  ;;  %v10189_v28 = vld [vmem:[%s16523_s3 + $0x50] sm:$0xf]  ;;  %v10181_v57 = vld [vmem:[%s16523_s3 + $0x40] sm:$0xf]  ;;  %v11192_v16 = vld [vmem:[%s16523_s3 + $0xa4] sm:$0xf0] }
 0x2ea   :  { %6505 = vmatpush.bf16.msrb.mxu2 %v10038_v45  ;;  %v9990_v45 = vor.u32 %v11131_v61, %v9989_v31  ;;  %v11182_v31 = vld [vmem:[%s16523_s3 + $0x54] sm:$0xf0]  ;;  %v10253_v61 = vld [vmem:[%s16523_s3 + $0xd0] sm:$0xf]  ;;  %v11179_v37 = vld [vmem:[%s16523_s3 + $0x44] sm:$0xf] }
 0x2eb   :  { %6518 = vmatpush.bf16.msrb.mxu3 %v10134_v49  ;;  %v16103_v15 = vadd.f32 %v6266_v50, %v6254_v35  ;;  %v10086_v49 = vor.u32 %v11155_v56, %v10085_v52  ;;  %v11198_v35 = vld [vmem:[%s16523_s3 + $0xd4] sm:$0xf0]  ;;  %v11181_v50 = vld [vmem:[%s16523_s3 + $0x54] sm:$0xf]  ;;  %v10191_v52 = vld [vmem:[%s16523_s3 + $0x58] sm:$0xf0] }
 0x2ec   :  { %6480 = vmatpush.bf16.msrb.mxu0 %v9834_v29  ;;  %v9786_v29 = vor.u32 %v11080_v4, %v9785_v46  ;;  %v10194_v56 = vor.u32 %v11181_v50, %v10191_v52  ;;  %v10229_v12 = vld [vmem:[%s16523_s3 + $0xa0] sm:$0xf]  ;;  %v11188_v23 = vld [vmem:[%s16523_s3 + $0x84] sm:$0xf0]  ;;  %v6530_v50 = vmax.f32 %v13910_v3, 0.0 }
 0x2ed   :  { %6493 = vmatpush.bf16.msrb.mxu1 %v9930_v26  ;;  %v9773_v26 = vld [vmem:[%s16520_s1 + $0x1508] sm:$0xf]  ;;  %v10230_v21 = vor.u32 %v11192_v16, %v10229_v12  ;;  %v10213_v58 = vld [vmem:[%s16523_s3 + $0x80] sm:$0xf]  ;;  %v10223_v16 = vld [vmem:[%s16523_s3 + $0x98] sm:$0xf0] }
 0x2ee   :  { %6506 = vmatpush.bf16.msrb.mxu2 %v10026_v25  ;;  %v11077_v25 = vld [vmem:[%s16520_s1 + $0x1510] sm:$0xf0]  ;;  %v10214_v52 = vor.u32 %v11188_v23, %v10213_v58  ;;  %v10327_v58 = vld [vmem:[%s16523_s3 + $0x168] sm:$0xf0] }
 0x2ef   :  { %6519 = vmatpush.bf16.msrb.mxu3 %v10122_v53  ;;  %v11101_v53 = vld [vmem:[%s16520_s1 + $0x15d0] sm:$0xf0] }
 0x2f0   :  { %6481 = vmatpush.bf16.msrb.mxu0 %v9822_v14  ;;  %v6255_v9 = vpop.f32.mrf.mxu2  ;;  %v11186_v14 = vld [vmem:[%s16523_s3 + $0x74] sm:$0xf0] }
 0x2f1   :  { %6494 = vmatpush.bf16.msrb.mxu1 %v9918_v51  ;;  %v6268_v51 = vpop.f32.mrf.mxu3  ;;  %v10206_v19 = vor.u32 %v11186_v14, %v10205_v30 }
 0x2f2   :  { %6507 = vmatpush.bf16.msrb.mxu2 %v10014_v17  ;;  %v9774_v17 = vor.u32 %v11077_v25, %v9773_v26  ;;  %v10175_v26 = vld [vmem:[%s16523_s3 + $0x38] sm:$0xf0]  ;;  %v10174_v25 = vor.u32 %v11178_v7, %v10173_v0  ;;  %v11193_v0 = vld [vmem:[%s16523_s3 + $0xb4] sm:$0xf] }
 0x2f3   :  { %6520 = vmatpush.bf16.msrb.mxu3 %v10110_v55  ;;  %v9870_v55 = vor.u32 %v11101_v53, %v9869_v11  ;;  %v10165_v11 = vld [vmem:[%s16523_s3 + $0x20] sm:$0xf]  ;;  %v11176_v53 = vld [vmem:[%s16523_s3 + $0x24] sm:$0xf0]  ;;  %v10239_v7 = vld [vmem:[%s16523_s3 + $0xb8] sm:$0xf0] }
 0x2f4   :  { %6482 = vmatpush.bf16.msrb.mxu0 %v9810_v42  ;;  %v11184_v42 = vld [vmem:[%s16523_s3 + $0x64] sm:$0xf0]  ;;  %v10166_v33 = vor.u32 %v11176_v53, %v10165_v11 }
 0x2f5   :  { %6495 = vmatpush.bf16.msrb.mxu1 %v9906_v54  ;;  %v10261_v54 = vld [vmem:[%s16523_s3 + $0xe0] sm:$0xf]  ;;  %v10198_v39 = vor.u32 %v11184_v42, %v10197_v41 }
 0x2f6   :  { %6508 = vmatpush.bf16.msrb.mxu2 %v10002_v59  ;;  %v11200_v59 = vld [vmem:[%s16523_s3 + $0xe4] sm:$0xf0] }
 0x2f7   :  { %6521 = vmatpush.bf16.msrb.mxu3 %v10098_v40  ;;  %v10262_v40 = vor.u32 %v11200_v59, %v10261_v54  ;;  %v10149_v54 = vld [vmem:[%s16523_s3] sm:$0xf]  ;;  %v11172_v59 = vld [vmem:[%s16523_s3 + $0x4] sm:$0xf0] }
 0x2f8   :  { %6483 = vmatpush.bf16.msrb.mxu0 %v9798_v60  ;;  %v11180_v60 = vld [vmem:[%s16523_s3 + $0x44] sm:$0xf0] }
 0x2f9   :  { %6496 = vmatpush.bf16.msrb.mxu1 %v9894_v47  ;;  %v10183_v47 = vld [vmem:[%s16523_s3 + $0x48] sm:$0xf0]  ;;  %v10182_v4 = vor.u32 %v11180_v60, %v10181_v57  ;;  %v11199_v57 = vld [vmem:[%s16523_s3 + $0xe4] sm:$0xf] }
 0x2fa   :  { %6509 = vmatpush.bf16.msrb.mxu2 %v9990_v45  ;;  %v10186_v63 = vor.u32 %v11179_v37, %v10183_v47  ;;  %v10263_v60 = vld [vmem:[%s16523_s3 + $0xe8] sm:$0xf0]  ;;  %v10255_v37 = vld [vmem:[%s16523_s3 + $0xd8] sm:$0xf0] }
 0x2fb   :  { %6522 = vmatpush.bf16.msrb.mxu3 %v10086_v49 }
 0x2fc   :  { %6484 = vmatpush.bf16.msrb.mxu0 %v9786_v29  ;;  %v11177_v29 = vld [vmem:[%s16523_s3 + $0x34] sm:$0xf] }
 0x2fd   :  { %6497 = vmatpush.bf16.msrb.mxu1 %v9882_v10 }
 0x2fe   :  { %6510 = vmatpush.bf16.msrb.mxu2 %v9978_v13  ;;  %v10178_v13 = vor.u32 %v11177_v29, %v10175_v26  ;;  %v10231_v29 = vld [vmem:[%s16523_s3 + $0xa8] sm:$0xf0] }
 0x2ff   :  { %6523 = vmatpush.bf16.msrb.mxu3 %v10074_v2 }
 0x300   :  { %6485 = vmatpush.bf16.msrb.mxu0 %v9774_v17  ;;  %v6279_v45 = vpop.f32.mrf.mxu0 }
 0x301   :  { %6498 = vmatpush.bf16.msrb.mxu1 %v9870_v55  ;;  %v6280_v46 = vadd.f32 %v6279_v45, %v16103_v15  ;;  %v6292_v62 = vpop.f32.mrf.mxu1  ;;  %v11194_v15 = vld [vmem:[%s16523_s3 + $0xb4] sm:$0xf0]  ;;  %v11195_v45 = vld [vmem:[%s16523_s3 + $0xc4] sm:$0xf] }
 0x302   :  { %6511 = vmatpush.bf16.msrb.mxu2 %v9966_v27  ;;  %v10238_v10 = vor.u32 %v11194_v15, %v10237_v5  ;;  %v11174_v55 = vld [vmem:[%s16523_s3 + $0x14] sm:$0xf0]  ;;  %v10221_v27 = vld [vmem:[%s16523_s3 + $0x90] sm:$0xf]  ;;  %v11191_v15 = vld [vmem:[%s16523_s3 + $0xa4] sm:$0xf] }
 0x303   :  { %6524 = vmatpush.bf16.msrb.mxu3 %v10062_v32  ;;  %6486 = vmatmul.bf16.vlgmr.msrb.gmra.mxu0 %v12990_v24  ;;  %v10190_v24 = vor.u32 %v11182_v31, %v10189_v28  ;;  %v6293_v1 = vadd.f32 %v6292_v62, %v6280_v46  ;;  %v11190_v32 = vld [vmem:[%s16523_s3 + $0x94] sm:$0xf0]  ;;  %v11201_v28 = vld [vmem:[%s16523_s3 + $0xf4] sm:$0xf]  ;;  %v10271_v31 = vld [vmem:[%s16523_s3 + $0xf8] sm:$0xf0]  ;;  %v10234_v11 = vor.u32 %v11191_v15, %v10231_v29 }
 0x304   :  { %6830 = vmatpush.bf16.msra.mxu0 %v10206_v19  ;;  %6499 = vmatmul.bf16.vlgmr.msrb.gmra.mxu1 %v13003_v36  ;;  %v10254_v36 = vor.u32 %v11198_v35, %v10253_v61  ;;  %v11173_v19 = vld [vmem:[%s16523_s3 + $0x14] sm:$0xf]  ;;  %v10222_v41 = vor.u32 %v11190_v32, %v10221_v27  ;;  %v10150_v35 = vor.u32 %v11172_v59, %v10149_v54  ;;  %v10247_v46 = vld [vmem:[%s16523_s3 + $0xc8] sm:$0xf0]  ;;  %v11218_v27 = vld [vmem:[%s16523_s3 + $0x174] sm:$0xf0] }
 0x305   :  { %6843 = vmatpush.bf16.msra.mxu1 %v10270_v20  ;;  %6512 = vmatmul.bf16.vlgmr.msrb.gmra.mxu2 %v13001_v34  ;;  %v10245_v34 = vld [vmem:[%s16523_s3 + $0xc0] sm:$0xf]  ;;  %v10159_v20 = vld [vmem:[%s16523_s3 + $0x18] sm:$0xf0]  ;;  %v11217_v32 = vld [vmem:[%s16523_s3 + $0x174] sm:$0xf] }
 0x306   :  { %6525 = vmatmul.bf16.vlgmr.msrb.gmra.mxu3 %v13011_v43  ;;  %v11196_v43 = vld [vmem:[%s16523_s3 + $0xc4] sm:$0xf0]  ;;  %v10162_v42 = vor.u32 %v11173_v19, %v10159_v20  ;;  %v11215_v59 = vld [vmem:[%s16523_s3 + $0x164] sm:$0xf]  ;;  %v11206_v15 = vld [vmem:[%s16523_s3 + $0x114] sm:$0xf0] }
 0x307   :  { %6869 = vmatpush.bf16.msra.mxu3 %v10210_v22  ;;  %v10246_v49 = vor.u32 %v11196_v43, %v10245_v34  ;;  %v10158_v22 = vor.u32 %v11174_v55, %v10157_v38  ;;  %v6533_v34 = vpack.c.bf16 %v6530_v50, %v6530_v50  ;;  %v10266_v43 = vor.u32 %v11199_v57, %v10263_v60  ;;  %v10333_v55 = vld [vmem:[%s16523_s3 + $0x170] sm:$0xf]  ;;  %v10311_v57 = vld [vmem:[%s16523_s3 + $0x148] sm:$0xf0]  ;;  %v11205_v29 = vld [vmem:[%s16523_s3 + $0x114] sm:$0xf] }
 0x308   :  { %6831 = vmatpush.bf16.msra.mxu0 %v10198_v39  ;;  %v6305_v2 = vpop.f32.mrf.mxu2  ;;  %v6281_v14 = vpop.f32.mrf.mxu0  ;;  %v11171_v39 = vld [vmem:[%s16523_s3 + $0x4] sm:$0xf]  ;;  %v10334_v20 = vor.u32 %v11218_v27, %v10333_v55 }
 0x309   :  { %6844 = vmatpush.bf16.msra.mxu1 %v10262_v40  ;;  %v6306_v9 = vadd.f32 %v6305_v2, %v6293_v1  ;;  %v6318_v30 = vpop.f32.mrf.mxu3  ;;  %v6294_v51 = vpop.f32.mrf.mxu1  ;;  %v10151_v40 = vld [vmem:[%s16523_s3 + $0x8] sm:$0xf0]  ;;  %v10242_v1 = vor.u32 %v11193_v0, %v10239_v7  ;;  %v11189_v2 = vld [vmem:[%s16523_s3 + $0x94] sm:$0xf] }
 0x30a   :  { %v10226_v6 = vor.u32 %v11189_v2, %v10223_v16  ;;  %6856 = vmatpush.bf16.msra.mxu2 %v10334_v20  ;;  %v10295_v7 = vld [vmem:[%s16523_s3 + $0x128] sm:$0xf0]  ;;  %v10277_v16 = vld [vmem:[%s16523_s3 + $0x100] sm:$0xf] }
 0x30b   :  { %6870 = vmatpush.bf16.msra.mxu3 %v10202_v48  ;;  %v6319_v17 = vadd.f32 %v6318_v30, %v6306_v9  ;;  %v10215_v9 = vld [vmem:[%s16523_s3 + $0x88] sm:$0xf0] }
 0x30c   :  { %6832 = vmatpush.bf16.msra.mxu0 %v10190_v24  ;;  %v10154_v24 = vor.u32 %v11171_v39, %v10151_v40  ;;  %v10330_v39 = vor.u32 %v11215_v59, %v10327_v58  ;;  %v10317_v40 = vld [vmem:[%s16523_s3 + $0x150] sm:$0xf] }
 0x30d   :  { %6845 = vmatpush.bf16.msra.mxu1 %v10254_v36  ;;  %v6531_v36 = vmax.f32 %v15504_v44, 0.0  ;;  %v11197_v44 = vld [vmem:[%s16523_s3 + $0xd4] sm:$0xf] }
 0x30e   :  { %v10258_v47 = vor.u32 %v11197_v44, %v10255_v37  ;;  %v11209_v44 = vld [vmem:[%s16523_s3 + $0x134] sm:$0xf] }
 0x30f   :  { %6871 = vmatpush.bf16.msra.mxu3 %v10194_v56  ;;  %v10274_v56 = vor.u32 %v11201_v28, %v10271_v31  ;;  %v6534_v3 = vpack.c.bf16 %v6531_v36, %v6531_v36  ;;  %v11213_v28 = vld [vmem:[%s16523_s3 + $0x154] sm:$0xf]  ;;  %v11212_v36 = vld [vmem:[%s16523_s3 + $0x144] sm:$0xf0] }
 0x310   :  { %6833 = vmatpush.bf16.msra.mxu0 %v10182_v4  ;;  %v6307_v48 = vpop.f32.mrf.mxu2 }
 0x311   :  { %6846 = vmatpush.bf16.msra.mxu1 %v10246_v49  ;;  %v6320_v61 = vpop.f32.mrf.mxu3  ;;  %v10250_v49 = vor.u32 %v11195_v45, %v10247_v46  ;;  %v11214_v48 = vld [vmem:[%s16523_s3 + $0x154] sm:$0xf0] }
 0x312   :  { %v10318_v61 = vor.u32 %v11214_v48, %v10317_v40 }
 0x313   :  { %6872 = vmatpush.bf16.msra.mxu3 %v10186_v63 }
 0x314   :  { %6834 = vmatpush.bf16.msra.mxu0 %v10174_v25 }
 0x315   :  { %6847 = vmatpush.bf16.msra.mxu1 %v10238_v10 }
 0x317   :  { %6873 = vmatpush.bf16.msra.mxu3 %v10178_v13 }
 0x318   :  { %6835 = vmatpush.bf16.msra.mxu0 %v10166_v33  ;;  %v10218_v33 = vor.u32 %v11187_v8, %v10215_v9  ;;  %v11203_v8 = vld [vmem:[%s16523_s3 + $0x104] sm:$0xf] }
 0x319   :  { %6848 = vmatpush.bf16.msra.mxu1 %v10230_v21 }
 0x31b   :  { %6874 = vmatpush.bf16.msra.mxu3 %v10170_v18 }
 0x31c   :  { %6836 = vmatpush.bf16.msra.mxu0 %v10158_v22  ;;  %v10335_v22 = vld [vmem:[%s16523_s3 + $0x178] sm:$0xf0] }
 0x31d   :  { %6849 = vmatpush.bf16.msra.mxu1 %v10222_v41  ;;  %v10325_v41 = vld [vmem:[%s16523_s3 + $0x160] sm:$0xf]  ;;  %v10338_v54 = vor.u32 %v11217_v32, %v10335_v22 }
 0x31f   :  { %6875 = vmatpush.bf16.msra.mxu3 %v10162_v42  ;;  %v11216_v42 = vld [vmem:[%s16523_s3 + $0x164] sm:$0xf0] }
 0x320   :  { %6837 = vmatpush.bf16.msra.mxu0 %v10150_v35  ;;  %v6331_v4 = vpop.f32.mrf.mxu0  ;;  %v10326_v23 = vor.u32 %v11216_v42, %v10325_v41  ;;  %v10319_v35 = vld [vmem:[%s16523_s3 + $0x158] sm:$0xf0] }
 0x321   :  { %6850 = vmatpush.bf16.msra.mxu1 %v10214_v52  ;;  %v6332_v62 = vadd.f32 %v6331_v4, %v6319_v17  ;;  %v6344_v63 = vpop.f32.mrf.mxu1  ;;  %v10322_v52 = vor.u32 %v11213_v28, %v10319_v35  ;;  %v10293_v4 = vld [vmem:[%s16523_s3 + $0x120] sm:$0xf] }
 0x322   :  { %6857 = vmatpush.bf16.msra.mxu2 %v10326_v23 }
 0x323   :  { %6876 = vmatpush.bf16.msra.mxu3 %v10154_v24  ;;  %6838 = vmatmul.bf16.vlgmr.msra.gmra.mxu0 %v6533_v34  ;;  %v6345_v5 = vadd.f32 %v6344_v63, %v6332_v62  ;;  %v10309_v24 = vld [vmem:[%s16523_s3 + $0x140] sm:$0xf]  ;;  %v11208_v62 = vld [vmem:[%s16523_s3 + $0x124] sm:$0xf0] }
 0x324   :  { %6882 = vmatpush.bf16.msrb.mxu0 %v10274_v56  ;;  %6851 = vmatmul.bf16.vlgmr.msra.gmra.mxu1 %v6534_v3  ;;  %v11211_v56 = vld [vmem:[%s16523_s3 + $0x144] sm:$0xf]  ;;  %v10310_v60 = vor.u32 %v11212_v36, %v10309_v24  ;;  %v10294_v0 = vor.u32 %v11208_v62, %v10293_v4  ;;  %v11230_v62 = vld [vmem:[%s16525_s5 + $0x58] sm:$0xff] }
 0x325   :  { %6895 = vmatpush.bf16.msrb.mxu1 %v10338_v54  ;;  %v11223_v4 = vld [vmem:[%s16525_s5 + $0x20] sm:$0xff] }
 0x326   :  { %6877 = vmatmul.bf16.vlgmr.msra.gmra.mxu3 %v6533_v34  ;;  %6858 = vmatpush.bf16.msra.mxu2 %v10318_v61  ;;  %v10314_v34 = vor.u32 %v11211_v56, %v10311_v57  ;;  %v11234_v56 = vld [vmem:[%s16525_s5 + $0x78] sm:$0xff] }
 0x327   :  { %v11226_v57 = vld [vmem:[%s16525_s5 + $0x38] sm:$0xff]  ;;  %7057 = vmatpush.bf16.msrb.mxu3 %v11234_v56 }
 0x328   :  { %6883 = vmatpush.bf16.msrb.mxu0 %v10266_v43  ;;  %v6357_v26 = vpop.f32.mrf.mxu2  ;;  %v6333_v13 = vpop.f32.mrf.mxu0  ;;  %v11210_v43 = vld [vmem:[%s16523_s3 + $0x134] sm:$0xf0] }
 0x329   :  { %v6358_v25 = vadd.f32 %v6357_v26, %v6345_v5  ;;  %v6370_v10 = vpop.f32.mrf.mxu3  ;;  %v6346_v53 = vpop.f32.mrf.mxu1  ;;  %6896 = vmatpush.bf16.msrb.mxu1 %v10330_v39 }
 0x32a   :  { %6859 = vmatpush.bf16.msra.mxu2 %v10310_v60 }
 0x32b   :  { %v16340_v12 = vadd.f32 %v6370_v10, %v6358_v25  ;;  %v10287_v25 = vld [vmem:[%s16523_s3 + $0x118] sm:$0xf0] }
 0x32c   :  { %6884 = vmatpush.bf16.msrb.mxu0 %v10258_v47  ;;  %v10303_v47 = vld [vmem:[%s16523_s3 + $0x138] sm:$0xf0]  ;;  %v10290_v10 = vor.u32 %v11205_v29, %v10287_v25  ;;  %v11228_v29 = vld [vmem:[%s16525_s5 + $0x48] sm:$0xff]  ;;  %v11227_v25 = vld [vmem:[%s16525_s5 + $0x40] sm:$0xff] }
 0x32d   :  { %6897 = vmatpush.bf16.msrb.mxu1 %v10322_v52  ;;  %v10306_v45 = vor.u32 %v11209_v44, %v10303_v47  ;;  %v11224_v47 = vld [vmem:[%s16525_s5 + $0x28] sm:$0xff] }
 0x330   :  { %6885 = vmatpush.bf16.msrb.mxu0 %v10250_v49  ;;  %v6359_v30 = vpop.f32.mrf.mxu2  ;;  %v11207_v49 = vld [vmem:[%s16523_s3 + $0x124] sm:$0xf] }
 0x331   :  { %v6372_v14 = vpop.f32.mrf.mxu3  ;;  %6898 = vmatpush.bf16.msrb.mxu1 %v10314_v34  ;;  %v10298_v5 = vor.u32 %v11207_v49, %v10295_v7  ;;  %v11222_v49 = vld [vmem:[%s16525_s5 + $0x18] sm:$0xff] }
 0x334   :  { %6886 = vmatpush.bf16.msrb.mxu0 %v10242_v1  ;;  %v10285_v1 = vld [vmem:[%s16523_s3 + $0x110] sm:$0xf] }
 0x335   :  { %6899 = vmatpush.bf16.msrb.mxu1 %v10306_v45  ;;  %v10286_v26 = vor.u32 %v11206_v15, %v10285_v1 }
 0x338   :  { %6887 = vmatpush.bf16.msrb.mxu0 %v10234_v11 }
 0x339   :  { %6900 = vmatpush.bf16.msrb.mxu1 %v10298_v5 }
 0x33c   :  { %6888 = vmatpush.bf16.msrb.mxu0 %v10226_v6  ;;  %v11204_v6 = vld [vmem:[%s16523_s3 + $0x104] sm:$0xf0] }
 0x33d   :  { %6901 = vmatpush.bf16.msrb.mxu1 %v10290_v10  ;;  %v10278_v30 = vor.u32 %v11204_v6, %v10277_v16  ;;  %v11220_v10 = vld [vmem:[%s16525_s5 + $0x8] sm:$0xff] }
 0x340   :  { %6889 = vmatpush.bf16.msrb.mxu0 %v10218_v33  ;;  %v16354_v51 = vpop.f32.mrf.mxu0 }
 0x341   :  { %v16356_v17 = vpop.f32.mrf.mxu1  ;;  %v6384_v11 = vadd.f32 %v16354_v51, %v16340_v12  ;;  %v10279_v12 = vld [vmem:[%s16523_s3 + $0x108] sm:$0xf0] }
 0x342   :  { %v10282_v14 = vor.u32 %v11203_v8, %v10279_v12 }
 0x343   :  { %6890 = vmatmul.bf16.vlgmr.msrb.gmra.mxu0 %v6534_v3  ;;  %v10301_v3 = vld [vmem:[%s16523_s3 + $0x130] sm:$0xf]  ;;  %v6397_v33 = vadd.f32 %v16356_v17, %v6384_v11 }
 0x344   :  { %v10302_v37 = vor.u32 %v11210_v43, %v10301_v3  ;;  %6902 = vmatpush.bf16.msrb.mxu1 %v10282_v14  ;;  %v11233_v3 = vld [vmem:[%s16525_s5 + $0x70] sm:$0xff] }
 0x345   :  { %v11225_v43 = vld [vmem:[%s16525_s5 + $0x30] sm:$0xff]  ;;  %7058 = vmatpush.bf16.msrb.mxu3 %v11233_v3 }
 0x346   :  { %6860 = vmatpush.bf16.msra.mxu2 %v10302_v37  ;;  %v11232_v37 = vld [vmem:[%s16525_s5 + $0x68] sm:$0xff] }
 0x348   :  { %v16358_v21 = vpop.f32.mrf.mxu2  ;;  %v6385_v38 = vpop.f32.mrf.mxu0 }
 0x349   :  { %v16360_v18 = vpop.f32.mrf.mxu3  ;;  %v6398_v19 = vpop.f32.mrf.mxu1  ;;  %v6410_v51 = vadd.f32 %v16358_v21, %v6397_v33  ;;  %7059 = vmatpush.bf16.msrb.mxu3 %v11232_v37 }
 0x34a   :  { %6861 = vmatpush.bf16.msra.mxu2 %v10294_v0 }
 0x34b   :  { %v6423_v27 = vadd.f32 %v16360_v18, %v6410_v51  ;;  %v6584_v18 = vld [vmem:[%s16524_s4] sm:$0x3] }
 0x34c   :  { %v6586_v35 = vperm.slane %v6584_v18, 0  ;;  %v6587_v0 = vperm.slane %v6584_v18, 1  ;;  %v11235_v51 = vld [vmem:[%s16526_s6] ss:$0 sm:$0xff] }
 0x34e   :  { %6862 = vmatpush.bf16.msra.mxu2 %v10286_v26  ;;  %v11221_v26 = vld [vmem:[%s16525_s5 + $0x10] sm:$0xff] }
 0x350   :  { %v6411_v31 = vpop.f32.mrf.mxu2 }
 0x351   :  { %v6424_v50 = vpop.f32.mrf.mxu3 }
 0x352   :  { %6863 = vmatpush.bf16.msra.mxu2 %v10278_v30 }
 0x356   :  { %7044 = vmatpush.bf16.msrb.mxu2 %v11226_v57 }
 0x35a   :  { %7045 = vmatpush.bf16.msrb.mxu2 %v11225_v43 }
 0x35e   :  { %7046 = vmatpush.bf16.msrb.mxu2 %v11224_v47 }
 0x360   :  { %v6435_v46 = vpop.f32.mrf.mxu0 }
 0x361   :  { %v6448_v63 = vpop.f32.mrf.mxu1  ;;  %v6436_v32 = vadd.f32 %v6435_v46, %v6423_v27  ;;  %v11231_v46 = vld [vmem:[%s16525_s5 + $0x60] sm:$0xff] }
 0x362   :  { %7060 = vmatpush.bf16.msrb.mxu3 %v11231_v46  ;;  %7047 = vmatpush.bf16.msrb.mxu2 %v11223_v4 }
 0x363   :  { %v6449_v19 = vadd.f32 %v6448_v63, %v6436_v32  ;;  %v11229_v63 = vld [vmem:[%s16525_s5 + $0x50] sm:$0xff] }
 0x366   :  { %7061 = vmatpush.bf16.msrb.mxu3 %v11230_v62  ;;  %7048 = vmatpush.bf16.msrb.mxu2 %v11222_v49 }
 0x368   :  { %v6461_v13 = vpop.f32.mrf.mxu2  ;;  %v6437_v2 = vpop.f32.mrf.mxu0 }
 0x369   :  { %v6474_v53 = vpop.f32.mrf.mxu3  ;;  %v6450_v9 = vpop.f32.mrf.mxu1  ;;  %v6462_v20 = vadd.f32 %v6461_v13, %v6449_v19  ;;  %v11219_v13 = vld [vmem:[%s16525_s5] sm:$0xff] }
 0x36a   :  { %7062 = vmatpush.bf16.msrb.mxu3 %v11229_v63  ;;  %7049 = vmatpush.bf16.msrb.mxu2 %v11221_v26 }
 0x36b   :  { %v6475_v22 = vadd.f32 %v6474_v53, %v6462_v20 }
 0x36e   :  { %7063 = vmatpush.bf16.msrb.mxu3 %v11228_v29  ;;  %7050 = vmatpush.bf16.msrb.mxu2 %v11220_v10 }
 0x370   :  { %v6463_v38 = vpop.f32.mrf.mxu2 }
 0x371   :  { %v6476_v55 = vpop.f32.mrf.mxu3 }
 0x372   :  { %7064 = vmatpush.bf16.msrb.mxu3 %v11227_v25  ;;  %7051 = vmatpush.bf16.msrb.mxu2 %v11219_v13 }
 0x380   :  { %v6487_v41 = vpop.f32.mrf.mxu0 }
 0x381   :  { %v6500_v42 = vpop.f32.mrf.mxu1  ;;  %v6488_v54 = vadd.f32 %v6487_v41, %v6475_v22 }
 0x383   :  { %v6501_v59 = vadd.f32 %v6500_v42, %v6488_v54 }
 0x388   :  { %v6513_v58 = vpop.f32.mrf.mxu2  ;;  %v6489_v40 = vpop.f32.mrf.mxu0 }
 0x389   :  { %v6526_v23 = vpop.f32.mrf.mxu3  ;;  %v6514_v39 = vadd.f32 %v6513_v58, %v6501_v59  ;;  %v6502_v17 = vpop.f32.mrf.mxu1 }
 0x38b   :  { %v6527_v48 = vadd.f32 %v6526_v23, %v6514_v39 }
 0x38d   :  { %v6532_v28 = vmax.f32 %v6527_v48, 0.0 }
 0x38f   :  { %v6535_v21 = vpack.c.bf16 %v6532_v28, %v6532_v28 }
 0x390   :  { %v6515_v31 = vpop.f32.mrf.mxu2 }
 0x391   :  { %v6528_v61 = vpop.f32.mrf.mxu3  ;;  %6864 = vmatmul.bf16.vlgmr.msra.gmra.mxu2 %v6535_v21  ;;  %6903 = vmatmul.bf16.vlgmr.msrb.gmra.mxu1 %v6535_v21 }
 0x3a0   :  { %v6839_v50 = vpop.f32.mrf.mxu0 }
 0x3a1   :  { %v6840_v52 = vadd.f32 %v6839_v50, %v6586_v35  ;;  %v6852_v24 = vpop.f32.mrf.mxu1 }
 0x3a3   :  { %v6853_v36 = vadd.f32 %v6852_v24, %v6840_v52 }
 0x3a8   :  { %v6841_v34 = vpop.f32.mrf.mxu0 }
 0x3a9   :  { %v6878_v60 = vpop.f32.mrf.mxu3  ;;  %v6854_v44 = vpop.f32.mrf.mxu1 }
 0x3aa   :  { %v6879_v7 = vadd.f32 %v6878_v60, %v6587_v0 }
 0x3b1   :  { %v6880_v45 = vpop.f32.mrf.mxu3 }
 0x3c0   :  { %v6891_v5 = vpop.f32.mrf.mxu0 }
 0x3c1   :  { %v6892_v1 = vadd.f32 %v6891_v5, %v6879_v7 }
 0x3c8   :  { %v6893_v15 = vpop.f32.mrf.mxu0 }
 0x40e   :  { %v6904_v11 = vpop.f32.mrf.mxu1 }
 0x40f   :  { %v6905_v53 = vadd.f32 %v6904_v11, %v6892_v1 }
 0x411   :  { %v6909_v2 = vmax.f32 %v6905_v53, 0.0 }
 0x413   :  { %v6911_v16 = vpack.c.bf16 %v6909_v2, %v6909_v2 }
 0x414   :  { %v6865_v6 = vpop.f32.mrf.mxu2 }
 0x415   :  { %v6866_v8 = vadd.f32 %v6865_v6, %v6853_v36  ;;  %7065 = vmatmul.bf16.vlgmr.msrb.gmra.mxu3 %v6911_v16 }
 0x416   :  { %v6906_v9 = vpop.f32.mrf.mxu1 }
 0x417   :  { %v6908_v30 = vmax.f32 %v6866_v8, 0.0 }
 0x419   :  { %v6910_v12 = vpack.c.bf16 %v6908_v30, %v6908_v30 }
 0x41b   :  { %7052 = vmatmul.bf16.vlgmr.msrb.gmra.mxu2 %v6910_v12 }
 0x41c   :  { %v6867_v14 = vpop.f32.mrf.mxu2 }
 0x498   :  { %v7066_v33 = vpop.f32.mrf.mxu3 }
 0x49e   :  { %v7053_v38 = vpop.f32.mrf.mxu2 }
 0x49f   :  { %v7054_v55 = vadd.f32 %v11235_v51, %v7053_v38 }
 0x4a0   :  { %v7068_v27 = vpop.f32.mrf.mxu3 }
 0x4a1   :  { %v7067_v32 = vadd.f32 %v7066_v33, %v7054_v55 }
 0x4a3   :  { %7070 = vst [vmem:[%s16527_s7] sm:$0xff] %v7067_v32 }
 0x4a6   :  { %v7055_v19 = vpop.f32.mrf.mxu2 }

</bundles_post_ra>
